<compile_context>
chip_gen: v7x
topology: tpu7x:2x2x1
jax: 0.10.0
libtpu: 0.0.40
codegen_flags: <defaults>
</compile_context>

<pallas_src>
import functools
import math

import jax
import jax.numpy as jnp
from jax.experimental import pallas as pl
from jax.experimental.pallas import tpu as pltpu

BN_EPS = 1e-5
BN_SCALE = 1.0 / math.sqrt(1.0 + BN_EPS)   # fresh eval-mode BN folded to scale


def _round_up(x, m):
    return (x + m - 1) // m * m


@functools.lru_cache(maxsize=None)
def _vmem_limit_bytes():
    # v5e/v6e: 128 MiB physical VMEM -> 64 MiB scoped; v7x: 64 MiB -> 32 MiB.
    try:
        cap = int(pltpu.get_tpu_info().vmem_capacity_bytes)
    except Exception:
        return 32 * 1024 * 1024
    return int(min(64 * 1024 * 1024, max(32 * 1024 * 1024, cap // 2)))


# --------------------------------------------------------------------------
# Pallas kernels
# --------------------------------------------------------------------------

def _mm_kernel(*refs, apply_relu, has_residual):
    """o = [relu]( A @ B [+ residual] ) with bf16 operands / f32 accumulation.

    The reduction dim is never gridded for this model (K <= 4096), so there is
    no accumulator scratch and no pl.when init/finalize.
    """
    if has_residual:
        a_ref, b_ref, r_ref, o_ref = refs
    else:
        a_ref, b_ref, o_ref = refs
        r_ref = None
    y = jnp.dot(a_ref[...], b_ref[...], preferred_element_type=jnp.float32)
    if has_residual:
        y = y + r_ref[...].astype(jnp.float32)
    if apply_relu:
        y = jnp.maximum(y, 0.0)
    o_ref[...] = y.astype(o_ref.dtype)


@functools.lru_cache(maxsize=None)
def _get_matmul_fn(Mp, K, N, tm, tn, apply_relu, has_residual, out_dtype_name):
    out_dtype = jnp.dtype(out_dtype_name)
    kernel = functools.partial(_mm_kernel, apply_relu=apply_relu,
                               has_residual=has_residual)
    in_specs = [pl.BlockSpec((tm, K), lambda i, j: (i, 0)),
                pl.BlockSpec((K, tn), lambda i, j: (0, j))]
    if has_residual:
        in_specs.append(pl.BlockSpec((tm, tn), lambda i, j: (i, j)))
    return pl.pallas_call(
        kernel,
        out_shape=jax.ShapeDtypeStruct((Mp, N), out_dtype),
        grid_spec=pltpu.PrefetchScalarGridSpec(
            num_scalar_prefetch=0,
            grid=(Mp // tm, N // tn),
            in_specs=in_specs,
            out_specs=pl.BlockSpec((tm, tn), lambda i, j: (i, j)),
        ),
        compiler_params=pltpu.CompilerParams(
            dimension_semantics=("parallel", "parallel"),
            vmem_limit_bytes=_vmem_limit_bytes()),
    )


def matmul_fused(a, b, residual=None, *, apply_relu, out_dtype=jnp.bfloat16):
    """a:(M,K) @ b:(K,N) with fused residual add / ReLU; single K grid step."""
    M, K = a.shape
    Kb, N = b.shape
    assert K == Kb
    assert N <= 128 or N % 128 == 0, "prep weights with 128-aligned Cout"
    # TODO(synk): add a K-tiled accumulator path for K > 4096 (layer3/layer4).
    assert K <= 4096, "K-collapsed matmul only (covers conv1/layer1/layer2)"
    Mp = _round_up(M, 16)                       # bf16 packs 16 rows per vreg
    tm = min(Mp, 512 if K <= 2048 else 256)
    Mp = _round_up(Mp, tm)
    tn = N if N <= 128 else (256 if N % 256 == 0 else 128)
    if Mp != M:
        a = jnp.pad(a, ((0, Mp - M), (0, 0)))
        if residual is not None:
            residual = jnp.pad(residual, ((0, Mp - M), (0, 0)))
    fn = _get_matmul_fn(Mp, K, N, tm, tn, bool(apply_relu),
                        residual is not None, jnp.dtype(out_dtype).name)
    args = (a, b) if residual is None else (a, b, residual)
    out = fn(*args)
    return out[:M] if Mp != M else out


def _maxpool_dh_kernel(y_ref, o_ref, *, Do, Ho):
    """D- and H-axis max-of-3 / stride-2 pooling, one sample VMEM-resident."""
    y = y_ref[0]                                           # (Dp, Hp, Wo, C)
    d_rows = []
    for od in range(Do):
        w = jnp.maximum(jnp.maximum(y[2 * od], y[2 * od + 1]), y[2 * od + 2])
        h_rows = [jnp.maximum(jnp.maximum(w[2 * oh], w[2 * oh + 1]),
                              w[2 * oh + 2]) for oh in range(Ho)]
        d_rows.append(jnp.stack(h_rows, axis=0))           # (Ho, Wo, C)
    o_ref[0] = jnp.stack(d_rows, axis=0)                   # (Do, Ho, Wo, C)


@functools.lru_cache(maxsize=None)
def _get_maxpool_fn(N, Dp, Hp, Wo, C, Do, Ho, dtype_name):
    dtype = jnp.dtype(dtype_name)
    kernel = functools.partial(_maxpool_dh_kernel, Do=Do, Ho=Ho)
    return pl.pallas_call(
        kernel,
        out_shape=jax.ShapeDtypeStruct((N, Do, Ho, Wo, C), dtype),
        grid_spec=pltpu.PrefetchScalarGridSpec(
            num_scalar_prefetch=0,
            grid=(N,),
            in_specs=[pl.BlockSpec((1, Dp, Hp, Wo, C),
                                   lambda n: (n, 0, 0, 0, 0))],
            out_specs=pl.BlockSpec((1, Do, Ho, Wo, C),
                                   lambda n: (n, 0, 0, 0, 0)),
        ),
        compiler_params=pltpu.CompilerParams(
            dimension_semantics=("parallel",),
            vmem_limit_bytes=_vmem_limit_bytes()),
    )


def maxpool3d(x):
    """MaxPool3d(kernel=3, stride=2, padding=1) on an NDHWC tensor."""
    N, D, H, W, C = x.shape
    Do, Ho, Wo = (D - 1) // 2 + 1, (H - 1) // 2 + 1, (W - 1) // 2 + 1
    xp = jnp.pad(x, ((0, 0), (1, 1), (1, 1), (1, 1), (0, 0)),
                 constant_values=-jnp.inf)
    # W (the sublane axis) is pooled by one fused XLA max over three strided
    # views; D and H are pooled inside the Pallas kernel.
    # TODO(synk): pull the W pass in-kernel too (strided sublane ref loads).
    y = jnp.maximum(jnp.maximum(xp[:, :, :, 0:2 * Wo:2, :],
                                xp[:, :, :, 1:2 * Wo:2, :]),
                    xp[:, :, :, 2:2 * Wo + 2:2, :])
    Dp, Hp = xp.shape[1], xp.shape[2]
    fn = _get_maxpool_fn(N, Dp, Hp, Wo, C, Do, Ho, jnp.dtype(x.dtype).name)
    return fn(y)


def _head_kernel(x_ref, w_ref, o_ref):
    # AdaptiveAvgPool3d(1) + Flatten + Linear(128, out, bias=False), fused.
    feat = jnp.mean(x_ref[...].astype(jnp.float32), axis=1)      # (N, C)
    o_ref[...] = jnp.dot(feat, w_ref[...], preferred_element_type=jnp.float32)


@functools.lru_cache(maxsize=None)
def _get_head_fn(N, S, C, NP):
    del S, C
    return pl.pallas_call(
        _head_kernel,
        out_shape=jax.ShapeDtypeStruct((N, NP), jnp.float32),
        compiler_params=pltpu.CompilerParams(
            vmem_limit_bytes=_vmem_limit_bytes()),
    )


def _head(x, fc):
    """AdaptiveAvgPool3d(1) + Flatten + Linear; fc is (128, out_size) f32."""
    N, C = x.shape[0], x.shape[-1]
    S = x.shape[1] * x.shape[2] * x.shape[3]
    out_size = fc.shape[1]
    xr = x.reshape(N, S, C)
    if N * S * C * xr.dtype.itemsize > 4 * 1024 * 1024:
        # Large spatial inputs: plain-XLA reduction (a few kFLOPs of work).
        feat = jnp.mean(xr.astype(jnp.float32), axis=1)
        return feat @ fc
    NP = max(128, out_size)                      # lane-dense output store
    fc_p = jnp.pad(fc, ((0, 0), (0, NP - out_size))) if NP != out_size else fc
    logits = _get_head_fn(N, S, C, NP)(xr, fc_p)
    return logits[:, :out_size] if NP != out_size else logits


# --------------------------------------------------------------------------
# JAX glue: im2col conv wrapper (NDHWC), bottleneck, forward
# --------------------------------------------------------------------------

def conv3d_bn(x, wmat, *, k, stride, padding, apply_relu, residual=None):
    """NDHWC Conv3d + folded eval-mode BN (+ fused residual add / ReLU).

    x: (N, D, H, W, Cin) bf16.  wmat: (K, Cout) bf16 prepped weight matrix,
    K = round128(k^3*Cin) (zero-row padded) for k>1, K = Cin for k==1.
    """
    N, D, H, W, C = x.shape
    Cout = wmat.shape[1]
    if k == 1:
        assert padding == 0 and wmat.shape[0] == C
        if stride > 1:
            x = x[:, ::stride, ::stride, ::stride, :]
        Do, Ho, Wo = x.shape[1], x.shape[2], x.shape[3]
        patches = x.reshape(N * Do * Ho * Wo, C)
    else:
        if padding > 0:
            x = jnp.pad(x, ((0, 0), (padding,) * 2, (padding,) * 2,
                            (padding,) * 2, (0, 0)))
        Dp, Hp, Wp = x.shape[1], x.shape[2], x.shape[3]
        Do = (Dp - k) // stride + 1
        Ho = (Hp - k) // stride + 1
        Wo = (Wp - k) // stride + 1
        # channels-last im2col: slices + one concat; column order (kd,kh,kw,c)
        # matches the weight prep.  The trailing zero block pads K up to the
        # 128-aligned weight K inside the same concat (no extra pad pass).
        # TODO(synk): in-kernel patch gather over the 27 offsets instead.
        slices = []
        for kd in range(k):
            for kh in range(k):
                for kw in range(k):
                    slices.append(
                        x[:, kd:kd + stride * (Do - 1) + 1:stride,
                             kh:kh + stride * (Ho - 1) + 1:stride,
                             kw:kw + stride * (Wo - 1) + 1:stride, :])
        K = wmat.shape[0]
        K_raw = C * k * k * k
        if K > K_raw:
            slices.append(jnp.zeros((N, Do, Ho, Wo, K - K_raw), x.dtype))
        patches = jnp.concatenate(slices, axis=-1).reshape(N * Do * Ho * Wo, K)
    res = None if residual is None else residual.reshape(-1, Cout)
    out = matmul_fused(patches.astype(jnp.bfloat16), wmat, res,
                       apply_relu=apply_relu)
    return out.reshape(N, Do, Ho, Wo, Cout)


def _bottleneck(x, blk, stride):
    out = conv3d_bn(x, blk["conv1"], k=1, stride=1, padding=0, apply_relu=True)
    out = conv3d_bn(out, blk["conv2"], k=3, stride=stride, padding=1,
                    apply_relu=True)
    if "down" in blk:
        identity = conv3d_bn(x, blk["down"], k=1, stride=stride, padding=0,
                             apply_relu=False)
    else:
        identity = x
    # conv3 + BN with residual add and final ReLU fused into the epilogue.
    return conv3d_bn(out, blk["conv3"], k=1, stride=1, padding=0,
                     apply_relu=True, residual=identity)


@jax.jit
def cnn_forward(x, params):
    # x: (N, C, D, H, W) float32 (PyTorch layout) -> NDHWC bf16 activations.
    x = jnp.transpose(x, (0, 2, 3, 4, 1)).astype(jnp.bfloat16)
    # backbone[:6]: conv1 -> bn1 -> relu -> maxpool -> layer1 -> layer2
    x = conv3d_bn(x, params["conv1"], k=7, stride=2, padding=3,
                  apply_relu=True)
    x = maxpool3d(x)
    for blk in params["layer1"]:
        x = _bottleneck(x, blk, stride=1)
    for bi, blk in enumerate(params["layer2"]):
        x = _bottleneck(x, blk, stride=2 if bi == 0 else 1)
    # features_add_ons + fc
    x = conv3d_bn(x, params["addon1"], k=1, stride=1, padding=0,
                  apply_relu=True)
    x = conv3d_bn(x, params["addon2"], k=1, stride=1, padding=0,
                  apply_relu=True)
    return _head(x, params["fc"])


# --------------------------------------------------------------------------
# Parameters (kaiming_normal fan_out like init_conv) and one-time prep
# --------------------------------------------------------------------------

def _kaiming_conv(key, cout, cin, k):
    fan_out = cout * k * k * k
    std = math.sqrt(2.0 / fan_out)
    return std * jax.random.normal(key, (cout, cin, k, k, k), jnp.float32)


def _make_layer(keys, inplanes, planes, blocks, stride):
    expansion = 4
    layer = []
    for b in range(blocks):
        s = stride if b == 0 else 1
        inp = inplanes if b == 0 else planes * expansion
        blk = {
            "conv1": _kaiming_conv(next(keys), planes, inp, 1),
            "conv2": _kaiming_conv(next(keys), planes, planes, 3),
            "conv3": _kaiming_conv(next(keys), planes * expansion, planes, 1),
        }
        if b == 0 and (s != 1 or inp != planes * expansion):
            blk["down"] = _kaiming_conv(next(keys), planes * expansion, inp, 1)
        layer.append(blk)
    return layer


def init_params(key, in_channels=4, out_size=2):
    keys = iter(jax.random.split(key, 64))
    params = {}
    # conv1: Conv3d(in_channels, 64, 7, stride=2, padding=3, bias=False)
    params["conv1"] = _kaiming_conv(next(keys), 64, in_channels, 7)
    # resnet152 truncated: layer1 (3 bottlenecks, planes=64),
    #                      layer2 (8 bottlenecks, planes=128, stride 2)
    params["layer1"] = _make_layer(keys, 64, 64, 3, 1)
    params["layer2"] = _make_layer(keys, 256, 128, 8, 2)
    # add-ons: Conv3d(512,128,1) / Conv3d(128,128,1), bias=False
    params["addon1"] = _kaiming_conv(next(keys), 128, 512, 1)
    params["addon2"] = _kaiming_conv(next(keys), 128, 128, 1)
    # fc: Linear(128, out_size, bias=False), PyTorch default init
    bound = 1.0 / math.sqrt(128.0)
    params["fc"] = jax.random.uniform(next(keys), (out_size, 128),
                                      jnp.float32, -bound, bound)
    return params


def _prep_conv(w):
    """(Cout,Cin,k,k,k) f32 -> (K,Cout) bf16 with eval-mode BN folded in."""
    cout, cin, k = int(w.shape[0]), int(w.shape[1]), int(w.shape[2])
    mat = w.transpose(2, 3, 4, 1, 0).reshape(k * k * k * cin, cout) * BN_SCALE
    if k > 1:   # zero-row pad K to 128 so the patch matrix needs no pad pass
        pad = _round_up(mat.shape[0], 128) - mat.shape[0]
        if pad:
            mat = jnp.pad(mat, ((0, pad), (0, 0)))
    return mat.astype(jnp.bfloat16)


def prepare_params(params):
    """One-time weight prep (outside jit): BN fold, transpose, bf16 cast."""
    prepped = {
        "conv1": _prep_conv(params["conv1"]),
        "addon1": _prep_conv(params["addon1"]),
        "addon2": _prep_conv(params["addon2"]),
        "fc": params["fc"].T.astype(jnp.float32),          # (128, out_size)
    }
    for name in ("layer1", "layer2"):
        prepped[name] = [{k: _prep_conv(w) for k, w in blk.items()}
                         for blk in params[name]]
    return prepped


if __name__ == "__main__":
    key = jax.random.PRNGKey(0)
    pkey, xkey = jax.random.split(key)
    in_channels, out_size = 4, 2
    params = init_params(pkey, in_channels=in_channels, out_size=out_size)
    prepared = prepare_params(params)
    # small input consistent with in_size=(4, D, H, W): (N, C, D, H, W)
    x = jax.random.normal(xkey, (2, in_channels, 16, 16, 16), jnp.float32)
    y = cnn_forward(x, prepared)
    y = jax.block_until_ready(y)
    assert y.shape == (2, out_size)
    assert bool(jnp.all(jnp.isfinite(y)))
    print("KERNEL_OK")
</pallas_src>

<mosaic_0001>
module attributes {stable_mosaic.version = 11 : i64} {
  func.func @_mm_kernel(%arg0: i32, %arg1: i32, %arg2: memref<512x1408xbf16, #tpu.memory_space<vmem>>, %arg3: memref<1408x64xbf16, #tpu.memory_space<vmem>>, %arg4: memref<512x64xbf16, #tpu.memory_space<vmem>>) attributes {dimension_semantics = [#tpu.dimension_semantics<parallel>, #tpu.dimension_semantics<parallel>], iteration_bounds = array<i64: 2, 1>, scalar_prefetch = 0 : i64, scratch_operands = 0 : i64, tpu.core_type = #tpu.core_type<tc>, window_params = [{transform_indices = @transform_0, window_bounds = array<i64: 512, 1408>}, {transform_indices = @transform_1, window_bounds = array<i64: 1408, 64>}, {transform_indices = @transform_2, window_bounds = array<i64: 512, 64>}]} {
    %c0 = arith.constant 0 : index
    %c0_0 = arith.constant 0 : index
    %0 = vector.load %arg2[%c0, %c0_0] : memref<512x1408xbf16, #tpu.memory_space<vmem>>, vector<512x1408xbf16>
    %c0_1 = arith.constant 0 : index
    %c0_2 = arith.constant 0 : index
    %1 = vector.load %arg3[%c0_1, %c0_2] : memref<1408x64xbf16, #tpu.memory_space<vmem>>, vector<1408x64xbf16>
    %cst = arith.constant dense<0.000000e+00> : vector<512x64xf32>
    %2 = tpu.matmul %0, %1, %cst {dimension_numbers = #tpu.dot_dimension_numbers<[1], [0], [0], [1], [0, 0, 1, 1], [], []>} : vector<512x1408xbf16>, vector<1408x64xbf16>, vector<512x64xf32> -> vector<512x64xf32>
    %cst_3 = arith.constant 0.000000e+00 : f32
    %3 = vector.broadcast %cst_3 : f32 to vector<512x64xf32>
    %4 = arith.maximumf %2, %3 : vector<512x64xf32>
    %5 = arith.truncf %4 : vector<512x64xf32> to vector<512x64xbf16>
    %c0_4 = arith.constant 0 : index
    %c0_5 = arith.constant 0 : index
    %6 = vector.load %arg4[%c0_4, %c0_5] : memref<512x64xbf16, #tpu.memory_space<vmem>>, vector<512x64xbf16>
    tpu.vector_store %arg4[%c0_4, %c0_5], %5 {strides = array<i32>} : memref<512x64xbf16, #tpu.memory_space<vmem>>, vector<512x64xbf16>,
    return
  }
  func.func @transform_0(%arg0: i32, %arg1: i32) -> (i32, i32) {
    %c0_i32 = arith.constant 0 : i32
    %c0_i32_0 = arith.constant 0 : i32
    return %arg0, %c0_i32 : i32, i32
  }
  func.func @transform_1(%arg0: i32, %arg1: i32) -> (i32, i32) {
    %c0_i32 = arith.constant 0 : i32
    %c0_i32_0 = arith.constant 0 : i32
    return %c0_i32, %arg1 : i32, i32
  }
  func.func @transform_2(%arg0: i32, %arg1: i32) -> (i32, i32) {
    %c0_i32 = arith.constant 0 : i32
    return %arg0, %arg1 : i32, i32
  }
}

module attributes {stable_mosaic.version = 11 : i64} {
  func.func @_maxpool_dh_kernel(%arg0: i32, %arg1: memref<1x10x10x4x64xbf16, #tpu.memory_space<vmem>>, %arg2: memref<1x4x4x4x64xbf16, #tpu.memory_space<vmem>>) attributes {dimension_semantics = [#tpu.dimension_semantics<parallel>], iteration_bounds = array<i64: 2>, scalar_prefetch = 0 : i64, scratch_operands = 0 : i64, tpu.core_type = #tpu.core_type<tc>, window_params = [{transform_indices = @transform_0, window_bounds = array<i64: 1, 10, 10, 4, 64>}, {transform_indices = @transform_1, window_bounds = array<i64: 1, 4, 4, 4, 64>}]} {
    %c0 = arith.constant 0 : index
    %c0_0 = arith.constant 0 : index
    %c0_1 = arith.constant 0 : index
    %c0_2 = arith.constant 0 : index
    %c0_3 = arith.constant 0 : index
    %0 = vector.load %arg1[%c0, %c0_0, %c0_1, %c0_2, %c0_3] : memref<1x10x10x4x64xbf16, #tpu.memory_space<vmem>>, vector<1x10x10x4x64xbf16>
    %1 = vector.shape_cast %0 : vector<1x10x10x4x64xbf16> to vector<10x10x4x64xbf16>
    %2 = vector.extract_strided_slice %1 {offsets = [0, 0, 0, 0], sizes = [1, 10, 4, 64], strides = [1, 1, 1, 1]} : vector<10x10x4x64xbf16> to vector<1x10x4x64xbf16>
    %3 = vector.shape_cast %2 : vector<1x10x4x64xbf16> to vector<10x4x64xbf16>
    %4 = vector.extract_strided_slice %1 {offsets = [1, 0, 0, 0], sizes = [1, 10, 4, 64], strides = [1, 1, 1, 1]} : vector<10x10x4x64xbf16> to vector<1x10x4x64xbf16>
    %5 = vector.shape_cast %4 : vector<1x10x4x64xbf16> to vector<10x4x64xbf16>
    %6 = arith.maximumf %3, %5 : vector<10x4x64xbf16>
    %7 = vector.extract_strided_slice %1 {offsets = [2, 0, 0, 0], sizes = [1, 10, 4, 64], strides = [1, 1, 1, 1]} : vector<10x10x4x64xbf16> to vector<1x10x4x64xbf16>
    %8 = vector.shape_cast %7 : vector<1x10x4x64xbf16> to vector<10x4x64xbf16>
    %9 = arith.maximumf %6, %8 : vector<10x4x64xbf16>
    %10 = vector.extract_strided_slice %9 {offsets = [0, 0, 0], sizes = [1, 4, 64], strides = [1, 1, 1]} : vector<10x4x64xbf16> to vector<1x4x64xbf16>
    %11 = vector.shape_cast %10 : vector<1x4x64xbf16> to vector<4x64xbf16>
    %12 = vector.extract_strided_slice %9 {offsets = [1, 0, 0], sizes = [1, 4, 64], strides = [1, 1, 1]} : vector<10x4x64xbf16> to vector<1x4x64xbf16>
    %13 = vector.shape_cast %12 : vector<1x4x64xbf16> to vector<4x64xbf16>
    %14 = arith.maximumf %11, %13 : vector<4x64xbf16>
    %15 = vector.extract_strided_slice %9 {offsets = [2, 0, 0], sizes = [1, 4, 64], strides = [1, 1, 1]} : vector<10x4x64xbf16> to vector<1x4x64xbf16>
    %16 = vector.shape_cast %15 : vector<1x4x64xbf16> to vector<4x64xbf16>
    %17 = arith.maximumf %14, %16 : vector<4x64xbf16>
    %18 = vector.extract_strided_slice %9 {offsets = [2, 0, 0], sizes = [1, 4, 64], strides = [1, 1, 1]} : vector<10x4x64xbf16> to vector<1x4x64xbf16>
    %19 = vector.shape_cast %18 : vector<1x4x64xbf16> to vector<4x64xbf16>
    %20 = vector.extract_strided_slice %9 {offsets = [3, 0, 0], sizes = [1, 4, 64], strides = [1, 1, 1]} : vector<10x4x64xbf16> to vector<1x4x64xbf16>
    %21 = vector.shape_cast %20 : vector<1x4x64xbf16> to vector<4x64xbf16>
    %22 = arith.maximumf %19, %21 : vector<4x64xbf16>
    %23 = vector.extract_strided_slice %9 {offsets = [4, 0, 0], sizes = [1, 4, 64], strides = [1, 1, 1]} : vector<10x4x64xbf16> to vector<1x4x64xbf16>
    %24 = vector.shape_cast %23 : vector<1x4x64xbf16> to vector<4x64xbf16>
    %25 = arith.maximumf %22, %24 : vector<4x64xbf16>
    %26 = vector.extract_strided_slice %9 {offsets = [4, 0, 0], sizes = [1, 4, 64], strides = [1, 1, 1]} : vector<10x4x64xbf16> to vector<1x4x64xbf16>
    %27 = vector.shape_cast %26 : vector<1x4x64xbf16> to vector<4x64xbf16>
    %28 = vector.extract_strided_slice %9 {offsets = [5, 0, 0], sizes = [1, 4, 64], strides = [1, 1, 1]} : vector<10x4x64xbf16> to vector<1x4x64xbf16>
    %29 = vector.shape_cast %28 : vector<1x4x64xbf16> to vector<4x64xbf16>
    %30 = arith.maximumf %27, %29 : vector<4x64xbf16>
    %31 = vector.extract_strided_slice %9 {offsets = [6, 0, 0], sizes = [1, 4, 64], strides = [1, 1, 1]} : vector<10x4x64xbf16> to vector<1x4x64xbf16>
    %32 = vector.shape_cast %31 : vector<1x4x64xbf16> to vector<4x64xbf16>
    %33 = arith.maximumf %30, %32 : vector<4x64xbf16>
    %34 = vector.extract_strided_slice %9 {offsets = [6, 0, 0], sizes = [1, 4, 64], strides = [1, 1, 1]} : vector<10x4x64xbf16> to vector<1x4x64xbf16>
    %35 = vector.shape_cast %34 : vector<1x4x64xbf16> to vector<4x64xbf16>
    %36 = vector.extract_strided_slice %9 {offsets = [7, 0, 0], sizes = [1, 4, 64], strides = [1, 1, 1]} : vector<10x4x64xbf16> to vector<1x4x64xbf16>
    %37 = vector.shape_cast %36 : vector<1x4x64xbf16> to vector<4x64xbf16>
    %38 = arith.maximumf %35, %37 : vector<4x64xbf16>
    %39 = vector.extract_strided_slice %9 {offsets = [8, 0, 0], sizes = [1, 4, 64], strides = [1, 1, 1]} : vector<10x4x64xbf16> to vector<1x4x64xbf16>
    %40 = vector.shape_cast %39 : vector<1x4x64xbf16> to vector<4x64xbf16>
    %41 = arith.maximumf %38, %40 : vector<4x64xbf16>
    %42 = vector.shape_cast %17 : vector<4x64xbf16> to vector<1x4x64xbf16>
    %43 = vector.shape_cast %25 : vector<4x64xbf16> to vector<1x4x64xbf16>
    %44 = vector.shape_cast %33 : vector<4x64xbf16> to vector<1x4x64xbf16>
    %45 = vector.shape_cast %41 : vector<4x64xbf16> to vector<1x4x64xbf16>
    %46 = tpu.concatenate %42, %43, %44, %45 in 0 : vector<1x4x64xbf16>, vector<1x4x64xbf16>, vector<1x4x64xbf16>, vector<1x4x64xbf16> -> vector<4x4x64xbf16>
    %47 = vector.extract_strided_slice %1 {offsets = [2, 0, 0, 0], sizes = [1, 10, 4, 64], strides = [1, 1, 1, 1]} : vector<10x10x4x64xbf16> to vector<1x10x4x64xbf16>
    %48 = vector.shape_cast %47 : vector<1x10x4x64xbf16> to vector<10x4x64xbf16>
    %49 = vector.extract_strided_slice %1 {offsets = [3, 0, 0, 0], sizes = [1, 10, 4, 64], strides = [1, 1, 1, 1]} : vector<10x10x4x64xbf16> to vector<1x10x4x64xbf16>
    %50 = vector.shape_cast %49 : vector<1x10x4x64xbf16> to vector<10x4x64xbf16>
    %51 = arith.maximumf %48, %50 : vector<10x4x64xbf16>
    %52 = vector.extract_strided_slice %1 {offsets = [4, 0, 0, 0], sizes = [1, 10, 4, 64], strides = [1, 1, 1, 1]} : vector<10x10x4x64xbf16> to vector<1x10x4x64xbf16>
    %53 = vector.shape_cast %52 : vector<1x10x4x64xbf16> to vector<10x4x64xbf16>
    %54 = arith.maximumf %51, %53 : vector<10x4x64xbf16>
    %55 = vector.extract_strided_slice %54 {offsets = [0, 0, 0], sizes = [1, 4, 64], strides = [1, 1, 1]} : vector<10x4x64xbf16> to vector<1x4x64xbf16>
    %56 = vector.shape_cast %55 : vector<1x4x64xbf16> to vector<4x64xbf16>
    %57 = vector.extract_strided_slice %54 {offsets = [1, 0, 0], sizes = [1, 4, 64], strides = [1, 1, 1]} : vector<10x4x64xbf16> to vector<1x4x64xbf16>
    %58 = vector.shape_cast %57 : vector<1x4x64xbf16> to vector<4x64xbf16>
    %59 = arith.maximumf %56, %58 : vector<4x64xbf16>
    %60 = vector.extract_strided_slice %54 {offsets = [2, 0, 0], sizes = [1, 4, 64], strides = [1, 1, 1]} : vector<10x4x64xbf16> to vector<1x4x64xbf16>
    %61 = vector.shape_cast %60 : vector<1x4x64xbf16> to vector<4x64xbf16>
    %62 = arith.maximumf %59, %61 : vector<4x64xbf16>
    %63 = vector.extract_strided_slice %54 {offsets = [2, 0, 0], sizes = [1, 4, 64], strides = [1, 1, 1]} : vector<10x4x64xbf16> to vector<1x4x64xbf16>
    %64 = vector.shape_cast %63 : vector<1x4x64xbf16> to vector<4x64xbf16>
    %65 = vector.extract_strided_slice %54 {offsets = [3, 0, 0], sizes = [1, 4, 64], strides = [1, 1, 1]} : vector<10x4x64xbf16> to vector<1x4x64xbf16>
    %66 = vector.shape_cast %65 : vector<1x4x64xbf16> to vector<4x64xbf16>
    %67 = arith.maximumf %64, %66 : vector<4x64xbf16>
    %68 = vector.extract_strided_slice %54 {offsets = [4, 0, 0], sizes = [1, 4, 64], strides = [1, 1, 1]} : vector<10x4x64xbf16> to vector<1x4x64xbf16>
    %69 = vector.shape_cast %68 : vector<1x4x64xbf16> to vector<4x64xbf16>
    %70 = arith.maximumf %67, %69 : vector<4x64xbf16>
    %71 = vector.extract_strided_slice %54 {offsets = [4, 0, 0], sizes = [1, 4, 64], strides = [1, 1, 1]} : vector<10x4x64xbf16> to vector<1x4x64xbf16>
    %72 = vector.shape_cast %71 : vector<1x4x64xbf16> to vector<4x64xbf16>
    %73 = vector.extract_strided_slice %54 {offsets = [5, 0, 0], sizes = [1, 4, 64], strides = [1, 1, 1]} : vector<10x4x64xbf16> to vector<1x4x64xbf16>
    %74 = vector.shape_cast %73 : vector<1x4x64xbf16> to vector<4x64xbf16>
    %75 = arith.maximumf %72, %74 : vector<4x64xbf16>
    %76 = vector.extract_strided_slice %54 {offsets = [6, 0, 0], sizes = [1, 4, 64], strides = [1, 1, 1]} : vector<10x4x64xbf16> to vector<1x4x64xbf16>
    %77 = vector.shape_cast %76 : vector<1x4x64xbf16> to vector<4x64xbf16>
    %78 = arith.maximumf %75, %77 : vector<4x64xbf16>
    %79 = vector.extract_strided_slice %54 {offsets = [6, 0, 0], sizes = [1, 4, 64], strides = [1, 1, 1]} : vector<10x4x64xbf16> to vector<1x4x64xbf16>
    %80 = vector.shape_cast %79 : vector<1x4x64xbf16> to vector<4x64xbf16>
    %81 = vector.extract_strided_slice %54 {offsets = [7, 0, 0], sizes = [1, 4, 64], strides = [1, 1, 1]} : vector<10x4x64xbf16> to vector<1x4x64xbf16>
    %82 = vector.shape_cast %81 : vector<1x4x64xbf16> to vector<4x64xbf16>
    %83 = arith.maximumf %80, %82 : vector<4x64xbf16>
    %84 = vector.extract_strided_slice %54 {offsets = [8, 0, 0], sizes = [1, 4, 64], strides = [1, 1, 1]} : vector<10x4x64xbf16> to vector<1x4x64xbf16>
    %85 = vector.shape_cast %84 : vector<1x4x64xbf16> to vector<4x64xbf16>
    %86 = arith.maximumf %83, %85 : vector<4x64xbf16>
    %87 = vector.shape_cast %62 : vector<4x64xbf16> to vector<1x4x64xbf16>
    %88 = vector.shape_cast %70 : vector<4x64xbf16> to vector<1x4x64xbf16>
    %89 = vector.shape_cast %78 : vector<4x64xbf16> to vector<1x4x64xbf16>
    %90 = vector.shape_cast %86 : vector<4x64xbf16> to vector<1x4x64xbf16>
    %91 = tpu.concatenate %87, %88, %89, %90 in 0 : vector<1x4x64xbf16>, vector<1x4x64xbf16>, vector<1x4x64xbf16>, vector<1x4x64xbf16> -> vector<4x4x64xbf16>
    %92 = vector.extract_strided_slice %1 {offsets = [4, 0, 0, 0], sizes = [1, 10, 4, 64], strides = [1, 1, 1, 1]} : vector<10x10x4x64xbf16> to vector<1x10x4x64xbf16>
    %93 = vector.shape_cast %92 : vector<1x10x4x64xbf16> to vector<10x4x64xbf16>
    %94 = vector.extract_strided_slice %1 {offsets = [5, 0, 0, 0], sizes = [1, 10, 4, 64], strides = [1, 1, 1, 1]} : vector<10x10x4x64xbf16> to vector<1x10x4x64xbf16>
    %95 = vector.shape_cast %94 : vector<1x10x4x64xbf16> to vector<10x4x64xbf16>
    %96 = arith.maximumf %93, %95 : vector<10x4x64xbf16>
    %97 = vector.extract_strided_slice %1 {offsets = [6, 0, 0, 0], sizes = [1, 10, 4, 64], strides = [1, 1, 1, 1]} : vector<10x10x4x64xbf16> to vector<1x10x4x64xbf16>
    %98 = vector.shape_cast %97 : vector<1x10x4x64xbf16> to vector<10x4x64xbf16>
    %99 = arith.maximumf %96, %98 : vector<10x4x64xbf16>
    %100 = vector.extract_strided_slice %99 {offsets = [0, 0, 0], sizes = [1, 4, 64], strides = [1, 1, 1]} : vector<10x4x64xbf16> to vector<1x4x64xbf16>
    %101 = vector.shape_cast %100 : vector<1x4x64xbf16> to vector<4x64xbf16>
    %102 = vector.extract_strided_slice %99 {offsets = [1, 0, 0], sizes = [1, 4, 64], strides = [1, 1, 1]} : vector<10x4x64xbf16> to vector<1x4x64xbf16>
    %103 = vector.shape_cast %102 : vector<1x4x64xbf16> to vector<4x64xbf16>
    %104 = arith.maximumf %101, %103 : vector<4x64xbf16>
    %105 = vector.extract_strided_slice %99 {offsets = [2, 0, 0], sizes = [1, 4, 64], strides = [1, 1, 1]} : vector<10x4x64xbf16> to vector<1x4x64xbf16>
    %106 = vector.shape_cast %105 : vector<1x4x64xbf16> to vector<4x64xbf16>
    %107 = arith.maximumf %104, %106 : vector<4x64xbf16>
    %108 = vector.extract_strided_slice %99 {offsets = [2, 0, 0], sizes = [1, 4, 64], strides = [1, 1, 1]} : vector<10x4x64xbf16> to vector<1x4x64xbf16>
    %109 = vector.shape_cast %108 : vector<1x4x64xbf16> to vector<4x64xbf16>
    %110 = vector.extract_strided_slice %99 {offsets = [3, 0, 0], sizes = [1, 4, 64], strides = [1, 1, 1]} : vector<10x4x64xbf16> to vector<1x4x64xbf16>
    %111 = vector.shape_cast %110 : vector<1x4x64xbf16> to vector<4x64xbf16>
    %112 = arith.maximumf %109, %111 : vector<4x64xbf16>
    %113 = vector.extract_strided_slice %99 {offsets = [4, 0, 0], sizes = [1, 4, 64], strides = [1, 1, 1]} : vector<10x4x64xbf16> to vector<1x4x64xbf16>
    %114 = vector.shape_cast %113 : vector<1x4x64xbf16> to vector<4x64xbf16>
    %115 = arith.maximumf %112, %114 : vector<4x64xbf16>
    %116 = vector.extract_strided_slice %99 {offsets = [4, 0, 0], sizes = [1, 4, 64], strides = [1, 1, 1]} : vector<10x4x64xbf16> to vector<1x4x64xbf16>
    %117 = vector.shape_cast %116 : vector<1x4x64xbf16> to vector<4x64xbf16>
    %118 = vector.extract_strided_slice %99 {offsets = [5, 0, 0], sizes = [1, 4, 64], strides = [1, 1, 1]} : vector<10x4x64xbf16> to vector<1x4x64xbf16>
    %119 = vector.shape_cast %118 : vector<1x4x64xbf16> to vector<4x64xbf16>
    %120 = arith.maximumf %117, %119 : vector<4x64xbf16>
    %121 = vector.extract_strided_slice %99 {offsets = [6, 0, 0], sizes = [1, 4, 64], strides = [1, 1, 1]} : vector<10x4x64xbf16> to vector<1x4x64xbf16>
    %122 = vector.shape_cast %121 : vector<1x4x64xbf16> to vector<4x64xbf16>
    %123 = arith.maximumf %120, %122 : vector<4x64xbf16>
    %124 = vector.extract_strided_slice %99 {offsets = [6, 0, 0], sizes = [1, 4, 64], strides = [1, 1, 1]} : vector<10x4x64xbf16> to vector<1x4x64xbf16>
    %125 = vector.shape_cast %124 : vector<1x4x64xbf16> to vector<4x64xbf16>
    %126 = vector.extract_strided_slice %99 {offsets = [7, 0, 0], sizes = [1, 4, 64], strides = [1, 1, 1]} : vector<10x4x64xbf16> to vector<1x4x64xbf16>
    %127 = vector.shape_cast %126 : vector<1x4x64xbf16> to vector<4x64xbf16>
    %128 = arith.maximumf %125, %127 : vector<4x64xbf16>
    %129 = vector.extract_strided_slice %99 {offsets = [8, 0, 0], sizes = [1, 4, 64], strides = [1, 1, 1]} : vector<10x4x64xbf16> to vector<1x4x64xbf16>
    %130 = vector.shape_cast %129 : vector<1x4x64xbf16> to vector<4x64xbf16>
    %131 = arith.maximumf %128, %130 : vector<4x64xbf16>
    %132 = vector.shape_cast %107 : vector<4x64xbf16> to vector<1x4x64xbf16>
    %133 = vector.shape_cast %115 : vector<4x64xbf16> to vector<1x4x64xbf16>
    %134 = vector.shape_cast %123 : vector<4x64xbf16> to vector<1x4x64xbf16>
    %135 = vector.shape_cast %131 : vector<4x64xbf16> to vector<1x4x64xbf16>
    %136 = tpu.concatenate %132, %133, %134, %135 in 0 : vector<1x4x64xbf16>, vector<1x4x64xbf16>, vector<1x4x64xbf16>, vector<1x4x64xbf16> -> vector<4x4x64xbf16>
    %137 = vector.extract_strided_slice %1 {offsets = [6, 0, 0, 0], sizes = [1, 10, 4, 64], strides = [1, 1, 1, 1]} : vector<10x10x4x64xbf16> to vector<1x10x4x64xbf16>
    %138 = vector.shape_cast %137 : vector<1x10x4x64xbf16> to vector<10x4x64xbf16>
    %139 = vector.extract_strided_slice %1 {offsets = [7, 0, 0, 0], sizes = [1, 10, 4, 64], strides = [1, 1, 1, 1]} : vector<10x10x4x64xbf16> to vector<1x10x4x64xbf16>
    %140 = vector.shape_cast %139 : vector<1x10x4x64xbf16> to vector<10x4x64xbf16>
    %141 = arith.maximumf %138, %140 : vector<10x4x64xbf16>
    %142 = vector.extract_strided_slice %1 {offsets = [8, 0, 0, 0], sizes = [1, 10, 4, 64], strides = [1, 1, 1, 1]} : vector<10x10x4x64xbf16> to vector<1x10x4x64xbf16>
    %143 = vector.shape_cast %142 : vector<1x10x4x64xbf16> to vector<10x4x64xbf16>
    %144 = arith.maximumf %141, %143 : vector<10x4x64xbf16>
    %145 = vector.extract_strided_slice %144 {offsets = [0, 0, 0], sizes = [1, 4, 64], strides = [1, 1, 1]} : vector<10x4x64xbf16> to vector<1x4x64xbf16>
    %146 = vector.shape_cast %145 : vector<1x4x64xbf16> to vector<4x64xbf16>
    %147 = vector.extract_strided_slice %144 {offsets = [1, 0, 0], sizes = [1, 4, 64], strides = [1, 1, 1]} : vector<10x4x64xbf16> to vector<1x4x64xbf16>
    %148 = vector.shape_cast %147 : vector<1x4x64xbf16> to vector<4x64xbf16>
    %149 = arith.maximumf %146, %148 : vector<4x64xbf16>
    %150 = vector.extract_strided_slice %144 {offsets = [2, 0, 0], sizes = [1, 4, 64], strides = [1, 1, 1]} : vector<10x4x64xbf16> to vector<1x4x64xbf16>
    %151 = vector.shape_cast %150 : vector<1x4x64xbf16> to vector<4x64xbf16>
    %152 = arith.maximumf %149, %151 : vector<4x64xbf16>
    %153 = vector.extract_strided_slice %144 {offsets = [2, 0, 0], sizes = [1, 4, 64], strides = [1, 1, 1]} : vector<10x4x64xbf16> to vector<1x4x64xbf16>
    %154 = vector.shape_cast %153 : vector<1x4x64xbf16> to vector<4x64xbf16>
    %155 = vector.extract_strided_slice %144 {offsets = [3, 0, 0], sizes = [1, 4, 64], strides = [1, 1, 1]} : vector<10x4x64xbf16> to vector<1x4x64xbf16>
    %156 = vector.shape_cast %155 : vector<1x4x64xbf16> to vector<4x64xbf16>
    %157 = arith.maximumf %154, %156 : vector<4x64xbf16>
    %158 = vector.extract_strided_slice %144 {offsets = [4, 0, 0], sizes = [1, 4, 64], strides = [1, 1, 1]} : vector<10x4x64xbf16> to vector<1x4x64xbf16>
    %159 = vector.shape_cast %158 : vector<1x4x64xbf16> to vector<4x64xbf16>
    %160 = arith.maximumf %157, %159 : vector<4x64xbf16>
    %161 = vector.extract_strided_slice %144 {offsets = [4, 0, 0], sizes = [1, 4, 64], strides = [1, 1, 1]} : vector<10x4x64xbf16> to vector<1x4x64xbf16>
    %162 = vector.shape_cast %161 : vector<1x4x64xbf16> to vector<4x64xbf16>
    %163 = vector.extract_strided_slice %144 {offsets = [5, 0, 0], sizes = [1, 4, 64], strides = [1, 1, 1]} : vector<10x4x64xbf16> to vector<1x4x64xbf16>
    %164 = vector.shape_cast %163 : vector<1x4x64xbf16> to vector<4x64xbf16>
    %165 = arith.maximumf %162, %164 : vector<4x64xbf16>
    %166 = vector.extract_strided_slice %144 {offsets = [6, 0, 0], sizes = [1, 4, 64], strides = [1, 1, 1]} : vector<10x4x64xbf16> to vector<1x4x64xbf16>
    %167 = vector.shape_cast %166 : vector<1x4x64xbf16> to vector<4x64xbf16>
    %168 = arith.maximumf %165, %167 : vector<4x64xbf16>
    %169 = vector.extract_strided_slice %144 {offsets = [6, 0, 0], sizes = [1, 4, 64], strides = [1, 1, 1]} : vector<10x4x64xbf16> to vector<1x4x64xbf16>
    %170 = vector.shape_cast %169 : vector<1x4x64xbf16> to vector<4x64xbf16>
    %171 = vector.extract_strided_slice %144 {offsets = [7, 0, 0], sizes = [1, 4, 64], strides = [1, 1, 1]} : vector<10x4x64xbf16> to vector<1x4x64xbf16>
    %172 = vector.shape_cast %171 : vector<1x4x64xbf16> to vector<4x64xbf16>
    %173 = arith.maximumf %170, %172 : vector<4x64xbf16>
    %174 = vector.extract_strided_slice %144 {offsets = [8, 0, 0], sizes = [1, 4, 64], strides = [1, 1, 1]} : vector<10x4x64xbf16> to vector<1x4x64xbf16>
    %175 = vector.shape_cast %174 : vector<1x4x64xbf16> to vector<4x64xbf16>
    %176 = arith.maximumf %173, %175 : vector<4x64xbf16>
    %177 = vector.shape_cast %152 : vector<4x64xbf16> to vector<1x4x64xbf16>
    %178 = vector.shape_cast %160 : vector<4x64xbf16> to vector<1x4x64xbf16>
    %179 = vector.shape_cast %168 : vector<4x64xbf16> to vector<1x4x64xbf16>
    %180 = vector.shape_cast %176 : vector<4x64xbf16> to vector<1x4x64xbf16>
    %181 = tpu.concatenate %177, %178, %179, %180 in 0 : vector<1x4x64xbf16>, vector<1x4x64xbf16>, vector<1x4x64xbf16>, vector<1x4x64xbf16> -> vector<4x4x64xbf16>
    %182 = vector.shape_cast %46 : vector<4x4x64xbf16> to vector<1x4x4x64xbf16>
    %183 = vector.shape_cast %91 : vector<4x4x64xbf16> to vector<1x4x4x64xbf16>
    %184 = vector.shape_cast %136 : vector<4x4x64xbf16> to vector<1x4x4x64xbf16>
    %185 = vector.shape_cast %181 : vector<4x4x64xbf16> to vector<1x4x4x64xbf16>
    %186 = tpu.concatenate %182, %183, %184, %185 in 0 : vector<1x4x4x64xbf16>, vector<1x4x4x64xbf16>, vector<1x4x4x64xbf16>, vector<1x4x4x64xbf16> -> vector<4x4x4x64xbf16>
    %c0_4 = arith.constant 0 : index
    %c0_5 = arith.constant 0 : index
    %c0_6 = arith.constant 0 : index
    %c0_7 = arith.constant 0 : index
    %c0_8 = arith.constant 0 : index
    %187 = vector.load %arg2[%c0_4, %c0_5, %c0_6, %c0_7, %c0_8] : memref<1x4x4x4x64xbf16, #tpu.memory_space<vmem>>, vector<1x4x4x4x64xbf16>
    %188 = vector.shape_cast %187 : vector<1x4x4x4x64xbf16> to vector<4x4x4x64xbf16>
    %189 = vector.shape_cast %186 : vector<4x4x4x64xbf16> to vector<1x4x4x4x64xbf16>
    tpu.vector_store %arg2[%c0_4, %c0_5, %c0_6, %c0_7, %c0_8], %189 {strides = array<i32>} : memref<1x4x4x4x64xbf16, #tpu.memory_space<vmem>>, vector<1x4x4x4x64xbf16>,
    return
  }
  func.func @transform_0(%arg0: i32) -> (i32, i32, i32, i32, i32) {
    %c0_i32 = arith.constant 0 : i32
    %c0_i32_0 = arith.constant 0 : i32
    %c0_i32_1 = arith.constant 0 : i32
    %c0_i32_2 = arith.constant 0 : i32
    %c0_i32_3 = arith.constant 0 : i32
    return %arg0, %c0_i32, %c0_i32_0, %c0_i32_1, %c0_i32_2 : i32, i32, i32, i32, i32
  }
  func.func @transform_1(%arg0: i32) -> (i32, i32, i32, i32, i32) {
    %c0_i32 = arith.constant 0 : i32
    %c0_i32_0 = arith.constant 0 : i32
    %c0_i32_1 = arith.constant 0 : i32
    %c0_i32_2 = arith.constant 0 : i32
    %c0_i32_3 = arith.constant 0 : i32
    return %arg0, %c0_i32, %c0_i32_0, %c0_i32_1, %c0_i32_2 : i32, i32, i32, i32, i32
  }
}

module attributes {stable_mosaic.version = 11 : i64} {
  func.func @_mm_kernel(%arg0: i32, %arg1: i32, %arg2: memref<128x64xbf16, #tpu.memory_space<vmem>>, %arg3: memref<64x64xbf16, #tpu.memory_space<vmem>>, %arg4: memref<128x64xbf16, #tpu.memory_space<vmem>>) attributes {dimension_semantics = [#tpu.dimension_semantics<parallel>, #tpu.dimension_semantics<parallel>], iteration_bounds = array<i64: 1, 1>, scalar_prefetch = 0 : i64, scratch_operands = 0 : i64, tpu.core_type = #tpu.core_type<tc>, window_params = [{transform_indices = @transform_0, window_bounds = array<i64: 128, 64>}, {transform_indices = @transform_1, window_bounds = array<i64: 64, 64>}, {transform_indices = @transform_2, window_bounds = array<i64: 128, 64>}]} {
    %c0 = arith.constant 0 : index
    %c0_0 = arith.constant 0 : index
    %0 = vector.load %arg2[%c0, %c0_0] : memref<128x64xbf16, #tpu.memory_space<vmem>>, vector<128x64xbf16>
    %c0_1 = arith.constant 0 : index
    %c0_2 = arith.constant 0 : index
    %1 = vector.load %arg3[%c0_1, %c0_2] : memref<64x64xbf16, #tpu.memory_space<vmem>>, vector<64x64xbf16>
    %cst = arith.constant dense<0.000000e+00> : vector<128x64xf32>
    %2 = tpu.matmul %0, %1, %cst {dimension_numbers = #tpu.dot_dimension_numbers<[1], [0], [0], [1], [0, 0, 1, 1], [], []>} : vector<128x64xbf16>, vector<64x64xbf16>, vector<128x64xf32> -> vector<128x64xf32>
    %cst_3 = arith.constant 0.000000e+00 : f32
    %3 = vector.broadcast %cst_3 : f32 to vector<128x64xf32>
    %4 = arith.maximumf %2, %3 : vector<128x64xf32>
    %5 = arith.truncf %4 : vector<128x64xf32> to vector<128x64xbf16>
    %c0_4 = arith.constant 0 : index
    %c0_5 = arith.constant 0 : index
    %6 = vector.load %arg4[%c0_4, %c0_5] : memref<128x64xbf16, #tpu.memory_space<vmem>>, vector<128x64xbf16>
    tpu.vector_store %arg4[%c0_4, %c0_5], %5 {strides = array<i32>} : memref<128x64xbf16, #tpu.memory_space<vmem>>, vector<128x64xbf16>,
    return
  }
  func.func @transform_0(%arg0: i32, %arg1: i32) -> (i32, i32) {
    %c0_i32 = arith.constant 0 : i32
    %c0_i32_0 = arith.constant 0 : i32
    return %arg0, %c0_i32 : i32, i32
  }
  func.func @transform_1(%arg0: i32, %arg1: i32) -> (i32, i32) {
    %c0_i32 = arith.constant 0 : i32
    %c0_i32_0 = arith.constant 0 : i32
    return %c0_i32, %arg1 : i32, i32
  }
  func.func @transform_2(%arg0: i32, %arg1: i32) -> (i32, i32) {
    %c0_i32 = arith.constant 0 : i32
    return %arg0, %arg1 : i32, i32
  }
}

module attributes {stable_mosaic.version = 11 : i64} {
  func.func @_mm_kernel(%arg0: i32, %arg1: i32, %arg2: memref<128x1792xbf16, #tpu.memory_space<vmem>>, %arg3: memref<1792x64xbf16, #tpu.memory_space<vmem>>, %arg4: memref<128x64xbf16, #tpu.memory_space<vmem>>) attributes {dimension_semantics = [#tpu.dimension_semantics<parallel>, #tpu.dimension_semantics<parallel>], iteration_bounds = array<i64: 1, 1>, scalar_prefetch = 0 : i64, scratch_operands = 0 : i64, tpu.core_type = #tpu.core_type<tc>, window_params = [{transform_indices = @transform_0, window_bounds = array<i64: 128, 1792>}, {transform_indices = @transform_1, window_bounds = array<i64: 1792, 64>}, {transform_indices = @transform_2, window_bounds = array<i64: 128, 64>}]} {
    %c0 = arith.constant 0 : index
    %c0_0 = arith.constant 0 : index
    %0 = vector.load %arg2[%c0, %c0_0] : memref<128x1792xbf16, #tpu.memory_space<vmem>>, vector<128x1792xbf16>
    %c0_1 = arith.constant 0 : index
    %c0_2 = arith.constant 0 : index
    %1 = vector.load %arg3[%c0_1, %c0_2] : memref<1792x64xbf16, #tpu.memory_space<vmem>>, vector<1792x64xbf16>
    %cst = arith.constant dense<0.000000e+00> : vector<128x64xf32>
    %2 = tpu.matmul %0, %1, %cst {dimension_numbers = #tpu.dot_dimension_numbers<[1], [0], [0], [1], [0, 0, 1, 1], [], []>} : vector<128x1792xbf16>, vector<1792x64xbf16>, vector<128x64xf32> -> vector<128x64xf32>
    %cst_3 = arith.constant 0.000000e+00 : f32
    %3 = vector.broadcast %cst_3 : f32 to vector<128x64xf32>
    %4 = arith.maximumf %2, %3 : vector<128x64xf32>
    %5 = arith.truncf %4 : vector<128x64xf32> to vector<128x64xbf16>
    %c0_4 = arith.constant 0 : index
    %c0_5 = arith.constant 0 : index
    %6 = vector.load %arg4[%c0_4, %c0_5] : memref<128x64xbf16, #tpu.memory_space<vmem>>, vector<128x64xbf16>
    tpu.vector_store %arg4[%c0_4, %c0_5], %5 {strides = array<i32>} : memref<128x64xbf16, #tpu.memory_space<vmem>>, vector<128x64xbf16>,
    return
  }
  func.func @transform_0(%arg0: i32, %arg1: i32) -> (i32, i32) {
    %c0_i32 = arith.constant 0 : i32
    %c0_i32_0 = arith.constant 0 : i32
    return %arg0, %c0_i32 : i32, i32
  }
  func.func @transform_1(%arg0: i32, %arg1: i32) -> (i32, i32) {
    %c0_i32 = arith.constant 0 : i32
    %c0_i32_0 = arith.constant 0 : i32
    return %c0_i32, %arg1 : i32, i32
  }
  func.func @transform_2(%arg0: i32, %arg1: i32) -> (i32, i32) {
    %c0_i32 = arith.constant 0 : i32
    return %arg0, %arg1 : i32, i32
  }
}

module attributes {stable_mosaic.version = 11 : i64} {
  func.func @_mm_kernel(%arg0: i32, %arg1: i32, %arg2: memref<128x64xbf16, #tpu.memory_space<vmem>>, %arg3: memref<64x256xbf16, #tpu.memory_space<vmem>>, %arg4: memref<128x256xbf16, #tpu.memory_space<vmem>>) attributes {dimension_semantics = [#tpu.dimension_semantics<parallel>, #tpu.dimension_semantics<parallel>], iteration_bounds = array<i64: 1, 1>, scalar_prefetch = 0 : i64, scratch_operands = 0 : i64, tpu.core_type = #tpu.core_type<tc>, window_params = [{transform_indices = @transform_0, window_bounds = array<i64: 128, 64>}, {transform_indices = @transform_1, window_bounds = array<i64: 64, 256>}, {transform_indices = @transform_2, window_bounds = array<i64: 128, 256>}]} {
    %c0 = arith.constant 0 : index
    %c0_0 = arith.constant 0 : index
    %0 = vector.load %arg2[%c0, %c0_0] : memref<128x64xbf16, #tpu.memory_space<vmem>>, vector<128x64xbf16>
    %c0_1 = arith.constant 0 : index
    %c0_2 = arith.constant 0 : index
    %1 = vector.load %arg3[%c0_1, %c0_2] : memref<64x256xbf16, #tpu.memory_space<vmem>>, vector<64x256xbf16>
    %cst = arith.constant dense<0.000000e+00> : vector<128x256xf32>
    %2 = tpu.matmul %0, %1, %cst {dimension_numbers = #tpu.dot_dimension_numbers<[1], [0], [0], [1], [0, 0, 1, 1], [], []>} : vector<128x64xbf16>, vector<64x256xbf16>, vector<128x256xf32> -> vector<128x256xf32>
    %3 = arith.truncf %2 : vector<128x256xf32> to vector<128x256xbf16>
    %c0_3 = arith.constant 0 : index
    %c0_4 = arith.constant 0 : index
    %4 = vector.load %arg4[%c0_3, %c0_4] : memref<128x256xbf16, #tpu.memory_space<vmem>>, vector<128x256xbf16>
    tpu.vector_store %arg4[%c0_3, %c0_4], %3 {strides = array<i32>} : memref<128x256xbf16, #tpu.memory_space<vmem>>, vector<128x256xbf16>,
    return
  }
  func.func @transform_0(%arg0: i32, %arg1: i32) -> (i32, i32) {
    %c0_i32 = arith.constant 0 : i32
    %c0_i32_0 = arith.constant 0 : i32
    return %arg0, %c0_i32 : i32, i32
  }
  func.func @transform_1(%arg0: i32, %arg1: i32) -> (i32, i32) {
    %c0_i32 = arith.constant 0 : i32
    %c0_i32_0 = arith.constant 0 : i32
    return %c0_i32, %arg1 : i32, i32
  }
  func.func @transform_2(%arg0: i32, %arg1: i32) -> (i32, i32) {
    %c0_i32 = arith.constant 0 : i32
    return %arg0, %arg1 : i32, i32
  }
}

module attributes {stable_mosaic.version = 11 : i64} {
  func.func @_mm_kernel(%arg0: i32, %arg1: i32, %arg2: memref<128x256xbf16, #tpu.memory_space<vmem>>, %arg3: memref<256x64xbf16, #tpu.memory_space<vmem>>, %arg4: memref<128x64xbf16, #tpu.memory_space<vmem>>) attributes {dimension_semantics = [#tpu.dimension_semantics<parallel>, #tpu.dimension_semantics<parallel>], iteration_bounds = array<i64: 1, 1>, scalar_prefetch = 0 : i64, scratch_operands = 0 : i64, tpu.core_type = #tpu.core_type<tc>, window_params = [{transform_indices = @transform_0, window_bounds = array<i64: 128, 256>}, {transform_indices = @transform_1, window_bounds = array<i64: 256, 64>}, {transform_indices = @transform_2, window_bounds = array<i64: 128, 64>}]} {
    %c0 = arith.constant 0 : index
    %c0_0 = arith.constant 0 : index
    %0 = vector.load %arg2[%c0, %c0_0] : memref<128x256xbf16, #tpu.memory_space<vmem>>, vector<128x256xbf16>
    %c0_1 = arith.constant 0 : index
    %c0_2 = arith.constant 0 : index
    %1 = vector.load %arg3[%c0_1, %c0_2] : memref<256x64xbf16, #tpu.memory_space<vmem>>, vector<256x64xbf16>
    %cst = arith.constant dense<0.000000e+00> : vector<128x64xf32>
    %2 = tpu.matmul %0, %1, %cst {dimension_numbers = #tpu.dot_dimension_numbers<[1], [0], [0], [1], [0, 0, 1, 1], [], []>} : vector<128x256xbf16>, vector<256x64xbf16>, vector<128x64xf32> -> vector<128x64xf32>
    %cst_3 = arith.constant 0.000000e+00 : f32
    %3 = vector.broadcast %cst_3 : f32 to vector<128x64xf32>
    %4 = arith.maximumf %2, %3 : vector<128x64xf32>
    %5 = arith.truncf %4 : vector<128x64xf32> to vector<128x64xbf16>
    %c0_4 = arith.constant 0 : index
    %c0_5 = arith.constant 0 : index
    %6 = vector.load %arg4[%c0_4, %c0_5] : memref<128x64xbf16, #tpu.memory_space<vmem>>, vector<128x64xbf16>
    tpu.vector_store %arg4[%c0_4, %c0_5], %5 {strides = array<i32>} : memref<128x64xbf16, #tpu.memory_space<vmem>>, vector<128x64xbf16>,
    return
  }
  func.func @transform_0(%arg0: i32, %arg1: i32) -> (i32, i32) {
    %c0_i32 = arith.constant 0 : i32
    %c0_i32_0 = arith.constant 0 : i32
    return %arg0, %c0_i32 : i32, i32
  }
  func.func @transform_1(%arg0: i32, %arg1: i32) -> (i32, i32) {
    %c0_i32 = arith.constant 0 : i32
    %c0_i32_0 = arith.constant 0 : i32
    return %c0_i32, %arg1 : i32, i32
  }
  func.func @transform_2(%arg0: i32, %arg1: i32) -> (i32, i32) {
    %c0_i32 = arith.constant 0 : i32
    return %arg0, %arg1 : i32, i32
  }
}

module attributes {stable_mosaic.version = 11 : i64} {
  func.func @_mm_kernel(%arg0: i32, %arg1: i32, %arg2: memref<128x64xbf16, #tpu.memory_space<vmem>>, %arg3: memref<64x256xbf16, #tpu.memory_space<vmem>>, %arg4: memref<128x256xbf16, #tpu.memory_space<vmem>>, %arg5: memref<128x256xbf16, #tpu.memory_space<vmem>>) attributes {dimension_semantics = [#tpu.dimension_semantics<parallel>, #tpu.dimension_semantics<parallel>], iteration_bounds = array<i64: 1, 1>, scalar_prefetch = 0 : i64, scratch_operands = 0 : i64, tpu.core_type = #tpu.core_type<tc>, window_params = [{transform_indices = @transform_0, window_bounds = array<i64: 128, 64>}, {transform_indices = @transform_1, window_bounds = array<i64: 64, 256>}, {transform_indices = @transform_2, window_bounds = array<i64: 128, 256>}, {transform_indices = @transform_3, window_bounds = array<i64: 128, 256>}]} {
    %c0 = arith.constant 0 : index
    %c0_0 = arith.constant 0 : index
    %0 = vector.load %arg2[%c0, %c0_0] : memref<128x64xbf16, #tpu.memory_space<vmem>>, vector<128x64xbf16>
    %c0_1 = arith.constant 0 : index
    %c0_2 = arith.constant 0 : index
    %1 = vector.load %arg3[%c0_1, %c0_2] : memref<64x256xbf16, #tpu.memory_space<vmem>>, vector<64x256xbf16>
    %cst = arith.constant dense<0.000000e+00> : vector<128x256xf32>
    %2 = tpu.matmul %0, %1, %cst {dimension_numbers = #tpu.dot_dimension_numbers<[1], [0], [0], [1], [0, 0, 1, 1], [], []>} : vector<128x64xbf16>, vector<64x256xbf16>, vector<128x256xf32> -> vector<128x256xf32>
    %c0_3 = arith.constant 0 : index
    %c0_4 = arith.constant 0 : index
    %3 = vector.load %arg4[%c0_3, %c0_4] : memref<128x256xbf16, #tpu.memory_space<vmem>>, vector<128x256xbf16>
    %4 = arith.extf %3 : vector<128x256xbf16> to vector<128x256xf32>
    %5 = arith.addf %2, %4 : vector<128x256xf32>
    %cst_5 = arith.constant 0.000000e+00 : f32
    %6 = vector.broadcast %cst_5 : f32 to vector<128x256xf32>
    %7 = arith.maximumf %5, %6 : vector<128x256xf32>
    %8 = arith.truncf %7 : vector<128x256xf32> to vector<128x256xbf16>
    %c0_6 = arith.constant 0 : index
    %c0_7 = arith.constant 0 : index
    %9 = vector.load %arg5[%c0_6, %c0_7] : memref<128x256xbf16, #tpu.memory_space<vmem>>, vector<128x256xbf16>
    tpu.vector_store %arg5[%c0_6, %c0_7], %8 {strides = array<i32>} : memref<128x256xbf16, #tpu.memory_space<vmem>>, vector<128x256xbf16>,
    return
  }
  func.func @transform_0(%arg0: i32, %arg1: i32) -> (i32, i32) {
    %c0_i32 = arith.constant 0 : i32
    %c0_i32_0 = arith.constant 0 : i32
    return %arg0, %c0_i32 : i32, i32
  }
  func.func @transform_1(%arg0: i32, %arg1: i32) -> (i32, i32) {
    %c0_i32 = arith.constant 0 : i32
    %c0_i32_0 = arith.constant 0 : i32
    return %c0_i32, %arg1 : i32, i32
  }
  func.func @transform_2(%arg0: i32, %arg1: i32) -> (i32, i32) {
    %c0_i32 = arith.constant 0 : i32
    return %arg0, %arg1 : i32, i32
  }
  func.func @transform_3(%arg0: i32, %arg1: i32) -> (i32, i32) {
    %c0_i32 = arith.constant 0 : i32
    return %arg0, %arg1 : i32, i32
  }
}

module attributes {stable_mosaic.version = 11 : i64} {
  func.func @_mm_kernel(%arg0: i32, %arg1: i32, %arg2: memref<128x256xbf16, #tpu.memory_space<vmem>>, %arg3: memref<256x128xbf16, #tpu.memory_space<vmem>>, %arg4: memref<128x128xbf16, #tpu.memory_space<vmem>>) attributes {dimension_semantics = [#tpu.dimension_semantics<parallel>, #tpu.dimension_semantics<parallel>], iteration_bounds = array<i64: 1, 1>, scalar_prefetch = 0 : i64, scratch_operands = 0 : i64, tpu.core_type = #tpu.core_type<tc>, window_params = [{transform_indices = @transform_0, window_bounds = array<i64: 128, 256>}, {transform_indices = @transform_1, window_bounds = array<i64: 256, 128>}, {transform_indices = @transform_2, window_bounds = array<i64: 128, 128>}]} {
    %c0 = arith.constant 0 : index
    %c0_0 = arith.constant 0 : index
    %0 = vector.load %arg2[%c0, %c0_0] : memref<128x256xbf16, #tpu.memory_space<vmem>>, vector<128x256xbf16>
    %c0_1 = arith.constant 0 : index
    %c0_2 = arith.constant 0 : index
    %1 = vector.load %arg3[%c0_1, %c0_2] : memref<256x128xbf16, #tpu.memory_space<vmem>>, vector<256x128xbf16>
    %cst = arith.constant dense<0.000000e+00> : vector<128x128xf32>
    %2 = tpu.matmul %0, %1, %cst {dimension_numbers = #tpu.dot_dimension_numbers<[1], [0], [0], [1], [0, 0, 1, 1], [], []>} : vector<128x256xbf16>, vector<256x128xbf16>, vector<128x128xf32> -> vector<128x128xf32>
    %cst_3 = arith.constant 0.000000e+00 : f32
    %3 = vector.broadcast %cst_3 : f32 to vector<128x128xf32>
    %4 = arith.maximumf %2, %3 : vector<128x128xf32>
    %5 = arith.truncf %4 : vector<128x128xf32> to vector<128x128xbf16>
    %c0_4 = arith.constant 0 : index
    %c0_5 = arith.constant 0 : index
    %6 = vector.load %arg4[%c0_4, %c0_5] : memref<128x128xbf16, #tpu.memory_space<vmem>>, vector<128x128xbf16>
    tpu.vector_store %arg4[%c0_4, %c0_5], %5 {strides = array<i32>} : memref<128x128xbf16, #tpu.memory_space<vmem>>, vector<128x128xbf16>,
    return
  }
  func.func @transform_0(%arg0: i32, %arg1: i32) -> (i32, i32) {
    %c0_i32 = arith.constant 0 : i32
    %c0_i32_0 = arith.constant 0 : i32
    return %arg0, %c0_i32 : i32, i32
  }
  func.func @transform_1(%arg0: i32, %arg1: i32) -> (i32, i32) {
    %c0_i32 = arith.constant 0 : i32
    %c0_i32_0 = arith.constant 0 : i32
    return %c0_i32, %arg1 : i32, i32
  }
  func.func @transform_2(%arg0: i32, %arg1: i32) -> (i32, i32) {
    %c0_i32 = arith.constant 0 : i32
    return %arg0, %arg1 : i32, i32
  }
}

module attributes {stable_mosaic.version = 11 : i64} {
  func.func @_mm_kernel(%arg0: i32, %arg1: i32, %arg2: memref<16x3456xbf16, #tpu.memory_space<vmem>>, %arg3: memref<3456x128xbf16, #tpu.memory_space<vmem>>, %arg4: memref<16x128xbf16, #tpu.memory_space<vmem>>) attributes {dimension_semantics = [#tpu.dimension_semantics<parallel>, #tpu.dimension_semantics<parallel>], iteration_bounds = array<i64: 1, 1>, scalar_prefetch = 0 : i64, scratch_operands = 0 : i64, tpu.core_type = #tpu.core_type<tc>, window_params = [{transform_indices = @transform_0, window_bounds = array<i64: 16, 3456>}, {transform_indices = @transform_1, window_bounds = array<i64: 3456, 128>}, {transform_indices = @transform_2, window_bounds = array<i64: 16, 128>}]} {
    %c0 = arith.constant 0 : index
    %c0_0 = arith.constant 0 : index
    %0 = vector.load %arg2[%c0, %c0_0] : memref<16x3456xbf16, #tpu.memory_space<vmem>>, vector<16x3456xbf16>
    %c0_1 = arith.constant 0 : index
    %c0_2 = arith.constant 0 : index
    %1 = vector.load %arg3[%c0_1, %c0_2] : memref<3456x128xbf16, #tpu.memory_space<vmem>>, vector<3456x128xbf16>
    %cst = arith.constant dense<0.000000e+00> : vector<16x128xf32>
    %2 = tpu.matmul %0, %1, %cst {dimension_numbers = #tpu.dot_dimension_numbers<[1], [0], [0], [1], [0, 0, 1, 1], [], []>} : vector<16x3456xbf16>, vector<3456x128xbf16>, vector<16x128xf32> -> vector<16x128xf32>
    %cst_3 = arith.constant 0.000000e+00 : f32
    %3 = vector.broadcast %cst_3 : f32 to vector<16x128xf32>
    %4 = arith.maximumf %2, %3 : vector<16x128xf32>
    %5 = arith.truncf %4 : vector<16x128xf32> to vector<16x128xbf16>
    %c0_4 = arith.constant 0 : index
    %c0_5 = arith.constant 0 : index
    %6 = vector.load %arg4[%c0_4, %c0_5] : memref<16x128xbf16, #tpu.memory_space<vmem>>, vector<16x128xbf16>
    tpu.vector_store %arg4[%c0_4, %c0_5], %5 {strides = array<i32>} : memref<16x128xbf16, #tpu.memory_space<vmem>>, vector<16x128xbf16>,
    return
  }
  func.func @transform_0(%arg0: i32, %arg1: i32) -> (i32, i32) {
    %c0_i32 = arith.constant 0 : i32
    %c0_i32_0 = arith.constant 0 : i32
    return %arg0, %c0_i32 : i32, i32
  }
  func.func @transform_1(%arg0: i32, %arg1: i32) -> (i32, i32) {
    %c0_i32 = arith.constant 0 : i32
    %c0_i32_0 = arith.constant 0 : i32
    return %c0_i32, %arg1 : i32, i32
  }
  func.func @transform_2(%arg0: i32, %arg1: i32) -> (i32, i32) {
    %c0_i32 = arith.constant 0 : i32
    return %arg0, %arg1 : i32, i32
  }
}

module attributes {stable_mosaic.version = 11 : i64} {
  func.func @_mm_kernel(%arg0: i32, %arg1: i32, %arg2: memref<16x128xbf16, #tpu.memory_space<vmem>>, %arg3: memref<128x256xbf16, #tpu.memory_space<vmem>>, %arg4: memref<16x256xbf16, #tpu.memory_space<vmem>>, %arg5: memref<16x256xbf16, #tpu.memory_space<vmem>>) attributes {dimension_semantics = [#tpu.dimension_semantics<parallel>, #tpu.dimension_semantics<parallel>], iteration_bounds = array<i64: 1, 2>, scalar_prefetch = 0 : i64, scratch_operands = 0 : i64, tpu.core_type = #tpu.core_type<tc>, window_params = [{transform_indices = @transform_0, window_bounds = array<i64: 16, 128>}, {transform_indices = @transform_1, window_bounds = array<i64: 128, 256>}, {transform_indices = @transform_2, window_bounds = array<i64: 16, 256>}, {transform_indices = @transform_3, window_bounds = array<i64: 16, 256>}]} {
    %c0 = arith.constant 0 : index
    %c0_0 = arith.constant 0 : index
    %0 = vector.load %arg2[%c0, %c0_0] : memref<16x128xbf16, #tpu.memory_space<vmem>>, vector<16x128xbf16>
    %c0_1 = arith.constant 0 : index
    %c0_2 = arith.constant 0 : index
    %1 = vector.load %arg3[%c0_1, %c0_2] : memref<128x256xbf16, #tpu.memory_space<vmem>>, vector<128x256xbf16>
    %cst = arith.constant dense<0.000000e+00> : vector<16x256xf32>
    %2 = tpu.matmul %0, %1, %cst {dimension_numbers = #tpu.dot_dimension_numbers<[1], [0], [0], [1], [0, 0, 1, 1], [], []>} : vector<16x128xbf16>, vector<128x256xbf16>, vector<16x256xf32> -> vector<16x256xf32>
    %c0_3 = arith.constant 0 : index
    %c0_4 = arith.constant 0 : index
    %3 = vector.load %arg4[%c0_3, %c0_4] : memref<16x256xbf16, #tpu.memory_space<vmem>>, vector<16x256xbf16>
    %4 = arith.extf %3 : vector<16x256xbf16> to vector<16x256xf32>
    %5 = arith.addf %2, %4 : vector<16x256xf32>
    %cst_5 = arith.constant 0.000000e+00 : f32
    %6 = vector.broadcast %cst_5 : f32 to vector<16x256xf32>
    %7 = arith.maximumf %5, %6 : vector<16x256xf32>
    %8 = arith.truncf %7 : vector<16x256xf32> to vector<16x256xbf16>
    %c0_6 = arith.constant 0 : index
    %c0_7 = arith.constant 0 : index
    %9 = vector.load %arg5[%c0_6, %c0_7] : memref<16x256xbf16, #tpu.memory_space<vmem>>, vector<16x256xbf16>
    tpu.vector_store %arg5[%c0_6, %c0_7], %8 {strides = array<i32>} : memref<16x256xbf16, #tpu.memory_space<vmem>>, vector<16x256xbf16>,
    return
  }
  func.func @transform_0(%arg0: i32, %arg1: i32) -> (i32, i32) {
    %c0_i32 = arith.constant 0 : i32
    %c0_i32_0 = arith.constant 0 : i32
    return %arg0, %c0_i32 : i32, i32
  }
  func.func @transform_1(%arg0: i32, %arg1: i32) -> (i32, i32) {
    %c0_i32 = arith.constant 0 : i32
    %c0_i32_0 = arith.constant 0 : i32
    return %c0_i32, %arg1 : i32, i32
  }
  func.func @transform_2(%arg0: i32, %arg1: i32) -> (i32, i32) {
    %c0_i32 = arith.constant 0 : i32
    return %arg0, %arg1 : i32, i32
  }
  func.func @transform_3(%arg0: i32, %arg1: i32) -> (i32, i32) {
    %c0_i32 = arith.constant 0 : i32
    return %arg0, %arg1 : i32, i32
  }
}

module attributes {stable_mosaic.version = 11 : i64} {
  func.func @_mm_kernel(%arg0: i32, %arg1: i32, %arg2: memref<16x256xbf16, #tpu.memory_space<vmem>>, %arg3: memref<256x256xbf16, #tpu.memory_space<vmem>>, %arg4: memref<16x256xbf16, #tpu.memory_space<vmem>>) attributes {dimension_semantics = [#tpu.dimension_semantics<parallel>, #tpu.dimension_semantics<parallel>], iteration_bounds = array<i64: 1, 2>, scalar_prefetch = 0 : i64, scratch_operands = 0 : i64, tpu.core_type = #tpu.core_type<tc>, window_params = [{transform_indices = @transform_0, window_bounds = array<i64: 16, 256>}, {transform_indices = @transform_1, window_bounds = array<i64: 256, 256>}, {transform_indices = @transform_2, window_bounds = array<i64: 16, 256>}]} {
    %c0 = arith.constant 0 : index
    %c0_0 = arith.constant 0 : index
    %0 = vector.load %arg2[%c0, %c0_0] : memref<16x256xbf16, #tpu.memory_space<vmem>>, vector<16x256xbf16>
    %c0_1 = arith.constant 0 : index
    %c0_2 = arith.constant 0 : index
    %1 = vector.load %arg3[%c0_1, %c0_2] : memref<256x256xbf16, #tpu.memory_space<vmem>>, vector<256x256xbf16>
    %cst = arith.constant dense<0.000000e+00> : vector<16x256xf32>
    %2 = tpu.matmul %0, %1, %cst {dimension_numbers = #tpu.dot_dimension_numbers<[1], [0], [0], [1], [0, 0, 1, 1], [], []>} : vector<16x256xbf16>, vector<256x256xbf16>, vector<16x256xf32> -> vector<16x256xf32>
    %3 = arith.truncf %2 : vector<16x256xf32> to vector<16x256xbf16>
    %c0_3 = arith.constant 0 : index
    %c0_4 = arith.constant 0 : index
    %4 = vector.load %arg4[%c0_3, %c0_4] : memref<16x256xbf16, #tpu.memory_space<vmem>>, vector<16x256xbf16>
    tpu.vector_store %arg4[%c0_3, %c0_4], %3 {strides = array<i32>} : memref<16x256xbf16, #tpu.memory_space<vmem>>, vector<16x256xbf16>,
    return
  }
  func.func @transform_0(%arg0: i32, %arg1: i32) -> (i32, i32) {
    %c0_i32 = arith.constant 0 : i32
    %c0_i32_0 = arith.constant 0 : i32
    return %arg0, %c0_i32 : i32, i32
  }
  func.func @transform_1(%arg0: i32, %arg1: i32) -> (i32, i32) {
    %c0_i32 = arith.constant 0 : i32
    %c0_i32_0 = arith.constant 0 : i32
    return %c0_i32, %arg1 : i32, i32
  }
  func.func @transform_2(%arg0: i32, %arg1: i32) -> (i32, i32) {
    %c0_i32 = arith.constant 0 : i32
    return %arg0, %arg1 : i32, i32
  }
}

module attributes {stable_mosaic.version = 11 : i64} {
  func.func @_mm_kernel(%arg0: i32, %arg1: i32, %arg2: memref<16x512xbf16, #tpu.memory_space<vmem>>, %arg3: memref<512x128xbf16, #tpu.memory_space<vmem>>, %arg4: memref<16x128xbf16, #tpu.memory_space<vmem>>) attributes {dimension_semantics = [#tpu.dimension_semantics<parallel>, #tpu.dimension_semantics<parallel>], iteration_bounds = array<i64: 1, 1>, scalar_prefetch = 0 : i64, scratch_operands = 0 : i64, tpu.core_type = #tpu.core_type<tc>, window_params = [{transform_indices = @transform_0, window_bounds = array<i64: 16, 512>}, {transform_indices = @transform_1, window_bounds = array<i64: 512, 128>}, {transform_indices = @transform_2, window_bounds = array<i64: 16, 128>}]} {
    %c0 = arith.constant 0 : index
    %c0_0 = arith.constant 0 : index
    %0 = vector.load %arg2[%c0, %c0_0] : memref<16x512xbf16, #tpu.memory_space<vmem>>, vector<16x512xbf16>
    %c0_1 = arith.constant 0 : index
    %c0_2 = arith.constant 0 : index
    %1 = vector.load %arg3[%c0_1, %c0_2] : memref<512x128xbf16, #tpu.memory_space<vmem>>, vector<512x128xbf16>
    %cst = arith.constant dense<0.000000e+00> : vector<16x128xf32>
    %2 = tpu.matmul %0, %1, %cst {dimension_numbers = #tpu.dot_dimension_numbers<[1], [0], [0], [1], [0, 0, 1, 1], [], []>} : vector<16x512xbf16>, vector<512x128xbf16>, vector<16x128xf32> -> vector<16x128xf32>
    %cst_3 = arith.constant 0.000000e+00 : f32
    %3 = vector.broadcast %cst_3 : f32 to vector<16x128xf32>
    %4 = arith.maximumf %2, %3 : vector<16x128xf32>
    %5 = arith.truncf %4 : vector<16x128xf32> to vector<16x128xbf16>
    %c0_4 = arith.constant 0 : index
    %c0_5 = arith.constant 0 : index
    %6 = vector.load %arg4[%c0_4, %c0_5] : memref<16x128xbf16, #tpu.memory_space<vmem>>, vector<16x128xbf16>
    tpu.vector_store %arg4[%c0_4, %c0_5], %5 {strides = array<i32>} : memref<16x128xbf16, #tpu.memory_space<vmem>>, vector<16x128xbf16>,
    return
  }
  func.func @transform_0(%arg0: i32, %arg1: i32) -> (i32, i32) {
    %c0_i32 = arith.constant 0 : i32
    %c0_i32_0 = arith.constant 0 : i32
    return %arg0, %c0_i32 : i32, i32
  }
  func.func @transform_1(%arg0: i32, %arg1: i32) -> (i32, i32) {
    %c0_i32 = arith.constant 0 : i32
    %c0_i32_0 = arith.constant 0 : i32
    return %c0_i32, %arg1 : i32, i32
  }
  func.func @transform_2(%arg0: i32, %arg1: i32) -> (i32, i32) {
    %c0_i32 = arith.constant 0 : i32
    return %arg0, %arg1 : i32, i32
  }
}

module attributes {stable_mosaic.version = 11 : i64} {
  func.func @_mm_kernel(%arg0: i32, %arg1: i32, %arg2: memref<16x128xbf16, #tpu.memory_space<vmem>>, %arg3: memref<128x128xbf16, #tpu.memory_space<vmem>>, %arg4: memref<16x128xbf16, #tpu.memory_space<vmem>>) attributes {dimension_semantics = [#tpu.dimension_semantics<parallel>, #tpu.dimension_semantics<parallel>], iteration_bounds = array<i64: 1, 1>, scalar_prefetch = 0 : i64, scratch_operands = 0 : i64, tpu.core_type = #tpu.core_type<tc>, window_params = [{transform_indices = @transform_0, window_bounds = array<i64: 16, 128>}, {transform_indices = @transform_1, window_bounds = array<i64: 128, 128>}, {transform_indices = @transform_2, window_bounds = array<i64: 16, 128>}]} {
    %c0 = arith.constant 0 : index
    %c0_0 = arith.constant 0 : index
    %0 = vector.load %arg2[%c0, %c0_0] : memref<16x128xbf16, #tpu.memory_space<vmem>>, vector<16x128xbf16>
    %c0_1 = arith.constant 0 : index
    %c0_2 = arith.constant 0 : index
    %1 = vector.load %arg3[%c0_1, %c0_2] : memref<128x128xbf16, #tpu.memory_space<vmem>>, vector<128x128xbf16>
    %cst = arith.constant dense<0.000000e+00> : vector<16x128xf32>
    %2 = tpu.matmul %0, %1, %cst {dimension_numbers = #tpu.dot_dimension_numbers<[1], [0], [0], [1], [0, 0, 1, 1], [], []>} : vector<16x128xbf16>, vector<128x128xbf16>, vector<16x128xf32> -> vector<16x128xf32>
    %cst_3 = arith.constant 0.000000e+00 : f32
    %3 = vector.broadcast %cst_3 : f32 to vector<16x128xf32>
    %4 = arith.maximumf %2, %3 : vector<16x128xf32>
    %5 = arith.truncf %4 : vector<16x128xf32> to vector<16x128xbf16>
    %c0_4 = arith.constant 0 : index
    %c0_5 = arith.constant 0 : index
    %6 = vector.load %arg4[%c0_4, %c0_5] : memref<16x128xbf16, #tpu.memory_space<vmem>>, vector<16x128xbf16>
    tpu.vector_store %arg4[%c0_4, %c0_5], %5 {strides = array<i32>} : memref<16x128xbf16, #tpu.memory_space<vmem>>, vector<16x128xbf16>,
    return
  }
  func.func @transform_0(%arg0: i32, %arg1: i32) -> (i32, i32) {
    %c0_i32 = arith.constant 0 : i32
    %c0_i32_0 = arith.constant 0 : i32
    return %arg0, %c0_i32 : i32, i32
  }
  func.func @transform_1(%arg0: i32, %arg1: i32) -> (i32, i32) {
    %c0_i32 = arith.constant 0 : i32
    %c0_i32_0 = arith.constant 0 : i32
    return %c0_i32, %arg1 : i32, i32
  }
  func.func @transform_2(%arg0: i32, %arg1: i32) -> (i32, i32) {
    %c0_i32 = arith.constant 0 : i32
    return %arg0, %arg1 : i32, i32
  }
}

module attributes {stable_mosaic.version = 11 : i64} {
  func.func @_mm_kernel(%arg0: i32, %arg1: i32, %arg2: memref<16x3456xbf16, #tpu.memory_space<vmem>>, %arg3: memref<3456x128xbf16, #tpu.memory_space<vmem>>, %arg4: memref<16x128xbf16, #tpu.memory_space<vmem>>) attributes {dimension_semantics = [#tpu.dimension_semantics<parallel>, #tpu.dimension_semantics<parallel>], iteration_bounds = array<i64: 1, 1>, scalar_prefetch = 0 : i64, scratch_operands = 0 : i64, tpu.core_type = #tpu.core_type<tc>, window_params = [{transform_indices = @transform_0, window_bounds = array<i64: 16, 3456>}, {transform_indices = @transform_1, window_bounds = array<i64: 3456, 128>}, {transform_indices = @transform_2, window_bounds = array<i64: 16, 128>}]} {
    %c0 = arith.constant 0 : index
    %c0_0 = arith.constant 0 : index
    %0 = vector.load %arg2[%c0, %c0_0] : memref<16x3456xbf16, #tpu.memory_space<vmem>>, vector<16x3456xbf16>
    %c0_1 = arith.constant 0 : index
    %c0_2 = arith.constant 0 : index
    %1 = vector.load %arg3[%c0_1, %c0_2] : memref<3456x128xbf16, #tpu.memory_space<vmem>>, vector<3456x128xbf16>
    %cst = arith.constant dense<0.000000e+00> : vector<16x128xf32>
    %2 = tpu.matmul %0, %1, %cst {dimension_numbers = #tpu.dot_dimension_numbers<[1], [0], [0], [1], [0, 0, 1, 1], [], []>} : vector<16x3456xbf16>, vector<3456x128xbf16>, vector<16x128xf32> -> vector<16x128xf32>
    %cst_3 = arith.constant 0.000000e+00 : f32
    %3 = vector.broadcast %cst_3 : f32 to vector<16x128xf32>
    %4 = arith.maximumf %2, %3 : vector<16x128xf32>
    %5 = arith.truncf %4 : vector<16x128xf32> to vector<16x128xbf16>
    %c0_4 = arith.constant 0 : index
    %c0_5 = arith.constant 0 : index
    %6 = vector.load %arg4[%c0_4, %c0_5] : memref<16x128xbf16, #tpu.memory_space<vmem>>, vector<16x128xbf16>
    tpu.vector_store %arg4[%c0_4, %c0_5], %5 {strides = array<i32>} : memref<16x128xbf16, #tpu.memory_space<vmem>>, vector<16x128xbf16>,
    return
  }
  func.func @transform_0(%arg0: i32, %arg1: i32) -> (i32, i32) {
    %c0_i32 = arith.constant 0 : i32
    %c0_i32_0 = arith.constant 0 : i32
    return %arg0, %c0_i32 : i32, i32
  }
  func.func @transform_1(%arg0: i32, %arg1: i32) -> (i32, i32) {
    %c0_i32 = arith.constant 0 : i32
    %c0_i32_0 = arith.constant 0 : i32
    return %c0_i32, %arg1 : i32, i32
  }
  func.func @transform_2(%arg0: i32, %arg1: i32) -> (i32, i32) {
    %c0_i32 = arith.constant 0 : i32
    return %arg0, %arg1 : i32, i32
  }
}

module attributes {stable_mosaic.version = 11 : i64} {
  func.func @_head_kernel(%arg0: memref<2x8x128xbf16, #tpu.memory_space<vmem>>, %arg1: memref<128x128xf32, #tpu.memory_space<vmem>>, %arg2: memref<2x128xf32, #tpu.memory_space<vmem>>) attributes {dimension_semantics = [], scalar_prefetch = 0 : i64, scratch_operands = 0 : i64, tpu.core_type = #tpu.core_type<tc>} {
    %c0 = arith.constant 0 : index
    %c0_0 = arith.constant 0 : index
    %c0_1 = arith.constant 0 : index
    %0 = vector.load %arg0[%c0, %c0_0, %c0_1] : memref<2x8x128xbf16, #tpu.memory_space<vmem>>, vector<2x8x128xbf16>
    %1 = arith.extf %0 : vector<2x8x128xbf16> to vector<2x8x128xf32>
    %cst = arith.constant dense<0.000000e+00> : vector<2x128xf32>
    %2 = vector.multi_reduction <add>, %1, %cst [1] : vector<2x8x128xf32> to vector<2x128xf32>
    %cst_2 = arith.constant 8.000000e+00 : f32
    %3 = vector.broadcast %cst_2 : f32 to vector<2x128xf32>
    %4 = arith.divf %2, %3 : vector<2x128xf32>
    %c0_3 = arith.constant 0 : index
    %c0_4 = arith.constant 0 : index
    %5 = vector.load %arg1[%c0_3, %c0_4] : memref<128x128xf32, #tpu.memory_space<vmem>>, vector<128x128xf32>
    %cst_5 = arith.constant dense<0.000000e+00> : vector<2x128xf32>
    %6 = tpu.matmul %4, %5, %cst_5 {dimension_numbers = #tpu.dot_dimension_numbers<[1], [0], [0], [1], [0, 0, 1, 1], [], []>} : vector<2x128xf32>, vector<128x128xf32>, vector<2x128xf32> -> vector<2x128xf32>
    %c0_6 = arith.constant 0 : index
    %c0_7 = arith.constant 0 : index
    %7 = vector.load %arg2[%c0_6, %c0_7] : memref<2x128xf32, #tpu.memory_space<vmem>>, vector<2x128xf32>
    tpu.vector_store %arg2[%c0_6, %c0_7], %6 {strides = array<i32>} : memref<2x128xf32, #tpu.memory_space<vmem>>, vector<2x128xf32>,
    return
  }
}

</mosaic_0001>

<bundles_post_ra>
// kernel: cnn_forward.41
= control target key start
LH: loop header
LB: loop body
LE: loop exit
PB: predicated region body
PF: predicated region fallthrough
CT: control target
= control target key end

     0   :  { %s412_s6 = smov 0   ;;  %s606_s0 = inlined_call_operand.vmem [shape: bf16[2,10,10,4,64], index: 0, kind: input, shape index: {}]   ;;  %s607_s1 = inlined_call_operand.vmem [shape: bf16[2,4,4,4,64], index: 1, kind: output, shape index: {}]  }
   0x1 LB: > { %s374_s7 = sadd.s32 4294967295, %s400_s6   ;;  %p378_p0 = scmp.ge.s32.totalorder %s400_s6, 1  ;;  %s400_s6 = sphi %s412_s6, %s11_s6  }
   0x2   : > { %p87_p1 = scmp.lt.s32.totalorder %s400_s6, 3 }
   0x4   : > { %p88_p2 = pnand %p378_p0, %p87_p1 }
   0x5   : > { %p107_p3 = scmp.lt.s32.totalorder (!%p88_p2), %s374_s7, 1  ;;  %vm302_vm0 = vcmask (!%p88_p2), 517120  }
   0x6   : > { %91 = sbr.rel (%p88_p2) target bundleno = 55 (0x37), region = 24 }
   0xd   : > { %s609_s7 = smov (!%p107_p3, %s374_s7), 1 }
   0xe   : > { %s385_s8 = smul.u32 200, %s609_s7  ;;  %s384_s12 = sshll.u32 %s609_s7, 5 }
   0xf   : > { %s458_s15 = scalar_lea.vmem %s607_s1, %s384_s12 }
  0x10   : > { %s426_s11 = scalar_lea.vmem %s606_s0, %s385_s8 }
  0x11   : > { %v117_v0 = vld [vmem:[%s426_s11] sm:$0x3]  ;;  %v118_v1 = vld [vmem:[%s426_s11 + $0x2] sm:$0x3]  ;;  %v119_v2 = vld [vmem:[%s426_s11 + $0x4] sm:$0x3] }
  0x12   : > { %v126_v3 = vld [vmem:[%s426_s11 + $0x14] sm:$0x3]  ;;  %v127_v4 = vld [vmem:[%s426_s11 + $0x16] sm:$0x3]  ;;  %v128_v5 = vld [vmem:[%s426_s11 + $0x18] sm:$0x3] }
  0x13   : > { %v135_v6 = vld [vmem:[%s426_s11 + $0x28] sm:$0x3]  ;;  %v436_v7 = vld [vmem:[%s426_s11 + $0x2a] sm:$0x3]  ;;  %v439_v8 = vld [vmem:[%s426_s11 + $0x2c] sm:$0x3]  ;;  %v198_v9 = vmax.bf16 %v126_v3, %v117_v0  ;;  %v199_v10 = vmax.bf16 %v127_v4, %v118_v1  ;;  %v200_v11 = vmax.bf16 %v128_v5, %v119_v2 }
  0x14   : > { %v120_v12 = vld [vmem:[%s426_s11 + $0x6] sm:$0x3]  ;;  %v121_v13 = vld [vmem:[%s426_s11 + $0x8] sm:$0x3]  ;;  %v129_v14 = vld [vmem:[%s426_s11 + $0x1a] sm:$0x3] }
  0x15   : > { %v207_v15 = vmax.bf16 %v198_v9, %v135_v6  ;;  %v208_v16 = vmax.bf16 %v199_v10, %v436_v7  ;;  %v209_v17 = vmax.bf16 %v200_v11, %v439_v8  ;;  %v130_v18 = vld [vmem:[%s426_s11 + $0x1c] sm:$0x3]  ;;  %v138_v19 = vld [vmem:[%s426_s11 + $0x2e] sm:$0x3]  ;;  %v201_v20 = vmax.bf16 %v129_v14, %v120_v12  ;;  %v122_v22 = vld [vmem:[%s426_s11 + $0xa] sm:$0x3] }
  0x16   : > { %v202_v21 = vmax.bf16 %v130_v18, %v121_v13  ;;  %v123_v23 = vld [vmem:[%s426_s11 + $0xc] sm:$0x3]  ;;  %v131_v24 = vld [vmem:[%s426_s11 + $0x1e] sm:$0x3]  ;;  %v139_v26 = vld [vmem:[%s426_s11 + $0x30] sm:$0x3] }
  0x17   : > { %v216_v25 = vmax.bf16 %v208_v16, %v207_v15  ;;  %v210_v27 = vmax.bf16 %v201_v20, %v138_v19  ;;  %v132_v28 = vld [vmem:[%s426_s11 + $0x20] sm:$0x3]  ;;  %v140_v29 = vld [vmem:[%s426_s11 + $0x32] sm:$0x3]  ;;  %v203_v30 = vmax.bf16 %v131_v24, %v122_v22  ;;  %v124_v33 = vld [vmem:[%s426_s11 + $0xe] sm:$0x3] }
  0x18   : > { %v211_v31 = vmax.bf16 %v202_v21, %v139_v26  ;;  %v204_v32 = vmax.bf16 %v132_v28, %v123_v23  ;;  %v125_v34 = vld [vmem:[%s426_s11 + $0x10] sm:$0x3]  ;;  %v133_v35 = vld [vmem:[%s426_s11 + $0x22] sm:$0x3]  ;;  %v141_v38 = vld [vmem:[%s426_s11 + $0x34] sm:$0x3] }
  0x19   : > { %v217_v36 = vmax.bf16 %v216_v25, %v209_v17  ;;  %v218_v37 = vmax.bf16 %v210_v27, %v209_v17  ;;  %v212_v39 = vmax.bf16 %v203_v30, %v140_v29  ;;  %v134_v40 = vld [vmem:[%s426_s11 + $0x24] sm:$0x3]  ;;  %v142_v41 = vld [vmem:[%s426_s11 + $0x36] sm:$0x3]  ;;  %v205_v42 = vmax.bf16 %v133_v35, %v124_v33  ;;  %v144_v45 = vld [vmem:[%s426_s11 + $0x3c] sm:$0x3] }
  0x1a   : > { %v213_v43 = vmax.bf16 %v204_v32, %v141_v38  ;;  %v206_v44 = vmax.bf16 %v134_v40, %v125_v34  ;;  %v145_v46 = vld [vmem:[%s426_s11 + $0x3e] sm:$0x3]  ;;  %v146_v47 = vld [vmem:[%s426_s11 + $0x40] sm:$0x3]  ;;  %v143_v50 = vld [vmem:[%s426_s11 + $0x38] sm:$0x3]  ;;  %v224_v54 = vmax.bf16 %v144_v45, %v135_v6 }
  0x1b   : > { %303 = vst.msk [vmem:[%s458_s15] sm:$0x3] %vm302_vm0, %v217_v36  ;;  %v219_v48 = vmax.bf16 %v218_v37, %v211_v31  ;;  %v220_v49 = vmax.bf16 %v212_v39, %v211_v31  ;;  %v214_v51 = vmax.bf16 %v205_v42, %v142_v41  ;;  %v153_v52 = vld [vmem:[%s426_s11 + $0x50] sm:$0x3]  ;;  %v474_v53 = vld [vmem:[%s426_s11 + $0x52] sm:$0x3]  ;;  %v225_v57 = vmax.bf16 %v145_v46, %v436_v7 }
  0x1c   : > { %v215_v55 = vmax.bf16 %v206_v44, %v143_v50  ;;  %v477_v56 = vld [vmem:[%s426_s11 + $0x54] sm:$0x3]  ;;  %v226_v58 = vmax.bf16 %v146_v47, %v439_v8  ;;  %v147_v59 = vld [vmem:[%s426_s11 + $0x42] sm:$0x3]  ;;  %v148_v60 = vld [vmem:[%s426_s11 + $0x44] sm:$0x3]  ;;  %v233_v63 = vmax.bf16 %v224_v54, %v153_v52 }
  0x1d   : > { %304 = vst.msk [vmem:[%s458_s15 + $0x2] sm:$0x3] %vm302_vm0, %v219_v48  ;;  %v221_v61 = vmax.bf16 %v220_v49, %v213_v43  ;;  %v222_v62 = vmax.bf16 %v214_v51, %v213_v43  ;;  %v486_v0 = vld [vmem:[%s426_s11 + $0x56] sm:$0x3]  ;;  %v227_v1 = vmax.bf16 %v147_v59, %v138_v19  ;;  %v149_v2 = vld [vmem:[%s426_s11 + $0x46] sm:$0x3]  ;;  %v234_v4 = vmax.bf16 %v225_v57, %v474_v53 }
  0x1e   : > { %v150_v3 = vld [vmem:[%s426_s11 + $0x48] sm:$0x3]  ;;  %v235_v5 = vmax.bf16 %v226_v58, %v477_v56  ;;  %v157_v6 = vld [vmem:[%s426_s11 + $0x58] sm:$0x3]  ;;  %v228_v7 = vmax.bf16 %v148_v60, %v139_v26  ;;  %v494_v8 = vld [vmem:[%s426_s11 + $0x5a] sm:$0x3]  ;;  %v229_v9 = vmax.bf16 %v149_v2, %v140_v29 }
  0x1f   : > { %v151_v10 = vld [vmem:[%s426_s11 + $0x4a] sm:$0x3]  ;;  %305 = vst.msk [vmem:[%s458_s15 + $0x4] sm:$0x3] %vm302_vm0, %v221_v61  ;;  %v223_v11 = vmax.bf16 %v222_v62, %v215_v55  ;;  %v236_v12 = vmax.bf16 %v227_v1, %v486_v0  ;;  %v159_v13 = vld [vmem:[%s426_s11 + $0x5c] sm:$0x3]  ;;  %v230_v14 = vmax.bf16 %v150_v3, %v141_v38  ;;  %v242_v18 = vmax.bf16 %v234_v4, %v233_v63 }
  0x20   : > { %v152_v15 = vld [vmem:[%s426_s11 + $0x4c] sm:$0x3]  ;;  %v503_v16 = vld [vmem:[%s426_s11 + $0x5e] sm:$0x3]  ;;  %v231_v17 = vmax.bf16 %v151_v10, %v142_v41  ;;  %v237_v19 = vmax.bf16 %v228_v7, %v157_v6  ;;  %v238_v20 = vmax.bf16 %v229_v9, %v494_v8  ;;  %v162_v22 = vld [vmem:[%s426_s11 + $0x64] sm:$0x3] }
  0x21   : > { %v232_v21 = vmax.bf16 %v152_v15, %v143_v50  ;;  %v163_v23 = vld [vmem:[%s426_s11 + $0x66] sm:$0x3]  ;;  %v164_v24 = vld [vmem:[%s426_s11 + $0x68] sm:$0x3]  ;;  %306 = vst.msk [vmem:[%s458_s15 + $0x6] sm:$0x3] %vm302_vm0, %v223_v11  ;;  %v244_v25 = vmax.bf16 %v236_v12, %v235_v5  ;;  %v239_v26 = vmax.bf16 %v230_v14, %v159_v13  ;;  %v250_v31 = vmax.bf16 %v162_v22, %v153_v52 }
  0x22   : > { %v161_v27 = vld [vmem:[%s426_s11 + $0x60] sm:$0x3]  ;;  %v240_v28 = vmax.bf16 %v231_v17, %v503_v16  ;;  %v171_v29 = vld [vmem:[%s426_s11 + $0x78] sm:$0x3]  ;;  %v515_v30 = vld [vmem:[%s426_s11 + $0x7a] sm:$0x3]  ;;  %v243_v32 = vmax.bf16 %v242_v18, %v235_v5  ;;  %v246_v33 = vmax.bf16 %v238_v20, %v237_v19  ;;  %v251_v36 = vmax.bf16 %v163_v23, %v474_v53 }
  0x23   : > { %v241_v34 = vmax.bf16 %v232_v21, %v161_v27  ;;  %v518_v35 = vld [vmem:[%s426_s11 + $0x7c] sm:$0x3]  ;;  %v165_v37 = vld [vmem:[%s426_s11 + $0x6a] sm:$0x3]  ;;  %v166_v38 = vld [vmem:[%s426_s11 + $0x6c] sm:$0x3]  ;;  %v245_v39 = vmax.bf16 %v244_v25, %v237_v19  ;;  %v252_v41 = vmax.bf16 %v164_v24, %v477_v56  ;;  %v259_v42 = vmax.bf16 %v250_v31, %v171_v29 }
  0x24   : > { %v248_v40 = vmax.bf16 %v240_v28, %v239_v26  ;;  %v525_v43 = vld [vmem:[%s426_s11 + $0x7e] sm:$0x3]  ;;  %v167_v44 = vld [vmem:[%s426_s11 + $0x6e] sm:$0x3]  ;;  %v168_v45 = vld [vmem:[%s426_s11 + $0x70] sm:$0x3]  ;;  %v247_v46 = vmax.bf16 %v246_v33, %v239_v26  ;;  %v260_v47 = vmax.bf16 %v251_v36, %v515_v30  ;;  %v253_v49 = vmax.bf16 %v165_v37, %v486_v0 }
  0x25   : > { %307 = vst.msk [vmem:[%s458_s15 + $0x8] sm:$0x3] %vm302_vm0, %v243_v32  ;;  %v533_v48 = vld [vmem:[%s426_s11 + $0x80] sm:$0x3]  ;;  %v254_v50 = vmax.bf16 %v166_v38, %v157_v6  ;;  %v537_v51 = vld [vmem:[%s426_s11 + $0x82] sm:$0x3]  ;;  %v261_v54 = vmax.bf16 %v252_v41, %v518_v35  ;;  %v255_v56 = vmax.bf16 %v167_v44, %v494_v8  ;;  %v256_v57 = vmax.bf16 %v168_v45, %v159_v13 }
  0x26   : > { %v169_v52 = vld [vmem:[%s426_s11 + $0x72] sm:$0x3]  ;;  %308 = vst.msk [vmem:[%s458_s15 + $0xa] sm:$0x3] %vm302_vm0, %v245_v39  ;;  %v249_v53 = vmax.bf16 %v248_v40, %v241_v34  ;;  %v544_v55 = vld [vmem:[%s426_s11 + $0x84] sm:$0x3]  ;;  %v268_v60 = vmax.bf16 %v260_v47, %v259_v42  ;;  %v262_v61 = vmax.bf16 %v253_v49, %v525_v43 }
  0x27   : > { %v170_v58 = vld [vmem:[%s426_s11 + $0x74] sm:$0x3]  ;;  %v549_v59 = vld [vmem:[%s426_s11 + $0x86] sm:$0x3]  ;;  %309 = vst.msk [vmem:[%s458_s15 + $0xc] sm:$0x3] %vm302_vm0, %v247_v46  ;;  %v263_v62 = vmax.bf16 %v254_v50, %v533_v48  ;;  %v257_v63 = vmax.bf16 %v169_v52, %v503_v16  ;;  %v264_v3 = vmax.bf16 %v255_v56, %v537_v51  ;;  %v265_v4 = vmax.bf16 %v256_v57, %v544_v55 }
  0x28   : > { %v180_v0 = vld [vmem:[%s426_s11 + $0x8c] sm:$0x3]  ;;  %v181_v1 = vld [vmem:[%s426_s11 + $0x8e] sm:$0x3]  ;;  %v182_v2 = vld [vmem:[%s426_s11 + $0x90] sm:$0x3]  ;;  %v258_v6 = vmax.bf16 %v170_v58, %v161_v27  ;;  %v269_v10 = vmax.bf16 %v268_v60, %v261_v54  ;;  %v270_v11 = vmax.bf16 %v262_v61, %v261_v54 }
  0x29   : > { %310 = vst.msk [vmem:[%s458_s15 + $0xe] sm:$0x3] %vm302_vm0, %v249_v53  ;;  %v179_v5 = vld [vmem:[%s426_s11 + $0x88] sm:$0x3]  ;;  %v189_v7 = vld [vmem:[%s426_s11 + $0xa0] sm:$0x3]  ;;  %v276_v9 = vmax.bf16 %v180_v0, %v171_v29  ;;  %v266_v12 = vmax.bf16 %v257_v63, %v549_v59  ;;  %v277_v14 = vmax.bf16 %v181_v1, %v515_v30  ;;  %v272_v17 = vmax.bf16 %v264_v3, %v263_v62 }
  0x2a   : > { %v190_v8 = vld [vmem:[%s426_s11 + $0xa2] sm:$0x3]  ;;  %v191_v13 = vld [vmem:[%s426_s11 + $0xa4] sm:$0x3]  ;;  %v183_v15 = vld [vmem:[%s426_s11 + $0x92] sm:$0x3]  ;;  %v267_v18 = vmax.bf16 %v258_v6, %v179_v5  ;;  %v278_v19 = vmax.bf16 %v182_v2, %v518_v35  ;;  %v271_v24 = vmax.bf16 %v270_v11, %v263_v62 }
  0x2b   : > { %v184_v16 = vld [vmem:[%s426_s11 + $0x94] sm:$0x3]  ;;  %v285_v20 = vmax.bf16 %v276_v9, %v189_v7  ;;  %v192_v21 = vld [vmem:[%s426_s11 + $0xa6] sm:$0x3]  ;;  %v185_v22 = vld [vmem:[%s426_s11 + $0x96] sm:$0x3]  ;;  %v274_v25 = vmax.bf16 %v266_v12, %v265_v4  ;;  %v286_v26 = vmax.bf16 %v277_v14, %v190_v8  ;;  %v279_v28 = vmax.bf16 %v183_v15, %v525_v43 }
  0x2c   : > { %v186_v23 = vld [vmem:[%s426_s11 + $0x98] sm:$0x3]  ;;  %311 = vst.msk [vmem:[%s458_s15 + $0x10] sm:$0x3] %vm302_vm0, %v269_v10  ;;  %v193_v27 = vld [vmem:[%s426_s11 + $0xa8] sm:$0x3]  ;;  %v273_v31 = vmax.bf16 %v272_v17, %v265_v4  ;;  %v287_v32 = vmax.bf16 %v278_v19, %v191_v13  ;;  %v280_v33 = vmax.bf16 %v184_v16, %v533_v48  ;;  %v281_v35 = vmax.bf16 %v185_v22, %v537_v51 }
  0x2d   : > { %v194_v29 = vld [vmem:[%s426_s11 + $0xaa] sm:$0x3]  ;;  %v187_v30 = vld [vmem:[%s426_s11 + $0x9a] sm:$0x3]  ;;  %v195_v34 = vld [vmem:[%s426_s11 + $0xac] sm:$0x3]  ;;  %v275_v37 = vmax.bf16 %v274_v25, %v267_v18  ;;  %v294_v38 = vmax.bf16 %v286_v26, %v285_v20  ;;  %v288_v39 = vmax.bf16 %v279_v28, %v192_v21  ;;  %v282_v40 = vmax.bf16 %v186_v23, %v544_v55 }
  0x2e   : > { %v188_v36 = vld [vmem:[%s426_s11 + $0x9c] sm:$0x3]  ;;  %312 = vst.msk [vmem:[%s458_s15 + $0x12] sm:$0x3] %vm302_vm0, %v271_v24  ;;  %v196_v41 = vld [vmem:[%s426_s11 + $0xae] sm:$0x3]  ;;  %v289_v43 = vmax.bf16 %v280_v33, %v193_v27  ;;  %v290_v44 = vmax.bf16 %v281_v35, %v194_v29  ;;  %v283_v45 = vmax.bf16 %v187_v30, %v549_v59 }
  0x2f   : > { %v197_v42 = vld [vmem:[%s426_s11 + $0xb0] sm:$0x3]  ;;  %313 = vst.msk [vmem:[%s458_s15 + $0x14] sm:$0x3] %vm302_vm0, %v273_v31  ;;  %v284_v46 = vmax.bf16 %v188_v36, %v179_v5  ;;  %314 = vst.msk [vmem:[%s458_s15 + $0x16] sm:$0x3] %vm302_vm0, %v275_v37  ;;  %v295_v47 = vmax.bf16 %v294_v38, %v287_v32  ;;  %v296_v48 = vmax.bf16 %v288_v39, %v287_v32 }
  0x30   : > { %v291_v49 = vmax.bf16 %v282_v40, %v195_v34  ;;  %v298_v50 = vmax.bf16 %v290_v44, %v289_v43  ;;  %v292_v51 = vmax.bf16 %v283_v45, %v196_v41 }
  0x31   : > { %v293_v52 = vmax.bf16 %v284_v46, %v197_v42  ;;  %315 = vst.msk [vmem:[%s458_s15 + $0x18] sm:$0x3] %vm302_vm0, %v295_v47  ;;  %v297_v53 = vmax.bf16 %v296_v48, %v289_v43 }
  0x32   : > { %v299_v54 = vmax.bf16 %v298_v50, %v291_v49  ;;  %v300_v55 = vmax.bf16 %v292_v51, %v291_v49 }
  0x33   : > { %316 = vst.msk [vmem:[%s458_s15 + $0x1a] sm:$0x3] %vm302_vm0, %v297_v53 }
  0x34   : > { %317 = vst.msk [vmem:[%s458_s15 + $0x1c] sm:$0x3] %vm302_vm0, %v299_v54  ;;  %v301_v56 = vmax.bf16 %v300_v55, %v293_v52 }
  0x36   : > { %318 = vst.msk [vmem:[%s458_s15 + $0x1e] sm:$0x3] %vm302_vm0, %v301_v56 }
  0x37 PF: > { %s11_s6 = sadd.s32 1, %s400_s6  }
  0x38   : > { %p8_p4 = scmp.ge.s32.totalorder %s11_s6, 4  }
  0x3a   :  { %10 = sbr.rel (!%p8_p4) target bundleno = 1 (0x1), region = 54 }

// kernel: cnn_forward.42
= control target key start
LH: loop header
LB: loop body
LE: loop exit
PB: predicated region body
PF: predicated region fallthrough
CT: control target
= control target key end

     0   :  { %vm100_vm0 = vcmask 523264   ;;  %vm302_vm1 = vcmask 519168   ;;  %s554_s1 = inlined_call_operand.vmem [shape: bf16[64,64], index: 1, kind: input, shape index: {}]   ;;  %s555_s0 = inlined_call_operand.vmem [shape: bf16[128,64], index: 0, kind: input, shape index: {}]   ;;  %s556_s2 = inlined_call_operand.vmem [shape: bf16[128,64], index: 2, kind: output, shape index: {}]  }
   0x1   :  { %v419_v0 = vld [vmem:[%s554_s1] sm:$0xff]   ;;  %v420_v1 = vld [vmem:[%s554_s1 + $0x8] sm:$0xff]   ;;  %v421_v2 = vld [vmem:[%s554_s1 + $0x10] sm:$0xff]  }
   0x2   :  { %387 = vmatprep.subr.bf16.mxu0 %v419_v0  ;;  %411 = vmatprep.subr.bf16.mxu1 %v419_v0  ;;  %v423_v3 = vld [vmem:[%s555_s0] sm:$0xff]   ;;  %v422_v5 = vld [vmem:[%s554_s1 + $0x18] sm:$0xff]   ;;  %v425_v6 = vld [vmem:[%s555_s0 + $0x8] sm:$0xff]  }
   0x3   :  { %388 = vmatpush3.bf16.msra.mxu0 %v419_v0  ;;  %415 = vmatpush3.bf16.msra.mxu1 %v419_v0  ;;  %v424_v4 = vld [vmem:[%s555_s0 + $0x20] sm:$0xff]   ;;  %v426_v7 = vld [vmem:[%s555_s0 + $0x28] sm:$0xff]   ;;  %v427_v8 = vld [vmem:[%s555_s0 + $0x10] sm:$0xff]  }
   0x4   :  { %389 = vmatprep.subr.bf16.mxu0 %v420_v1  ;;  %412 = vmatprep.subr.bf16.mxu1 %v420_v1  ;;  %v428_v9 = vld [vmem:[%s555_s0 + $0x30] sm:$0xff]   ;;  %v429_v10 = vld [vmem:[%s555_s0 + $0x18] sm:$0xff]  }
   0x5   :  { %395 = vmatprep.mubr.msk.bf16.mxu0 %vm100_vm0, %v423_v3  ;;  %403 = vmatprep.mubr.msk.bf16.mxu1 %vm100_vm0, %v424_v4  ;;  %v430_v11 = vld [vmem:[%s555_s0 + $0x38] sm:$0xff]  }
   0x7   :  { %390 = vmatpush3.bf16.msra.mxu0 %v420_v1  ;;  %416 = vmatpush3.bf16.msra.mxu1 %v420_v1 }
   0x8   :  { %391 = vmatprep.subr.bf16.mxu0 %v421_v2  ;;  %413 = vmatprep.subr.bf16.mxu1 %v421_v2 }
   0xb   :  { %392 = vmatpush3.bf16.msra.mxu0 %v421_v2  ;;  %417 = vmatpush3.bf16.msra.mxu1 %v421_v2 }
   0xc   :  { %393 = vmatprep.subr.bf16.mxu0 %v422_v5  ;;  %414 = vmatprep.subr.bf16.mxu1 %v422_v5 }
   0xf   :  { %394 = vmatpush3.bf16.msra.mxu0 %v422_v5  ;;  %418 = vmatpush3.bf16.msra.mxu1 %v422_v5 }
  0x12   :  { %396 = vmatmul.mubr.msk.bf16.vlgmr.msra.gmra.mrb[0].mxu0 %vm100_vm0, %v425_v6  ;;  %404 = vmatmul.mubr.msk.bf16.vlgmr.msra.gmra.mrb[0].mxu1 %vm100_vm0, %v426_v7 }
  0x13   :  { %399 = vmatprep.mubr.msk.bf16.mxu0 %vm100_vm0, %v427_v8  ;;  %407 = vmatprep.mubr.msk.bf16.mxu1 %vm100_vm0, %v428_v9 }
  0x1a   :  { %400 = vmatmul.mubr.msk.bf16.gmra.mrb[4].mxu0 %vm100_vm0, %v429_v10  ;;  %408 = vmatmul.mubr.msk.bf16.gmra.mrb[4].mxu1 %vm100_vm0, %v430_v11 }
  0xe5   :  { %v397_v12 = vpop.f32.mrb[0].mxu0  ;;  %v405_v13 = vpop.f32.mrb[0].mxu1 }
  0xe6   :  { %v224_v14 = vmax.f32 %v397_v12, 0.0  ;;  %v232_v15 = vmax.f32 %v405_v13, 0.0  ;;  %v159_v16 = vpop.f32.mrb[1].mxu0  ;;  %v191_v17 = vpop.f32.mrb[1].mxu1 }
  0xe7   :  { %v222_v18 = vmax.f32 %v159_v16, 0.0  ;;  %v230_v19 = vmax.f32 %v191_v17, 0.0  ;;  %v398_v20 = vpop.f32.mrb[2].mxu0  ;;  %v406_v21 = vpop.f32.mrb[2].mxu1 }
  0xe8   :  { %v361_v22 = vpack.c.bf16 %v224_v14, %v224_v14  ;;  %v369_v23 = vpack.c.bf16 %v232_v15, %v232_v15  ;;  %v225_v24 = vmax.f32 %v398_v20, 0.0  ;;  %v233_v25 = vmax.f32 %v406_v21, 0.0  ;;  %v162_v26 = vpop.f32.mrb[3].mxu0  ;;  %v194_v27 = vpop.f32.mrb[3].mxu1 }
  0xe9   :  { %v359_v28 = vpack.c.bf16 %v222_v18, %v222_v18  ;;  %v367_v29 = vpack.c.bf16 %v230_v19, %v230_v19  ;;  %v223_v30 = vmax.f32 %v162_v26, 0.0  ;;  %v231_v31 = vmax.f32 %v194_v27, 0.0 }
  0xea   :  { %305 = vst.msk [vmem:[%s556_s2 + $0x8] sm:$0xf] %vm302_vm1, %v361_v22  ;;  %313 = vst.msk [vmem:[%s556_s2 + $0x28] sm:$0xf] %vm302_vm1, %v369_v23  ;;  %v362_v32 = vpack.c.bf16 %v225_v24, %v225_v24  ;;  %v370_v33 = vpack.c.bf16 %v233_v25, %v233_v25 }
  0xeb   :  { %303 = vst.msk [vmem:[%s556_s2] sm:$0xf] %vm302_vm1, %v359_v28  ;;  %311 = vst.msk [vmem:[%s556_s2 + $0x20] sm:$0xf] %vm302_vm1, %v367_v29  ;;  %v360_v34 = vpack.c.bf16 %v223_v30, %v223_v30  ;;  %v368_v35 = vpack.c.bf16 %v231_v31, %v231_v31 }
  0xec   :  { %306 = vst.msk [vmem:[%s556_s2 + $0xc] sm:$0xf] %vm302_vm1, %v362_v32  ;;  %314 = vst.msk [vmem:[%s556_s2 + $0x2c] sm:$0xf] %vm302_vm1, %v370_v33 }
  0xed   :  { %304 = vst.msk [vmem:[%s556_s2 + $0x4] sm:$0xf] %vm302_vm1, %v360_v34  ;;  %312 = vst.msk [vmem:[%s556_s2 + $0x24] sm:$0xf] %vm302_vm1, %v368_v35  ;;  %v401_v36 = vpop.f32.mrb[4].mxu0  ;;  %v409_v37 = vpop.f32.mrb[4].mxu1 }
  0xee   :  { %v228_v38 = vmax.f32 %v401_v36, 0.0  ;;  %v236_v39 = vmax.f32 %v409_v37, 0.0  ;;  %v175_v40 = vpop.f32.mrb[5].mxu0  ;;  %v207_v41 = vpop.f32.mrb[5].mxu1 }
  0xef   :  { %v226_v42 = vmax.f32 %v175_v40, 0.0  ;;  %v234_v43 = vmax.f32 %v207_v41, 0.0  ;;  %v402_v44 = vpop.f32.mrb[6].mxu0  ;;  %v410_v45 = vpop.f32.mrb[6].mxu1 }
  0xf0   :  { %v365_v46 = vpack.c.bf16 %v228_v38, %v228_v38  ;;  %v373_v47 = vpack.c.bf16 %v236_v39, %v236_v39  ;;  %v229_v48 = vmax.f32 %v402_v44, 0.0  ;;  %v237_v49 = vmax.f32 %v410_v45, 0.0  ;;  %v178_v50 = vpop.f32.mrb[7].mxu0  ;;  %v210_v51 = vpop.f32.mrb[7].mxu1 }
  0xf1   :  { %v363_v52 = vpack.c.bf16 %v226_v42, %v226_v42  ;;  %v371_v53 = vpack.c.bf16 %v234_v43, %v234_v43  ;;  %v227_v54 = vmax.f32 %v178_v50, 0.0  ;;  %v235_v55 = vmax.f32 %v210_v51, 0.0 }
  0xf2   :  { %309 = vst.msk [vmem:[%s556_s2 + $0x18] sm:$0xf] %vm302_vm1, %v365_v46  ;;  %317 = vst.msk [vmem:[%s556_s2 + $0x38] sm:$0xf] %vm302_vm1, %v373_v47  ;;  %v366_v56 = vpack.c.bf16 %v229_v48, %v229_v48  ;;  %v374_v57 = vpack.c.bf16 %v237_v49, %v237_v49 }
  0xf3   :  { %307 = vst.msk [vmem:[%s556_s2 + $0x10] sm:$0xf] %vm302_vm1, %v363_v52  ;;  %315 = vst.msk [vmem:[%s556_s2 + $0x30] sm:$0xf] %vm302_vm1, %v371_v53  ;;  %v364_v58 = vpack.c.bf16 %v227_v54, %v227_v54  ;;  %v372_v59 = vpack.c.bf16 %v235_v55, %v235_v55 }
  0xf4   :  { %310 = vst.msk [vmem:[%s556_s2 + $0x1c] sm:$0xf] %vm302_vm1, %v366_v56  ;;  %318 = vst.msk [vmem:[%s556_s2 + $0x3c] sm:$0xf] %vm302_vm1, %v374_v57 }
  0xf5   :  { %308 = vst.msk [vmem:[%s556_s2 + $0x14] sm:$0xf] %vm302_vm1, %v364_v58  ;;  %316 = vst.msk [vmem:[%s556_s2 + $0x34] sm:$0xf] %vm302_vm1, %v372_v59 }

// kernel: cnn_forward.40
= control target key start
LH: loop header
LB: loop body
LE: loop exit
PB: predicated region body
PF: predicated region fallthrough
CT: control target
= control target key end

     0   :  { %s7139_s9 = smov 0   ;;  %s7141_s10 = smov 0   ;;  %s8429_s0 = inlined_call_operand.vmem [shape: bf16[1024,1408], index: 0, kind: input, shape index: {}]   ;;  %s8430_s1 = inlined_call_operand.vmem [shape: bf16[1408,64], index: 1, kind: input, shape index: {}]   ;;  %s8431_s2 = inlined_call_operand.vmem [shape: bf16[1024,64], index: 2, kind: output, shape index: {}]  }
   0x1   :  { %s7143_s11 = smov 0  }
   0x2 LB: > { %s24_s12 = sadd.s32 1, %s7117_s10  ;;  %p5282_p0 = scmp.ge.s32.totalorder %s7121_s11, 1  ;;  %s7121_s11 = sphi %s7143_s11, %s12_s11   ;;  %s7117_s10 = sphi %s7141_s10, %s8461_s10   ;;  %s7113_s9 = sphi %s7139_s9, %s8460_s9  }
   0x3   : > { %p26_p1 = scmp.ge.s32.totalorder %s24_s12, 2  ;;  %p137_p2 = scmp.lt.s32.totalorder %s7121_s11, 3 }
   0x5   : > { %s8463_s12 = smov (%p26_p1, %s24_s12), 0  ;;  %p138_p3 = pnand %p5282_p0, %p137_p2 }
   0x7   : > { %141 = sbr.rel (%p138_p3) target bundleno = 998 (0x3e6), region = 28 }
   0xe   : > { %v6483_v0 = vld [vmem:[%s8430_s1] sm:$0xff]   ;;  %v7123_v1 = vmov 0   ;;  %v6485_v3 = vld [vmem:[%s8430_s1 + $0x8] sm:$0xff]   ;;  %v6487_v5 = vld [vmem:[%s8430_s1 + $0x10] sm:$0xff]   ;;  %s5283_s5 = sshll.u32 %s7113_s9, 6  ;;  %vm5122_vm0 = vcmask 519168  }
   0xf   : > { %3068 = vmatprep.subr.bf16.mxu1 %v7123_v1  ;;  %3646 = vmatprep.subr.bf16.mxu0 %v7123_v1  ;;  %v6484_v2 = vld [vmem:[%s8430_s1 + $0x100] sm:$0xff]   ;;  %v6486_v4 = vld [vmem:[%s8430_s1 + $0x108] sm:$0xff]   ;;  %v6488_v6 = vld [vmem:[%s8430_s1 + $0x110] sm:$0xff]   ;;  %p168_p4 = scmp.lt.s32.totalorder %s5283_s5, 127 }
  0x10   : > { %3069 = vmatpush1.bf16.msra.mxu1 %v6483_v0  ;;  %3647 = vmatpush1.bf16.msra.mxu0 %v6484_v2  ;;  %v6489_v7 = vld [vmem:[%s8430_s1 + $0x18] sm:$0xff]   ;;  %v6491_v9 = vld [vmem:[%s8430_s1 + $0x20] sm:$0xff]   ;;  %v6493_v11 = vld [vmem:[%s8430_s1 + $0x28] sm:$0xff]  }
  0x11   : > { %3070 = vmatprep.subr.bf16.mxu1 %v7123_v1  ;;  %3648 = vmatprep.subr.bf16.mxu0 %v7123_v1  ;;  %v6490_v8 = vld [vmem:[%s8430_s1 + $0x118] sm:$0xff]   ;;  %v6492_v10 = vld [vmem:[%s8430_s1 + $0x120] sm:$0xff]   ;;  %v6494_v12 = vld [vmem:[%s8430_s1 + $0x128] sm:$0xff]   ;;  %s8465_s5 = smov (!%p168_p4, %s5283_s5), 127 }
  0x12   : > { %v6495_v13 = vld [vmem:[%s8430_s1 + $0x30] sm:$0xff]   ;;  %v6497_v15 = vld [vmem:[%s8430_s1 + $0x38] sm:$0xff]   ;;  %s6457_s19 = smul.u32 44, %s8465_s5  ;;  %v6499_v17 = vld [vmem:[%s8430_s1 + $0x40] sm:$0xff]  }
  0x13   : > { %v6496_v14 = vld [vmem:[%s8430_s1 + $0x130] sm:$0xff]   ;;  %v6498_v16 = vld [vmem:[%s8430_s1 + $0x138] sm:$0xff]   ;;  %v6500_v18 = vld [vmem:[%s8430_s1 + $0x140] sm:$0xff]  }
  0x14   : > { %3071 = vmatpush1.bf16.msra.mxu1 %v6485_v3  ;;  %3649 = vmatpush1.bf16.msra.mxu0 %v6486_v4  ;;  %s7233_s26 = scalar_lea.vmem %s8429_s0, %s6457_s19  ;;  %v6501_v20 = vld [vmem:[%s8430_s1 + $0x48] sm:$0xff]   ;;  %v6503_v23 = vld [vmem:[%s8430_s1 + $0x50] sm:$0xff]   ;;  %v6505_v25 = vld [vmem:[%s8430_s1 + $0x58] sm:$0xff]  }
  0x15   : > { %3072 = vmatprep.subr.bf16.mxu1 %v7123_v1  ;;  %3650 = vmatprep.subr.bf16.mxu0 %v7123_v1  ;;  %v6517_v19 = vld [vmem:[%s7233_s26 + $0x4] ss:$44 sps:$4 sm:$0xff]   ;;  %v6520_v21 = vld [vmem:[%s7233_s26 + $0x14] ss:$44 sps:$4 sm:$0xff]   ;;  %v6502_v22 = vld [vmem:[%s8430_s1 + $0x148] sm:$0xff]  }
  0x16   : > { %3100 = vmatprep.mubr.bf16.mxu1 %v6517_v19  ;;  %3678 = vmatprep.mubr.bf16.mxu0 %v6520_v21  ;;  %v6504_v24 = vld [vmem:[%s8430_s1 + $0x150] sm:$0xff]   ;;  %v6506_v26 = vld [vmem:[%s8430_s1 + $0x158] sm:$0xff]   ;;  %v6507_v27 = vld [vmem:[%s8430_s1 + $0x60] sm:$0xff]  }
  0x17   : > { %v6508_v28 = vld [vmem:[%s8430_s1 + $0x160] sm:$0xff]   ;;  %v6509_v29 = vld [vmem:[%s8430_s1 + $0x68] sm:$0xff]   ;;  %v6511_v31 = vld [vmem:[%s8430_s1 + $0x70] sm:$0xff]  }
  0x18   : > { %3073 = vmatpush1.bf16.msra.mxu1 %v6487_v5  ;;  %3651 = vmatpush1.bf16.msra.mxu0 %v6488_v6  ;;  %v6510_v30 = vld [vmem:[%s8430_s1 + $0x168] sm:$0xff]   ;;  %v6512_v32 = vld [vmem:[%s8430_s1 + $0x170] sm:$0xff]   ;;  %v6513_v33 = vld [vmem:[%s8430_s1 + $0x78] sm:$0xff]  }
  0x19   : > { %3074 = vmatprep.subr.bf16.mxu1 %v7123_v1  ;;  %3652 = vmatprep.subr.bf16.mxu0 %v7123_v1  ;;  %v6514_v34 = vld [vmem:[%s8430_s1 + $0x178] sm:$0xff]   ;;  %v6515_v35 = vld [vmem:[%s7233_s26] ss:$44 sps:$4 sm:$0xff]   ;;  %v6528_v44 = vld [vmem:[%s7233_s26 + $0x68] ss:$44 sps:$4 sm:$0xff]  }
  0x1a   : > { %v6518_v36 = vld [vmem:[%s7233_s26 + $0x10] ss:$44 sps:$4 sm:$0xff]   ;;  %v6521_v37 = vld [vmem:[%s8430_s1 + $0x180] sm:$0xff]   ;;  %v6525_v40 = vld [vmem:[%s7233_s26 + $0x6c] ss:$44 sps:$4 sm:$0xff]  }
  0x1b   : > { %v6522_v38 = vld [vmem:[%s8430_s1 + $0x80] sm:$0xff]   ;;  %v6523_v39 = vld [vmem:[%s7233_s26 + $0x5c] ss:$44 sps:$4 sm:$0xff]   ;;  %v6543_v47 = vld [vmem:[%s8430_s1 + $0x190] sm:$0xff]  }
  0x1c   : > { %3075 = vmatpush1.bf16.msra.mxu1 %v6489_v7  ;;  %3653 = vmatpush1.bf16.msra.mxu0 %v6490_v8  ;;  %v6536_v41 = vld [vmem:[%s8430_s1 + $0x88] sm:$0xff]   ;;  %v6527_v43 = vld [vmem:[%s7233_s26 + $0x58] ss:$44 sps:$4 sm:$0xff]   ;;  %v6530_v45 = vld [vmem:[%s7233_s26 + $0xb4] ss:$44 sps:$4 sm:$0xff]  }
  0x1d   : > { %3076 = vmatprep.subr.bf16.mxu1 %v7123_v1  ;;  %3654 = vmatprep.subr.bf16.mxu0 %v7123_v1  ;;  %v6529_v42 = vld [vmem:[%s8430_s1 + $0x188] sm:$0xff]   ;;  %v6532_v46 = vld [vmem:[%s7233_s26 + $0xc4] ss:$44 sps:$4 sm:$0xff]   ;;  %v6551_v49 = vld [vmem:[%s8430_s1 + $0x198] sm:$0xff]  }
  0x1e   : > { %v6550_v48 = vld [vmem:[%s8430_s1 + $0x90] sm:$0xff]   ;;  %v6565_v50 = vld [vmem:[%s8430_s1 + $0x98] sm:$0xff]   ;;  %v6535_v52 = vld [vmem:[%s7233_s26 + $0xc0] ss:$44 sps:$4 sm:$0xff]  }
  0x1f   : > { %v6534_v51 = vld [vmem:[%s7233_s26 + $0xb0] ss:$44 sps:$4 sm:$0xff]   ;;  %v6537_v53 = vld [vmem:[%s7233_s26 + $0x10c] ss:$44 sps:$4 sm:$0xff]   ;;  %v6564_v55 = vld [vmem:[%s8430_s1 + $0x1a0] sm:$0xff]  }
  0x20   : > { %3077 = vmatpush1.bf16.msra.mxu1 %v6491_v9  ;;  %3655 = vmatpush1.bf16.msra.mxu0 %v6492_v10  ;;  %v6539_v54 = vld [vmem:[%s7233_s26 + $0x11c] ss:$44 sps:$4 sm:$0xff]   ;;  %v6579_v56 = vld [vmem:[%s8430_s1 + $0xa0] sm:$0xff]   ;;  %v6586_v63 = vld [vmem:[%s8430_s1 + $0x1b0] sm:$0xff]  }
  0x21   : > { %3078 = vmatprep.subr.bf16.mxu1 %v7123_v1  ;;  %3656 = vmatprep.subr.bf16.mxu0 %v7123_v1  ;;  %v6541_v57 = vld [vmem:[%s7233_s26 + $0x108] ss:$44 sps:$4 sm:$0xff]   ;;  %v6542_v59 = vld [vmem:[%s7233_s26 + $0x118] ss:$44 sps:$4 sm:$0xff]   ;;  %v6548_v3 = vld [vmem:[%s7233_s26 + $0x160] ss:$44 sps:$4 sm:$0xff]  }
  0x22   : > { %v6572_v58 = vld [vmem:[%s8430_s1 + $0x1a8] sm:$0xff]   ;;  %v6544_v61 = vld [vmem:[%s7233_s26 + $0x164] ss:$44 sps:$4 sm:$0xff]   ;;  %v6546_v62 = vld [vmem:[%s7233_s26 + $0x174] ss:$44 sps:$4 sm:$0xff]  }
  0x23   : > { %v6593_v60 = vld [vmem:[%s8430_s1 + $0xa8] sm:$0xff]   ;;  %v6608_v0 = vld [vmem:[%s8430_s1 + $0xb0] sm:$0xff]   ;;  %v6594_v2 = vld [vmem:[%s8430_s1 + $0x1b8] sm:$0xff]  }
  0x24   : > { %3079 = vmatpush1.bf16.msra.mxu1 %v6493_v11  ;;  %3657 = vmatpush1.bf16.msra.mxu0 %v6494_v12  ;;  %v6622_v4 = vld [vmem:[%s8430_s1 + $0xb8] sm:$0xff]   ;;  %v6607_v8 = vld [vmem:[%s8430_s1 + $0x1c0] sm:$0xff]   ;;  %v6615_v10 = vld [vmem:[%s8430_s1 + $0x1c8] sm:$0xff]  }
  0x25   : > { %3080 = vmatprep.subr.bf16.mxu1 %v7123_v1  ;;  %3658 = vmatprep.subr.bf16.mxu0 %v7123_v1  ;;  %v6549_v5 = vld [vmem:[%s7233_s26 + $0x170] ss:$44 sps:$4 sm:$0xff]   ;;  %v6554_v7 = vld [vmem:[%s7233_s26 + $0x1cc] ss:$44 sps:$4 sm:$0xff]   ;;  %v6636_v9 = vld [vmem:[%s8430_s1 + $0xc0] sm:$0xff]  }
  0x26   : > { %v6552_v6 = vld [vmem:[%s7233_s26 + $0x1bc] ss:$44 sps:$4 sm:$0xff]   ;;  %v6556_v11 = vld [vmem:[%s7233_s26 + $0x1b8] ss:$44 sps:$4 sm:$0xff]   ;;  %v6563_v19 = vld [vmem:[%s7233_s26 + $0x220] ss:$44 sps:$4 sm:$0xff]  }
  0x27   : > { %v6557_v12 = vld [vmem:[%s7233_s26 + $0x1c8] ss:$44 sps:$4 sm:$0xff]  }
  0x28   : > { %3081 = vmatpush1.bf16.msra.mxu1 %v6495_v13  ;;  %3659 = vmatpush1.bf16.msra.mxu0 %v6496_v14  ;;  %v6558_v13 = vld [vmem:[%s7233_s26 + $0x214] ss:$44 sps:$4 sm:$0xff]   ;;  %v6560_v14 = vld [vmem:[%s7233_s26 + $0x224] ss:$44 sps:$4 sm:$0xff]   ;;  %v6568_v21 = vld [vmem:[%s7233_s26 + $0x27c] ss:$44 sps:$4 sm:$0xff]  }
  0x29   : > { %3082 = vmatprep.subr.bf16.mxu1 %v7123_v1  ;;  %3660 = vmatprep.subr.bf16.mxu0 %v7123_v1 }
  0x2c   : > { %3083 = vmatpush1.bf16.msra.mxu1 %v6497_v15  ;;  %3661 = vmatpush1.bf16.msra.mxu0 %v6498_v16  ;;  %v6629_v15 = vld [vmem:[%s8430_s1 + $0x1d0] sm:$0xff]   ;;  %v6651_v16 = vld [vmem:[%s8430_s1 + $0xc8] sm:$0xff]  }
  0x2d   : > { %3084 = vmatprep.subr.bf16.mxu1 %v7123_v1  ;;  %3662 = vmatprep.subr.bf16.mxu0 %v7123_v1 }
  0x30   : > { %3085 = vmatpush1.bf16.msra.mxu1 %v6499_v17  ;;  %3663 = vmatpush1.bf16.msra.mxu0 %v6500_v18  ;;  %v6637_v17 = vld [vmem:[%s8430_s1 + $0x1d8] sm:$0xff]  }
  0x31   : > { %3086 = vmatprep.subr.bf16.mxu1 %v7123_v1  ;;  %3664 = vmatprep.subr.bf16.mxu0 %v7123_v1  ;;  %v6562_v18 = vld [vmem:[%s7233_s26 + $0x210] ss:$44 sps:$4 sm:$0xff]  }
  0x34   : > { %3087 = vmatpush1.bf16.msra.mxu1 %v6501_v20  ;;  %3665 = vmatpush1.bf16.msra.mxu0 %v6502_v22  ;;  %v6566_v20 = vld [vmem:[%s7233_s26 + $0x26c] ss:$44 sps:$4 sm:$0xff]   ;;  %v6650_v22 = vld [vmem:[%s8430_s1 + $0x1e0] sm:$0xff]  }
  0x35   : > { %3088 = vmatprep.subr.bf16.mxu1 %v7123_v1  ;;  %3666 = vmatprep.subr.bf16.mxu0 %v7123_v1 }
  0x38   : > { %3089 = vmatpush1.bf16.msra.mxu1 %v6503_v23  ;;  %3667 = vmatpush1.bf16.msra.mxu0 %v6504_v24  ;;  %v6665_v23 = vld [vmem:[%s8430_s1 + $0xd0] sm:$0xff]   ;;  %v6658_v24 = vld [vmem:[%s8430_s1 + $0x1e8] sm:$0xff]  }
  0x39   : > { %3090 = vmatprep.subr.bf16.mxu1 %v7123_v1  ;;  %3668 = vmatprep.subr.bf16.mxu0 %v7123_v1 }
  0x3c   : > { %3091 = vmatpush1.bf16.msra.mxu1 %v6505_v25  ;;  %3669 = vmatpush1.bf16.msra.mxu0 %v6506_v26  ;;  %v6570_v25 = vld [vmem:[%s7233_s26 + $0x268] ss:$44 sps:$4 sm:$0xff]   ;;  %v6571_v26 = vld [vmem:[%s7233_s26 + $0x278] ss:$44 sps:$4 sm:$0xff]  }
  0x3d   : > { %3092 = vmatprep.subr.bf16.mxu1 %v7123_v1  ;;  %3670 = vmatprep.subr.bf16.mxu0 %v7123_v1 }
  0x40   : > { %3093 = vmatpush1.bf16.msra.mxu1 %v6507_v27  ;;  %3671 = vmatpush1.bf16.msra.mxu0 %v6508_v28  ;;  %v6573_v27 = vld [vmem:[%s7233_s26 + $0x2c4] ss:$44 sps:$4 sm:$0xff]   ;;  %v6575_v28 = vld [vmem:[%s7233_s26 + $0x2d4] ss:$44 sps:$4 sm:$0xff]  }
  0x41   : > { %3094 = vmatprep.subr.bf16.mxu1 %v7123_v1  ;;  %3672 = vmatprep.subr.bf16.mxu0 %v7123_v1 }
  0x44   : > { %3095 = vmatpush1.bf16.msra.mxu1 %v6509_v29  ;;  %3673 = vmatpush1.bf16.msra.mxu0 %v6510_v30  ;;  %v6672_v29 = vld [vmem:[%s8430_s1 + $0x1f0] sm:$0xff]   ;;  %v6679_v30 = vld [vmem:[%s8430_s1 + $0xd8] sm:$0xff]  }
  0x45   : > { %3096 = vmatprep.subr.bf16.mxu1 %v7123_v1  ;;  %3674 = vmatprep.subr.bf16.mxu0 %v7123_v1 }
  0x48   : > { %3097 = vmatpush1.bf16.msra.mxu1 %v6511_v31  ;;  %3675 = vmatpush1.bf16.msra.mxu0 %v6512_v32  ;;  %v6680_v31 = vld [vmem:[%s8430_s1 + $0x1f8] sm:$0xff]   ;;  %v6577_v32 = vld [vmem:[%s7233_s26 + $0x2c0] ss:$44 sps:$4 sm:$0xff]  }
  0x49   : > { %3098 = vmatprep.subr.bf16.mxu1 %v7123_v1  ;;  %3676 = vmatprep.subr.bf16.mxu0 %v7123_v1 }
  0x4c   : > { %3099 = vmatpush1.bf16.msra.mxu1 %v6513_v33  ;;  %3677 = vmatpush1.bf16.msra.mxu0 %v6514_v34  ;;  %v6578_v33 = vld [vmem:[%s7233_s26 + $0x2d0] ss:$44 sps:$4 sm:$0xff]  }
  0x4d   : > { %3357 = vmatprep.subr.bf16.mxu1 %v7123_v1  ;;  %3935 = vmatprep.subr.bf16.mxu0 %v7123_v1  ;;  %v6580_v34 = vld [vmem:[%s7233_s26 + $0x31c] ss:$44 sps:$4 sm:$0xff]  }
  0x4f   : > { %3101 = vmatmul.mubr.bf16.vlgmr.msra.gmra.mrb[0].mxu1 %v6515_v35  ;;  %3679 = vmatmul.mubr.bf16.vlgmr.msra.gmra.mrb[0].mxu0 %v6518_v36  ;;  %v6582_v35 = vld [vmem:[%s7233_s26 + $0x32c] ss:$44 sps:$4 sm:$0xff]  }
  0x50   : > { %3358 = vmatpush1.bf16.msra.mxu1 %v6522_v38  ;;  %3936 = vmatpush1.bf16.msra.mxu0 %v6521_v37  ;;  %v6584_v36 = vld [vmem:[%s7233_s26 + $0x318] ss:$44 sps:$4 sm:$0xff]   ;;  %v6585_v38 = vld [vmem:[%s7233_s26 + $0x328] ss:$44 sps:$4 sm:$0xff]  }
  0x51   : > { %3108 = vmatprep.mubr.bf16.mxu1 %v6523_v39  ;;  %3686 = vmatprep.mubr.bf16.mxu0 %v6525_v40  ;;  %v6694_v37 = vld [vmem:[%s8430_s1 + $0xe0] sm:$0xff]  }
  0x52   : > { %3937 = vmatprep.subr.bf16.mxu0 %v7123_v1  ;;  %3359 = vmatprep.subr.bf16.mxu1 %v7123_v1  ;;  %v6587_v39 = vld [vmem:[%s7233_s26 + $0x374] ss:$44 sps:$4 sm:$0xff]   ;;  %v6589_v40 = vld [vmem:[%s7233_s26 + $0x384] ss:$44 sps:$4 sm:$0xff]  }
  0x54   : > { %3360 = vmatpush1.bf16.msra.mxu1 %v6536_v41  ;;  %3938 = vmatpush1.bf16.msra.mxu0 %v6529_v42  ;;  %v6591_v41 = vld [vmem:[%s7233_s26 + $0x370] ss:$44 sps:$4 sm:$0xff]   ;;  %v6592_v42 = vld [vmem:[%s7233_s26 + $0x380] ss:$44 sps:$4 sm:$0xff]  }
  0x55   : > { %3361 = vmatprep.subr.bf16.mxu1 %v7123_v1  ;;  %3939 = vmatprep.subr.bf16.mxu0 %v7123_v1 }
  0x57   : > { %3109 = vmatmul.mubr.bf16.gmra.mrb[4].mxu1 %v6527_v43  ;;  %3687 = vmatmul.mubr.bf16.gmra.mrb[4].mxu0 %v6528_v44  ;;  %v6595_v43 = vld [vmem:[%s7233_s26 + $0x3cc] ss:$44 sps:$4 sm:$0xff]   ;;  %v6597_v44 = vld [vmem:[%s7233_s26 + $0x3dc] ss:$44 sps:$4 sm:$0xff]  }
  0x58   : > { %3116 = vmatprep.mubr.bf16.mxu1 %v6530_v45  ;;  %3694 = vmatprep.mubr.bf16.mxu0 %v6532_v46  ;;  %v6708_v45 = vld [vmem:[%s8430_s1 + $0xe8] sm:$0xff]  }
  0x59   : > { %3940 = vmatpush1.bf16.msra.mxu0 %v6543_v47  ;;  %3362 = vmatpush1.bf16.msra.mxu1 %v6550_v48  ;;  %v6599_v46 = vld [vmem:[%s7233_s26 + $0x3c8] ss:$44 sps:$4 sm:$0xff]   ;;  %v6600_v47 = vld [vmem:[%s7233_s26 + $0x3d8] ss:$44 sps:$4 sm:$0xff]  }
  0x5a   : > { %3941 = vmatprep.subr.bf16.mxu0 %v7123_v1  ;;  %3363 = vmatprep.subr.bf16.mxu1 %v7123_v1  ;;  %v6601_v48 = vld [vmem:[%s7233_s26 + $0x424] ss:$44 sps:$4 sm:$0xff]  }
  0x5d   : > { %3942 = vmatpush1.bf16.msra.mxu0 %v6551_v49  ;;  %3364 = vmatpush1.bf16.msra.mxu1 %v6565_v50  ;;  %v6603_v49 = vld [vmem:[%s7233_s26 + $0x434] ss:$44 sps:$4 sm:$0xff]  }
  0x5e   : > { %3943 = vmatprep.subr.bf16.mxu0 %v7123_v1  ;;  %3365 = vmatprep.subr.bf16.mxu1 %v7123_v1  ;;  %v6605_v50 = vld [vmem:[%s7233_s26 + $0x420] ss:$44 sps:$4 sm:$0xff]  }
  0x5f   : > { %3117 = vmatmul.mubr.bf16.gmra.mrb[8].mxu1 %v6534_v51  ;;  %3695 = vmatmul.mubr.bf16.gmra.mrb[8].mxu0 %v6535_v52  ;;  %v6606_v51 = vld [vmem:[%s7233_s26 + $0x430] ss:$44 sps:$4 sm:$0xff]  }
  0x60   : > { %3124 = vmatprep.mubr.bf16.mxu1 %v6537_v53  ;;  %3702 = vmatprep.mubr.bf16.mxu0 %v6539_v54  ;;  %v6609_v52 = vld [vmem:[%s7233_s26 + $0x47c] ss:$44 sps:$4 sm:$0xff]   ;;  %v6611_v53 = vld [vmem:[%s7233_s26 + $0x48c] ss:$44 sps:$4 sm:$0xff]   ;;  %v6722_v54 = vld [vmem:[%s8430_s1 + $0xf0] sm:$0xff]  }
  0x61   : > { %3944 = vmatpush1.bf16.msra.mxu0 %v6564_v55  ;;  %3366 = vmatpush1.bf16.msra.mxu1 %v6579_v56  ;;  %v6613_v55 = vld [vmem:[%s7233_s26 + $0x478] ss:$44 sps:$4 sm:$0xff]   ;;  %v6614_v56 = vld [vmem:[%s7233_s26 + $0x488] ss:$44 sps:$4 sm:$0xff]  }
  0x62   : > { %3945 = vmatprep.subr.bf16.mxu0 %v7123_v1  ;;  %3367 = vmatprep.subr.bf16.mxu1 %v7123_v1 }
  0x65   : > { %3946 = vmatpush1.bf16.msra.mxu0 %v6572_v58  ;;  %3368 = vmatpush1.bf16.msra.mxu1 %v6593_v60  ;;  %v6618_v58 = vld [vmem:[%s7233_s26 + $0x4e4] ss:$44 sps:$4 sm:$0xff]   ;;  %v6621_v60 = vld [vmem:[%s7233_s26 + $0x4e0] ss:$44 sps:$4 sm:$0xff]  }
  0x66   : > { %3947 = vmatprep.subr.bf16.mxu0 %v7123_v1  ;;  %3369 = vmatprep.subr.bf16.mxu1 %v7123_v1 }
  0x67   : > { %3125 = vmatmul.mubr.bf16.gmra.mrb[12].mxu1 %v6541_v57  ;;  %3703 = vmatmul.mubr.bf16.gmra.mrb[12].mxu0 %v6542_v59  ;;  %v6616_v57 = vld [vmem:[%s7233_s26 + $0x4d4] ss:$44 sps:$4 sm:$0xff]   ;;  %v6620_v59 = vld [vmem:[%s7233_s26 + $0x4d0] ss:$44 sps:$4 sm:$0xff]  }
  0x68   : > { %3132 = vmatprep.mubr.bf16.mxu1 %v6544_v61  ;;  %3710 = vmatprep.mubr.bf16.mxu0 %v6546_v62  ;;  %v6623_v61 = vld [vmem:[%s7233_s26 + $0x52c] ss:$44 sps:$4 sm:$0xff]   ;;  %v6625_v62 = vld [vmem:[%s7233_s26 + $0x53c] ss:$44 sps:$4 sm:$0xff]  }
  0x69   : > { %3948 = vmatpush1.bf16.msra.mxu0 %v6586_v63  ;;  %3370 = vmatpush1.bf16.msra.mxu1 %v6608_v0  ;;  %v6736_v63 = vld [vmem:[%s8430_s1 + $0xf8] sm:$0xff]   ;;  %v6627_v0 = vld [vmem:[%s7233_s26 + $0x528] ss:$44 sps:$4 sm:$0xff]  }
  0x6a   : > { %3949 = vmatprep.subr.bf16.mxu0 %v7123_v1  ;;  %3371 = vmatprep.subr.bf16.mxu1 %v7123_v1 }
  0x6d   : > { %3950 = vmatpush1.bf16.msra.mxu0 %v6594_v2  ;;  %3372 = vmatpush1.bf16.msra.mxu1 %v6622_v4  ;;  %v6628_v2 = vld [vmem:[%s7233_s26 + $0x538] ss:$44 sps:$4 sm:$0xff]   ;;  %v6632_v4 = vld [vmem:[%s7233_s26 + $0x594] ss:$44 sps:$4 sm:$0xff]  }
  0x6e   : > { %3951 = vmatprep.subr.bf16.mxu0 %v7123_v1  ;;  %3373 = vmatprep.subr.bf16.mxu1 %v7123_v1 }
  0x6f   : > { %3133 = vmatmul.mubr.bf16.gmra.mrb[16].mxu1 %v6548_v3  ;;  %3711 = vmatmul.mubr.bf16.gmra.mrb[16].mxu0 %v6549_v5  ;;  %v6630_v3 = vld [vmem:[%s7233_s26 + $0x584] ss:$44 sps:$4 sm:$0xff]   ;;  %v6634_v5 = vld [vmem:[%s7233_s26 + $0x580] ss:$44 sps:$4 sm:$0xff]  }
  0x70   : > { %3140 = vmatprep.mubr.bf16.mxu1 %v6552_v6  ;;  %3718 = vmatprep.mubr.bf16.mxu0 %v6554_v7  ;;  %v6635_v6 = vld [vmem:[%s7233_s26 + $0x590] ss:$44 sps:$4 sm:$0xff]  }
  0x71   : > { %3952 = vmatpush1.bf16.msra.mxu0 %v6607_v8  ;;  %3374 = vmatpush1.bf16.msra.mxu1 %v6636_v9  ;;  %v6638_v7 = vld [vmem:[%s7233_s26 + $0x5dc] ss:$44 sps:$4 sm:$0xff]   ;;  %v6640_v8 = vld [vmem:[%s7233_s26 + $0x5ec] ss:$44 sps:$4 sm:$0xff]  }
  0x72   : > { %3953 = vmatprep.subr.bf16.mxu0 %v7123_v1  ;;  %3375 = vmatprep.subr.bf16.mxu1 %v7123_v1  ;;  %v6642_v9 = vld [vmem:[%s7233_s26 + $0x5d8] ss:$44 sps:$4 sm:$0xff]  }
  0x75   : > { %3954 = vmatpush1.bf16.msra.mxu0 %v6615_v10  ;;  %3376 = vmatpush1.bf16.msra.mxu1 %v6651_v16  ;;  %v6643_v10 = vld [vmem:[%s7233_s26 + $0x5e8] ss:$44 sps:$4 sm:$0xff]  }
  0x76   : > { %3955 = vmatprep.subr.bf16.mxu0 %v7123_v1  ;;  %3377 = vmatprep.subr.bf16.mxu1 %v7123_v1  ;;  %v6654_v16 = vld [vmem:[%s7233_s26 + $0x69c] ss:$44 sps:$4 sm:$0xff]  }
  0x77   : > { %3141 = vmatmul.mubr.bf16.gmra.mrb[20].mxu1 %v6556_v11  ;;  %3719 = vmatmul.mubr.bf16.gmra.mrb[20].mxu0 %v6557_v12  ;;  %v6644_v11 = vld [vmem:[%s7233_s26 + $0x634] ss:$44 sps:$4 sm:$0xff]   ;;  %v6646_v12 = vld [vmem:[%s7233_s26 + $0x644] ss:$44 sps:$4 sm:$0xff]  }
  0x78   : > { %3148 = vmatprep.mubr.bf16.mxu1 %v6558_v13  ;;  %3726 = vmatprep.mubr.bf16.mxu0 %v6560_v14  ;;  %v6648_v13 = vld [vmem:[%s7233_s26 + $0x630] ss:$44 sps:$4 sm:$0xff]   ;;  %v6649_v14 = vld [vmem:[%s7233_s26 + $0x640] ss:$44 sps:$4 sm:$0xff]  }
  0x79   : > { %3956 = vmatpush1.bf16.msra.mxu0 %v6629_v15  ;;  %3378 = vmatpush1.bf16.msra.mxu1 %v6665_v23  ;;  %v6652_v15 = vld [vmem:[%s7233_s26 + $0x68c] ss:$44 sps:$4 sm:$0xff]   ;;  %v6666_v23 = vld [vmem:[%s7233_s26 + $0x73c] ss:$44 sps:$4 sm:$0xff]  }
  0x7a   : > { %3957 = vmatprep.subr.bf16.mxu0 %v7123_v1  ;;  %3379 = vmatprep.subr.bf16.mxu1 %v7123_v1 }
  0x7d   : > { %3958 = vmatpush1.bf16.msra.mxu0 %v6637_v17  ;;  %3380 = vmatpush1.bf16.msra.mxu1 %v6679_v30  ;;  %v6656_v17 = vld [vmem:[%s7233_s26 + $0x688] ss:$44 sps:$4 sm:$0xff]   ;;  %v6678_v30 = vld [vmem:[%s7233_s26 + $0x7a0] ss:$44 sps:$4 sm:$0xff]  }
  0x7e   : > { %3959 = vmatprep.subr.bf16.mxu0 %v7123_v1  ;;  %3381 = vmatprep.subr.bf16.mxu1 %v7123_v1 }
  0x7f   : > { %3149 = vmatmul.mubr.bf16.gmra.mrb[24].mxu1 %v6562_v18  ;;  %3727 = vmatmul.mubr.bf16.gmra.mrb[24].mxu0 %v6563_v19  ;;  %v6657_v18 = vld [vmem:[%s7233_s26 + $0x698] ss:$44 sps:$4 sm:$0xff]  }
  0x80   : > { %3156 = vmatprep.mubr.bf16.mxu1 %v6566_v20  ;;  %3734 = vmatprep.mubr.bf16.mxu0 %v6568_v21  ;;  %v6659_v19 = vld [vmem:[%s7233_s26 + $0x6e4] ss:$44 sps:$4 sm:$0xff]   ;;  %v6661_v20 = vld [vmem:[%s7233_s26 + $0x6f4] ss:$44 sps:$4 sm:$0xff]  }
  0x81   : > { %3960 = vmatpush1.bf16.msra.mxu0 %v6650_v22  ;;  %3382 = vmatpush1.bf16.msra.mxu1 %v6694_v37  ;;  %v6663_v21 = vld [vmem:[%s7233_s26 + $0x6e0] ss:$44 sps:$4 sm:$0xff]   ;;  %v6664_v22 = vld [vmem:[%s7233_s26 + $0x6f0] ss:$44 sps:$4 sm:$0xff]  }
  0x82   : > { %3961 = vmatprep.subr.bf16.mxu0 %v7123_v1  ;;  %3383 = vmatprep.subr.bf16.mxu1 %v7123_v1  ;;  %v6692_v37 = vld [vmem:[%s7233_s26 + $0x840] ss:$44 sps:$4 sm:$0xff]  }
  0x85   : > { %3962 = vmatpush1.bf16.msra.mxu0 %v6658_v24  ;;  %3384 = vmatpush1.bf16.msra.mxu1 %v6708_v45  ;;  %v6668_v24 = vld [vmem:[%s7233_s26 + $0x74c] ss:$44 sps:$4 sm:$0xff]   ;;  %v6701_v45 = vld [vmem:[%s7233_s26 + $0x8f4] ss:$44 sps:$4 sm:$0xff]  }
  0x86   : > { %3963 = vmatprep.subr.bf16.mxu0 %v7123_v1  ;;  %3385 = vmatprep.subr.bf16.mxu1 %v7123_v1 }
  0x87   : > { %3157 = vmatmul.mubr.bf16.gmra.mrb[28].mxu1 %v6570_v25  ;;  %3735 = vmatmul.mubr.bf16.gmra.mrb[28].mxu0 %v6571_v26  ;;  %v6670_v25 = vld [vmem:[%s7233_s26 + $0x738] ss:$44 sps:$4 sm:$0xff]   ;;  %v6671_v26 = vld [vmem:[%s7233_s26 + $0x748] ss:$44 sps:$4 sm:$0xff]  }
  0x88   : > { %3164 = vmatprep.mubr.bf16.mxu1 %v6573_v27  ;;  %3742 = vmatprep.mubr.bf16.mxu0 %v6575_v28  ;;  %v6673_v27 = vld [vmem:[%s7233_s26 + $0x794] ss:$44 sps:$4 sm:$0xff]   ;;  %v6675_v28 = vld [vmem:[%s7233_s26 + $0x7a4] ss:$44 sps:$4 sm:$0xff]  }
  0x89   : > { %3964 = vmatpush1.bf16.msra.mxu0 %v6672_v29  ;;  %3386 = vmatpush1.bf16.msra.mxu1 %v6722_v54  ;;  %v6677_v29 = vld [vmem:[%s7233_s26 + $0x790] ss:$44 sps:$4 sm:$0xff]   ;;  %v6762_v54 = vld [vmem:[%s8430_s1 + $0x228] sm:$0xff]  }
  0x8a   : > { %3965 = vmatprep.subr.bf16.mxu0 %v7123_v1  ;;  %3387 = vmatprep.subr.bf16.mxu1 %v7123_v1 }
  0x8d   : > { %3966 = vmatpush1.bf16.msra.mxu0 %v6680_v31  ;;  %3388 = vmatpush1.bf16.msra.mxu1 %v6736_v63  ;;  %v6681_v31 = vld [vmem:[%s7233_s26 + $0x7ec] ss:$44 sps:$4 sm:$0xff]   ;;  %v6723_v63 = vld [vmem:[%s7233_s26 + $0x9fc] ss:$44 sps:$4 sm:$0xff]  }
  0x8e   : > { %4224 = vmatprep.subr.bf16.mxu0 %v7123_v1  ;;  %5977 = vmatprep.subr.bf16.mxu1 %v7123_v1 }
  0x8f   : > { %3165 = vmatmul.mubr.bf16.gmra.mrb[32].mxu1 %v6577_v32  ;;  %3743 = vmatmul.mubr.bf16.gmra.mrb[32].mxu0 %v6578_v33  ;;  %v6683_v32 = vld [vmem:[%s7233_s26 + $0x7fc] ss:$44 sps:$4 sm:$0xff]  }
  0x90   : > { %3172 = vmatprep.mubr.bf16.mxu1 %v6580_v34  ;;  %3750 = vmatprep.mubr.bf16.mxu0 %v6582_v35  ;;  %v6685_v33 = vld [vmem:[%s7233_s26 + $0x7e8] ss:$44 sps:$4 sm:$0xff]   ;;  %v6686_v34 = vld [vmem:[%s7233_s26 + $0x7f8] ss:$44 sps:$4 sm:$0xff]  }
  0x91   : > { %v6687_v35 = vld [vmem:[%s7233_s26 + $0x844] ss:$44 sps:$4 sm:$0xff]  }
  0x97   : > { %3173 = vmatmul.mubr.bf16.gmra.mrb[36].mxu1 %v6584_v36  ;;  %3751 = vmatmul.mubr.bf16.gmra.mrb[36].mxu0 %v6585_v38  ;;  %v6691_v36 = vld [vmem:[%s7233_s26 + $0x1c] ss:$44 sps:$4 sm:$0xff]   ;;  %v6689_v38 = vld [vmem:[%s7233_s26 + $0x18] ss:$44 sps:$4 sm:$0xff]  }
  0x98   : > { %3180 = vmatprep.mubr.bf16.mxu1 %v6587_v39  ;;  %3758 = vmatprep.mubr.bf16.mxu0 %v6589_v40  ;;  %v6695_v39 = vld [vmem:[%s7233_s26 + $0x89c] ss:$44 sps:$4 sm:$0xff]   ;;  %v6693_v40 = vld [vmem:[%s8430_s1 + $0x200] sm:$0xff]  }
  0x9f   : > { %3181 = vmatmul.mubr.bf16.gmra.mrb[40].mxu1 %v6591_v41  ;;  %3759 = vmatmul.mubr.bf16.gmra.mrb[40].mxu0 %v6592_v42  ;;  %v6697_v41 = vld [vmem:[%s7233_s26 + $0x74] ss:$44 sps:$4 sm:$0xff]   ;;  %v6699_v42 = vld [vmem:[%s7233_s26 + $0x898] ss:$44 sps:$4 sm:$0xff]  }
  0xa0   : > { %3188 = vmatprep.mubr.bf16.mxu1 %v6595_v43  ;;  %3766 = vmatprep.mubr.bf16.mxu0 %v6597_v44  ;;  %v6707_v43 = vld [vmem:[%s8430_s1 + $0x208] sm:$0xff]   ;;  %v6700_v44 = vld [vmem:[%s7233_s26 + $0x70] ss:$44 sps:$4 sm:$0xff]  }
  0xa7   : > { %3189 = vmatmul.mubr.bf16.gmra.mrb[44].mxu1 %v6599_v46  ;;  %3767 = vmatmul.mubr.bf16.gmra.mrb[44].mxu0 %v6600_v47  ;;  %v6703_v46 = vld [vmem:[%s7233_s26 + $0xcc] ss:$44 sps:$4 sm:$0xff]   ;;  %v6721_v47 = vld [vmem:[%s8430_s1 + $0x210] sm:$0xff]  }
  0xa8   : > { %3196 = vmatprep.mubr.bf16.mxu1 %v6601_v48  ;;  %3774 = vmatprep.mubr.bf16.mxu0 %v6603_v49  ;;  %v6735_v48 = vld [vmem:[%s8430_s1 + $0x218] sm:$0xff]  }
  0xa9   : > { %v6705_v49 = vld [vmem:[%s7233_s26 + $0x8f0] ss:$44 sps:$4 sm:$0xff]  }
  0xaf   : > { %3197 = vmatmul.mubr.bf16.gmra.mrb[48].mxu1 %v6605_v50  ;;  %3775 = vmatmul.mubr.bf16.gmra.mrb[48].mxu0 %v6606_v51  ;;  %v6706_v50 = vld [vmem:[%s7233_s26 + $0xc8] ss:$44 sps:$4 sm:$0xff]   ;;  %v6709_v51 = vld [vmem:[%s7233_s26 + $0x94c] ss:$44 sps:$4 sm:$0xff]  }
  0xb0   : > { %3204 = vmatprep.mubr.bf16.mxu1 %v6609_v52  ;;  %3782 = vmatprep.mubr.bf16.mxu0 %v6611_v53  ;;  %v6711_v52 = vld [vmem:[%s7233_s26 + $0x124] ss:$44 sps:$4 sm:$0xff]  }
  0xb1   : > { %v6749_v53 = vld [vmem:[%s8430_s1 + $0x220] sm:$0xff]  }
  0xb7   : > { %3205 = vmatmul.mubr.bf16.gmra.mrb[52].mxu1 %v6613_v55  ;;  %3783 = vmatmul.mubr.bf16.gmra.mrb[52].mxu0 %v6614_v56  ;;  %v6713_v55 = vld [vmem:[%s7233_s26 + $0x948] ss:$44 sps:$4 sm:$0xff]   ;;  %v6714_v56 = vld [vmem:[%s7233_s26 + $0x120] ss:$44 sps:$4 sm:$0xff]  }
  0xb8   : > { %3212 = vmatprep.mubr.bf16.mxu1 %v6616_v57  ;;  %3790 = vmatprep.mubr.bf16.mxu0 %v6618_v58  ;;  %v6715_v57 = vld [vmem:[%s7233_s26 + $0x9a4] ss:$44 sps:$4 sm:$0xff]   ;;  %v6717_v58 = vld [vmem:[%s7233_s26 + $0x17c] ss:$44 sps:$4 sm:$0xff]  }
  0xbf   : > { %3213 = vmatmul.mubr.bf16.gmra.mrb[56].mxu1 %v6620_v59  ;;  %3791 = vmatmul.mubr.bf16.gmra.mrb[56].mxu0 %v6621_v60  ;;  %v6775_v59 = vld [vmem:[%s8430_s1 + $0x230] sm:$0xff]   ;;  %v6788_v60 = vld [vmem:[%s8430_s1 + $0x238] sm:$0xff]  }
  0xc0   : > { %3220 = vmatprep.mubr.bf16.mxu1 %v6623_v61  ;;  %3798 = vmatprep.mubr.bf16.mxu0 %v6625_v62  ;;  %v6719_v61 = vld [vmem:[%s7233_s26 + $0x9a0] ss:$44 sps:$4 sm:$0xff]   ;;  %v6720_v62 = vld [vmem:[%s7233_s26 + $0x178] ss:$44 sps:$4 sm:$0xff]  }
  0xc7   : > { %3221 = vmatmul.mubr.bf16.gmra.mrb[60].mxu1 %v6627_v0  ;;  %3799 = vmatmul.mubr.bf16.gmra.mrb[60].mxu0 %v6628_v2  ;;  %v6725_v0 = vld [vmem:[%s7233_s26 + $0x1d4] ss:$44 sps:$4 sm:$0xff]  }
  0xc8   : > { %3228 = vmatprep.mubr.bf16.mxu1 %v6630_v3  ;;  %3806 = vmatprep.mubr.bf16.mxu0 %v6632_v4  ;;  %v6801_v2 = vld [vmem:[%s8430_s1 + $0x240] sm:$0xff]   ;;  %v6814_v3 = vld [vmem:[%s8430_s1 + $0x248] sm:$0xff]  }
  0xc9   : > { %v6727_v4 = vld [vmem:[%s7233_s26 + $0x9f8] ss:$44 sps:$4 sm:$0xff]  }
  0xcf   : > { %3229 = vmatmul.mubr.bf16.gmra.mrb[64].mxu1 %v6634_v5  ;;  %3807 = vmatmul.mubr.bf16.gmra.mrb[64].mxu0 %v6635_v6  ;;  %v6728_v5 = vld [vmem:[%s7233_s26 + $0x1d0] ss:$44 sps:$4 sm:$0xff]   ;;  %v6729_v6 = vld [vmem:[%s7233_s26 + $0xa54] ss:$44 sps:$4 sm:$0xff]  }
  0xd0   : > { %3236 = vmatprep.mubr.bf16.mxu1 %v6638_v7  ;;  %3814 = vmatprep.mubr.bf16.mxu0 %v6640_v8  ;;  %v6731_v7 = vld [vmem:[%s7233_s26 + $0x22c] ss:$44 sps:$4 sm:$0xff]   ;;  %v6827_v8 = vld [vmem:[%s8430_s1 + $0x250] sm:$0xff]  }
  0xd7   : > { %3237 = vmatmul.mubr.bf16.gmra.mrb[68].mxu1 %v6642_v9  ;;  %3815 = vmatmul.mubr.bf16.gmra.mrb[68].mxu0 %v6643_v10  ;;  %v6733_v9 = vld [vmem:[%s7233_s26 + $0xa50] ss:$44 sps:$4 sm:$0xff]   ;;  %v6734_v10 = vld [vmem:[%s7233_s26 + $0x228] ss:$44 sps:$4 sm:$0xff]  }
  0xd8   : > { %3244 = vmatprep.mubr.bf16.mxu1 %v6644_v11  ;;  %3822 = vmatprep.mubr.bf16.mxu0 %v6646_v12  ;;  %v6737_v11 = vld [vmem:[%s7233_s26 + $0xaac] ss:$44 sps:$4 sm:$0xff]   ;;  %v6739_v12 = vld [vmem:[%s7233_s26 + $0x284] ss:$44 sps:$4 sm:$0xff]  }
  0xdf   : > { %3245 = vmatmul.mubr.bf16.gmra.mrb[72].mxu1 %v6648_v13  ;;  %3823 = vmatmul.mubr.bf16.gmra.mrb[72].mxu0 %v6649_v14  ;;  %v6840_v13 = vld [vmem:[%s8430_s1 + $0x258] sm:$0xff]   ;;  %v6741_v14 = vld [vmem:[%s7233_s26 + $0xaa8] ss:$44 sps:$4 sm:$0xff]  }
  0xe0   : > { %3252 = vmatprep.mubr.bf16.mxu1 %v6652_v15  ;;  %3830 = vmatprep.mubr.bf16.mxu0 %v6654_v16  ;;  %v6742_v15 = vld [vmem:[%s7233_s26 + $0x280] ss:$44 sps:$4 sm:$0xff]  }
  0xe1   : > { %v6745_v16 = vld [vmem:[%s7233_s26 + $0xc] ss:$44 sps:$4 sm:$0xff]  }
  0xe7   : > { %3253 = vmatmul.mubr.bf16.gmra.mrb[76].mxu1 %v6656_v17  ;;  %3831 = vmatmul.mubr.bf16.gmra.mrb[76].mxu0 %v6657_v18  ;;  %v6746_v17 = vld [vmem:[%s7233_s26 + $0x2dc] ss:$44 sps:$4 sm:$0xff]  }
  0xe8   : > { %3260 = vmatprep.mubr.bf16.mxu1 %v6659_v19  ;;  %3838 = vmatprep.mubr.bf16.mxu0 %v6661_v20  ;;  %v6743_v18 = vld [vmem:[%s7233_s26 + $0x8] ss:$44 sps:$4 sm:$0xff]   ;;  %v6748_v19 = vld [vmem:[%s7233_s26 + $0x2d8] ss:$44 sps:$4 sm:$0xff]  }
  0xe9   : > { %v6750_v20 = vld [vmem:[%s7233_s26 + $0x64] ss:$44 sps:$4 sm:$0xff]  }
  0xef   : > { %3261 = vmatmul.mubr.bf16.gmra.mrb[80].mxu1 %v6663_v21  ;;  %3839 = vmatmul.mubr.bf16.gmra.mrb[80].mxu0 %v6664_v22  ;;  %v6752_v21 = vld [vmem:[%s7233_s26 + $0x334] ss:$44 sps:$4 sm:$0xff]  }
  0xf0   : > { %3268 = vmatprep.mubr.bf16.mxu1 %v6666_v23  ;;  %3846 = vmatprep.mubr.bf16.mxu0 %v6668_v24  ;;  %v7083_v22 = vld [vmem:[%s8430_s1 + $0x100] sm:$0xff]  }
  0xf1   : > { %v6853_v23 = vld [vmem:[%s8430_s1 + $0x260] sm:$0xff]  }
  0xf2   : > { %v6754_v24 = vld [vmem:[%s7233_s26 + $0x60] ss:$44 sps:$4 sm:$0xff]  }
  0xf7   : > { %3269 = vmatmul.mubr.bf16.gmra.mrb[84].mxu1 %v6670_v25  ;;  %3847 = vmatmul.mubr.bf16.gmra.mrb[84].mxu0 %v6671_v26  ;;  %v6755_v25 = vld [vmem:[%s7233_s26 + $0x330] ss:$44 sps:$4 sm:$0xff]  }
  0xf8   : > { %3276 = vmatprep.mubr.bf16.mxu1 %v6673_v27  ;;  %3854 = vmatprep.mubr.bf16.mxu0 %v6675_v28  ;;  %v6756_v26 = vld [vmem:[%s7233_s26 + $0xbc] ss:$44 sps:$4 sm:$0xff]   ;;  %v6758_v28 = vld [vmem:[%s7233_s26 + $0x38c] ss:$44 sps:$4 sm:$0xff]  }
  0xf9   : > { %v7084_v27 = vld [vmem:[%s8430_s1 + $0x108] sm:$0xff]  }
  0xff   : > { %3277 = vmatmul.mubr.bf16.gmra.mrb[88].mxu1 %v6677_v29  ;;  %3855 = vmatmul.mubr.bf16.gmra.mrb[88].mxu0 %v6678_v30  ;;  %v7085_v29 = vld [vmem:[%s8430_s1 + $0x110] sm:$0xff]   ;;  %v6760_v30 = vld [vmem:[%s7233_s26 + $0xb8] ss:$44 sps:$4 sm:$0xff]  }
 0x100   : > { %3284 = vmatprep.mubr.bf16.mxu1 %v6681_v31  ;;  %3862 = vmatprep.mubr.bf16.mxu0 %v6683_v32  ;;  %v6761_v31 = vld [vmem:[%s7233_s26 + $0x388] ss:$44 sps:$4 sm:$0xff]  }
 0x101   : > { %v6763_v32 = vld [vmem:[%s7233_s26 + $0x114] ss:$44 sps:$4 sm:$0xff]  }
 0x107   : > { %3285 = vmatmul.mubr.bf16.gmra.mrb[92].mxu1 %v6685_v33  ;;  %3863 = vmatmul.mubr.bf16.gmra.mrb[92].mxu0 %v6686_v34  ;;  %v6765_v33 = vld [vmem:[%s7233_s26 + $0x3e4] ss:$44 sps:$4 sm:$0xff]   ;;  %v7086_v34 = vld [vmem:[%s8430_s1 + $0x118] sm:$0xff]  }
 0x108   : > { %3292 = vmatprep.mubr.bf16.mxu1 %v6687_v35  ;;  %3967 = vmatprep.mubr.bf16.mxu0 %v6691_v36  ;;  %v6866_v35 = vld [vmem:[%s8430_s1 + $0x268] sm:$0xff]   ;;  %v7087_v36 = vld [vmem:[%s8430_s1 + $0x120] sm:$0xff]  }
 0x10f   : > { %3293 = vmatmul.mubr.bf16.gmra.mrb[96].mxu1 %v6692_v37  ;;  %3968 = vmatmul.mubr.bf16.vlgmr.msra.gmra.mrb[0].mxu0 %v6689_v38  ;;  %v6767_v37 = vld [vmem:[%s7233_s26 + $0x110] ss:$44 sps:$4 sm:$0xff]   ;;  %v6768_v38 = vld [vmem:[%s7233_s26 + $0x3e0] ss:$44 sps:$4 sm:$0xff]  }
 0x110   : > { %3300 = vmatprep.mubr.bf16.mxu1 %v6695_v39  ;;  %4225 = vmatpush1.bf16.msra.mxu0 %v6693_v40  ;;  %v6769_v39 = vld [vmem:[%s7233_s26 + $0x16c] ss:$44 sps:$4 sm:$0xff]   ;;  %v6771_v40 = vld [vmem:[%s7233_s26 + $0x43c] ss:$44 sps:$4 sm:$0xff]  }
 0x111   : > { %3975 = vmatprep.mubr.bf16.mxu0 %v6697_v41  ;;  %4226 = vmatprep.subr.bf16.mxu0 %v7123_v1  ;;  %v7088_v41 = vld [vmem:[%s8430_s1 + $0x128] sm:$0xff]  }
 0x114   : > { %4227 = vmatpush1.bf16.msra.mxu0 %v6707_v43  ;;  %v6773_v43 = vld [vmem:[%s7233_s26 + $0x168] ss:$44 sps:$4 sm:$0xff]  }
 0x115   : > { %4228 = vmatprep.subr.bf16.mxu0 %v7123_v1 }
 0x117   : > { %3301 = vmatmul.mubr.bf16.gmra.mrb[100].mxu1 %v6699_v42  ;;  %3976 = vmatmul.mubr.bf16.gmra.mrb[4].mxu0 %v6700_v44  ;;  %v7089_v42 = vld [vmem:[%s8430_s1 + $0x130] sm:$0xff]   ;;  %v6774_v44 = vld [vmem:[%s7233_s26 + $0x438] ss:$44 sps:$4 sm:$0xff]  }
 0x118   : > { %3308 = vmatprep.mubr.bf16.mxu1 %v6701_v45  ;;  %3983 = vmatprep.mubr.bf16.mxu0 %v6703_v46  ;;  %v6776_v45 = vld [vmem:[%s7233_s26 + $0x1c4] ss:$44 sps:$4 sm:$0xff]   ;;  %v6778_v46 = vld [vmem:[%s7233_s26 + $0x494] ss:$44 sps:$4 sm:$0xff]  }
 0x119   : > { %4229 = vmatpush1.bf16.msra.mxu0 %v6721_v47  ;;  %v7090_v47 = vld [vmem:[%s8430_s1 + $0x138] sm:$0xff]  }
 0x11a   : > { %4230 = vmatprep.subr.bf16.mxu0 %v7123_v1 }
 0x11d   : > { %4231 = vmatpush1.bf16.msra.mxu0 %v6735_v48  ;;  %v6879_v48 = vld [vmem:[%s8430_s1 + $0x270] sm:$0xff]  }
 0x11e   : > { %4232 = vmatprep.subr.bf16.mxu0 %v7123_v1 }
 0x11f   : > { %3309 = vmatmul.mubr.bf16.gmra.mrb[104].mxu1 %v6705_v49  ;;  %3984 = vmatmul.mubr.bf16.gmra.mrb[8].mxu0 %v6706_v50  ;;  %v7091_v49 = vld [vmem:[%s8430_s1 + $0x140] sm:$0xff]  }
 0x120   : > { %3316 = vmatprep.mubr.bf16.mxu1 %v6709_v51  ;;  %3991 = vmatprep.mubr.bf16.mxu0 %v6711_v52  ;;  %v6780_v50 = vld [vmem:[%s7233_s26 + $0x1c0] ss:$44 sps:$4 sm:$0xff]   ;;  %v6781_v51 = vld [vmem:[%s7233_s26 + $0x490] ss:$44 sps:$4 sm:$0xff]  }
 0x121   : > { %4233 = vmatpush1.bf16.msra.mxu0 %v6749_v53  ;;  %v6782_v52 = vld [vmem:[%s7233_s26 + $0x21c] ss:$44 sps:$4 sm:$0xff]   ;;  %v6784_v53 = vld [vmem:[%s7233_s26 + $0x4ec] ss:$44 sps:$4 sm:$0xff]  }
 0x122   : > { %4234 = vmatprep.subr.bf16.mxu0 %v7123_v1 }
 0x125   : > { %4235 = vmatpush1.bf16.msra.mxu0 %v6762_v54  ;;  %v7092_v54 = vld [vmem:[%s8430_s1 + $0x148] sm:$0xff]  }
 0x126   : > { %4236 = vmatprep.subr.bf16.mxu0 %v7123_v1 }
 0x127   : > { %3317 = vmatmul.mubr.bf16.gmra.mrb[108].mxu1 %v6713_v55  ;;  %3992 = vmatmul.mubr.bf16.gmra.mrb[12].mxu0 %v6714_v56  ;;  %v7093_v55 = vld [vmem:[%s8430_s1 + $0x150] sm:$0xff]   ;;  %v6786_v56 = vld [vmem:[%s7233_s26 + $0x218] ss:$44 sps:$4 sm:$0xff]  }
 0x128   : > { %3324 = vmatprep.mubr.bf16.mxu1 %v6715_v57  ;;  %3999 = vmatprep.mubr.bf16.mxu0 %v6717_v58  ;;  %v6787_v57 = vld [vmem:[%s7233_s26 + $0x4e8] ss:$44 sps:$4 sm:$0xff]  }
 0x129   : > { %4237 = vmatpush1.bf16.msra.mxu0 %v6775_v59  ;;  %v6789_v58 = vld [vmem:[%s7233_s26 + $0x274] ss:$44 sps:$4 sm:$0xff]   ;;  %v6791_v59 = vld [vmem:[%s7233_s26 + $0x544] ss:$44 sps:$4 sm:$0xff]  }
 0x12a   : > { %4238 = vmatprep.subr.bf16.mxu0 %v7123_v1 }
 0x12d   : > { %4239 = vmatpush1.bf16.msra.mxu0 %v6788_v60  ;;  %v7094_v60 = vld [vmem:[%s8430_s1 + $0x158] sm:$0xff]  }
 0x12e   : > { %4240 = vmatprep.subr.bf16.mxu0 %v7123_v1 }
 0x12f   : > { %3325 = vmatmul.mubr.bf16.gmra.mrb[112].mxu1 %v6719_v61  ;;  %4000 = vmatmul.mubr.bf16.gmra.mrb[16].mxu0 %v6720_v62  ;;  %v6892_v61 = vld [vmem:[%s8430_s1 + $0x278] sm:$0xff]   ;;  %v7095_v62 = vld [vmem:[%s8430_s1 + $0x160] sm:$0xff]  }
 0x130   : > { %3332 = vmatprep.mubr.bf16.mxu1 %v6723_v63  ;;  %4007 = vmatprep.mubr.bf16.mxu0 %v6725_v0  ;;  %v6793_v63 = vld [vmem:[%s7233_s26 + $0x270] ss:$44 sps:$4 sm:$0xff]   ;;  %v6794_v0 = vld [vmem:[%s7233_s26 + $0x540] ss:$44 sps:$4 sm:$0xff]  }
 0x131   : > { %4241 = vmatpush1.bf16.msra.mxu0 %v6801_v2  ;;  %v6795_v2 = vld [vmem:[%s7233_s26 + $0x2cc] ss:$44 sps:$4 sm:$0xff]  }
 0x132   : > { %4242 = vmatprep.subr.bf16.mxu0 %v7123_v1 }
 0x135   : > { %4243 = vmatpush1.bf16.msra.mxu0 %v6814_v3  ;;  %v6797_v3 = vld [vmem:[%s7233_s26 + $0x59c] ss:$44 sps:$4 sm:$0xff]  }
 0x136   : > { %4244 = vmatprep.subr.bf16.mxu0 %v7123_v1 }
 0x137   : > { %3333 = vmatmul.mubr.bf16.gmra.mrb[116].mxu1 %v6727_v4  ;;  %4008 = vmatmul.mubr.bf16.gmra.mrb[20].mxu0 %v6728_v5  ;;  %v7096_v4 = vld [vmem:[%s8430_s1 + $0x168] sm:$0xff]   ;;  %v7097_v5 = vld [vmem:[%s8430_s1 + $0x170] sm:$0xff]  }
 0x138   : > { %3340 = vmatprep.mubr.bf16.mxu1 %v6729_v6  ;;  %4015 = vmatprep.mubr.bf16.mxu0 %v6731_v7  ;;  %v6799_v6 = vld [vmem:[%s7233_s26 + $0x2c8] ss:$44 sps:$4 sm:$0xff]   ;;  %v6800_v7 = vld [vmem:[%s7233_s26 + $0x598] ss:$44 sps:$4 sm:$0xff]  }
 0x139   : > { %4245 = vmatpush1.bf16.msra.mxu0 %v6827_v8  ;;  %v6802_v8 = vld [vmem:[%s7233_s26 + $0x324] ss:$44 sps:$4 sm:$0xff]  }
 0x13a   : > { %4246 = vmatprep.subr.bf16.mxu0 %v7123_v1 }
 0x13d   : > { %4247 = vmatpush1.bf16.msra.mxu0 %v6840_v13  ;;  %v6810_v13 = vld [vmem:[%s7233_s26 + $0x64c] ss:$44 sps:$4 sm:$0xff]  }
 0x13e   : > { %4248 = vmatprep.subr.bf16.mxu0 %v7123_v1 }
 0x13f   : > { %3341 = vmatmul.mubr.bf16.gmra.mrb[120].mxu1 %v6733_v9  ;;  %4016 = vmatmul.mubr.bf16.gmra.mrb[24].mxu0 %v6734_v10  ;;  %v6804_v9 = vld [vmem:[%s7233_s26 + $0x5f4] ss:$44 sps:$4 sm:$0xff]   ;;  %v7098_v10 = vld [vmem:[%s8430_s1 + $0x178] sm:$0xff]  }
 0x140   : > { %3348 = vmatprep.mubr.bf16.mxu1 %v6737_v11  ;;  %4023 = vmatprep.mubr.bf16.mxu0 %v6739_v12  ;;  %v6806_v11 = vld [vmem:[%s7233_s26 + $0x320] ss:$44 sps:$4 sm:$0xff]   ;;  %v6808_v12 = vld [vmem:[%s7233_s26 + $0x37c] ss:$44 sps:$4 sm:$0xff]  }
 0x141   : > { %4249 = vmatpush1.bf16.msra.mxu0 %v6853_v23  ;;  %v6826_v23 = vld [vmem:[%s7233_s26 + $0x6f8] ss:$44 sps:$4 sm:$0xff]  }
 0x142   : > { %4250 = vmatprep.subr.bf16.mxu0 %v7123_v1 }
 0x145   : > { %4251 = vmatpush1.bf16.msra.mxu0 %v6866_v35  ;;  %v6846_v35 = vld [vmem:[%s7233_s26 + $0x800] ss:$44 sps:$4 sm:$0xff]  }
 0x146   : > { %4252 = vmatprep.subr.bf16.mxu0 %v7123_v1 }
 0x147   : > { %3349 = vmatmul.mubr.bf16.gmra.mrb[124].mxu1 %v6741_v14  ;;  %4024 = vmatmul.mubr.bf16.gmra.mrb[28].mxu0 %v6742_v15  ;;  %v6812_v14 = vld [vmem:[%s7233_s26 + $0x378] ss:$44 sps:$4 sm:$0xff]   ;;  %v6813_v15 = vld [vmem:[%s7233_s26 + $0x648] ss:$44 sps:$4 sm:$0xff]  }
 0x148   : > { %3389 = vmatprep.mubr.bf16.mxu1 %v6745_v16  ;;  %4031 = vmatprep.mubr.bf16.mxu0 %v6746_v17  ;;  %v6815_v16 = vld [vmem:[%s7233_s26 + $0x3d4] ss:$44 sps:$4 sm:$0xff]   ;;  %v6817_v17 = vld [vmem:[%s7233_s26 + $0x6a4] ss:$44 sps:$4 sm:$0xff]  }
 0x149   : > { %4253 = vmatpush1.bf16.msra.mxu0 %v6879_v48  ;;  %v6865_v48 = vld [vmem:[%s7233_s26 + $0x908] ss:$44 sps:$4 sm:$0xff]  }
 0x14a   : > { %4254 = vmatprep.subr.bf16.mxu0 %v7123_v1 }
 0x14d   : > { %4255 = vmatpush1.bf16.msra.mxu0 %v6892_v61  ;;  %v6886_v61 = vld [vmem:[%s7233_s26 + $0x79c] ss:$44 sps:$4 sm:$0xff]  }
 0x14f   : > { %3390 = vmatmul.mubr.bf16.vlgmr.msra.gmra.mrb[0].mxu1 %v6743_v18  ;;  %4032 = vmatmul.mubr.bf16.gmra.mrb[32].mxu0 %v6748_v19  ;;  %v6819_v18 = vld [vmem:[%s7233_s26 + $0x3d0] ss:$44 sps:$4 sm:$0xff]   ;;  %v6820_v19 = vld [vmem:[%s7233_s26 + $0x6a0] ss:$44 sps:$4 sm:$0xff]  }
 0x150   : > { %5993 = vmatpush1.bf16.msra.mxu1 %v7083_v22  ;;  %3397 = vmatprep.mubr.bf16.mxu1 %v6750_v20  ;;  %v6821_v20 = vld [vmem:[%s7233_s26 + $0x42c] ss:$44 sps:$4 sm:$0xff]   ;;  %v6825_v22 = vld [vmem:[%s7233_s26 + $0x428] ss:$44 sps:$4 sm:$0xff]  }
 0x151   : > { %4039 = vmatprep.mubr.bf16.mxu0 %v6752_v21  ;;  %5978 = vmatprep.subr.bf16.mxu1 %v7123_v1  ;;  %v6823_v21 = vld [vmem:[%s7233_s26 + $0x6fc] ss:$44 sps:$4 sm:$0xff]  }
 0x154   : > { %5994 = vmatpush1.bf16.msra.mxu1 %v7084_v27  ;;  %v6833_v27 = vld [vmem:[%s7233_s26 + $0x750] ss:$44 sps:$4 sm:$0xff]  }
 0x155   : > { %5979 = vmatprep.subr.bf16.mxu1 %v7123_v1 }
 0x157   : > { %3398 = vmatmul.mubr.bf16.gmra.mrb[4].mxu1 %v6754_v24  ;;  %4040 = vmatmul.mubr.bf16.gmra.mrb[36].mxu0 %v6755_v25  ;;  %v6828_v24 = vld [vmem:[%s7233_s26 + $0x484] ss:$44 sps:$4 sm:$0xff]   ;;  %v6830_v25 = vld [vmem:[%s7233_s26 + $0x754] ss:$44 sps:$4 sm:$0xff]  }
 0x158   : > { %3405 = vmatprep.mubr.bf16.mxu1 %v6756_v26  ;;  %4047 = vmatprep.mubr.bf16.mxu0 %v6758_v28  ;;  %v6832_v26 = vld [vmem:[%s7233_s26 + $0x480] ss:$44 sps:$4 sm:$0xff]   ;;  %v6834_v28 = vld [vmem:[%s7233_s26 + $0x4dc] ss:$44 sps:$4 sm:$0xff]  }
 0x159   : > { %5995 = vmatpush1.bf16.msra.mxu1 %v7085_v29  ;;  %v6836_v29 = vld [vmem:[%s7233_s26 + $0x7ac] ss:$44 sps:$4 sm:$0xff]  }
 0x15a   : > { %5980 = vmatprep.subr.bf16.mxu1 %v7123_v1 }
 0x15d   : > { %5996 = vmatpush1.bf16.msra.mxu1 %v7086_v34  ;;  %v6845_v34 = vld [vmem:[%s7233_s26 + $0x530] ss:$44 sps:$4 sm:$0xff]  }
 0x15e   : > { %5981 = vmatprep.subr.bf16.mxu1 %v7123_v1 }
 0x15f   : > { %3406 = vmatmul.mubr.bf16.gmra.mrb[8].mxu1 %v6760_v30  ;;  %4048 = vmatmul.mubr.bf16.gmra.mrb[40].mxu0 %v6761_v31  ;;  %v6838_v30 = vld [vmem:[%s7233_s26 + $0x4d8] ss:$44 sps:$4 sm:$0xff]   ;;  %v6839_v31 = vld [vmem:[%s7233_s26 + $0x7a8] ss:$44 sps:$4 sm:$0xff]  }
 0x160   : > { %3413 = vmatprep.mubr.bf16.mxu1 %v6763_v32  ;;  %4055 = vmatprep.mubr.bf16.mxu0 %v6765_v33  ;;  %v6841_v32 = vld [vmem:[%s7233_s26 + $0x534] ss:$44 sps:$4 sm:$0xff]   ;;  %v6843_v33 = vld [vmem:[%s7233_s26 + $0x804] ss:$44 sps:$4 sm:$0xff]  }
 0x161   : > { %5997 = vmatpush1.bf16.msra.mxu1 %v7087_v36  ;;  %v6847_v36 = vld [vmem:[%s7233_s26 + $0x58c] ss:$44 sps:$4 sm:$0xff]  }
 0x162   : > { %5982 = vmatprep.subr.bf16.mxu1 %v7123_v1 }
 0x165   : > { %5998 = vmatpush1.bf16.msra.mxu1 %v7088_v41  ;;  %v6856_v41 = vld [vmem:[%s7233_s26 + $0x8b4] ss:$44 sps:$4 sm:$0xff]  }
 0x166   : > { %5983 = vmatprep.subr.bf16.mxu1 %v7123_v1 }
 0x167   : > { %3414 = vmatmul.mubr.bf16.gmra.mrb[12].mxu1 %v6767_v37  ;;  %4056 = vmatmul.mubr.bf16.gmra.mrb[44].mxu0 %v6768_v38  ;;  %v6849_v37 = vld [vmem:[%s7233_s26 + $0x85c] ss:$44 sps:$4 sm:$0xff]  }
 0x168   : > { %3421 = vmatprep.mubr.bf16.mxu1 %v6769_v39  ;;  %4063 = vmatprep.mubr.bf16.mxu0 %v6771_v40  ;;  %v6851_v38 = vld [vmem:[%s7233_s26 + $0x588] ss:$44 sps:$4 sm:$0xff]   ;;  %v6852_v39 = vld [vmem:[%s7233_s26 + $0x858] ss:$44 sps:$4 sm:$0xff]  }
 0x169   : > { %5999 = vmatpush1.bf16.msra.mxu1 %v7089_v42  ;;  %v6854_v40 = vld [vmem:[%s7233_s26 + $0x5e4] ss:$44 sps:$4 sm:$0xff]  }
 0x16a   : > { %5984 = vmatprep.subr.bf16.mxu1 %v7123_v1  ;;  %v7753_v42 = vld [vmem:[%s8430_s1 + $0x280] sm:$0xff]  }
 0x16d   : > { %6000 = vmatpush1.bf16.msra.mxu1 %v7090_v47  ;;  %v6864_v47 = vld [vmem:[%s7233_s26 + $0x638] ss:$44 sps:$4 sm:$0xff]  }
 0x16e   : > { %5985 = vmatprep.subr.bf16.mxu1 %v7123_v1 }
 0x16f   : > { %3422 = vmatmul.mubr.bf16.gmra.mrb[16].mxu1 %v6773_v43  ;;  %4064 = vmatmul.mubr.bf16.gmra.mrb[48].mxu0 %v6774_v44  ;;  %v6858_v43 = vld [vmem:[%s7233_s26 + $0x5e0] ss:$44 sps:$4 sm:$0xff]   ;;  %v6859_v44 = vld [vmem:[%s7233_s26 + $0x8b0] ss:$44 sps:$4 sm:$0xff]  }
 0x170   : > { %3429 = vmatprep.mubr.bf16.mxu1 %v6776_v45  ;;  %4071 = vmatprep.mubr.bf16.mxu0 %v6778_v46  ;;  %v6860_v45 = vld [vmem:[%s7233_s26 + $0x63c] ss:$44 sps:$4 sm:$0xff]   ;;  %v6862_v46 = vld [vmem:[%s7233_s26 + $0x90c] ss:$44 sps:$4 sm:$0xff]  }
 0x171   : > { %6001 = vmatpush1.bf16.msra.mxu1 %v7091_v49  ;;  %v6867_v49 = vld [vmem:[%s7233_s26 + $0x694] ss:$44 sps:$4 sm:$0xff]  }
 0x172   : > { %5986 = vmatprep.subr.bf16.mxu1 %v7123_v1 }
 0x175   : > { %6002 = vmatpush1.bf16.msra.mxu1 %v7092_v54  ;;  %v6875_v54 = vld [vmem:[%s7233_s26 + $0x9bc] ss:$44 sps:$4 sm:$0xff]  }
 0x176   : > { %5987 = vmatprep.subr.bf16.mxu1 %v7123_v1 }
 0x177   : > { %3430 = vmatmul.mubr.bf16.gmra.mrb[20].mxu1 %v6780_v50  ;;  %4072 = vmatmul.mubr.bf16.gmra.mrb[52].mxu0 %v6781_v51  ;;  %v6869_v50 = vld [vmem:[%s7233_s26 + $0x964] ss:$44 sps:$4 sm:$0xff]  }
 0x178   : > { %3437 = vmatprep.mubr.bf16.mxu1 %v6782_v52  ;;  %4079 = vmatprep.mubr.bf16.mxu0 %v6784_v53  ;;  %v6871_v51 = vld [vmem:[%s7233_s26 + $0x690] ss:$44 sps:$4 sm:$0xff]   ;;  %v6872_v52 = vld [vmem:[%s7233_s26 + $0x960] ss:$44 sps:$4 sm:$0xff]  }
 0x179   : > { %6003 = vmatpush1.bf16.msra.mxu1 %v7093_v55  ;;  %v6873_v53 = vld [vmem:[%s7233_s26 + $0x6ec] ss:$44 sps:$4 sm:$0xff]   ;;  %v6877_v55 = vld [vmem:[%s7233_s26 + $0x6e8] ss:$44 sps:$4 sm:$0xff]  }
 0x17a   : > { %5988 = vmatprep.subr.bf16.mxu1 %v7123_v1 }
 0x17d   : > { %6004 = vmatpush1.bf16.msra.mxu1 %v7094_v60  ;;  %v6885_v60 = vld [vmem:[%s7233_s26 + $0xa10] ss:$44 sps:$4 sm:$0xff]  }
 0x17e   : > { %5989 = vmatprep.subr.bf16.mxu1 %v7123_v1 }
 0x17f   : > { %3438 = vmatmul.mubr.bf16.gmra.mrb[24].mxu1 %v6786_v56  ;;  %4080 = vmatmul.mubr.bf16.gmra.mrb[56].mxu0 %v6787_v57  ;;  %v6878_v56 = vld [vmem:[%s7233_s26 + $0x9b8] ss:$44 sps:$4 sm:$0xff]  }
 0x180   : > { %3445 = vmatprep.mubr.bf16.mxu1 %v6789_v58  ;;  %4087 = vmatprep.mubr.bf16.mxu0 %v6791_v59  ;;  %v6880_v57 = vld [vmem:[%s7233_s26 + $0x744] ss:$44 sps:$4 sm:$0xff]   ;;  %v6882_v58 = vld [vmem:[%s7233_s26 + $0xa14] ss:$44 sps:$4 sm:$0xff]  }
 0x181   : > { %6005 = vmatpush1.bf16.msra.mxu1 %v7095_v62  ;;  %v6884_v59 = vld [vmem:[%s7233_s26 + $0x740] ss:$44 sps:$4 sm:$0xff]  }
 0x182   : > { %5990 = vmatprep.subr.bf16.mxu1 %v7123_v1  ;;  %v6888_v62 = vld [vmem:[%s7233_s26 + $0xa6c] ss:$44 sps:$4 sm:$0xff]  }
 0x185   : > { %6006 = vmatpush1.bf16.msra.mxu1 %v7096_v4  ;;  %v6897_v4 = vld [vmem:[%s7233_s26 + $0x7f0] ss:$44 sps:$4 sm:$0xff]  }
 0x186   : > { %5991 = vmatprep.subr.bf16.mxu1 %v7123_v1 }
 0x187   : > { %3446 = vmatmul.mubr.bf16.gmra.mrb[28].mxu1 %v6793_v63  ;;  %4088 = vmatmul.mubr.bf16.gmra.mrb[60].mxu0 %v6794_v0  ;;  %v6890_v63 = vld [vmem:[%s7233_s26 + $0x798] ss:$44 sps:$4 sm:$0xff]   ;;  %v6891_v0 = vld [vmem:[%s7233_s26 + $0xa68] ss:$44 sps:$4 sm:$0xff]  }
 0x188   : > { %3453 = vmatprep.mubr.bf16.mxu1 %v6795_v2  ;;  %4095 = vmatprep.mubr.bf16.mxu0 %v6797_v3  ;;  %v6893_v2 = vld [vmem:[%s7233_s26 + $0x7f4] ss:$44 sps:$4 sm:$0xff]   ;;  %v6895_v3 = vld [vmem:[%s7233_s26 + $0xac4] ss:$44 sps:$4 sm:$0xff]  }
 0x189   : > { %6007 = vmatpush1.bf16.msra.mxu1 %v7097_v5  ;;  %v6898_v5 = vld [vmem:[%s7233_s26 + $0xac0] ss:$44 sps:$4 sm:$0xff]  }
 0x18a   : > { %5992 = vmatprep.subr.bf16.mxu1 %v7123_v1  ;;  %v6807_v1 = vld [vmem:[%s7233_s26 + $0x5f0] ss:$44 sps:$4 sm:$0xff]  }
 0x18d   : > { %6008 = vmatpush1.bf16.msra.mxu1 %v7098_v10  ;;  %v6905_v10 = vld [vmem:[%s7233_s26 + $0x8a4] ss:$44 sps:$4 sm:$0xff]  }
 0x18e   : > { %5897 = vmatprep.subr.bf16.mxu1 %v7753_v42 }
 0x18f   : > { %3454 = vmatmul.mubr.bf16.gmra.mrb[32].mxu1 %v6799_v6  ;;  %4096 = vmatmul.mubr.bf16.gmra.mrb[64].mxu0 %v6800_v7  ;;  %v6899_v6 = vld [vmem:[%s7233_s26 + $0x84c] ss:$44 sps:$4 sm:$0xff]   ;;  %v6903_v7 = vld [vmem:[%s7233_s26 + $0x24] ss:$44 sps:$4 sm:$0xff]  }
 0x190   : > { %3461 = vmatprep.mubr.bf16.mxu1 %v6802_v8  ;;  %4103 = vmatprep.mubr.bf16.mxu0 %v6804_v9  ;;  %v6904_v8 = vld [vmem:[%s7233_s26 + $0x848] ss:$44 sps:$4 sm:$0xff]   ;;  %v6901_v9 = vld [vmem:[%s7233_s26 + $0x20] ss:$44 sps:$4 sm:$0xff]  }
 0x197   : > { %3462 = vmatmul.mubr.bf16.gmra.mrb[36].mxu1 %v6806_v11  ;;  %4104 = vmatmul.mubr.bf16.gmra.mrb[68].mxu0 %v6807_v1  ;;  %v6907_v11 = vld [vmem:[%s7233_s26 + $0x7c] ss:$44 sps:$4 sm:$0xff]   ;;  %v6909_v1 = vld [vmem:[%s7233_s26 + $0x8a0] ss:$44 sps:$4 sm:$0xff]  }
 0x198   : > { %3469 = vmatprep.mubr.bf16.mxu1 %v6808_v12  ;;  %4111 = vmatprep.mubr.bf16.mxu0 %v6810_v13  ;;  %v6910_v12 = vld [vmem:[%s7233_s26 + $0x78] ss:$44 sps:$4 sm:$0xff]   ;;  %v6911_v13 = vld [vmem:[%s7233_s26 + $0x8fc] ss:$44 sps:$4 sm:$0xff]  }
 0x19f   : > { %3470 = vmatmul.mubr.bf16.gmra.mrb[40].mxu1 %v6812_v14  ;;  %4112 = vmatmul.mubr.bf16.gmra.mrb[72].mxu0 %v6813_v15  ;;  %v6913_v14 = vld [vmem:[%s7233_s26 + $0xd4] ss:$44 sps:$4 sm:$0xff]   ;;  %v6915_v15 = vld [vmem:[%s7233_s26 + $0x8f8] ss:$44 sps:$4 sm:$0xff]  }
 0x1a0   : > { %3477 = vmatprep.mubr.bf16.mxu1 %v6815_v16  ;;  %4119 = vmatprep.mubr.bf16.mxu0 %v6817_v17  ;;  %v6916_v16 = vld [vmem:[%s7233_s26 + $0xd0] ss:$44 sps:$4 sm:$0xff]   ;;  %v6917_v17 = vld [vmem:[%s7233_s26 + $0x954] ss:$44 sps:$4 sm:$0xff]  }
 0x1a7   : > { %3478 = vmatmul.mubr.bf16.gmra.mrb[44].mxu1 %v6819_v18  ;;  %4120 = vmatmul.mubr.bf16.gmra.mrb[76].mxu0 %v6820_v19  ;;  %v6919_v18 = vld [vmem:[%s7233_s26 + $0x12c] ss:$44 sps:$4 sm:$0xff]  }
 0x1a8   : > { %3485 = vmatprep.mubr.bf16.mxu1 %v6821_v20  ;;  %4127 = vmatprep.mubr.bf16.mxu0 %v6823_v21  ;;  %v6921_v21 = vld [vmem:[%s7233_s26 + $0x950] ss:$44 sps:$4 sm:$0xff]  }
 0x1af   : > { %3486 = vmatmul.mubr.bf16.gmra.mrb[48].mxu1 %v6825_v22  ;;  %4128 = vmatmul.mubr.bf16.gmra.mrb[80].mxu0 %v6826_v23  ;;  %v6922_v23 = vld [vmem:[%s7233_s26 + $0x128] ss:$44 sps:$4 sm:$0xff]  }
 0x1b0   : > { %3493 = vmatprep.mubr.bf16.mxu1 %v6828_v24  ;;  %4135 = vmatprep.mubr.bf16.mxu0 %v6830_v25  ;;  %v6923_v24 = vld [vmem:[%s7233_s26 + $0x9ac] ss:$44 sps:$4 sm:$0xff]  }
 0x1b7   : > { %3494 = vmatmul.mubr.bf16.gmra.mrb[52].mxu1 %v6832_v26  ;;  %4136 = vmatmul.mubr.bf16.gmra.mrb[84].mxu0 %v6833_v27  ;;  %v6925_v26 = vld [vmem:[%s7233_s26 + $0x184] ss:$44 sps:$4 sm:$0xff]  }
 0x1b8   : > { %3501 = vmatprep.mubr.bf16.mxu1 %v6834_v28  ;;  %4143 = vmatprep.mubr.bf16.mxu0 %v6836_v29  ;;  %v6927_v29 = vld [vmem:[%s7233_s26 + $0x9a8] ss:$44 sps:$4 sm:$0xff]  }
 0x1bf   : > { %3502 = vmatmul.mubr.bf16.gmra.mrb[56].mxu1 %v6838_v30  ;;  %4144 = vmatmul.mubr.bf16.gmra.mrb[88].mxu0 %v6839_v31  ;;  %v6928_v31 = vld [vmem:[%s7233_s26 + $0x180] ss:$44 sps:$4 sm:$0xff]  }
 0x1c0   : > { %3509 = vmatprep.mubr.bf16.mxu1 %v6841_v32  ;;  %4151 = vmatprep.mubr.bf16.mxu0 %v6843_v33  ;;  %v6929_v32 = vld [vmem:[%s7233_s26 + $0xa04] ss:$44 sps:$4 sm:$0xff]  }
 0x1c7   : > { %3510 = vmatmul.mubr.bf16.gmra.mrb[60].mxu1 %v6845_v34  ;;  %4152 = vmatmul.mubr.bf16.gmra.mrb[92].mxu0 %v6846_v35  ;;  %v6931_v34 = vld [vmem:[%s7233_s26 + $0x1dc] ss:$44 sps:$4 sm:$0xff]  }
 0x1c8   : > { %3517 = vmatprep.mubr.bf16.mxu1 %v6847_v36  ;;  %4159 = vmatprep.mubr.bf16.mxu0 %v6849_v37  ;;  %v6933_v37 = vld [vmem:[%s7233_s26 + $0xa00] ss:$44 sps:$4 sm:$0xff]  }
 0x1cf   : > { %3518 = vmatmul.mubr.bf16.gmra.mrb[64].mxu1 %v6851_v38  ;;  %4160 = vmatmul.mubr.bf16.gmra.mrb[96].mxu0 %v6852_v39  ;;  %v6934_v39 = vld [vmem:[%s7233_s26 + $0x1d8] ss:$44 sps:$4 sm:$0xff]  }
 0x1d0   : > { %3525 = vmatprep.mubr.bf16.mxu1 %v6854_v40  ;;  %4167 = vmatprep.mubr.bf16.mxu0 %v6856_v41  ;;  %v6935_v40 = vld [vmem:[%s7233_s26 + $0xa5c] ss:$44 sps:$4 sm:$0xff]  }
 0x1d7   : > { %3526 = vmatmul.mubr.bf16.gmra.mrb[68].mxu1 %v6858_v43  ;;  %4168 = vmatmul.mubr.bf16.gmra.mrb[100].mxu0 %v6859_v44  ;;  %v6937_v43 = vld [vmem:[%s7233_s26 + $0x234] ss:$44 sps:$4 sm:$0xff]  }
 0x1d8   : > { %3533 = vmatprep.mubr.bf16.mxu1 %v6860_v45  ;;  %4175 = vmatprep.mubr.bf16.mxu0 %v6862_v46  ;;  %v6939_v46 = vld [vmem:[%s7233_s26 + $0xa58] ss:$44 sps:$4 sm:$0xff]  }
 0x1df   : > { %3534 = vmatmul.mubr.bf16.gmra.mrb[72].mxu1 %v6864_v47  ;;  %4176 = vmatmul.mubr.bf16.gmra.mrb[104].mxu0 %v6865_v48  ;;  %v6940_v48 = vld [vmem:[%s7233_s26 + $0x230] ss:$44 sps:$4 sm:$0xff]  }
 0x1e0   : > { %3541 = vmatprep.mubr.bf16.mxu1 %v6867_v49  ;;  %4183 = vmatprep.mubr.bf16.mxu0 %v6869_v50  ;;  %v6941_v49 = vld [vmem:[%s7233_s26 + $0xab4] ss:$44 sps:$4 sm:$0xff]  }
 0x1e7   : > { %3542 = vmatmul.mubr.bf16.gmra.mrb[76].mxu1 %v6871_v51  ;;  %4184 = vmatmul.mubr.bf16.gmra.mrb[108].mxu0 %v6872_v52  ;;  %v6943_v51 = vld [vmem:[%s7233_s26 + $0x28c] ss:$44 sps:$4 sm:$0xff]  }
 0x1e8   : > { %3549 = vmatprep.mubr.bf16.mxu1 %v6873_v53  ;;  %4191 = vmatprep.mubr.bf16.mxu0 %v6875_v54  ;;  %v6945_v54 = vld [vmem:[%s7233_s26 + $0xab0] ss:$44 sps:$4 sm:$0xff]  }
 0x1ef   : > { %3550 = vmatmul.mubr.bf16.gmra.mrb[80].mxu1 %v6877_v55  ;;  %4192 = vmatmul.mubr.bf16.gmra.mrb[112].mxu0 %v6878_v56  ;;  %v6946_v56 = vld [vmem:[%s7233_s26 + $0x288] ss:$44 sps:$4 sm:$0xff]  }
 0x1f0   : > { %3557 = vmatprep.mubr.bf16.mxu1 %v6880_v57  ;;  %4199 = vmatprep.mubr.bf16.mxu0 %v6882_v58  ;;  %v6949_v57 = vld [vmem:[%s7233_s26 + $0x854] ss:$44 sps:$4 sm:$0xff]  }
 0x1f7   : > { %3558 = vmatmul.mubr.bf16.gmra.mrb[84].mxu1 %v6884_v59  ;;  %4200 = vmatmul.mubr.bf16.gmra.mrb[116].mxu0 %v6885_v60  ;;  %v6950_v59 = vld [vmem:[%s7233_s26 + $0x2e4] ss:$44 sps:$4 sm:$0xff]  }
 0x1f8   : > { %3565 = vmatprep.mubr.bf16.mxu1 %v6886_v61  ;;  %4207 = vmatprep.mubr.bf16.mxu0 %v6888_v62  ;;  %v6947_v62 = vld [vmem:[%s7233_s26 + $0x850] ss:$44 sps:$4 sm:$0xff]  }
 0x1ff   : > { %3566 = vmatmul.mubr.bf16.gmra.mrb[88].mxu1 %v6890_v63  ;;  %4208 = vmatmul.mubr.bf16.gmra.mrb[120].mxu0 %v6891_v0  ;;  %v6952_v0 = vld [vmem:[%s7233_s26 + $0x2e0] ss:$44 sps:$4 sm:$0xff]  }
 0x200   : > { %3573 = vmatprep.mubr.bf16.mxu1 %v6893_v2  ;;  %4215 = vmatprep.mubr.bf16.mxu0 %v6895_v3  ;;  %v6954_v3 = vld [vmem:[%s7233_s26 + $0x8ac] ss:$44 sps:$4 sm:$0xff]  }
 0x207   : > { %3574 = vmatmul.mubr.bf16.gmra.mrb[92].mxu1 %v6897_v4  ;;  %4216 = vmatmul.mubr.bf16.gmra.mrb[124].mxu0 %v6898_v5  ;;  %v6956_v4 = vld [vmem:[%s7233_s26 + $0x33c] ss:$44 sps:$4 sm:$0xff]  }
 0x208   : > { %3581 = vmatprep.mubr.bf16.mxu1 %v6899_v6  ;;  %4256 = vmatprep.mubr.bf16.mxu0 %v6903_v7  ;;  %v6960_v5 = vld [vmem:[%s8430_s1 + $0x288] sm:$0xff]   ;;  %v6967_v6 = vld [vmem:[%s8430_s1 + $0x290] sm:$0xff]  }
 0x20f   : > { %3582 = vmatmul.mubr.bf16.gmra.mrb[96].mxu1 %v6904_v8  ;;  %4257 = vmatmul.mubr.bf16.vlgmr.msra.gmra.mrb[0].mxu0 %v6901_v9  ;;  %v6958_v9 = vld [vmem:[%s7233_s26 + $0x8a8] ss:$44 sps:$4 sm:$0xff]  }
 0x210   : > { %3589 = vmatprep.mubr.bf16.mxu1 %v6905_v10  ;;  %4264 = vmatprep.mubr.bf16.mxu0 %v6907_v11  ;;  %v6959_v11 = vld [vmem:[%s7233_s26 + $0x338] ss:$44 sps:$4 sm:$0xff]  }
 0x217   : > { %3590 = vmatmul.mubr.bf16.gmra.mrb[100].mxu1 %v6909_v1  ;;  %4265 = vmatmul.mubr.bf16.gmra.mrb[4].mxu0 %v6910_v12  ;;  %v6961_v1 = vld [vmem:[%s7233_s26 + $0x904] ss:$44 sps:$4 sm:$0xff]  }
 0x218   : > { %3597 = vmatprep.mubr.bf16.mxu1 %v6911_v13  ;;  %4272 = vmatprep.mubr.bf16.mxu0 %v6913_v14  ;;  %v6974_v13 = vld [vmem:[%s8430_s1 + $0x298] sm:$0xff]  }
 0x21f   : > { %3598 = vmatmul.mubr.bf16.gmra.mrb[104].mxu1 %v6915_v15  ;;  %4273 = vmatmul.mubr.bf16.gmra.mrb[8].mxu0 %v6916_v16  ;;  %v6981_v15 = vld [vmem:[%s8430_s1 + $0x2a0] sm:$0xff]  }
 0x220   : > { %3605 = vmatprep.mubr.bf16.mxu1 %v6917_v17  ;;  %4280 = vmatprep.mubr.bf16.mxu0 %v6919_v18  ;;  %v6965_v17 = vld [vmem:[%s7233_s26 + $0x900] ss:$44 sps:$4 sm:$0xff]  }
 0x222   : > { %v7796_v19 = vpop.f32.mrb[0].mxu1 }
 0x223   : > { %v3393_v20 = vpop.f32.mrb[1].mxu1 }
 0x224   : > { %v7799_v22 = vpop.f32.mrb[2].mxu1  ;;  %v6966_v20 = vld [vmem:[%s7233_s26 + $0x390] ss:$44 sps:$4 sm:$0xff]  }
 0x225   : > { %v3396_v25 = vpop.f32.mrb[3].mxu1 }
 0x226   : > { %v6988_v25 = vld [vmem:[%s8430_s1 + $0x2a8] sm:$0xff]  }
 0x227   : > { %3606 = vmatmul.mubr.bf16.gmra.mrb[108].mxu1 %v6921_v21  ;;  %4281 = vmatmul.mubr.bf16.gmra.mrb[12].mxu0 %v6922_v23  ;;  %v6968_v21 = vld [vmem:[%s7233_s26 + $0x95c] ss:$44 sps:$4 sm:$0xff]  }
 0x228   : > { %3613 = vmatprep.mubr.bf16.mxu1 %v6923_v24  ;;  %4288 = vmatprep.mubr.bf16.mxu0 %v6925_v26  ;;  %v6970_v24 = vld [vmem:[%s7233_s26 + $0x3ec] ss:$44 sps:$4 sm:$0xff]  }
 0x22a   : > { %v7804_v27 = vpop.f32.mrb[4].mxu1 }
 0x22b   : > { %v3401_v28 = vpop.f32.mrb[5].mxu1 }
 0x22c   : > { %v7807_v30 = vpop.f32.mrb[6].mxu1  ;;  %v6995_v28 = vld [vmem:[%s8430_s1 + $0x2b0] sm:$0xff]  }
 0x22d   : > { %v3404_v33 = vpop.f32.mrb[7].mxu1 }
 0x22e   : > { %v6973_v33 = vld [vmem:[%s7233_s26 + $0x3e8] ss:$44 sps:$4 sm:$0xff]  }
 0x22f   : > { %3614 = vmatmul.mubr.bf16.gmra.mrb[112].mxu1 %v6927_v29  ;;  %4289 = vmatmul.mubr.bf16.gmra.mrb[16].mxu0 %v6928_v31  ;;  %v6972_v31 = vld [vmem:[%s7233_s26 + $0x958] ss:$44 sps:$4 sm:$0xff]  }
 0x230   : > { %3621 = vmatprep.mubr.bf16.mxu1 %v6929_v32  ;;  %4296 = vmatprep.mubr.bf16.mxu0 %v6931_v34  ;;  %v6975_v34 = vld [vmem:[%s7233_s26 + $0x9b4] ss:$44 sps:$4 sm:$0xff]  }
 0x232   : > { %v7812_v35 = vpop.f32.mrb[8].mxu1 }
 0x233   : > { %v3409_v36 = vpop.f32.mrb[9].mxu1 }
 0x234   : > { %v7815_v38 = vpop.f32.mrb[10].mxu1 }
 0x235   : > { %v3412_v41 = vpop.f32.mrb[11].mxu1 }
 0x237   : > { %3622 = vmatmul.mubr.bf16.gmra.mrb[116].mxu1 %v6933_v37  ;;  %4297 = vmatmul.mubr.bf16.gmra.mrb[20].mxu0 %v6934_v39  ;;  %v6977_v37 = vld [vmem:[%s7233_s26 + $0x444] ss:$44 sps:$4 sm:$0xff]   ;;  %v7002_v39 = vld [vmem:[%s8430_s1 + $0x2b8] sm:$0xff]  }
 0x238   : > { %3629 = vmatprep.mubr.bf16.mxu1 %v6935_v40  ;;  %4304 = vmatprep.mubr.bf16.mxu0 %v6937_v43  ;;  %v6979_v43 = vld [vmem:[%s7233_s26 + $0x9b0] ss:$44 sps:$4 sm:$0xff]  }
 0x23a   : > { %v7820_v44 = vpop.f32.mrb[12].mxu1 }
 0x23b   : > { %v3417_v45 = vpop.f32.mrb[13].mxu1 }
 0x23c   : > { %v7823_v47 = vpop.f32.mrb[14].mxu1 }
 0x23d   : > { %v3420_v50 = vpop.f32.mrb[15].mxu1 }
 0x23e   : > { %v6984_v50 = vld [vmem:[%s7233_s26 + $0x49c] ss:$44 sps:$4 sm:$0xff]  }
 0x23f   : > { %3630 = vmatmul.mubr.bf16.gmra.mrb[120].mxu1 %v6939_v46  ;;  %4305 = vmatmul.mubr.bf16.gmra.mrb[24].mxu0 %v6940_v48  ;;  %v6980_v46 = vld [vmem:[%s7233_s26 + $0x440] ss:$44 sps:$4 sm:$0xff]  }
 0x240   : > { %3637 = vmatprep.mubr.bf16.mxu1 %v6941_v49  ;;  %4312 = vmatprep.mubr.bf16.mxu0 %v6943_v51  ;;  %v6982_v48 = vld [vmem:[%s7233_s26 + $0xa0c] ss:$44 sps:$4 sm:$0xff]  }
 0x242   : > { %v7828_v52 = vpop.f32.mrb[16].mxu1 }
 0x243   : > { %v3425_v53 = vpop.f32.mrb[17].mxu1 }
 0x244   : > { %v7831_v55 = vpop.f32.mrb[18].mxu1 }
 0x245   : > { %v3428_v58 = vpop.f32.mrb[19].mxu1 }
 0x246   : > { %v6989_v58 = vld [vmem:[%s7233_s26 + $0xa64] ss:$44 sps:$4 sm:$0xff]  }
 0x247   : > { %3638 = vmatmul.mubr.bf16.gmra.mrb[124].mxu1 %v6945_v54  ;;  %4313 = vmatmul.mubr.bf16.gmra.mrb[28].mxu0 %v6946_v56  ;;  %v6986_v54 = vld [vmem:[%s7233_s26 + $0xa08] ss:$44 sps:$4 sm:$0xff]  }
 0x248   : > { %3870 = vmatprep.mubr.bf16.mxu1 %v6949_v57  ;;  %4320 = vmatprep.mubr.bf16.mxu0 %v6950_v59  ;;  %v6987_v57 = vld [vmem:[%s7233_s26 + $0x498] ss:$44 sps:$4 sm:$0xff]  }
 0x24a   : > { %v7836_v60 = vpop.f32.mrb[20].mxu1 }
 0x24b   : > { %v3433_v61 = vpop.f32.mrb[21].mxu1 }
 0x24c   : > { %v7839_v63 = vpop.f32.mrb[22].mxu1  ;;  %v6991_v61 = vld [vmem:[%s7233_s26 + $0x4f4] ss:$44 sps:$4 sm:$0xff]  }
 0x24d   : > { %v3436_v2 = vpop.f32.mrb[23].mxu1 }
 0x24e   : > { %v6993_v2 = vld [vmem:[%s7233_s26 + $0xa60] ss:$44 sps:$4 sm:$0xff]  }
 0x24f   : > { %3871 = vmatmul.mubr.bf16.vlgmr.msra.gmra.mrb[96].mxu1 %v6947_v62  ;;  %4321 = vmatmul.mubr.bf16.gmra.mrb[32].mxu0 %v6952_v0 }
 0x250   : > { %5898 = vmatpush3.bf16.msra.mxu1 %v7753_v42  ;;  %3878 = vmatprep.mubr.bf16.mxu1 %v6954_v3  ;;  %v6963_v42 = vld [vmem:[%s7233_s26 + $0x394] ss:$44 sps:$4 sm:$0xff]  }
 0x251   : > { %4328 = vmatprep.mubr.bf16.mxu0 %v6956_v4  ;;  %5899 = vmatprep.subr.bf16.mxu1 %v6960_v5  ;;  %v6994_v4 = vld [vmem:[%s7233_s26 + $0x4f0] ss:$44 sps:$4 sm:$0xff]  }
 0x252   : > { %v7851_v7 = vpop.f32.mrb[24].mxu1 }
 0x253   : > { %v3441_v8 = vpop.f32.mrb[25].mxu1 }
 0x254   : > { %v7854_v10 = vpop.f32.mrb[26].mxu1  ;;  %5900 = vmatpush3.bf16.msra.mxu1 %v6960_v5  ;;  %v6996_v5 = vld [vmem:[%s7233_s26 + $0xabc] ss:$44 sps:$4 sm:$0xff]   ;;  %v6998_v8 = vld [vmem:[%s7233_s26 + $0x54c] ss:$44 sps:$4 sm:$0xff]  }
 0x255   : > { %v3444_v12 = vpop.f32.mrb[27].mxu1  ;;  %5901 = vmatprep.subr.bf16.mxu1 %v6967_v6 }
 0x257   : > { %3879 = vmatmul.mubr.bf16.gmra.mrb[100].mxu1 %v6958_v9  ;;  %4329 = vmatmul.mubr.bf16.gmra.mrb[36].mxu0 %v6959_v11 }
 0x258   : > { %3886 = vmatprep.mubr.bf16.mxu1 %v6961_v1  ;;  %4336 = vmatprep.mubr.bf16.mxu0 %v6963_v42  ;;  %v7000_v1 = vld [vmem:[%s7233_s26 + $0xab8] ss:$44 sps:$4 sm:$0xff]   ;;  %v7001_v42 = vld [vmem:[%s7233_s26 + $0x548] ss:$44 sps:$4 sm:$0xff]  }
 0x259   : > { %5902 = vmatpush3.bf16.msra.mxu1 %v6967_v6 }
 0x25a   : > { %v7862_v14 = vpop.f32.mrb[28].mxu1  ;;  %5903 = vmatprep.subr.bf16.mxu1 %v6974_v13 }
 0x25b   : > { %v3449_v16 = vpop.f32.mrb[29].mxu1 }
 0x25c   : > { %v7868_v18 = vpop.f32.mrb[30].mxu1  ;;  %v7003_v16 = vld [vmem:[%s7233_s26 + $0x5a4] ss:$44 sps:$4 sm:$0xff]  }
 0x25d   : > { %v3452_v23 = vpop.f32.mrb[31].mxu1  ;;  %5904 = vmatpush3.bf16.msra.mxu1 %v6974_v13  ;;  %v7005_v13 = vld [vmem:[%s7233_s26 + $0x28] ss:$44 sps:$4 sm:$0xff]  }
 0x25e   : > { %5905 = vmatprep.subr.bf16.mxu1 %v6981_v15 }
 0x25f   : > { %3887 = vmatmul.mubr.bf16.gmra.mrb[104].mxu1 %v6965_v17  ;;  %4337 = vmatmul.mubr.bf16.gmra.mrb[40].mxu0 %v6966_v20 }
 0x260   : > { %3894 = vmatprep.mubr.bf16.mxu1 %v6968_v21  ;;  %4344 = vmatprep.mubr.bf16.mxu0 %v6970_v24  ;;  %v7007_v21 = vld [vmem:[%s7233_s26 + $0x80] ss:$44 sps:$4 sm:$0xff]  }
 0x261   : > { %5906 = vmatpush3.bf16.msra.mxu1 %v6981_v15  ;;  %v7006_v24 = vld [vmem:[%s7233_s26 + $0x5a0] ss:$44 sps:$4 sm:$0xff]  }
 0x262   : > { %v7876_v26 = vpop.f32.mrb[32].mxu1  ;;  %5907 = vmatprep.subr.bf16.mxu1 %v6988_v25 }
 0x263   : > { %v3457_v29 = vpop.f32.mrb[33].mxu1 }
 0x264   : > { %v7882_v32 = vpop.f32.mrb[34].mxu1  ;;  %v7008_v29 = vld [vmem:[%s7233_s26 + $0x5fc] ss:$44 sps:$4 sm:$0xff]  }
 0x265   : > { %v3460_v36 = vpop.f32.mrb[35].mxu1  ;;  %5908 = vmatpush3.bf16.msra.mxu1 %v6988_v25  ;;  %v7010_v25 = vld [vmem:[%s7233_s26 + $0xd8] ss:$44 sps:$4 sm:$0xff]  }
 0x266   : > { %5909 = vmatprep.subr.bf16.mxu1 %v6995_v28 }
 0x267   : > { %3895 = vmatmul.mubr.bf16.gmra.mrb[108].mxu1 %v6972_v31  ;;  %4345 = vmatmul.mubr.bf16.gmra.mrb[44].mxu0 %v6973_v33 }
 0x268   : > { %3902 = vmatprep.mubr.bf16.mxu1 %v6975_v34  ;;  %4352 = vmatprep.mubr.bf16.mxu0 %v6977_v37  ;;  %v7012_v34 = vld [vmem:[%s7233_s26 + $0x130] ss:$44 sps:$4 sm:$0xff]   ;;  %v7011_v37 = vld [vmem:[%s7233_s26 + $0x5f8] ss:$44 sps:$4 sm:$0xff]  }
 0x269   : > { %5910 = vmatpush3.bf16.msra.mxu1 %v6995_v28 }
 0x26a   : > { %v7890_v40 = vpop.f32.mrb[36].mxu1  ;;  %5911 = vmatprep.subr.bf16.mxu1 %v7002_v39 }
 0x26b   : > { %v3465_v41 = vpop.f32.mrb[37].mxu1 }
 0x26c   : > { %v7893_v45 = vpop.f32.mrb[38].mxu1 }
 0x26d   : > { %v3468_v49 = vpop.f32.mrb[39].mxu1  ;;  %5912 = vmatpush3.bf16.msra.mxu1 %v7002_v39  ;;  %v7015_v39 = vld [vmem:[%s7233_s26 + $0x188] ss:$44 sps:$4 sm:$0xff]  }
 0x26e   : > { %v7017_v49 = vld [vmem:[%s7233_s26 + $0x1e0] ss:$44 sps:$4 sm:$0xff]  }
 0x26f   : > { %3903 = vmatmul.mubr.bf16.gmra.mrb[112].mxu1 %v6979_v43  ;;  %4353 = vmatmul.mubr.bf16.gmra.mrb[48].mxu0 %v6980_v46  ;;  %v7013_v43 = vld [vmem:[%s7233_s26 + $0x654] ss:$44 sps:$4 sm:$0xff]  }
 0x270   : > { %3910 = vmatprep.mubr.bf16.mxu1 %v6982_v48  ;;  %4360 = vmatprep.mubr.bf16.mxu0 %v6984_v50 }
 0x272   : > { %v7898_v51 = vpop.f32.mrb[40].mxu1 }
 0x273   : > { %v3473_v53 = vpop.f32.mrb[41].mxu1 }
 0x274   : > { %v7901_v56 = vpop.f32.mrb[42].mxu1  ;;  %v7016_v53 = vld [vmem:[%s7233_s26 + $0x650] ss:$44 sps:$4 sm:$0xff]  }
 0x275   : > { %v3476_v59 = vpop.f32.mrb[43].mxu1 }
 0x277   : > { %3911 = vmatmul.mubr.bf16.gmra.mrb[116].mxu1 %v6986_v54  ;;  %4361 = vmatmul.mubr.bf16.gmra.mrb[52].mxu0 %v6987_v57  ;;  %v7020_v54 = vld [vmem:[%s7233_s26 + $0x238] ss:$44 sps:$4 sm:$0xff]  }
 0x278   : > { %3918 = vmatprep.mubr.bf16.mxu1 %v6989_v58  ;;  %4368 = vmatprep.mubr.bf16.mxu0 %v6991_v61  ;;  %v7018_v58 = vld [vmem:[%s7233_s26 + $0x6ac] ss:$44 sps:$4 sm:$0xff]  }
 0x27a   : > { %v7906_v62 = vpop.f32.mrb[44].mxu1 }
 0x27b   : > { %v3481_v0 = vpop.f32.mrb[45].mxu1 }
 0x27c   : > { %v7909_v3 = vpop.f32.mrb[46].mxu1  ;;  %v7022_v0 = vld [vmem:[%s7233_s26 + $0x290] ss:$44 sps:$4 sm:$0xff]  }
 0x27d   : > { %v3484_v6 = vpop.f32.mrb[47].mxu1 }
 0x27f   : > { %3919 = vmatmul.mubr.bf16.gmra.mrb[120].mxu1 %v6993_v2  ;;  %4369 = vmatmul.mubr.bf16.gmra.mrb[56].mxu0 %v6994_v4  ;;  %v7021_v4 = vld [vmem:[%s7233_s26 + $0x6a8] ss:$44 sps:$4 sm:$0xff]  }
 0x280   : > { %3926 = vmatprep.mubr.bf16.mxu1 %v6996_v5  ;;  %4376 = vmatprep.mubr.bf16.mxu0 %v6998_v8  ;;  %v7025_v5 = vld [vmem:[%s7233_s26 + $0x2e8] ss:$44 sps:$4 sm:$0xff]   ;;  %v7023_v8 = vld [vmem:[%s7233_s26 + $0x704] ss:$44 sps:$4 sm:$0xff]  }
 0x282   : > { %v7914_v9 = vpop.f32.mrb[48].mxu1 }
 0x283   : > { %v3489_v11 = vpop.f32.mrb[49].mxu1 }
 0x284   : > { %v7917_v12 = vpop.f32.mrb[50].mxu1 }
 0x285   : > { %v3492_v15 = vpop.f32.mrb[51].mxu1 }
 0x286   : > { %v7026_v15 = vld [vmem:[%s7233_s26 + $0x700] ss:$44 sps:$4 sm:$0xff]  }
 0x287   : > { %3927 = vmatmul.mubr.bf16.gmra.mrb[124].mxu1 %v7000_v1  ;;  %4377 = vmatmul.mubr.bf16.gmra.mrb[60].mxu0 %v7001_v42  ;;  %v7027_v42 = vld [vmem:[%s7233_s26 + $0x340] ss:$44 sps:$4 sm:$0xff]  }
 0x288   : > { %5913 = vmatprep.mubr.bf16.mxu1 %v7005_v13  ;;  %4384 = vmatprep.mubr.bf16.mxu0 %v7003_v16  ;;  %v7030_v16 = vld [vmem:[%s7233_s26 + $0x398] ss:$44 sps:$4 sm:$0xff]  }
 0x28a   : > { %v7922_v17 = vpop.f32.mrb[52].mxu1 }
 0x28b   : > { %v3497_v20 = vpop.f32.mrb[53].mxu1 }
 0x28c   : > { %v7925_v23 = vpop.f32.mrb[54].mxu1 }
 0x28d   : > { %v3500_v28 = vpop.f32.mrb[55].mxu1 }
 0x28e   : > { %v7032_v28 = vld [vmem:[%s7233_s26 + $0x3f0] ss:$44 sps:$4 sm:$0xff]  }
 0x28f   : > { %5914 = vmatmul.mubr.bf16.vlgmr.msra.gmra.mrb[128].mxu1 %v7007_v21  ;;  %4385 = vmatmul.mubr.bf16.gmra.mrb[64].mxu0 %v7006_v24  ;;  %v7028_v21 = vld [vmem:[%s7233_s26 + $0x75c] ss:$44 sps:$4 sm:$0xff]  }
 0x290   : > { %5917 = vmatprep.mubr.bf16.mxu1 %v7010_v25  ;;  %4392 = vmatprep.mubr.bf16.mxu0 %v7008_v29 }
 0x292   : > { %v7930_v31 = vpop.f32.mrb[56].mxu1 }
 0x293   : > { %v3505_v33 = vpop.f32.mrb[57].mxu1 }
 0x294   : > { %v7933_v36 = vpop.f32.mrb[58].mxu1  ;;  %v7031_v33 = vld [vmem:[%s7233_s26 + $0x758] ss:$44 sps:$4 sm:$0xff]  }
 0x295   : > { %v3508_v41 = vpop.f32.mrb[59].mxu1 }
 0x297   : > { %5918 = vmatmul.mubr.bf16.gmra.mrb[132].mxu1 %v7012_v34  ;;  %4393 = vmatmul.mubr.bf16.gmra.mrb[68].mxu0 %v7011_v37  ;;  %v7035_v34 = vld [vmem:[%s7233_s26 + $0x448] ss:$44 sps:$4 sm:$0xff]  }
 0x298   : > { %5921 = vmatprep.mubr.bf16.mxu1 %v7015_v39  ;;  %4400 = vmatprep.mubr.bf16.mxu0 %v7013_v43  ;;  %v7033_v39 = vld [vmem:[%s7233_s26 + $0x7b4] ss:$44 sps:$4 sm:$0xff]  }
 0x29a   : > { %v7938_v46 = vpop.f32.mrb[60].mxu1 }
 0x29b   : > { %v3513_v48 = vpop.f32.mrb[61].mxu1 }
 0x29c   : > { %v7941_v50 = vpop.f32.mrb[62].mxu1  ;;  %v7037_v48 = vld [vmem:[%s7233_s26 + $0x4a0] ss:$44 sps:$4 sm:$0xff]  }
 0x29d   : > { %v3516_v57 = vpop.f32.mrb[63].mxu1 }
 0x29f   : > { %5922 = vmatmul.mubr.bf16.gmra.mrb[136].mxu1 %v7017_v49  ;;  %4401 = vmatmul.mubr.bf16.gmra.mrb[72].mxu0 %v7016_v53  ;;  %v7036_v53 = vld [vmem:[%s7233_s26 + $0x7b0] ss:$44 sps:$4 sm:$0xff]  }
 0x2a0   : > { %5925 = vmatprep.mubr.bf16.mxu1 %v7020_v54  ;;  %4408 = vmatprep.mubr.bf16.mxu0 %v7018_v58  ;;  %v7040_v54 = vld [vmem:[%s7233_s26 + $0x4f8] ss:$44 sps:$4 sm:$0xff]  }
 0x2a1   : > { %v7038_v58 = vld [vmem:[%s7233_s26 + $0x80c] ss:$44 sps:$4 sm:$0xff]  }
 0x2a2   : > { %v7946_v59 = vpop.f32.mrb[64].mxu1 }
 0x2a3   : > { %v3521_v61 = vpop.f32.mrb[65].mxu1 }
 0x2a4   : > { %v7949_v2 = vpop.f32.mrb[66].mxu1 }
 0x2a5   : > { %v3524_v6 = vpop.f32.mrb[67].mxu1 }
 0x2a6   : > { %v7041_v6 = vld [vmem:[%s7233_s26 + $0x808] ss:$44 sps:$4 sm:$0xff]  }
 0x2a7   : > { %5926 = vmatmul.mubr.bf16.gmra.mrb[140].mxu1 %v7022_v0  ;;  %4409 = vmatmul.mubr.bf16.gmra.mrb[76].mxu0 %v7021_v4  ;;  %v7042_v4 = vld [vmem:[%s7233_s26 + $0x550] ss:$44 sps:$4 sm:$0xff]  }
 0x2a8   : > { %5929 = vmatprep.mubr.bf16.mxu1 %v7025_v5  ;;  %4416 = vmatprep.mubr.bf16.mxu0 %v7023_v8  ;;  %v7045_v8 = vld [vmem:[%s7233_s26 + $0x5a8] ss:$44 sps:$4 sm:$0xff]  }
 0x2aa   : > { %v7954_v11 = vpop.f32.mrb[68].mxu1 }
 0x2ab   : > { %v3529_v1 = vpop.f32.mrb[69].mxu1 }
 0x2ac   : > { %v7957_v13 = vpop.f32.mrb[70].mxu1 }
 0x2ad   : > { %v3532_v20 = vpop.f32.mrb[71].mxu1 }
 0x2ae   : > { %v7047_v20 = vld [vmem:[%s7233_s26 + $0x600] ss:$44 sps:$4 sm:$0xff]  }
 0x2af   : > { %5930 = vmatmul.mubr.bf16.gmra.mrb[144].mxu1 %v7027_v42  ;;  %4417 = vmatmul.mubr.bf16.gmra.mrb[80].mxu0 %v7026_v15  ;;  %v7043_v42 = vld [vmem:[%s7233_s26 + $0x864] ss:$44 sps:$4 sm:$0xff]  }
 0x2b0   : > { %5933 = vmatprep.mubr.bf16.mxu1 %v7030_v16  ;;  %4424 = vmatprep.mubr.bf16.mxu0 %v7028_v21 }
 0x2b2   : > { %v7962_v24 = vpop.f32.mrb[72].mxu1 }
 0x2b3   : > { %v3537_v25 = vpop.f32.mrb[73].mxu1 }
 0x2b4   : > { %v7965_v29 = vpop.f32.mrb[74].mxu1  ;;  %v7046_v25 = vld [vmem:[%s7233_s26 + $0x860] ss:$44 sps:$4 sm:$0xff]  }
 0x2b5   : > { %v3540_v37 = vpop.f32.mrb[75].mxu1 }
 0x2b7   : > { %5934 = vmatmul.mubr.bf16.gmra.mrb[148].mxu1 %v7032_v28  ;;  %4425 = vmatmul.mubr.bf16.gmra.mrb[84].mxu0 %v7031_v33  ;;  %v7050_v28 = vld [vmem:[%s7233_s26 + $0x658] ss:$44 sps:$4 sm:$0xff]  }
 0x2b8   : > { %5937 = vmatprep.mubr.bf16.mxu1 %v7035_v34  ;;  %4432 = vmatprep.mubr.bf16.mxu0 %v7033_v39  ;;  %v7048_v34 = vld [vmem:[%s7233_s26 + $0x8bc] ss:$44 sps:$4 sm:$0xff]  }
 0x2ba   : > { %v7970_v41 = vpop.f32.mrb[76].mxu1 }
 0x2bb   : > { %v3545_v43 = vpop.f32.mrb[77].mxu1 }
 0x2bc   : > { %v7973_v49 = vpop.f32.mrb[78].mxu1  ;;  %v7052_v43 = vld [vmem:[%s7233_s26 + $0x6b0] ss:$44 sps:$4 sm:$0xff]  }
 0x2bd   : > { %v3548_v57 = vpop.f32.mrb[79].mxu1 }
 0x2bf   : > { %5938 = vmatmul.mubr.bf16.gmra.mrb[152].mxu1 %v7037_v48  ;;  %4433 = vmatmul.mubr.bf16.gmra.mrb[88].mxu0 %v7036_v53  ;;  %v7051_v53 = vld [vmem:[%s7233_s26 + $0x8b8] ss:$44 sps:$4 sm:$0xff]  }
 0x2c0   : > { %5941 = vmatprep.mubr.bf16.mxu1 %v7040_v54  ;;  %4440 = vmatprep.mubr.bf16.mxu0 %v7038_v58  ;;  %v7055_v54 = vld [vmem:[%s7233_s26 + $0x708] ss:$44 sps:$4 sm:$0xff]  }
 0x2c1   : > { %v7053_v58 = vld [vmem:[%s7233_s26 + $0x914] ss:$44 sps:$4 sm:$0xff]  }
 0x2c2   : > { %v7978_v61 = vpop.f32.mrb[80].mxu1 }
 0x2c3   : > { %v3553_v0 = vpop.f32.mrb[81].mxu1 }
 0x2c4   : > { %v7981_v5 = vpop.f32.mrb[82].mxu1 }
 0x2c5   : > { %v3556_v1 = vpop.f32.mrb[83].mxu1 }
 0x2c6   : > { %v7056_v1 = vld [vmem:[%s7233_s26 + $0x910] ss:$44 sps:$4 sm:$0xff]  }
 0x2c7   : > { %5942 = vmatmul.mubr.bf16.gmra.mrb[156].mxu1 %v7042_v4  ;;  %4441 = vmatmul.mubr.bf16.gmra.mrb[92].mxu0 %v7041_v6  ;;  %v7057_v6 = vld [vmem:[%s7233_s26 + $0x760] ss:$44 sps:$4 sm:$0xff]  }
 0x2c8   : > { %5945 = vmatprep.mubr.bf16.mxu1 %v7045_v8  ;;  %4448 = vmatprep.mubr.bf16.mxu0 %v7043_v42  ;;  %v7060_v42 = vld [vmem:[%s7233_s26 + $0x7b8] ss:$44 sps:$4 sm:$0xff]  }
 0x2ca   : > { %v7986_v15 = vpop.f32.mrb[84].mxu1 }
 0x2cb   : > { %v3561_v16 = vpop.f32.mrb[85].mxu1 }
 0x2cc   : > { %v7989_v21 = vpop.f32.mrb[86].mxu1 }
 0x2cd   : > { %v3564_v33 = vpop.f32.mrb[87].mxu1 }
 0x2cf   : > { %5946 = vmatmul.mubr.bf16.gmra.mrb[160].mxu1 %v7047_v20  ;;  %4449 = vmatmul.mubr.bf16.gmra.mrb[96].mxu0 %v7046_v25  ;;  %v7058_v20 = vld [vmem:[%s7233_s26 + $0x96c] ss:$44 sps:$4 sm:$0xff]  }
 0x2d0   : > { %5949 = vmatprep.mubr.bf16.mxu1 %v7050_v28  ;;  %4456 = vmatprep.mubr.bf16.mxu0 %v7048_v34  ;;  %v7062_v28 = vld [vmem:[%s7233_s26 + $0x810] ss:$44 sps:$4 sm:$0xff]  }
 0x2d2   : > { %v7994_v37 = vpop.f32.mrb[88].mxu1 }
 0x2d3   : > { %v3569_v39 = vpop.f32.mrb[89].mxu1 }
 0x2d4   : > { %v7997_v48 = vpop.f32.mrb[90].mxu1  ;;  %v7061_v39 = vld [vmem:[%s7233_s26 + $0x968] ss:$44 sps:$4 sm:$0xff]  }
 0x2d5   : > { %v3572_v57 = vpop.f32.mrb[91].mxu1 }
 0x2d7   : > { %5950 = vmatmul.mubr.bf16.gmra.mrb[164].mxu1 %v7052_v43  ;;  %4457 = vmatmul.mubr.bf16.gmra.mrb[100].mxu0 %v7051_v53  ;;  %v7065_v43 = vld [vmem:[%s7233_s26 + $0x868] ss:$44 sps:$4 sm:$0xff]  }
 0x2d8   : > { %5953 = vmatprep.mubr.bf16.mxu1 %v7055_v54  ;;  %4464 = vmatprep.mubr.bf16.mxu0 %v7053_v58  ;;  %v7063_v54 = vld [vmem:[%s7233_s26 + $0x9c4] ss:$44 sps:$4 sm:$0xff]  }
 0x2da   : > { %v8002_v0 = vpop.f32.mrb[92].mxu1 }
 0x2db   : > { %v3577_v4 = vpop.f32.mrb[93].mxu1 }
 0x2dc   : > { %v8005_v8 = vpop.f32.mrb[94].mxu1 }
 0x2dd   : > { %v3580_v16 = vpop.f32.mrb[95].mxu1 }
 0x2de   : > { %v7070_v16 = vld [vmem:[%s7233_s26 + $0x918] ss:$44 sps:$4 sm:$0xff]  }
 0x2df   : > { %5954 = vmatmul.mubr.bf16.gmra.mrb[168].mxu1 %v7057_v6  ;;  %4465 = vmatmul.mubr.bf16.gmra.mrb[104].mxu0 %v7056_v1 }
 0x2e0   : > { %5957 = vmatprep.mubr.bf16.mxu1 %v7060_v42  ;;  %4472 = vmatprep.mubr.bf16.mxu0 %v7058_v20  ;;  %v7066_v42 = vld [vmem:[%s7233_s26 + $0x9c0] ss:$44 sps:$4 sm:$0xff]  }
 0x2e2   : > { %v4258_v25 = vpop.f32.mrb[0].mxu0 }
 0x2e3   : > { %v8012_v33 = vadd.f32 %v4258_v25, %v7796_v19  ;;  %v4260_v34 = vpop.f32.mrb[1].mxu0  ;;  %v7067_v19 = vld [vmem:[%s7233_s26 + $0x8c0] ss:$44 sps:$4 sm:$0xff]  }
 0x2e4   : > { %v4261_v53 = vpop.f32.mrb[2].mxu0 }
 0x2e5   : > { %v8018_v57 = vadd.f32 %v4261_v53, %v7799_v22  ;;  %v4263_v58 = vpop.f32.mrb[3].mxu0  ;;  %v7068_v22 = vld [vmem:[%s7233_s26 + $0xa1c] ss:$44 sps:$4 sm:$0xff]   ;;  %v7071_v53 = vld [vmem:[%s7233_s26 + $0xa18] ss:$44 sps:$4 sm:$0xff]  }
 0x2e7   : > { %5958 = vmatmul.mubr.bf16.gmra.mrb[172].mxu1 %v7062_v28  ;;  %4473 = vmatmul.mubr.bf16.gmra.mrb[108].mxu0 %v7061_v39 }
 0x2e8   : > { %5961 = vmatprep.mubr.bf16.mxu1 %v7065_v43  ;;  %4480 = vmatprep.mubr.bf16.mxu0 %v7063_v54  ;;  %v7075_v54 = vld [vmem:[%s7233_s26 + $0x9c8] ss:$44 sps:$4 sm:$0xff]  }
 0x2ea   : > { %v4266_v4 = vpop.f32.mrb[4].mxu0 }
 0x2eb   : > { %v8022_v6 = vadd.f32 %v4266_v4, %v7804_v27  ;;  %v4268_v1 = vpop.f32.mrb[5].mxu0  ;;  %v7072_v27 = vld [vmem:[%s7233_s26 + $0x970] ss:$44 sps:$4 sm:$0xff]  }
 0x2ec   : > { %v4269_v20 = vpop.f32.mrb[6].mxu0 }
 0x2ed   : > { %v8028_v25 = vadd.f32 %v4269_v20, %v7807_v30  ;;  %v4271_v28 = vpop.f32.mrb[7].mxu0  ;;  %v7073_v30 = vld [vmem:[%s7233_s26 + $0xa74] ss:$44 sps:$4 sm:$0xff]   ;;  %v7076_v20 = vld [vmem:[%s7233_s26 + $0xa70] ss:$44 sps:$4 sm:$0xff]  }
 0x2ef   : > { %5962 = vmatmul.mubr.bf16.gmra.mrb[176].mxu1 %v7067_v19  ;;  %4481 = vmatmul.mubr.bf16.gmra.mrb[112].mxu0 %v7066_v42 }
 0x2f0   : > { %5965 = vmatprep.mubr.bf16.mxu1 %v7070_v16  ;;  %4488 = vmatprep.mubr.bf16.mxu0 %v7068_v22  ;;  %v7080_v22 = vld [vmem:[%s7233_s26 + $0xa78] ss:$44 sps:$4 sm:$0xff]  }
 0x2f2   : > { %v4274_v34 = vpop.f32.mrb[8].mxu0 }
 0x2f3   : > { %v8032_v39 = vadd.f32 %v4274_v34, %v7812_v35  ;;  %v4276_v43 = vpop.f32.mrb[9].mxu0  ;;  %v7077_v35 = vld [vmem:[%s7233_s26 + $0xa20] ss:$44 sps:$4 sm:$0xff]  }
 0x2f4   : > { %v4277_v58 = vpop.f32.mrb[10].mxu0  ;;  %v7078_v34 = vld [vmem:[%s7233_s26 + $0xacc] ss:$44 sps:$4 sm:$0xff]  }
 0x2f5   : > { %v8038_v4 = vadd.f32 %v4277_v58, %v7815_v38  ;;  %v4279_v19 = vpop.f32.mrb[11].mxu0  ;;  %v7081_v58 = vld [vmem:[%s7233_s26 + $0xac8] ss:$44 sps:$4 sm:$0xff]  }
 0x2f7   : > { %5966 = vmatmul.mubr.bf16.gmra.mrb[180].mxu1 %v7072_v27  ;;  %4489 = vmatmul.mubr.bf16.gmra.mrb[116].mxu0 %v7071_v53  ;;  %v7082_v53 = vld [vmem:[%s7233_s26 + $0xad0] ss:$44 sps:$4 sm:$0xff]   ;;  %s5286_s26 = sshll.u32 %s8465_s5, 2 }
 0x2f8   : > { %5969 = vmatprep.mubr.bf16.mxu1 %v7075_v54  ;;  %4496 = vmatprep.mubr.bf16.mxu0 %v7073_v30  ;;  %s8166_s18 = scalar_lea.vmem %s8431_s2, %s5286_s26 }
 0x2fa   : > { %v4282_v1 = vpop.f32.mrb[12].mxu0 }
 0x2fb   : > { %v8042_v42 = vadd.f32 %v4282_v1, %v7820_v44  ;;  %v4284_v16 = vpop.f32.mrb[13].mxu0 }
 0x2fc   : > { %v4285_v28 = vpop.f32.mrb[14].mxu0 }
 0x2fd   : > { %v8048_v38 = vadd.f32 %v4285_v28, %v7823_v47  ;;  %v4287_v43 = vpop.f32.mrb[15].mxu0 }
 0x2ff   : > { %5970 = vmatmul.mubr.bf16.gmra.mrb[184].mxu1 %v7077_v35  ;;  %4497 = vmatmul.mubr.bf16.gmra.mrb[120].mxu0 %v7076_v20 }
 0x300   : > { %5973 = vmatprep.mubr.bf16.mxu1 %v7080_v22  ;;  %4504 = vmatprep.mubr.bf16.mxu0 %v7078_v34 }
 0x302   : > { %v4290_v27 = vpop.f32.mrb[16].mxu0 }
 0x303   : > { %v8052_v54 = vadd.f32 %v4290_v27, %v7828_v52  ;;  %v4292_v44 = vpop.f32.mrb[17].mxu0 }
 0x304   : > { %v4293_v30 = vpop.f32.mrb[18].mxu0 }
 0x305   : > { %v8056_v19 = vadd.f32 %v4293_v30, %v7831_v55  ;;  %v4295_v1 = vpop.f32.mrb[19].mxu0 }
 0x307   : > { %5974 = vmatmul.mubr.bf16.gmra.mrb[188].mxu1 %v7082_v53  ;;  %4505 = vmatmul.mubr.bf16.gmra.mrb[124].mxu0 %v7081_v58 }
 0x30a   : > { %v4298_v47 = vpop.f32.mrb[20].mxu0 }
 0x30b   : > { %v8059_v35 = vadd.f32 %v4298_v47, %v7836_v60  ;;  %v4300_v16 = vpop.f32.mrb[21].mxu0 }
 0x30c   : > { %v4301_v20 = vpop.f32.mrb[22].mxu0 }
 0x30d   : > { %v8062_v22 = vadd.f32 %v4301_v20, %v7839_v63  ;;  %v4303_v52 = vpop.f32.mrb[23].mxu0 }
 0x312   : > { %v4306_v28 = vpop.f32.mrb[24].mxu0 }
 0x313   : > { %v8065_v34 = vadd.f32 %v4306_v28, %v7851_v7  ;;  %v4308_v43 = vpop.f32.mrb[25].mxu0 }
 0x314   : > { %v4309_v55 = vpop.f32.mrb[26].mxu0 }
 0x315   : > { %v8068_v27 = vadd.f32 %v4309_v55, %v7854_v10  ;;  %v4311_v53 = vpop.f32.mrb[27].mxu0 }
 0x31a   : > { %v4314_v44 = vpop.f32.mrb[28].mxu0 }
 0x31b   : > { %v8071_v60 = vadd.f32 %v4314_v44, %v7862_v14  ;;  %v4316_v58 = vpop.f32.mrb[29].mxu0 }
 0x31c   : > { %v4317_v30 = vpop.f32.mrb[30].mxu0 }
 0x31d   : > { %v8074_v63 = vadd.f32 %v4317_v30, %v7868_v18  ;;  %v4319_v1 = vpop.f32.mrb[31].mxu0 }
 0x322   : > { %v8076_v47 = vpop.f32.mrb[96].mxu1  ;;  %v4322_v7 = vpop.f32.mrb[32].mxu0 }
 0x323   : > { %v3874_v16 = vpop.f32.mrb[97].mxu1  ;;  %v8079_v20 = vadd.f32 %v4322_v7, %v7876_v26  ;;  %v4324_v10 = vpop.f32.mrb[33].mxu0 }
 0x324   : > { %v8081_v52 = vpop.f32.mrb[98].mxu1  ;;  %v4325_v28 = vpop.f32.mrb[34].mxu0 }
 0x325   : > { %v3877_v43 = vpop.f32.mrb[99].mxu1  ;;  %v8084_v14 = vadd.f32 %v4325_v28, %v7882_v32  ;;  %v4327_v55 = vpop.f32.mrb[35].mxu0 }
 0x32a   : > { %v8086_v53 = vpop.f32.mrb[100].mxu1  ;;  %v4330_v18 = vpop.f32.mrb[36].mxu0 }
 0x32b   : > { %8432 = vst [vmem:[#allocation2_spill] sm:$0xff] %v8086_v53  ;;  %v3882_v44 = vpop.f32.mrb[101].mxu1  ;;  %v8089_v58 = vadd.f32 %v4330_v18, %v7890_v40  ;;  %v4332_v30 = vpop.f32.mrb[37].mxu0 }
 0x32c   : > { %v8091_v1 = vpop.f32.mrb[102].mxu1  ;;  %v4333_v26 = vpop.f32.mrb[38].mxu0 }
 0x32d   : > { %8433 = vst [vmem:[#allocation3_spill] sm:$0xff] %v8091_v1  ;;  %v3885_v7 = vpop.f32.mrb[103].mxu1  ;;  %v8094_v16 = vadd.f32 %v4333_v26, %v7893_v45  ;;  %v4335_v10 = vpop.f32.mrb[39].mxu0 }
 0x332   : > { %v8096_v43 = vpop.f32.mrb[104].mxu1  ;;  %v4338_v32 = vpop.f32.mrb[40].mxu0 }
 0x333   : > { %8434 = vst [vmem:[#allocation4_spill] sm:$0xff] %v8096_v43  ;;  %v3890_v28 = vpop.f32.mrb[105].mxu1  ;;  %v8099_v55 = vadd.f32 %v4338_v32, %v7898_v51  ;;  %v4340_v44 = vpop.f32.mrb[41].mxu0 }
 0x334   : > { %v8101_v53 = vpop.f32.mrb[106].mxu1  ;;  %v4341_v40 = vpop.f32.mrb[42].mxu0 }
 0x335   : > { %8435 = vst [vmem:[#allocation5_spill] sm:$0xff] %v8101_v53  ;;  %v3893_v18 = vpop.f32.mrb[107].mxu1  ;;  %v8104_v30 = vadd.f32 %v4341_v40, %v7901_v56  ;;  %v4343_v7 = vpop.f32.mrb[43].mxu0 }
 0x33a   : > { %v8106_v1 = vpop.f32.mrb[108].mxu1  ;;  %v4346_v45 = vpop.f32.mrb[44].mxu0 }
 0x33b   : > { %8436 = vst [vmem:[#allocation6_spill] sm:$0xff] %v8106_v1  ;;  %v3898_v26 = vpop.f32.mrb[109].mxu1  ;;  %v8109_v10 = vadd.f32 %v4346_v45, %v7906_v62  ;;  %v4348_v28 = vpop.f32.mrb[45].mxu0 }
 0x33c   : > { %v8111_v43 = vpop.f32.mrb[110].mxu1  ;;  %v4349_v51 = vpop.f32.mrb[46].mxu0 }
 0x33d   : > { %8437 = vst [vmem:[#allocation7_spill] sm:$0xff] %v8111_v43  ;;  %v3901_v32 = vpop.f32.mrb[111].mxu1  ;;  %v8114_v44 = vadd.f32 %v4349_v51, %v7909_v3  ;;  %v4351_v18 = vpop.f32.mrb[47].mxu0 }
 0x342   : > { %v8116_v53 = vpop.f32.mrb[112].mxu1  ;;  %v4354_v56 = vpop.f32.mrb[48].mxu0 }
 0x343   : > { %8438 = vst [vmem:[#allocation8_spill] sm:$0xff] %v8116_v53  ;;  %v3906_v40 = vpop.f32.mrb[113].mxu1  ;;  %v8119_v7 = vadd.f32 %v4354_v56, %v7914_v9  ;;  %v4356_v26 = vpop.f32.mrb[49].mxu0 }
 0x344   : > { %v8121_v1 = vpop.f32.mrb[114].mxu1  ;;  %v4357_v62 = vpop.f32.mrb[50].mxu0 }
 0x345   : > { %8439 = vst [vmem:[#allocation9_spill] sm:$0xff] %v8121_v1  ;;  %v3909_v45 = vpop.f32.mrb[115].mxu1  ;;  %v8124_v28 = vadd.f32 %v4357_v62, %v7917_v12  ;;  %v4359_v32 = vpop.f32.mrb[51].mxu0 }
 0x34a   : > { %v8126_v43 = vpop.f32.mrb[116].mxu1  ;;  %v4362_v3 = vpop.f32.mrb[52].mxu0 }
 0x34b   : > { %8440 = vst [vmem:[#allocation10_spill] sm:$0xff] %v8126_v43  ;;  %v3914_v51 = vpop.f32.mrb[117].mxu1  ;;  %v8129_v18 = vadd.f32 %v4362_v3, %v7922_v17  ;;  %v4364_v40 = vpop.f32.mrb[53].mxu0 }
 0x34c   : > { %v8131_v53 = vpop.f32.mrb[118].mxu1  ;;  %v4365_v9 = vpop.f32.mrb[54].mxu0 }
 0x34d   : > { %8441 = vst [vmem:[#allocation11_spill] sm:$0xff] %v8131_v53  ;;  %v3917_v56 = vpop.f32.mrb[119].mxu1  ;;  %v8134_v26 = vadd.f32 %v4365_v9, %v7925_v23  ;;  %v4367_v45 = vpop.f32.mrb[55].mxu0 }
 0x352   : > { %v8136_v1 = vpop.f32.mrb[120].mxu1  ;;  %v4370_v12 = vpop.f32.mrb[56].mxu0 }
 0x353   : > { %8442 = vst [vmem:[#allocation12_spill] sm:$0xff] %v8136_v1  ;;  %v3922_v62 = vpop.f32.mrb[121].mxu1  ;;  %v8139_v32 = vadd.f32 %v4370_v12, %v7930_v31  ;;  %v4372_v51 = vpop.f32.mrb[57].mxu0 }
 0x354   : > { %v8141_v43 = vpop.f32.mrb[122].mxu1  ;;  %v4373_v17 = vpop.f32.mrb[58].mxu0 }
 0x355   : > { %8443 = vst [vmem:[#allocation13_spill] sm:$0xff] %v8141_v43  ;;  %v3925_v3 = vpop.f32.mrb[123].mxu1  ;;  %v8144_v40 = vadd.f32 %v4373_v17, %v7933_v36  ;;  %v4375_v56 = vpop.f32.mrb[59].mxu0 }
 0x35a   : > { %v8146_v23 = vpop.f32.mrb[124].mxu1  ;;  %v4378_v9 = vpop.f32.mrb[60].mxu0 }
 0x35b   : > { %8444 = vst [vmem:[#allocation14_spill] sm:$0xff] %v8146_v23  ;;  %v3930_v45 = vpop.f32.mrb[125].mxu1  ;;  %v8149_v1 = vadd.f32 %v4378_v9, %v7938_v46  ;;  %v4380_v62 = vpop.f32.mrb[61].mxu0 }
 0x35c   : > { %v8151_v31 = vpop.f32.mrb[126].mxu1  ;;  %v4381_v12 = vpop.f32.mrb[62].mxu0 }
 0x35d   : > { %8445 = vst [vmem:[#allocation15_spill] sm:$0xff] %v8151_v31  ;;  %v3933_v51 = vpop.f32.mrb[127].mxu1  ;;  %v8154_v43 = vadd.f32 %v4381_v12, %v7941_v50  ;;  %v4383_v3 = vpop.f32.mrb[63].mxu0 }
 0x362   : > { %v5915_v53 = vpop.f32.mrb[128].mxu1  ;;  %v4386_v36 = vpop.f32.mrb[64].mxu0 }
 0x363   : > { %v4556_v17 = vadd.f32 %v8022_v6, %v5915_v53  ;;  %v4547_v56 = vpop.f32.mrb[129].mxu1  ;;  %v8159_v45 = vadd.f32 %v4386_v36, %v7946_v59  ;;  %v4388_v46 = vpop.f32.mrb[65].mxu0 }
 0x364   : > { %v4548_v9 = vadd.f32 %v8012_v33, %v4547_v56  ;;  %v5916_v62 = vpop.f32.mrb[130].mxu1  ;;  %v4389_v23 = vpop.f32.mrb[66].mxu0 }
 0x365   : > { %v4804_v31 = vmax.f32 %v4556_v17, 0.0  ;;  %v4559_v51 = vadd.f32 %v8028_v25, %v5916_v62  ;;  %v4550_v50 = vpop.f32.mrb[131].mxu1  ;;  %v8169_v6 = vadd.f32 %v4389_v23, %v7949_v2  ;;  %v4391_v33 = vpop.f32.mrb[67].mxu0 }
 0x366   : > { %v4802_v59 = vmax.f32 %v4548_v9, 0.0  ;;  %v4551_v53 = vadd.f32 %v8018_v57, %v4550_v50 }
 0x367   : > { %v5795_v12 = vpack.c.bf16 %v4804_v31, %v4804_v31  ;;  %v4805_v25 = vmax.f32 %v4559_v51, 0.0 }
 0x368   : > { %v5793_v3 = vpack.c.bf16 %v4802_v59, %v4802_v59  ;;  %v4803_v36 = vmax.f32 %v4551_v53, 0.0 }
 0x369   : > { %5125 = vst.msk [vmem:[%s8166_s18 + $0x8] sm:$0xf] %vm5122_vm0, %v5795_v12  ;;  %v5796_v17 = vpack.c.bf16 %v4805_v25, %v4805_v25 }
 0x36a   : > { %5123 = vst.msk [vmem:[%s8166_s18] sm:$0xf] %vm5122_vm0, %v5793_v3  ;;  %v5794_v56 = vpack.c.bf16 %v4803_v36, %v4803_v36  ;;  %v5919_v46 = vpop.f32.mrb[132].mxu1  ;;  %v4394_v9 = vpop.f32.mrb[68].mxu0 }
 0x36b   : > { %5126 = vst.msk [vmem:[%s8166_s18 + $0xc] sm:$0xf] %vm5122_vm0, %v5796_v17  ;;  %v4572_v2 = vadd.f32 %v8042_v42, %v5919_v46  ;;  %v4563_v23 = vpop.f32.mrb[133].mxu1  ;;  %v8182_v57 = vadd.f32 %v4394_v9, %v7954_v11  ;;  %v4396_v31 = vpop.f32.mrb[69].mxu0 }
 0x36c   : > { %5124 = vst.msk [vmem:[%s8166_s18 + $0x4] sm:$0xf] %vm5122_vm0, %v5794_v56  ;;  %v4564_v62 = vadd.f32 %v8032_v39, %v4563_v23  ;;  %v5920_v51 = vpop.f32.mrb[134].mxu1  ;;  %v4397_v59 = vpop.f32.mrb[70].mxu0 }
 0x36d   : > { %v4808_v50 = vmax.f32 %v4572_v2, 0.0  ;;  %v4575_v33 = vadd.f32 %v8048_v38, %v5920_v51  ;;  %v4566_v53 = vpop.f32.mrb[135].mxu1  ;;  %v8187_v42 = vadd.f32 %v4397_v59, %v7957_v13  ;;  %v4399_v25 = vpop.f32.mrb[71].mxu0 }
 0x36e   : > { %v4806_v12 = vmax.f32 %v4564_v62, 0.0  ;;  %v4567_v11 = vadd.f32 %v8038_v4, %v4566_v53 }
 0x36f   : > { %v5799_v3 = vpack.c.bf16 %v4808_v50, %v4808_v50  ;;  %v4809_v36 = vmax.f32 %v4575_v33, 0.0 }
 0x370   : > { %v5797_v17 = vpack.c.bf16 %v4806_v12, %v4806_v12  ;;  %v4807_v39 = vmax.f32 %v4567_v11, 0.0 }
 0x371   : > { %5129 = vst.msk [vmem:[%s8166_s18 + $0x18] sm:$0xf] %vm5122_vm0, %v5799_v3  ;;  %v5800_v56 = vpack.c.bf16 %v4809_v36, %v4809_v36 }
 0x372   : > { %5127 = vst.msk [vmem:[%s8166_s18 + $0x10] sm:$0xf] %vm5122_vm0, %v5797_v17  ;;  %v5798_v46 = vpack.c.bf16 %v4807_v39, %v4807_v39  ;;  %v5923_v38 = vpop.f32.mrb[136].mxu1  ;;  %v4402_v9 = vpop.f32.mrb[72].mxu0 }
 0x373   : > { %5130 = vst.msk [vmem:[%s8166_s18 + $0x1c] sm:$0xf] %vm5122_vm0, %v5800_v56  ;;  %v4588_v13 = vadd.f32 %v8059_v35, %v5923_v38  ;;  %v4579_v2 = vpop.f32.mrb[137].mxu1  ;;  %v8200_v4 = vadd.f32 %v4402_v9, %v7962_v24  ;;  %v4404_v23 = vpop.f32.mrb[73].mxu0 }
 0x374   : > { %5128 = vst.msk [vmem:[%s8166_s18 + $0x14] sm:$0xf] %vm5122_vm0, %v5798_v46  ;;  %v4580_v31 = vadd.f32 %v8052_v54, %v4579_v2  ;;  %v5924_v62 = vpop.f32.mrb[138].mxu1  ;;  %v4405_v50 = vpop.f32.mrb[74].mxu0 }
 0x375   : > { %v4812_v51 = vmax.f32 %v4588_v13, 0.0  ;;  %v4591_v59 = vadd.f32 %v8062_v22, %v5924_v62  ;;  %v4582_v33 = vpop.f32.mrb[139].mxu1  ;;  %v8205_v35 = vadd.f32 %v4405_v50, %v7965_v29  ;;  %v4407_v12 = vpop.f32.mrb[75].mxu0 }
 0x376   : > { %v4810_v53 = vmax.f32 %v4580_v31, 0.0  ;;  %v4583_v24 = vadd.f32 %v8056_v19, %v4582_v33 }
 0x377   : > { %v5803_v25 = vpack.c.bf16 %v4812_v51, %v4812_v51  ;;  %v4813_v11 = vmax.f32 %v4591_v59, 0.0 }
 0x378   : > { %v5801_v3 = vpack.c.bf16 %v4810_v53, %v4810_v53  ;;  %v4811_v54 = vmax.f32 %v4583_v24, 0.0 }
 0x379   : > { %5133 = vst.msk [vmem:[%s8166_s18 + $0x28] sm:$0xf] %vm5122_vm0, %v5803_v25  ;;  %v5804_v36 = vpack.c.bf16 %v4813_v11, %v4813_v11 }
 0x37a   : > { %5131 = vst.msk [vmem:[%s8166_s18 + $0x20] sm:$0xf] %vm5122_vm0, %v5801_v3  ;;  %v5802_v17 = vpack.c.bf16 %v4811_v54, %v4811_v54  ;;  %v5927_v22 = vpop.f32.mrb[140].mxu1  ;;  %v4410_v39 = vpop.f32.mrb[76].mxu0 }
 0x37b   : > { %5134 = vst.msk [vmem:[%s8166_s18 + $0x2c] sm:$0xf] %vm5122_vm0, %v5804_v36  ;;  %v4604_v29 = vadd.f32 %v8071_v60, %v5927_v22  ;;  %v4595_v56 = vpop.f32.mrb[141].mxu1  ;;  %v8218_v19 = vadd.f32 %v4410_v39, %v7970_v41  ;;  %v4412_v46 = vpop.f32.mrb[77].mxu0 }
 0x37c   : > { %5132 = vst.msk [vmem:[%s8166_s18 + $0x24] sm:$0xf] %vm5122_vm0, %v5802_v17  ;;  %v4596_v38 = vadd.f32 %v8065_v34, %v4595_v56  ;;  %v5928_v9 = vpop.f32.mrb[142].mxu1  ;;  %v4413_v2 = vpop.f32.mrb[78].mxu0 }
 0x37d   : > { %v4816_v13 = vmax.f32 %v4604_v29, 0.0  ;;  %v4607_v23 = vadd.f32 %v8074_v63, %v5928_v9  ;;  %v4598_v31 = vpop.f32.mrb[143].mxu1  ;;  %v8223_v60 = vadd.f32 %v4413_v2, %v7973_v49  ;;  %v4415_v51 = vpop.f32.mrb[79].mxu0 }
 0x37e   : > { %v4814_v62 = vmax.f32 %v4596_v38, 0.0  ;;  %v4599_v41 = vadd.f32 %v8068_v27, %v4598_v31 }
 0x37f   : > { %v5807_v50 = vpack.c.bf16 %v4816_v13, %v4816_v13  ;;  %v4817_v59 = vmax.f32 %v4607_v23, 0.0 }
 0x380   : > { %v5805_v33 = vpack.c.bf16 %v4814_v62, %v4814_v62  ;;  %v4815_v34 = vmax.f32 %v4599_v41, 0.0 }
 0x381   : > { %5137 = vst.msk [vmem:[%s8166_s18 + $0x38] sm:$0xf] %vm5122_vm0, %v5807_v50  ;;  %v5808_v53 = vpack.c.bf16 %v4817_v59, %v4817_v59 }
 0x382   : > { %5135 = vst.msk [vmem:[%s8166_s18 + $0x30] sm:$0xf] %vm5122_vm0, %v5805_v33  ;;  %v5806_v12 = vpack.c.bf16 %v4815_v34, %v4815_v34  ;;  %v5931_v63 = vpop.f32.mrb[144].mxu1  ;;  %v4418_v24 = vpop.f32.mrb[80].mxu0 }
 0x383   : > { %5138 = vst.msk [vmem:[%s8166_s18 + $0x3c] sm:$0xf] %vm5122_vm0, %v5808_v53  ;;  %v4620_v49 = vadd.f32 %v8089_v58, %v5931_v63  ;;  %v4611_v25 = vpop.f32.mrb[145].mxu1  ;;  %v8236_v27 = vadd.f32 %v4418_v24, %v7978_v61  ;;  %v4420_v11 = vpop.f32.mrb[81].mxu0 }
 0x384   : > { %5136 = vst.msk [vmem:[%s8166_s18 + $0x34] sm:$0xf] %vm5122_vm0, %v5806_v12  ;;  %v4612_v3 = vadd.f32 %v8079_v20, %v4611_v25  ;;  %v5932_v54 = vpop.f32.mrb[146].mxu1  ;;  %v4421_v17 = vpop.f32.mrb[82].mxu0 }
 0x385   : > { %v4820_v36 = vmax.f32 %v4620_v49, 0.0  ;;  %v4623_v22 = vadd.f32 %v8094_v16, %v5932_v54  ;;  %v4614_v39 = vpop.f32.mrb[147].mxu1  ;;  %v8241_v58 = vadd.f32 %v4421_v17, %v7981_v5  ;;  %v4423_v56 = vpop.f32.mrb[83].mxu0 }
 0x386   : > { %v4818_v29 = vmax.f32 %v4612_v3, 0.0  ;;  %v4615_v61 = vadd.f32 %v8084_v14, %v4614_v39 }
 0x387   : > { %v5811_v46 = vpack.c.bf16 %v4820_v36, %v4820_v36  ;;  %v4821_v38 = vmax.f32 %v4623_v22, 0.0 }
 0x388   : > { %v5809_v9 = vpack.c.bf16 %v4818_v29, %v4818_v29  ;;  %v4819_v20 = vmax.f32 %v4615_v61, 0.0 }
 0x389   : > { %5141 = vst.msk [vmem:[%s8166_s18 + $0x48] sm:$0xf] %vm5122_vm0, %v5811_v46  ;;  %v5812_v13 = vpack.c.bf16 %v4821_v38, %v4821_v38 }
 0x38a   : > { %5139 = vst.msk [vmem:[%s8166_s18 + $0x40] sm:$0xf] %vm5122_vm0, %v5809_v9  ;;  %v5810_v2 = vpack.c.bf16 %v4819_v20, %v4819_v20  ;;  %v5935_v16 = vpop.f32.mrb[148].mxu1  ;;  %v4426_v23 = vpop.f32.mrb[84].mxu0 }
 0x38b   : > { %5142 = vst.msk [vmem:[%s8166_s18 + $0x4c] sm:$0xf] %vm5122_vm0, %v5812_v13  ;;  %v4636_v5 = vadd.f32 %v8109_v10, %v5935_v16  ;;  %v4627_v31 = vpop.f32.mrb[149].mxu1  ;;  %v8254_v14 = vadd.f32 %v4426_v23, %v7986_v15  ;;  %v4428_v62 = vpop.f32.mrb[85].mxu0 }
 0x38c   : > { %5140 = vst.msk [vmem:[%s8166_s18 + $0x44] sm:$0xf] %vm5122_vm0, %v5810_v2  ;;  %v4628_v51 = vadd.f32 %v8099_v55, %v4627_v31  ;;  %v5936_v41 = vpop.f32.mrb[150].mxu1  ;;  %v4429_v59 = vpop.f32.mrb[86].mxu0 }
 0x38d   : > { %v4824_v50 = vmax.f32 %v4636_v5, 0.0  ;;  %v4639_v33 = vadd.f32 %v8114_v44, %v5936_v41  ;;  %v4630_v34 = vpop.f32.mrb[151].mxu1  ;;  %v8259_v10 = vadd.f32 %v4429_v59, %v7989_v21  ;;  %v4431_v12 = vpop.f32.mrb[87].mxu0 }
 0x38e   : > { %v4822_v53 = vmax.f32 %v4628_v51, 0.0  ;;  %v4631_v15 = vadd.f32 %v8104_v30, %v4630_v34 }
 0x38f   : > { %v5815_v63 = vpack.c.bf16 %v4824_v50, %v4824_v50  ;;  %v4825_v24 = vmax.f32 %v4639_v33, 0.0 }
 0x390   : > { %v5813_v49 = vpack.c.bf16 %v4822_v53, %v4822_v53  ;;  %v4823_v55 = vmax.f32 %v4631_v15, 0.0 }
 0x391   : > { %5145 = vst.msk [vmem:[%s8166_s18 + $0x58] sm:$0xf] %vm5122_vm0, %v5815_v63  ;;  %v5816_v25 = vpack.c.bf16 %v4825_v24, %v4825_v24 }
 0x392   : > { %5143 = vst.msk [vmem:[%s8166_s18 + $0x50] sm:$0xf] %vm5122_vm0, %v5813_v49  ;;  %v5814_v11 = vpack.c.bf16 %v4823_v55, %v4823_v55  ;;  %v5939_v44 = vpop.f32.mrb[152].mxu1  ;;  %v4434_v3 = vpop.f32.mrb[88].mxu0 }
 0x393   : > { %5146 = vst.msk [vmem:[%s8166_s18 + $0x5c] sm:$0xf] %vm5122_vm0, %v5816_v25  ;;  %v4652_v21 = vadd.f32 %v8129_v18, %v5939_v44  ;;  %v4643_v54 = vpop.f32.mrb[153].mxu1  ;;  %v8272_v30 = vadd.f32 %v4434_v3, %v7994_v37  ;;  %v4436_v36 = vpop.f32.mrb[89].mxu0 }
 0x394   : > { %5144 = vst.msk [vmem:[%s8166_s18 + $0x54] sm:$0xf] %vm5122_vm0, %v5814_v11  ;;  %v4644_v17 = vadd.f32 %v8119_v7, %v4643_v54  ;;  %v5940_v22 = vpop.f32.mrb[154].mxu1  ;;  %v4437_v29 = vpop.f32.mrb[90].mxu0 }
 0x395   : > { %v4828_v39 = vmax.f32 %v4652_v21, 0.0  ;;  %v4655_v56 = vadd.f32 %v8134_v26, %v5940_v22  ;;  %v4646_v61 = vpop.f32.mrb[155].mxu1  ;;  %v8277_v18 = vadd.f32 %v4437_v29, %v7997_v48  ;;  %v4439_v38 = vpop.f32.mrb[91].mxu0 }
 0x396   : > { %v4826_v46 = vmax.f32 %v4644_v17, 0.0  ;;  %v4647_v37 = vadd.f32 %v8124_v28, %v4646_v61 }
 0x397   : > { %v5819_v9 = vpack.c.bf16 %v4828_v39, %v4828_v39  ;;  %v4829_v20 = vmax.f32 %v4655_v56, 0.0 }
 0x398   : > { %v5817_v13 = vpack.c.bf16 %v4826_v46, %v4826_v46  ;;  %v4827_v7 = vmax.f32 %v4647_v37, 0.0 }
 0x399   : > { %5149 = vst.msk [vmem:[%s8166_s18 + $0x68] sm:$0xf] %vm5122_vm0, %v5819_v9  ;;  %v5820_v2 = vpack.c.bf16 %v4829_v20, %v4829_v20 }
 0x39a   : > { %5147 = vst.msk [vmem:[%s8166_s18 + $0x60] sm:$0xf] %vm5122_vm0, %v5817_v13  ;;  %v5818_v16 = vpack.c.bf16 %v4827_v7, %v4827_v7  ;;  %v5943_v26 = vpop.f32.mrb[156].mxu1  ;;  %v4442_v23 = vpop.f32.mrb[92].mxu0 }
 0x39b   : > { %5150 = vst.msk [vmem:[%s8166_s18 + $0x6c] sm:$0xf] %vm5122_vm0, %v5820_v2  ;;  %v4668_v48 = vadd.f32 %v8149_v1, %v5943_v26  ;;  %v4659_v5 = vpop.f32.mrb[157].mxu1  ;;  %v8290_v28 = vadd.f32 %v4442_v23, %v8002_v0  ;;  %v4444_v31 = vpop.f32.mrb[93].mxu0 }
 0x39c   : > { %5148 = vst.msk [vmem:[%s8166_s18 + $0x64] sm:$0xf] %vm5122_vm0, %v5818_v16  ;;  %v4660_v62 = vadd.f32 %v8139_v32, %v4659_v5  ;;  %v5944_v51 = vpop.f32.mrb[158].mxu1  ;;  %v4445_v50 = vpop.f32.mrb[94].mxu0 }
 0x39d   : > { %v4832_v41 = vmax.f32 %v4668_v48, 0.0  ;;  %v4671_v59 = vadd.f32 %v8154_v43, %v5944_v51  ;;  %v4662_v33 = vpop.f32.mrb[159].mxu1  ;;  %v8295_v1 = vadd.f32 %v4445_v50, %v8005_v8  ;;  %v4447_v53 = vpop.f32.mrb[95].mxu0 }
 0x39e   : > { %v4830_v34 = vmax.f32 %v4660_v62, 0.0  ;;  %v4663_v0 = vadd.f32 %v8144_v40, %v4662_v33 }
 0x39f   : > { %v5823_v12 = vpack.c.bf16 %v4832_v41, %v4832_v41  ;;  %v4833_v15 = vmax.f32 %v4671_v59, 0.0 }
 0x3a0   : > { %v5821_v63 = vpack.c.bf16 %v4830_v34, %v4830_v34  ;;  %v4831_v32 = vmax.f32 %v4663_v0, 0.0 }
 0x3a1   : > { %5153 = vst.msk [vmem:[%s8166_s18 + $0x78] sm:$0xf] %vm5122_vm0, %v5823_v12  ;;  %v5824_v24 = vpack.c.bf16 %v4833_v15, %v4833_v15 }
 0x3a2   : > { %5151 = vst.msk [vmem:[%s8166_s18 + $0x70] sm:$0xf] %vm5122_vm0, %v5821_v63  ;;  %v5822_v49 = vpack.c.bf16 %v4831_v32, %v4831_v32  ;;  %v5947_v43 = vpop.f32.mrb[160].mxu1  ;;  %v4450_v55 = vpop.f32.mrb[96].mxu0 }
 0x3a3   : > { %5154 = vst.msk [vmem:[%s8166_s18 + $0x7c] sm:$0xf] %vm5122_vm0, %v5824_v24  ;;  %v4684_v8 = vadd.f32 %v8182_v57, %v5947_v43  ;;  %v4675_v25 = vpop.f32.mrb[161].mxu1  ;;  %v8308_v40 = vadd.f32 %v4450_v55, %v8076_v47  ;;  %v4452_v11 = vpop.f32.mrb[97].mxu0 }
 0x3a4   : > { %5152 = vst.msk [vmem:[%s8166_s18 + $0x74] sm:$0xf] %vm5122_vm0, %v5822_v49  ;;  %v4676_v44 = vadd.f32 %v8159_v45, %v4675_v25  ;;  %v5948_v3 = vpop.f32.mrb[162].mxu1  ;;  %v4453_v54 = vpop.f32.mrb[98].mxu0 }
 0x3a5   : > { %v4836_v21 = vmax.f32 %v4684_v8, 0.0  ;;  %v4687_v36 = vadd.f32 %v8187_v42, %v5948_v3  ;;  %v4678_v17 = vpop.f32.mrb[163].mxu1  ;;  %v8313_v57 = vadd.f32 %v4453_v54, %v8081_v52  ;;  %v4455_v39 = vpop.f32.mrb[99].mxu0 }
 0x3a6   : > { %v4834_v22 = vmax.f32 %v4676_v44, 0.0  ;;  %v4679_v47 = vadd.f32 %v8169_v6, %v4678_v17  ;;  %v8446_v6 = vld [vmem:[#allocation2_spill] sm:$0xff] }
 0x3a7   : > { %v5827_v29 = vpack.c.bf16 %v4836_v21, %v4836_v21  ;;  %v4837_v56 = vmax.f32 %v4687_v36, 0.0 }
 0x3a8   : > { %v5825_v61 = vpack.c.bf16 %v4834_v22, %v4834_v22  ;;  %v4835_v45 = vmax.f32 %v4679_v47, 0.0 }
 0x3a9   : > { %5157 = vst.msk [vmem:[%s8166_s18 + $0x88] sm:$0xf] %vm5122_vm0, %v5827_v29  ;;  %v5828_v46 = vpack.c.bf16 %v4837_v56, %v4837_v56 }
 0x3aa   : > { %5155 = vst.msk [vmem:[%s8166_s18 + $0x80] sm:$0xf] %vm5122_vm0, %v5825_v61  ;;  %v5826_v38 = vpack.c.bf16 %v4835_v45, %v4835_v45  ;;  %v5951_v42 = vpop.f32.mrb[164].mxu1  ;;  %v4458_v37 = vpop.f32.mrb[100].mxu0 }
 0x3ab   : > { %5158 = vst.msk [vmem:[%s8166_s18 + $0x8c] sm:$0xf] %vm5122_vm0, %v5828_v46  ;;  %v4700_v52 = vadd.f32 %v8218_v19, %v5951_v42  ;;  %v4691_v9 = vpop.f32.mrb[165].mxu1  ;;  %v8326_v20 = vadd.f32 %v4458_v37, %v8446_v6  ;;  %v4460_v13 = vpop.f32.mrb[101].mxu0  ;;  %v8447_v19 = vld [vmem:[#allocation3_spill] sm:$0xff] }
 0x3ac   : > { %5156 = vst.msk [vmem:[%s8166_s18 + $0x84] sm:$0xf] %vm5122_vm0, %v5826_v38  ;;  %v4692_v7 = vadd.f32 %v8200_v4, %v4691_v9  ;;  %v5952_v2 = vpop.f32.mrb[166].mxu1  ;;  %v4461_v26 = vpop.f32.mrb[102].mxu0  ;;  %v8451_v6 = vld [vmem:[#allocation7_spill] sm:$0xff] }
 0x3ad   : > { %v4840_v16 = vmax.f32 %v4700_v52, 0.0  ;;  %v4703_v23 = vadd.f32 %v8223_v60, %v5952_v2  ;;  %v4694_v48 = vpop.f32.mrb[167].mxu1  ;;  %v8331_v31 = vadd.f32 %v4461_v26, %v8447_v19  ;;  %v4463_v62 = vpop.f32.mrb[103].mxu0 }
 0x3ae   : > { %v4838_v5 = vmax.f32 %v4692_v7, 0.0  ;;  %v4695_v51 = vadd.f32 %v8205_v35, %v4694_v48  ;;  %v8448_v35 = vld [vmem:[#allocation4_spill] sm:$0xff] }
 0x3af   : > { %v5831_v41 = vpack.c.bf16 %v4840_v16, %v4840_v16  ;;  %v4841_v50 = vmax.f32 %v4703_v23, 0.0 }
 0x3b0   : > { %v5829_v59 = vpack.c.bf16 %v4838_v5, %v4838_v5  ;;  %v4839_v4 = vmax.f32 %v4695_v51, 0.0 }
 0x3b1   : > { %5161 = vst.msk [vmem:[%s8166_s18 + $0x98] sm:$0xf] %vm5122_vm0, %v5831_v41  ;;  %v5832_v33 = vpack.c.bf16 %v4841_v50, %v4841_v50 }
 0x3b2   : > { %5159 = vst.msk [vmem:[%s8166_s18 + $0x90] sm:$0xf] %vm5122_vm0, %v5829_v59  ;;  %v5830_v34 = vpack.c.bf16 %v4839_v4, %v4839_v4  ;;  %v5955_v60 = vpop.f32.mrb[168].mxu1  ;;  %v4466_v53 = vpop.f32.mrb[104].mxu0 }
 0x3b3   : > { %5162 = vst.msk [vmem:[%s8166_s18 + $0x9c] sm:$0xf] %vm5122_vm0, %v5832_v33  ;;  %v4716_v0 = vadd.f32 %v8254_v14, %v5955_v60  ;;  %v4707_v12 = vpop.f32.mrb[169].mxu1  ;;  %v8344_v15 = vadd.f32 %v4466_v53, %v8448_v35  ;;  %v4468_v63 = vpop.f32.mrb[105].mxu0  ;;  %v8449_v14 = vld [vmem:[#allocation5_spill] sm:$0xff] }
 0x3b4   : > { %5160 = vst.msk [vmem:[%s8166_s18 + $0x94] sm:$0xf] %vm5122_vm0, %v5830_v34  ;;  %v4708_v32 = vadd.f32 %v8236_v27, %v4707_v12  ;;  %v5956_v24 = vpop.f32.mrb[170].mxu1  ;;  %v4469_v43 = vpop.f32.mrb[106].mxu0 }
 0x3b5   : > { %v4844_v49 = vmax.f32 %v4716_v0, 0.0  ;;  %v4719_v55 = vadd.f32 %v8259_v10, %v5956_v24  ;;  %v4710_v8 = vpop.f32.mrb[171].mxu1  ;;  %v8349_v11 = vadd.f32 %v4469_v43, %v8449_v14  ;;  %v4471_v44 = vpop.f32.mrb[107].mxu0  ;;  %v8453_v0 = vld [vmem:[#allocation9_spill] sm:$0xff]  ;;  %v8454_v14 = vld [vmem:[#allocation10_spill] sm:$0xff] }
 0x3b6   : > { %v4842_v25 = vmax.f32 %v4708_v32, 0.0  ;;  %v4711_v3 = vadd.f32 %v8241_v58, %v4710_v8  ;;  %v8450_v58 = vld [vmem:[#allocation6_spill] sm:$0xff] }
 0x3b7   : > { %v5835_v21 = vpack.c.bf16 %v4844_v49, %v4844_v49  ;;  %v4845_v54 = vmax.f32 %v4719_v55, 0.0 }
 0x3b8   : > { %v5833_v36 = vpack.c.bf16 %v4842_v25, %v4842_v25  ;;  %v4843_v27 = vmax.f32 %v4711_v3, 0.0 }
 0x3b9   : > { %5165 = vst.msk [vmem:[%s8166_s18 + $0xa8] sm:$0xf] %vm5122_vm0, %v5835_v21  ;;  %v5836_v17 = vpack.c.bf16 %v4845_v54, %v4845_v54 }
 0x3ba   : > { %5163 = vst.msk [vmem:[%s8166_s18 + $0xa0] sm:$0xf] %vm5122_vm0, %v5833_v36  ;;  %v5834_v22 = vpack.c.bf16 %v4843_v27, %v4843_v27  ;;  %v5959_v10 = vpop.f32.mrb[172].mxu1  ;;  %v4474_v39 = vpop.f32.mrb[108].mxu0 }
 0x3bb   : > { %5166 = vst.msk [vmem:[%s8166_s18 + $0xac] sm:$0xf] %vm5122_vm0, %v5836_v17  ;;  %v4732_v47 = vadd.f32 %v8290_v28, %v5959_v10  ;;  %v4723_v29 = vpop.f32.mrb[173].mxu1  ;;  %v6063_v56 = vadd.f32 %v4474_v39, %v8450_v58  ;;  %v4476_v61 = vpop.f32.mrb[109].mxu0  ;;  %v8455_v10 = vld [vmem:[#allocation11_spill] sm:$0xff] }
 0x3bc   : > { %5164 = vst.msk [vmem:[%s8166_s18 + $0xa4] sm:$0xf] %vm5122_vm0, %v5834_v22  ;;  %v4724_v45 = vadd.f32 %v8272_v30, %v4723_v29  ;;  %v5960_v46 = vpop.f32.mrb[174].mxu1  ;;  %v4477_v42 = vpop.f32.mrb[110].mxu0 }
 0x3bd   : > { %v4848_v38 = vmax.f32 %v4732_v47, 0.0  ;;  %v4735_v37 = vadd.f32 %v8295_v1, %v5960_v46  ;;  %v4726_v52 = vpop.f32.mrb[175].mxu1  ;;  %v6064_v28 = vadd.f32 %v4477_v42, %v8451_v6  ;;  %v4479_v13 = vpop.f32.mrb[111].mxu0 }
 0x3be   : > { %v4846_v9 = vmax.f32 %v4724_v45, 0.0  ;;  %v4727_v7 = vadd.f32 %v8277_v18, %v4726_v52  ;;  %v8452_v18 = vld [vmem:[#allocation8_spill] sm:$0xff] }
 0x3bf   : > { %v5839_v2 = vpack.c.bf16 %v4848_v38, %v4848_v38  ;;  %v4849_v16 = vmax.f32 %v4735_v37, 0.0 }
 0x3c0   : > { %v5837_v26 = vpack.c.bf16 %v4846_v9, %v4846_v9  ;;  %v4847_v23 = vmax.f32 %v4727_v7, 0.0  ;;  %v8456_v9 = vld [vmem:[#allocation12_spill] sm:$0xff] }
 0x3c1   : > { %5169 = vst.msk [vmem:[%s8166_s18 + $0xb8] sm:$0xf] %vm5122_vm0, %v5839_v2  ;;  %v5840_v30 = vpack.c.bf16 %v4849_v16, %v4849_v16 }
 0x3c2   : > { %5167 = vst.msk [vmem:[%s8166_s18 + $0xb0] sm:$0xf] %vm5122_vm0, %v5837_v26  ;;  %v5838_v48 = vpack.c.bf16 %v4847_v23, %v4847_v23  ;;  %v5963_v5 = vpop.f32.mrb[176].mxu1  ;;  %v4482_v1 = vpop.f32.mrb[112].mxu0 }
 0x3c3   : > { %5170 = vst.msk [vmem:[%s8166_s18 + $0xbc] sm:$0xf] %vm5122_vm0, %v5840_v30  ;;  %v4748_v19 = vadd.f32 %v8326_v20, %v5963_v5  ;;  %v4739_v62 = vpop.f32.mrb[177].mxu1  ;;  %v6065_v51 = vadd.f32 %v4482_v1, %v8452_v18  ;;  %v4484_v41 = vpop.f32.mrb[113].mxu0  ;;  %v8457_v30 = vld [vmem:[#allocation13_spill] sm:$0xff] }
 0x3c4   : > { %5168 = vst.msk [vmem:[%s8166_s18 + $0xb4] sm:$0xf] %vm5122_vm0, %v5838_v48  ;;  %v4740_v50 = vadd.f32 %v8308_v40, %v4739_v62  ;;  %v5964_v59 = vpop.f32.mrb[178].mxu1  ;;  %v4485_v33 = vpop.f32.mrb[114].mxu0 }
 0x3c5   : > { %v4852_v4 = vmax.f32 %v4748_v19, 0.0  ;;  %v4751_v34 = vadd.f32 %v8331_v31, %v5964_v59  ;;  %v4742_v60 = vpop.f32.mrb[179].mxu1  ;;  %v6066_v20 = vadd.f32 %v4485_v33, %v8453_v0  ;;  %v4487_v12 = vpop.f32.mrb[115].mxu0 }
 0x3c6   : > { %v4850_v53 = vmax.f32 %v4740_v50, 0.0  ;;  %v4743_v35 = vadd.f32 %v8313_v57, %v4742_v60 }
 0x3c7   : > { %v5843_v63 = vpack.c.bf16 %v4852_v4, %v4852_v4  ;;  %v4853_v32 = vmax.f32 %v4751_v34, 0.0  ;;  %v8458_v34 = vld [vmem:[#allocation14_spill] sm:$0xff] }
 0x3c8   : > { %v5841_v24 = vpack.c.bf16 %v4850_v53, %v4850_v53  ;;  %v4851_v49 = vmax.f32 %v4743_v35, 0.0 }
 0x3c9   : > { %5173 = vst.msk [vmem:[%s8166_s18 + $0xc8] sm:$0xf] %vm5122_vm0, %v5843_v63  ;;  %v5844_v40 = vpack.c.bf16 %v4853_v32, %v4853_v32 }
 0x3ca   : > { %5171 = vst.msk [vmem:[%s8166_s18 + $0xc0] sm:$0xf] %vm5122_vm0, %v5841_v24  ;;  %v5842_v43 = vpack.c.bf16 %v4851_v49, %v4851_v49  ;;  %v5967_v55 = vpop.f32.mrb[180].mxu1  ;;  %v4490_v31 = vpop.f32.mrb[116].mxu0  ;;  %v8459_v24 = vld [vmem:[#allocation15_spill] sm:$0xff] }
 0x3cb   : > { %5174 = vst.msk [vmem:[%s8166_s18 + $0xcc] sm:$0xf] %vm5122_vm0, %v5844_v40  ;;  %v4764_v8 = vadd.f32 %v6063_v56, %v5967_v55  ;;  %v4755_v25 = vpop.f32.mrb[181].mxu1  ;;  %v6067_v57 = vadd.f32 %v4490_v31, %v8454_v14  ;;  %v4492_v44 = vpop.f32.mrb[117].mxu0 }
 0x3cc   : > { %5172 = vst.msk [vmem:[%s8166_s18 + $0xc4] sm:$0xf] %vm5122_vm0, %v5842_v43  ;;  %v4756_v3 = vadd.f32 %v8344_v15, %v4755_v25  ;;  %v5968_v21 = vpop.f32.mrb[182].mxu1  ;;  %v4493_v36 = vpop.f32.mrb[118].mxu0 }
 0x3cd   : > { %v4856_v54 = vmax.f32 %v4764_v8, 0.0  ;;  %v4767_v27 = vadd.f32 %v6064_v28, %v5968_v21  ;;  %v4758_v17 = vpop.f32.mrb[183].mxu1  ;;  %v6068_v39 = vadd.f32 %v4493_v36, %v8455_v10  ;;  %v4495_v47 = vpop.f32.mrb[119].mxu0 }
 0x3ce   : > { %v4854_v22 = vmax.f32 %v4756_v3, 0.0  ;;  %v4759_v29 = vadd.f32 %v8349_v11, %v4758_v17 }
 0x3cf   : > { %v5847_v58 = vpack.c.bf16 %v4856_v54, %v4856_v54  ;;  %v4857_v56 = vmax.f32 %v4767_v27, 0.0 }
 0x3d0   : > { %v5845_v61 = vpack.c.bf16 %v4854_v22, %v4854_v22  ;;  %v4855_v45 = vmax.f32 %v4759_v29, 0.0 }
 0x3d1   : > { %5177 = vst.msk [vmem:[%s8166_s18 + $0xd8] sm:$0xf] %vm5122_vm0, %v5847_v58  ;;  %v5848_v15 = vpack.c.bf16 %v4857_v56, %v4857_v56 }
 0x3d2   : > { %5175 = vst.msk [vmem:[%s8166_s18 + $0xd0] sm:$0xf] %vm5122_vm0, %v5845_v61  ;;  %v5846_v46 = vpack.c.bf16 %v4855_v45, %v4855_v45  ;;  %v5971_v38 = vpop.f32.mrb[184].mxu1  ;;  %v4498_v42 = vpop.f32.mrb[120].mxu0 }
 0x3d3   : > { %5178 = vst.msk [vmem:[%s8166_s18 + $0xdc] sm:$0xf] %vm5122_vm0, %v5848_v15  ;;  %v4780_v37 = vadd.f32 %v6067_v57, %v5971_v38  ;;  %v4771_v52 = vpop.f32.mrb[185].mxu1  ;;  %v6069_v11 = vadd.f32 %v4498_v42, %v8456_v9  ;;  %v4500_v6 = vpop.f32.mrb[121].mxu0 }
 0x3d4   : > { %5176 = vst.msk [vmem:[%s8166_s18 + $0xd4] sm:$0xf] %vm5122_vm0, %v5846_v46  ;;  %v4772_v28 = vadd.f32 %v6065_v51, %v4771_v52  ;;  %v5972_v13 = vpop.f32.mrb[186].mxu1  ;;  %v4501_v2 = vpop.f32.mrb[122].mxu0 }
 0x3d5   : > { %v4860_v7 = vmax.f32 %v4780_v37, 0.0  ;;  %v4783_v16 = vadd.f32 %v6068_v39, %v5972_v13  ;;  %v4774_v26 = vpop.f32.mrb[187].mxu1  ;;  %v6070_v48 = vadd.f32 %v4501_v2, %v8457_v30  ;;  %v4503_v5 = vpop.f32.mrb[123].mxu0 }
 0x3d6   : > { %v4858_v23 = vmax.f32 %v4772_v28, 0.0  ;;  %v4775_v1 = vadd.f32 %v6066_v20, %v4774_v26 }
 0x3d7   : > { %v5851_v19 = vpack.c.bf16 %v4860_v7, %v4860_v7  ;;  %v4861_v62 = vmax.f32 %v4783_v16, 0.0 }
 0x3d8   : > { %v5849_v18 = vpack.c.bf16 %v4858_v23, %v4858_v23  ;;  %v4859_v41 = vmax.f32 %v4775_v1, 0.0 }
 0x3d9   : > { %5181 = vst.msk [vmem:[%s8166_s18 + $0xe8] sm:$0xf] %vm5122_vm0, %v5851_v19  ;;  %v5852_v51 = vpack.c.bf16 %v4861_v62, %v4861_v62 }
 0x3da   : > { %5179 = vst.msk [vmem:[%s8166_s18 + $0xe0] sm:$0xf] %vm5122_vm0, %v5849_v18  ;;  %v5850_v50 = vpack.c.bf16 %v4859_v41, %v4859_v41  ;;  %v5975_v59 = vpop.f32.mrb[188].mxu1  ;;  %v4506_v4 = vpop.f32.mrb[124].mxu0 }
 0x3db   : > { %5182 = vst.msk [vmem:[%s8166_s18 + $0xec] sm:$0xf] %vm5122_vm0, %v5852_v51  ;;  %v4787_v33 = vpop.f32.mrb[189].mxu1  ;;  %v6071_v60 = vadd.f32 %v4506_v4, %v8458_v34  ;;  %v4508_v53 = vpop.f32.mrb[125].mxu0 }
 0x3dc   : > { %5180 = vst.msk [vmem:[%s8166_s18 + $0xe4] sm:$0xf] %vm5122_vm0, %v5850_v50  ;;  %v4788_v0 = vadd.f32 %v6069_v11, %v4787_v33  ;;  %v5976_v20 = vpop.f32.mrb[190].mxu1  ;;  %v4509_v12 = vpop.f32.mrb[126].mxu0 }
 0x3dd   : > { %v4790_v35 = vpop.f32.mrb[191].mxu1  ;;  %v4796_v63 = vadd.f32 %v6071_v60, %v5975_v59  ;;  %v6072_v49 = vadd.f32 %v4509_v12, %v8459_v24  ;;  %v4511_v40 = vpop.f32.mrb[127].mxu0 }
 0x3de   : > { %v4862_v32 = vmax.f32 %v4788_v0, 0.0  ;;  %v4791_v43 = vadd.f32 %v6070_v48, %v4790_v35 }
 0x3df   : > { %v4864_v55 = vmax.f32 %v4796_v63, 0.0  ;;  %v4799_v8 = vadd.f32 %v6072_v49, %v5976_v20 }
 0x3e0   : > { %v5853_v31 = vpack.c.bf16 %v4862_v32, %v4862_v32  ;;  %v4863_v25 = vmax.f32 %v4791_v43, 0.0 }
 0x3e1   : > { %v5855_v14 = vpack.c.bf16 %v4864_v55, %v4864_v55  ;;  %v4865_v57 = vmax.f32 %v4799_v8, 0.0 }
 0x3e2   : > { %5183 = vst.msk [vmem:[%s8166_s18 + $0xf0] sm:$0xf] %vm5122_vm0, %v5853_v31  ;;  %v5854_v44 = vpack.c.bf16 %v4863_v25, %v4863_v25 }
 0x3e3   : > { %5185 = vst.msk [vmem:[%s8166_s18 + $0xf8] sm:$0xf] %vm5122_vm0, %v5855_v14  ;;  %v5856_v3 = vpack.c.bf16 %v4865_v57, %v4865_v57 }
 0x3e4   : > { %5184 = vst.msk [vmem:[%s8166_s18 + $0xf4] sm:$0xf] %vm5122_vm0, %v5854_v44 }
 0x3e5   : > { %5186 = vst.msk [vmem:[%s8166_s18 + $0xfc] sm:$0xf] %vm5122_vm0, %v5856_v3 }
 0x3e6 PF: > { %s12_s11 = sadd.s32 1, %s7121_s11   ;;  %s8460_s9 = smov %s7117_s10 }
 0x3e7   : > { %p9_p5 = scmp.ge.s32.totalorder %s12_s11, 4   ;;  %s8461_s10 = smov %s8463_s12 }
 0x3e9   :  { %11 = sbr.rel (!%p9_p5) target bundleno = 2 (0x2), region = 61 }

// kernel: cnn_forward.43
= control target key start
LH: loop header
LB: loop body
LE: loop exit
PB: predicated region body
PF: predicated region fallthrough
CT: control target
= control target key end

     0   :  { %vm2339_vm0 = vcmask 519168   ;;  %s4237_s1 = inlined_call_operand.vmem [shape: bf16[1792,64], index: 1, kind: input, shape index: {}]   ;;  %s4238_s0 = inlined_call_operand.vmem [shape: bf16[128,1792], index: 0, kind: input, shape index: {}]   ;;  %s4239_s2 = inlined_call_operand.vmem [shape: bf16[128,64], index: 2, kind: output, shape index: {}]  }
   0x1   :  { %v3080_v0 = vld [vmem:[%s4237_s1 + $0x40] sm:$0xff]   ;;  %v3082_v2 = vld [vmem:[%s4237_s1 + $0x48] sm:$0xff]   ;;  %v3084_v4 = vld [vmem:[%s4237_s1 + $0x50] sm:$0xff]  }
   0x2   :  { %v3081_v1 = vld [vmem:[%s4237_s1] sm:$0xff]   ;;  %2616 = vmatprep.subr.bf16.mxu0 %v3080_v0  ;;  %3064 = vmatprep.subr.bf16.mxu1 %v3080_v0  ;;  %v3083_v3 = vld [vmem:[%s4237_s1 + $0x8] sm:$0xff]   ;;  %v3085_v5 = vld [vmem:[%s4237_s1 + $0x10] sm:$0xff]  }
   0x3   :  { %2617 = vmatpush3.bf16.msra.mxu0 %v3081_v1  ;;  %3072 = vmatpush3.bf16.msra.mxu1 %v3081_v1  ;;  %v3086_v6 = vld [vmem:[%s4237_s1 + $0x58] sm:$0xff]   ;;  %v3088_v8 = vld [vmem:[%s4237_s1 + $0x60] sm:$0xff]   ;;  %v3090_v10 = vld [vmem:[%s4237_s1 + $0x68] sm:$0xff]  }
   0x4   :  { %2618 = vmatprep.subr.bf16.mxu0 %v3082_v2  ;;  %3065 = vmatprep.subr.bf16.mxu1 %v3082_v2  ;;  %v3087_v7 = vld [vmem:[%s4237_s1 + $0x18] sm:$0xff]   ;;  %v3089_v9 = vld [vmem:[%s4237_s1 + $0x20] sm:$0xff]   ;;  %v3091_v13 = vld [vmem:[%s4237_s1 + $0x28] sm:$0xff]  }
   0x5   :  { %v3098_v11 = vld [vmem:[%s4238_s0 + $0x4] ss:$56 sps:$4 sm:$0xff]   ;;  %v3092_v14 = vld [vmem:[%s4237_s1 + $0x70] sm:$0xff]   ;;  %v3096_v18 = vld [vmem:[%s4238_s0] ss:$56 sps:$4 sm:$0xff]  }
   0x6   :  { %v3101_v12 = vld [vmem:[%s4238_s0 + $0x1c4] ss:$56 sps:$4 sm:$0xff]   ;;  %1612 = vmatprep.mubr.bf16.mxu0 %v3098_v11  ;;  %v3093_v15 = vld [vmem:[%s4237_s1 + $0x30] sm:$0xff]   ;;  %v3099_v19 = vld [vmem:[%s4238_s0 + $0x1c0] ss:$56 sps:$4 sm:$0xff]  }
   0x7   :  { %2619 = vmatpush3.bf16.msra.mxu0 %v3083_v3  ;;  %3073 = vmatpush3.bf16.msra.mxu1 %v3083_v3  ;;  %v3094_v16 = vld [vmem:[%s4237_s1 + $0x78] sm:$0xff]   ;;  %v3102_v20 = vld [vmem:[%s4237_s1 + $0xc0] sm:$0xff]   ;;  %v3106_v24 = vld [vmem:[%s4237_s1 + $0xc8] sm:$0xff]  }
   0x8   :  { %2620 = vmatprep.subr.bf16.mxu0 %v3084_v4  ;;  %3066 = vmatprep.subr.bf16.mxu1 %v3084_v4  ;;  %v3095_v17 = vld [vmem:[%s4237_s1 + $0x38] sm:$0xff]   ;;  %v3103_v21 = vld [vmem:[%s4237_s1 + $0x140] sm:$0xff]   ;;  %v3107_v25 = vld [vmem:[%s4237_s1 + $0x148] sm:$0xff]  }
   0x9   :  { %1644 = vmatprep.mubr.bf16.mxu1 %v3101_v12  ;;  %v3104_v22 = vld [vmem:[%s4237_s1 + $0x80] sm:$0xff]   ;;  %v3110_v26 = vld [vmem:[%s4238_s0 + $0x74] ss:$56 sps:$4 sm:$0xff]   ;;  %v3114_v31 = vld [vmem:[%s4238_s0 + $0x70] ss:$56 sps:$4 sm:$0xff]  }
   0xa   :  { %v3105_v23 = vld [vmem:[%s4237_s1 + $0x100] sm:$0xff]   ;;  %v3108_v27 = vld [vmem:[%s4237_s1 + $0x88] sm:$0xff]   ;;  %v3116_v30 = vld [vmem:[%s4237_s1 + $0xd0] sm:$0xff]  }
   0xb   :  { %2621 = vmatpush3.bf16.msra.mxu0 %v3085_v5  ;;  %3074 = vmatpush3.bf16.msra.mxu1 %v3085_v5  ;;  %v3112_v28 = vld [vmem:[%s4238_s0 + $0x234] ss:$56 sps:$4 sm:$0xff]   ;;  %v3115_v33 = vld [vmem:[%s4238_s0 + $0x230] ss:$56 sps:$4 sm:$0xff]   ;;  %v3120_v36 = vld [vmem:[%s4237_s1 + $0xd8] sm:$0xff]  }
   0xc   :  { %2622 = vmatprep.subr.bf16.mxu0 %v3086_v6  ;;  %3067 = vmatprep.subr.bf16.mxu1 %v3086_v6  ;;  %v3109_v29 = vld [vmem:[%s4237_s1 + $0x108] sm:$0xff]   ;;  %v3117_v32 = vld [vmem:[%s4237_s1 + $0x150] sm:$0xff]   ;;  %v3121_v37 = vld [vmem:[%s4237_s1 + $0x158] sm:$0xff]  }
   0xd   :  { %v3118_v34 = vld [vmem:[%s4237_s1 + $0x90] sm:$0xff]   ;;  %v3124_v38 = vld [vmem:[%s4238_s0 + $0xe4] ss:$56 sps:$4 sm:$0xff]   ;;  %v3128_v43 = vld [vmem:[%s4238_s0 + $0xe0] ss:$56 sps:$4 sm:$0xff]  }
   0xe   :  { %v3119_v35 = vld [vmem:[%s4237_s1 + $0x110] sm:$0xff]   ;;  %v3122_v39 = vld [vmem:[%s4237_s1 + $0x98] sm:$0xff]   ;;  %v3130_v42 = vld [vmem:[%s4237_s1 + $0xe0] sm:$0xff]  }
   0xf   :  { %2623 = vmatpush3.bf16.msra.mxu0 %v3087_v7  ;;  %3075 = vmatpush3.bf16.msra.mxu1 %v3087_v7  ;;  %v3126_v40 = vld [vmem:[%s4238_s0 + $0x2a4] ss:$56 sps:$4 sm:$0xff]   ;;  %v3129_v44 = vld [vmem:[%s4238_s0 + $0x2a0] ss:$56 sps:$4 sm:$0xff]   ;;  %v3134_v48 = vld [vmem:[%s4237_s1 + $0xe8] sm:$0xff]  }
  0x10   :  { %2624 = vmatprep.subr.bf16.mxu0 %v3088_v8  ;;  %3068 = vmatprep.subr.bf16.mxu1 %v3088_v8  ;;  %v3123_v41 = vld [vmem:[%s4237_s1 + $0x118] sm:$0xff]   ;;  %v3131_v45 = vld [vmem:[%s4237_s1 + $0x160] sm:$0xff]   ;;  %v3135_v49 = vld [vmem:[%s4237_s1 + $0x168] sm:$0xff]  }
  0x11   :  { %v3132_v46 = vld [vmem:[%s4237_s1 + $0xa0] sm:$0xff]   ;;  %v3138_v50 = vld [vmem:[%s4238_s0 + $0x154] ss:$56 sps:$4 sm:$0xff]   ;;  %v3142_v55 = vld [vmem:[%s4238_s0 + $0x150] ss:$56 sps:$4 sm:$0xff]  }
  0x12   :  { %v3133_v47 = vld [vmem:[%s4237_s1 + $0x120] sm:$0xff]   ;;  %v3140_v51 = vld [vmem:[%s4238_s0 + $0x314] ss:$56 sps:$4 sm:$0xff]   ;;  %v3143_v56 = vld [vmem:[%s4238_s0 + $0x310] ss:$56 sps:$4 sm:$0xff]  }
  0x13   :  { %2625 = vmatpush3.bf16.msra.mxu0 %v3089_v9  ;;  %3076 = vmatpush3.bf16.msra.mxu1 %v3089_v9  ;;  %v3136_v52 = vld [vmem:[%s4237_s1 + $0xa8] sm:$0xff]   ;;  %v3144_v54 = vld [vmem:[%s4237_s1 + $0xf0] sm:$0xff]   ;;  %v3148_v60 = vld [vmem:[%s4237_s1 + $0xf8] sm:$0xff]  }
  0x14   :  { %2626 = vmatprep.subr.bf16.mxu0 %v3090_v10  ;;  %3069 = vmatprep.subr.bf16.mxu1 %v3090_v10  ;;  %v3137_v53 = vld [vmem:[%s4237_s1 + $0x128] sm:$0xff]   ;;  %v3145_v57 = vld [vmem:[%s4237_s1 + $0x170] sm:$0xff]   ;;  %v3149_v61 = vld [vmem:[%s4237_s1 + $0x178] sm:$0xff]  }
  0x15   :  { %v3146_v58 = vld [vmem:[%s4237_s1 + $0xb0] sm:$0xff]   ;;  %v3150_v62 = vld [vmem:[%s4237_s1 + $0xb8] sm:$0xff]   ;;  %v3154_v0 = vld [vmem:[%s4238_s0 + $0xc] ss:$56 sps:$4 sm:$0xff]  }
  0x16   :  { %v3147_v59 = vld [vmem:[%s4237_s1 + $0x130] sm:$0xff]   ;;  %v3151_v63 = vld [vmem:[%s4237_s1 + $0x138] sm:$0xff]   ;;  %v3152_v1 = vld [vmem:[%s4238_s0 + $0x8] ss:$56 sps:$4 sm:$0xff]  }
  0x17   :  { %2627 = vmatpush3.bf16.msra.mxu0 %v3091_v13  ;;  %3077 = vmatpush3.bf16.msra.mxu1 %v3091_v13  ;;  %v3155_v2 = vld [vmem:[%s4238_s0 + $0x10] ss:$56 sps:$4 sm:$0xff]   ;;  %v3157_v3 = vld [vmem:[%s4238_s0 + $0x14] ss:$56 sps:$4 sm:$0xff]   ;;  %v3158_v4 = vld [vmem:[%s4237_s1 + $0x1c0] sm:$0xff]  }
  0x18   :  { %2628 = vmatprep.subr.bf16.mxu0 %v3092_v14  ;;  %3070 = vmatprep.subr.bf16.mxu1 %v3092_v14  ;;  %v3159_v5 = vld [vmem:[%s4237_s1 + $0x180] sm:$0xff]   ;;  %v3162_v8 = vld [vmem:[%s4238_s0 + $0x7c] ss:$56 sps:$4 sm:$0xff]   ;;  %v3166_v10 = vld [vmem:[%s4238_s0 + $0x78] ss:$56 sps:$4 sm:$0xff]  }
  0x19   :  { %v3160_v6 = vld [vmem:[%s4237_s1 + $0x240] sm:$0xff]   ;;  %v3168_v12 = vld [vmem:[%s4237_s1 + $0x1c8] sm:$0xff]  }
  0x1a   :  { %v3161_v7 = vld [vmem:[%s4237_s1 + $0x200] sm:$0xff]   ;;  %v3169_v13 = vld [vmem:[%s4237_s1 + $0x188] sm:$0xff]  }
  0x1b   :  { %2629 = vmatpush3.bf16.msra.mxu0 %v3093_v15  ;;  %3078 = vmatpush3.bf16.msra.mxu1 %v3093_v15  ;;  %v3164_v9 = vld [vmem:[%s4238_s0 + $0x84] ss:$56 sps:$4 sm:$0xff]   ;;  %v3167_v11 = vld [vmem:[%s4238_s0 + $0x80] ss:$56 sps:$4 sm:$0xff]   ;;  %v3170_v14 = vld [vmem:[%s4237_s1 + $0x248] sm:$0xff]  }
  0x1c   :  { %2630 = vmatprep.subr.bf16.mxu0 %v3094_v16  ;;  %3071 = vmatprep.subr.bf16.mxu1 %v3094_v16  ;;  %v3171_v15 = vld [vmem:[%s4237_s1 + $0x208] sm:$0xff]  }
  0x1d   :  { %v3172_v16 = vld [vmem:[%s4238_s0 + $0xec] ss:$56 sps:$4 sm:$0xff]  }
  0x1f   :  { %2631 = vmatpush3.bf16.msra.mxu0 %v3095_v17  ;;  %3079 = vmatpush3.bf16.msra.mxu1 %v3095_v17  ;;  %v3174_v17 = vld [vmem:[%s4238_s0 + $0xf4] ss:$56 sps:$4 sm:$0xff]  }
  0x20   :  { %2680 = vmatprep.subr.bf16.mxu1 %v3102_v20  ;;  %2744 = vmatprep.subr.bf16.mxu0 %v3103_v21  ;;  %v3177_v20 = vld [vmem:[%s4238_s0 + $0xf0] ss:$56 sps:$4 sm:$0xff]  }
  0x21   :  { %v3179_v21 = vld [vmem:[%s4237_s1 + $0x190] sm:$0xff]  }
  0x22   :  { %1613 = vmatmul.mubr.bf16.vlgmr.msra.gmra.mrb[0].mxu0 %v3096_v18  ;;  %1645 = vmatmul.mubr.bf16.vlgmr.msra.gmra.mrb[0].mxu1 %v3099_v19  ;;  %v3178_v18 = vld [vmem:[%s4237_s1 + $0x1d0] sm:$0xff]   ;;  %v3176_v19 = vld [vmem:[%s4238_s0 + $0xe8] ss:$56 sps:$4 sm:$0xff]  }
  0x23   :  { %2681 = vmatpush3.bf16.msra.mxu1 %v3104_v22  ;;  %2745 = vmatpush3.bf16.msra.mxu0 %v3105_v23  ;;  %v3180_v22 = vld [vmem:[%s4237_s1 + $0x250] sm:$0xff]  }
  0x24   :  { %2682 = vmatprep.subr.bf16.mxu1 %v3106_v24  ;;  %2746 = vmatprep.subr.bf16.mxu0 %v3107_v25  ;;  %v3181_v23 = vld [vmem:[%s4237_s1 + $0x210] sm:$0xff]   ;;  %v3184_v25 = vld [vmem:[%s4238_s0 + $0x164] ss:$56 sps:$4 sm:$0xff]  }
  0x25   :  { %1620 = vmatprep.mubr.bf16.mxu0 %v3110_v26  ;;  %1652 = vmatprep.mubr.bf16.mxu1 %v3112_v28  ;;  %v3182_v24 = vld [vmem:[%s4238_s0 + $0x15c] ss:$56 sps:$4 sm:$0xff]   ;;  %v3186_v28 = vld [vmem:[%s4238_s0 + $0x158] ss:$56 sps:$4 sm:$0xff]  }
  0x26   :  { %v3188_v26 = vld [vmem:[%s4237_s1 + $0x1d8] sm:$0xff]  }
  0x27   :  { %2683 = vmatpush3.bf16.msra.mxu1 %v3108_v27  ;;  %2747 = vmatpush3.bf16.msra.mxu0 %v3109_v29  ;;  %v3189_v27 = vld [vmem:[%s4237_s1 + $0x198] sm:$0xff]  }
  0x28   :  { %2684 = vmatprep.subr.bf16.mxu1 %v3116_v30  ;;  %2748 = vmatprep.subr.bf16.mxu0 %v3117_v32  ;;  %v3190_v29 = vld [vmem:[%s4237_s1 + $0x258] sm:$0xff]   ;;  %v3192_v32 = vld [vmem:[%s4238_s0 + $0x1cc] ss:$56 sps:$4 sm:$0xff]  }
  0x29   :  { %v3191_v30 = vld [vmem:[%s4237_s1 + $0x218] sm:$0xff]  }
  0x2a   :  { %1621 = vmatmul.mubr.bf16.gmra.mrb[4].mxu0 %v3114_v31  ;;  %1653 = vmatmul.mubr.bf16.gmra.mrb[4].mxu1 %v3115_v33  ;;  %v3187_v31 = vld [vmem:[%s4238_s0 + $0x160] ss:$56 sps:$4 sm:$0xff]   ;;  %v3194_v33 = vld [vmem:[%s4238_s0 + $0x1d4] ss:$56 sps:$4 sm:$0xff]  }
  0x2b   :  { %2685 = vmatpush3.bf16.msra.mxu1 %v3118_v34  ;;  %2749 = vmatpush3.bf16.msra.mxu0 %v3119_v35  ;;  %v3198_v34 = vld [vmem:[%s4237_s1 + $0x1e0] sm:$0xff]  }
  0x2c   :  { %2686 = vmatprep.subr.bf16.mxu1 %v3120_v36  ;;  %2750 = vmatprep.subr.bf16.mxu0 %v3121_v37  ;;  %v3199_v35 = vld [vmem:[%s4237_s1 + $0x1a0] sm:$0xff]  }
  0x2d   :  { %1628 = vmatprep.mubr.bf16.mxu0 %v3124_v38  ;;  %1660 = vmatprep.mubr.bf16.mxu1 %v3126_v40  ;;  %v3200_v36 = vld [vmem:[%s4237_s1 + $0x260] sm:$0xff]   ;;  %v3202_v40 = vld [vmem:[%s4238_s0 + $0x23c] ss:$56 sps:$4 sm:$0xff]  }
  0x2e   :  { %v3201_v37 = vld [vmem:[%s4237_s1 + $0x220] sm:$0xff]  }
  0x2f   :  { %2687 = vmatpush3.bf16.msra.mxu1 %v3122_v39  ;;  %2751 = vmatpush3.bf16.msra.mxu0 %v3123_v41  ;;  %v3196_v38 = vld [vmem:[%s4238_s0 + $0x1c8] ss:$56 sps:$4 sm:$0xff]   ;;  %v3204_v41 = vld [vmem:[%s4238_s0 + $0x244] ss:$56 sps:$4 sm:$0xff]  }
  0x30   :  { %2688 = vmatprep.subr.bf16.mxu1 %v3130_v42  ;;  %2752 = vmatprep.subr.bf16.mxu0 %v3131_v45  ;;  %v3197_v39 = vld [vmem:[%s4238_s0 + $0x1d0] ss:$56 sps:$4 sm:$0xff]  }
  0x31   :  { %v3208_v42 = vld [vmem:[%s4237_s1 + $0x1e8] sm:$0xff]  }
  0x32   :  { %1629 = vmatmul.mubr.bf16.gmra.mrb[8].mxu0 %v3128_v43  ;;  %1661 = vmatmul.mubr.bf16.gmra.mrb[8].mxu1 %v3129_v44  ;;  %v3209_v43 = vld [vmem:[%s4237_s1 + $0x1a8] sm:$0xff]  }
  0x33   :  { %2689 = vmatpush3.bf16.msra.mxu1 %v3132_v46  ;;  %2753 = vmatpush3.bf16.msra.mxu0 %v3133_v47  ;;  %v3210_v44 = vld [vmem:[%s4237_s1 + $0x268] sm:$0xff]   ;;  %v3206_v46 = vld [vmem:[%s4238_s0 + $0x238] ss:$56 sps:$4 sm:$0xff]  }
  0x34   :  { %2690 = vmatprep.subr.bf16.mxu1 %v3134_v48  ;;  %2754 = vmatprep.subr.bf16.mxu0 %v3135_v49  ;;  %v3211_v45 = vld [vmem:[%s4237_s1 + $0x228] sm:$0xff]   ;;  %v3207_v47 = vld [vmem:[%s4238_s0 + $0x240] ss:$56 sps:$4 sm:$0xff]  }
  0x35   :  { %1636 = vmatprep.mubr.bf16.mxu0 %v3138_v50  ;;  %1668 = vmatprep.mubr.bf16.mxu1 %v3140_v51  ;;  %v3212_v48 = vld [vmem:[%s4238_s0 + $0x2ac] ss:$56 sps:$4 sm:$0xff]   ;;  %v3218_v50 = vld [vmem:[%s4237_s1 + $0x1f0] sm:$0xff]  }
  0x36   :  { %v3214_v49 = vld [vmem:[%s4238_s0 + $0x2b4] ss:$56 sps:$4 sm:$0xff]  }
  0x37   :  { %2691 = vmatpush3.bf16.msra.mxu1 %v3136_v52  ;;  %2755 = vmatpush3.bf16.msra.mxu0 %v3137_v53  ;;  %v3219_v51 = vld [vmem:[%s4237_s1 + $0x1b0] sm:$0xff]  }
  0x38   :  { %2692 = vmatprep.subr.bf16.mxu1 %v3144_v54  ;;  %2756 = vmatprep.subr.bf16.mxu0 %v3145_v57  ;;  %v3220_v52 = vld [vmem:[%s4237_s1 + $0x270] sm:$0xff]   ;;  %v3216_v54 = vld [vmem:[%s4238_s0 + $0x2a8] ss:$56 sps:$4 sm:$0xff]  }
  0x39   :  { %v3221_v53 = vld [vmem:[%s4237_s1 + $0x230] sm:$0xff]  }
  0x3a   :  { %1637 = vmatmul.mubr.bf16.gmra.mrb[12].mxu0 %v3142_v55  ;;  %1669 = vmatmul.mubr.bf16.gmra.mrb[12].mxu1 %v3143_v56  ;;  %v3217_v55 = vld [vmem:[%s4238_s0 + $0x2b0] ss:$56 sps:$4 sm:$0xff]   ;;  %v3228_v56 = vld [vmem:[%s4237_s1 + $0x1f8] sm:$0xff]  }
  0x3b   :  { %2693 = vmatpush3.bf16.msra.mxu1 %v3146_v58  ;;  %2757 = vmatpush3.bf16.msra.mxu0 %v3147_v59  ;;  %v3222_v57 = vld [vmem:[%s4238_s0 + $0x31c] ss:$56 sps:$4 sm:$0xff]  }
  0x3c   :  { %2694 = vmatprep.subr.bf16.mxu1 %v3148_v60  ;;  %2758 = vmatprep.subr.bf16.mxu0 %v3149_v61  ;;  %v3224_v58 = vld [vmem:[%s4238_s0 + $0x324] ss:$56 sps:$4 sm:$0xff]  }
  0x3d   :  { %1709 = vmatprep.mubr.bf16.mxu1 %v3154_v0  ;;  %1806 = vmatprep.mubr.bf16.mxu0 %v3157_v3  ;;  %v3229_v59 = vld [vmem:[%s4237_s1 + $0x1b8] sm:$0xff]  }
  0x3e   :  { %v3230_v60 = vld [vmem:[%s4237_s1 + $0x278] sm:$0xff]  }
  0x3f   :  { %2695 = vmatpush3.bf16.msra.mxu1 %v3150_v62  ;;  %2759 = vmatpush3.bf16.msra.mxu0 %v3151_v63  ;;  %v3231_v61 = vld [vmem:[%s4237_s1 + $0x238] sm:$0xff]   ;;  %v3238_v62 = vld [vmem:[%s4237_s1 + $0x2c0] sm:$0xff]  }
  0x40   :  { %2808 = vmatprep.subr.bf16.mxu1 %v3158_v4  ;;  %2872 = vmatprep.subr.bf16.mxu0 %v3160_v6  ;;  %v3226_v63 = vld [vmem:[%s4238_s0 + $0x318] ss:$56 sps:$4 sm:$0xff]   ;;  %v3237_v3 = vld [vmem:[%s4238_s0 + $0x24] ss:$56 sps:$4 sm:$0xff]  }
  0x41   :  { %v3227_v0 = vld [vmem:[%s4238_s0 + $0x320] ss:$56 sps:$4 sm:$0xff]  }
  0x42   :  { %1710 = vmatmul.mubr.bf16.vlgmr.msra.gmra.mrb[16].mxu1 %v3152_v1  ;;  %1807 = vmatmul.mubr.bf16.vlgmr.msra.gmra.mrb[16].mxu0 %v3155_v2  ;;  %v3240_v1 = vld [vmem:[%s4237_s1 + $0x340] sm:$0xff]   ;;  %v3234_v2 = vld [vmem:[%s4238_s0 + $0x1c] ss:$56 sps:$4 sm:$0xff]   ;;  %v3232_v4 = vld [vmem:[%s4238_s0 + $0x18] ss:$56 sps:$4 sm:$0xff]  }
  0x43   :  { %2809 = vmatpush3.bf16.msra.mxu1 %v3159_v5  ;;  %2873 = vmatpush3.bf16.msra.mxu0 %v3161_v7  ;;  %v3235_v5 = vld [vmem:[%s4238_s0 + $0x20] ss:$56 sps:$4 sm:$0xff]  }
  0x44   :  { %1717 = vmatprep.mubr.bf16.mxu1 %v3162_v8  ;;  %1814 = vmatprep.mubr.bf16.mxu0 %v3164_v9  ;;  %v3239_v6 = vld [vmem:[%s4237_s1 + $0x280] sm:$0xff]   ;;  %v3244_v9 = vld [vmem:[%s4238_s0 + $0x94] ss:$56 sps:$4 sm:$0xff]  }
  0x45   :  { %2810 = vmatprep.subr.bf16.mxu1 %v3168_v12  ;;  %2874 = vmatprep.subr.bf16.mxu0 %v3170_v14  ;;  %v3241_v7 = vld [vmem:[%s4237_s1 + $0x300] sm:$0xff]   ;;  %v3250_v12 = vld [vmem:[%s4237_s1 + $0x348] sm:$0xff]   ;;  %v3258_v14 = vld [vmem:[%s4237_s1 + $0x2d0] sm:$0xff]  }
  0x46   :  { %v3242_v8 = vld [vmem:[%s4238_s0 + $0x8c] ss:$56 sps:$4 sm:$0xff]  }
  0x47   :  { %2811 = vmatpush3.bf16.msra.mxu1 %v3169_v13  ;;  %2875 = vmatpush3.bf16.msra.mxu0 %v3171_v15  ;;  %v3251_v13 = vld [vmem:[%s4237_s1 + $0x308] sm:$0xff]  }
  0x48   :  { %2812 = vmatprep.subr.bf16.mxu1 %v3178_v18  ;;  %2876 = vmatprep.subr.bf16.mxu0 %v3180_v22  ;;  %v3246_v15 = vld [vmem:[%s4238_s0 + $0x88] ss:$56 sps:$4 sm:$0xff]   ;;  %v3252_v18 = vld [vmem:[%s4238_s0 + $0xfc] ss:$56 sps:$4 sm:$0xff]  }
  0x49   :  { %v3268_v22 = vld [vmem:[%s4237_s1 + $0x2d8] sm:$0xff]  }
  0x4a   :  { %1718 = vmatmul.mubr.bf16.gmra.mrb[20].mxu1 %v3166_v10  ;;  %1815 = vmatmul.mubr.bf16.gmra.mrb[20].mxu0 %v3167_v11  ;;  %v3248_v10 = vld [vmem:[%s4237_s1 + $0x2c8] sm:$0xff]  }
  0x4b   :  { %1725 = vmatprep.mubr.bf16.mxu1 %v3172_v16  ;;  %1822 = vmatprep.mubr.bf16.mxu0 %v3174_v17  ;;  %v3249_v11 = vld [vmem:[%s4237_s1 + $0x288] sm:$0xff]   ;;  %v3260_v17 = vld [vmem:[%s4237_s1 + $0x350] sm:$0xff]  }
  0x4c   :  { %2813 = vmatpush3.bf16.msra.mxu1 %v3179_v21  ;;  %2877 = vmatpush3.bf16.msra.mxu0 %v3181_v23  ;;  %v3247_v16 = vld [vmem:[%s4238_s0 + $0x90] ss:$56 sps:$4 sm:$0xff]   ;;  %v3270_v23 = vld [vmem:[%s4237_s1 + $0x358] sm:$0xff]  }
  0x4d   :  { %2814 = vmatprep.subr.bf16.mxu1 %v3188_v26  ;;  %2878 = vmatprep.subr.bf16.mxu0 %v3190_v29  ;;  %v3261_v21 = vld [vmem:[%s4237_s1 + $0x310] sm:$0xff]   ;;  %v3269_v26 = vld [vmem:[%s4237_s1 + $0x298] sm:$0xff]  }
  0x4e   :  { %v3264_v29 = vld [vmem:[%s4238_s0 + $0x174] ss:$56 sps:$4 sm:$0xff]  }
  0x50   :  { %2815 = vmatpush3.bf16.msra.mxu1 %v3189_v27  ;;  %2879 = vmatpush3.bf16.msra.mxu0 %v3191_v30  ;;  %v3271_v27 = vld [vmem:[%s4237_s1 + $0x318] sm:$0xff]   ;;  %v3278_v30 = vld [vmem:[%s4237_s1 + $0x2e0] sm:$0xff]  }
  0x51   :  { %2816 = vmatprep.subr.bf16.mxu1 %v3198_v34  ;;  %2880 = vmatprep.subr.bf16.mxu0 %v3200_v36  ;;  %v3266_v34 = vld [vmem:[%s4238_s0 + $0x168] ss:$56 sps:$4 sm:$0xff]  }
  0x52   :  { %1726 = vmatmul.mubr.bf16.gmra.mrb[24].mxu1 %v3176_v19  ;;  %1823 = vmatmul.mubr.bf16.gmra.mrb[24].mxu0 %v3177_v20  ;;  %v3254_v19 = vld [vmem:[%s4238_s0 + $0x104] ss:$56 sps:$4 sm:$0xff]   ;;  %v3259_v20 = vld [vmem:[%s4237_s1 + $0x290] sm:$0xff]   ;;  %v3288_v36 = vld [vmem:[%s4237_s1 + $0x2e8] sm:$0xff]  }
  0x53   :  { %1733 = vmatprep.mubr.bf16.mxu1 %v3182_v24  ;;  %1830 = vmatprep.mubr.bf16.mxu0 %v3184_v25  ;;  %v3256_v24 = vld [vmem:[%s4238_s0 + $0xf8] ss:$56 sps:$4 sm:$0xff]  }
  0x54   :  { %2817 = vmatpush3.bf16.msra.mxu1 %v3199_v35  ;;  %2881 = vmatpush3.bf16.msra.mxu0 %v3201_v37  ;;  %v3257_v25 = vld [vmem:[%s4238_s0 + $0x100] ss:$56 sps:$4 sm:$0xff]   ;;  %v3267_v35 = vld [vmem:[%s4238_s0 + $0x170] ss:$56 sps:$4 sm:$0xff]   ;;  %v3272_v37 = vld [vmem:[%s4238_s0 + $0x1dc] ss:$56 sps:$4 sm:$0xff]  }
  0x55   :  { %2818 = vmatprep.subr.bf16.mxu1 %v3208_v42  ;;  %2882 = vmatprep.subr.bf16.mxu0 %v3210_v44  ;;  %v3298_v42 = vld [vmem:[%s4237_s1 + $0x2f0] sm:$0xff]   ;;  %v3277_v44 = vld [vmem:[%s4238_s0 + $0x1e0] ss:$56 sps:$4 sm:$0xff]  }
  0x58   :  { %2819 = vmatpush3.bf16.msra.mxu1 %v3209_v43  ;;  %2883 = vmatpush3.bf16.msra.mxu0 %v3211_v45  ;;  %v3276_v43 = vld [vmem:[%s4238_s0 + $0x1d8] ss:$56 sps:$4 sm:$0xff]  }
  0x59   :  { %2820 = vmatprep.subr.bf16.mxu1 %v3218_v50  ;;  %2884 = vmatprep.subr.bf16.mxu0 %v3220_v52  ;;  %v3299_v45 = vld [vmem:[%s4237_s1 + $0x2b0] sm:$0xff]   ;;  %v3308_v50 = vld [vmem:[%s4237_s1 + $0x2f8] sm:$0xff]  }
  0x5a   :  { %1734 = vmatmul.mubr.bf16.gmra.mrb[28].mxu1 %v3186_v28  ;;  %1831 = vmatmul.mubr.bf16.gmra.mrb[28].mxu0 %v3187_v31  ;;  %v3262_v28 = vld [vmem:[%s4238_s0 + $0x16c] ss:$56 sps:$4 sm:$0xff]   ;;  %v3310_v52 = vld [vmem:[%s4237_s1 + $0x378] sm:$0xff]  }
  0x5b   :  { %1741 = vmatprep.mubr.bf16.mxu1 %v3192_v32  ;;  %1838 = vmatprep.mubr.bf16.mxu0 %v3194_v33  ;;  %v3279_v31 = vld [vmem:[%s4237_s1 + $0x2a0] sm:$0xff]  }
  0x5c   :  { %2821 = vmatpush3.bf16.msra.mxu1 %v3219_v51  ;;  %2885 = vmatpush3.bf16.msra.mxu0 %v3221_v53  ;;  %v3280_v32 = vld [vmem:[%s4237_s1 + $0x360] sm:$0xff]   ;;  %v3309_v51 = vld [vmem:[%s4237_s1 + $0x2b8] sm:$0xff]  }
  0x5d   :  { %2822 = vmatprep.subr.bf16.mxu1 %v3228_v56  ;;  %2886 = vmatprep.subr.bf16.mxu0 %v3230_v60  ;;  %v3281_v33 = vld [vmem:[%s4237_s1 + $0x320] sm:$0xff]   ;;  %v3311_v53 = vld [vmem:[%s4237_s1 + $0x338] sm:$0xff]  }
  0x5e   :  { %v3292_v56 = vld [vmem:[%s4238_s0 + $0x2bc] ss:$56 sps:$4 sm:$0xff]   ;;  %v3302_v60 = vld [vmem:[%s4238_s0 + $0x32c] ss:$56 sps:$4 sm:$0xff]  }
  0x60   :  { %2823 = vmatpush3.bf16.msra.mxu1 %v3229_v59  ;;  %2887 = vmatpush3.bf16.msra.mxu0 %v3231_v61  ;;  %v3297_v59 = vld [vmem:[%s4238_s0 + $0x2c0] ss:$56 sps:$4 sm:$0xff]   ;;  %v3304_v61 = vld [vmem:[%s4238_s0 + $0x334] ss:$56 sps:$4 sm:$0xff]  }
  0x61   :  { %2936 = vmatprep.subr.bf16.mxu1 %v3238_v62  ;;  %3000 = vmatprep.subr.bf16.mxu0 %v3240_v1  ;;  %v3306_v62 = vld [vmem:[%s4238_s0 + $0x328] ss:$56 sps:$4 sm:$0xff]   ;;  %v3317_v1 = vld [vmem:[%s4238_s0 + $0x34] ss:$56 sps:$4 sm:$0xff]  }
  0x62   :  { %1742 = vmatmul.mubr.bf16.gmra.mrb[32].mxu1 %v3196_v38  ;;  %1839 = vmatmul.mubr.bf16.gmra.mrb[32].mxu0 %v3197_v39  ;;  %v3274_v38 = vld [vmem:[%s4238_s0 + $0x1e4] ss:$56 sps:$4 sm:$0xff]   ;;  %v3289_v39 = vld [vmem:[%s4237_s1 + $0x2a8] sm:$0xff]  }
  0x63   :  { %1749 = vmatprep.mubr.bf16.mxu1 %v3202_v40  ;;  %1846 = vmatprep.mubr.bf16.mxu0 %v3204_v41  ;;  %v3290_v40 = vld [vmem:[%s4237_s1 + $0x368] sm:$0xff]  }
  0x64   :  { %v3291_v41 = vld [vmem:[%s4237_s1 + $0x328] sm:$0xff]  }
  0x6a   :  { %1750 = vmatmul.mubr.bf16.gmra.mrb[36].mxu1 %v3206_v46  ;;  %1847 = vmatmul.mubr.bf16.gmra.mrb[36].mxu0 %v3207_v47  ;;  %v3282_v46 = vld [vmem:[%s4238_s0 + $0x24c] ss:$56 sps:$4 sm:$0xff]   ;;  %v3300_v47 = vld [vmem:[%s4237_s1 + $0x370] sm:$0xff]  }
  0x6b   :  { %1757 = vmatprep.mubr.bf16.mxu1 %v3212_v48  ;;  %1854 = vmatprep.mubr.bf16.mxu0 %v3214_v49  ;;  %v3301_v48 = vld [vmem:[%s4237_s1 + $0x330] sm:$0xff]  }
  0x6c   :  { %v3284_v49 = vld [vmem:[%s4238_s0 + $0x254] ss:$56 sps:$4 sm:$0xff]  }
  0x72   :  { %1758 = vmatmul.mubr.bf16.gmra.mrb[40].mxu1 %v3216_v54  ;;  %1855 = vmatmul.mubr.bf16.gmra.mrb[40].mxu0 %v3217_v55  ;;  %v3286_v54 = vld [vmem:[%s4238_s0 + $0x248] ss:$56 sps:$4 sm:$0xff]  }
  0x73   :  { %1765 = vmatprep.mubr.bf16.mxu1 %v3222_v57  ;;  %1862 = vmatprep.mubr.bf16.mxu0 %v3224_v58  ;;  %v3287_v55 = vld [vmem:[%s4238_s0 + $0x250] ss:$56 sps:$4 sm:$0xff]   ;;  %v3294_v57 = vld [vmem:[%s4238_s0 + $0x2c4] ss:$56 sps:$4 sm:$0xff]  }
  0x74   :  { %v3296_v58 = vld [vmem:[%s4238_s0 + $0x2b8] ss:$56 sps:$4 sm:$0xff]  }
  0x7a   :  { %1766 = vmatmul.mubr.bf16.gmra.mrb[44].mxu1 %v3226_v63  ;;  %1863 = vmatmul.mubr.bf16.gmra.mrb[44].mxu0 %v3227_v0  ;;  %v3307_v63 = vld [vmem:[%s4238_s0 + $0x330] ss:$56 sps:$4 sm:$0xff]   ;;  %v3314_v0 = vld [vmem:[%s4238_s0 + $0x2c] ss:$56 sps:$4 sm:$0xff]  }
  0x7b   :  { %1903 = vmatprep.mubr.bf16.mxu1 %v3234_v2  ;;  %2000 = vmatprep.mubr.bf16.mxu0 %v3237_v3  ;;  %v3312_v2 = vld [vmem:[%s4238_s0 + $0x28] ss:$56 sps:$4 sm:$0xff]  }
  0x7c   :  { %v3315_v3 = vld [vmem:[%s4238_s0 + $0x30] ss:$56 sps:$4 sm:$0xff]  }
  0x82   :  { %1904 = vmatmul.mubr.bf16.vlgmr.msra.gmra.mrb[48].mxu1 %v3232_v4  ;;  %2001 = vmatmul.mubr.bf16.vlgmr.msra.gmra.mrb[48].mxu0 %v3235_v5  ;;  %v3318_v4 = vld [vmem:[%s4238_s0 + $0x9c] ss:$56 sps:$4 sm:$0xff]  }
  0x83   :  { %2937 = vmatpush3.bf16.msra.mxu1 %v3239_v6  ;;  %3001 = vmatpush3.bf16.msra.mxu0 %v3241_v7  ;;  %v3320_v5 = vld [vmem:[%s4238_s0 + $0xa4] ss:$56 sps:$4 sm:$0xff]   ;;  %v3322_v6 = vld [vmem:[%s4238_s0 + $0x98] ss:$56 sps:$4 sm:$0xff]  }
  0x84   :  { %1911 = vmatprep.mubr.bf16.mxu1 %v3242_v8  ;;  %2008 = vmatprep.mubr.bf16.mxu0 %v3244_v9  ;;  %v3323_v7 = vld [vmem:[%s4238_s0 + $0xa0] ss:$56 sps:$4 sm:$0xff]   ;;  %v3324_v8 = vld [vmem:[%s4238_s0 + $0x10c] ss:$56 sps:$4 sm:$0xff]  }
  0x85   :  { %2938 = vmatprep.subr.bf16.mxu1 %v3248_v10  ;;  %3002 = vmatprep.subr.bf16.mxu0 %v3250_v12  ;;  %v3326_v9 = vld [vmem:[%s4238_s0 + $0x114] ss:$56 sps:$4 sm:$0xff]   ;;  %v3328_v10 = vld [vmem:[%s4238_s0 + $0x108] ss:$56 sps:$4 sm:$0xff]  }
  0x86   :  { %v3330_v12 = vld [vmem:[%s4238_s0 + $0x17c] ss:$56 sps:$4 sm:$0xff]  }
  0x87   :  { %2939 = vmatpush3.bf16.msra.mxu1 %v3249_v11  ;;  %3003 = vmatpush3.bf16.msra.mxu0 %v3251_v13  ;;  %v3329_v11 = vld [vmem:[%s4238_s0 + $0x110] ss:$56 sps:$4 sm:$0xff]   ;;  %v3332_v13 = vld [vmem:[%s4238_s0 + $0x184] ss:$56 sps:$4 sm:$0xff]  }
  0x88   :  { %2940 = vmatprep.subr.bf16.mxu1 %v3258_v14  ;;  %3004 = vmatprep.subr.bf16.mxu0 %v3260_v17  ;;  %v3334_v14 = vld [vmem:[%s4238_s0 + $0x178] ss:$56 sps:$4 sm:$0xff]   ;;  %v3338_v17 = vld [vmem:[%s4238_s0 + $0x1f4] ss:$56 sps:$4 sm:$0xff]  }
  0x8a   :  { %1912 = vmatmul.mubr.bf16.gmra.mrb[52].mxu1 %v3246_v15  ;;  %2009 = vmatmul.mubr.bf16.gmra.mrb[52].mxu0 %v3247_v16  ;;  %v3335_v15 = vld [vmem:[%s4238_s0 + $0x180] ss:$56 sps:$4 sm:$0xff]   ;;  %v3336_v16 = vld [vmem:[%s4238_s0 + $0x1ec] ss:$56 sps:$4 sm:$0xff]  }
  0x8b   :  { %1919 = vmatprep.mubr.bf16.mxu1 %v3252_v18  ;;  %2016 = vmatprep.mubr.bf16.mxu0 %v3254_v19  ;;  %v3340_v18 = vld [vmem:[%s4238_s0 + $0x1e8] ss:$56 sps:$4 sm:$0xff]  }
  0x8c   :  { %2941 = vmatpush3.bf16.msra.mxu1 %v3259_v20  ;;  %3005 = vmatpush3.bf16.msra.mxu0 %v3261_v21  ;;  %v3341_v19 = vld [vmem:[%s4238_s0 + $0x1f0] ss:$56 sps:$4 sm:$0xff]   ;;  %v3342_v20 = vld [vmem:[%s4238_s0 + $0x25c] ss:$56 sps:$4 sm:$0xff]  }
  0x8d   :  { %2942 = vmatprep.subr.bf16.mxu1 %v3268_v22  ;;  %3006 = vmatprep.subr.bf16.mxu0 %v3270_v23  ;;  %v3344_v21 = vld [vmem:[%s4238_s0 + $0x264] ss:$56 sps:$4 sm:$0xff]   ;;  %v3346_v22 = vld [vmem:[%s4238_s0 + $0x258] ss:$56 sps:$4 sm:$0xff]  }
  0x8e   :  { %v3347_v23 = vld [vmem:[%s4238_s0 + $0x260] ss:$56 sps:$4 sm:$0xff]  }
  0x90   :  { %2943 = vmatpush3.bf16.msra.mxu1 %v3269_v26  ;;  %3007 = vmatpush3.bf16.msra.mxu0 %v3271_v27  ;;  %v3352_v26 = vld [vmem:[%s4238_s0 + $0x2c8] ss:$56 sps:$4 sm:$0xff]  }
  0x91   :  { %2944 = vmatprep.subr.bf16.mxu1 %v3278_v30  ;;  %3008 = vmatprep.subr.bf16.mxu0 %v3280_v32  ;;  %v3353_v27 = vld [vmem:[%s4238_s0 + $0x2d0] ss:$56 sps:$4 sm:$0xff]  }
  0x92   :  { %1920 = vmatmul.mubr.bf16.gmra.mrb[56].mxu1 %v3256_v24  ;;  %2017 = vmatmul.mubr.bf16.gmra.mrb[56].mxu0 %v3257_v25  ;;  %v3348_v24 = vld [vmem:[%s4238_s0 + $0x2cc] ss:$56 sps:$4 sm:$0xff]  }
  0x93   :  { %1927 = vmatprep.mubr.bf16.mxu1 %v3262_v28  ;;  %2024 = vmatprep.mubr.bf16.mxu0 %v3264_v29  ;;  %v3350_v25 = vld [vmem:[%s4238_s0 + $0x2d4] ss:$56 sps:$4 sm:$0xff]   ;;  %v3356_v29 = vld [vmem:[%s4238_s0 + $0x344] ss:$56 sps:$4 sm:$0xff]  }
  0x94   :  { %2945 = vmatpush3.bf16.msra.mxu1 %v3279_v31  ;;  %3009 = vmatpush3.bf16.msra.mxu0 %v3281_v33  ;;  %v3354_v28 = vld [vmem:[%s4238_s0 + $0x33c] ss:$56 sps:$4 sm:$0xff]  }
  0x95   :  { %2946 = vmatprep.subr.bf16.mxu1 %v3288_v36  ;;  %3010 = vmatprep.subr.bf16.mxu0 %v3290_v40 }
  0x98   :  { %2947 = vmatpush3.bf16.msra.mxu1 %v3289_v39  ;;  %3011 = vmatpush3.bf16.msra.mxu0 %v3291_v41 }
  0x99   :  { %2948 = vmatprep.subr.bf16.mxu1 %v3298_v42  ;;  %3012 = vmatprep.subr.bf16.mxu0 %v3300_v47 }
  0x9a   :  { %1928 = vmatmul.mubr.bf16.gmra.mrb[60].mxu1 %v3266_v34  ;;  %2025 = vmatmul.mubr.bf16.gmra.mrb[60].mxu0 %v3267_v35  ;;  %v3358_v34 = vld [vmem:[%s4238_s0 + $0x338] ss:$56 sps:$4 sm:$0xff]  }
  0x9b   :  { %1935 = vmatprep.mubr.bf16.mxu1 %v3272_v37  ;;  %2032 = vmatprep.mubr.bf16.mxu0 %v3274_v38  ;;  %v3359_v35 = vld [vmem:[%s4238_s0 + $0x340] ss:$56 sps:$4 sm:$0xff]  }
  0x9c   :  { %2949 = vmatpush3.bf16.msra.mxu1 %v3299_v45  ;;  %3013 = vmatpush3.bf16.msra.mxu0 %v3301_v48 }
  0x9d   :  { %2950 = vmatprep.subr.bf16.mxu1 %v3308_v50  ;;  %3014 = vmatprep.subr.bf16.mxu0 %v3310_v52 }
  0xa0   :  { %2951 = vmatpush3.bf16.msra.mxu1 %v3309_v51  ;;  %3015 = vmatpush3.bf16.msra.mxu0 %v3311_v53 }
  0xa2   :  { %1936 = vmatmul.mubr.bf16.gmra.mrb[64].mxu1 %v3276_v43  ;;  %2033 = vmatmul.mubr.bf16.gmra.mrb[64].mxu0 %v3277_v44 }
  0xa3   :  { %1943 = vmatprep.mubr.bf16.mxu1 %v3282_v46  ;;  %2040 = vmatprep.mubr.bf16.mxu0 %v3284_v49 }
  0xaa   :  { %1944 = vmatmul.mubr.bf16.gmra.mrb[68].mxu1 %v3286_v54  ;;  %2041 = vmatmul.mubr.bf16.gmra.mrb[68].mxu0 %v3287_v55 }
  0xab   :  { %1951 = vmatprep.mubr.bf16.mxu1 %v3292_v56  ;;  %2048 = vmatprep.mubr.bf16.mxu0 %v3294_v57 }
  0xb2   :  { %1952 = vmatmul.mubr.bf16.gmra.mrb[72].mxu1 %v3296_v58  ;;  %2049 = vmatmul.mubr.bf16.gmra.mrb[72].mxu0 %v3297_v59 }
  0xb3   :  { %1959 = vmatprep.mubr.bf16.mxu1 %v3302_v60  ;;  %2056 = vmatprep.mubr.bf16.mxu0 %v3304_v61 }
  0xba   :  { %1960 = vmatmul.mubr.bf16.gmra.mrb[76].mxu1 %v3306_v62  ;;  %2057 = vmatmul.mubr.bf16.gmra.mrb[76].mxu0 %v3307_v63 }
  0xbb   :  { %2097 = vmatprep.mubr.bf16.mxu1 %v3314_v0  ;;  %2194 = vmatprep.mubr.bf16.mxu0 %v3317_v1 }
  0xc2   :  { %2098 = vmatmul.mubr.bf16.vlgmr.msra.gmra.mrb[80].mxu1 %v3312_v2  ;;  %2195 = vmatmul.mubr.bf16.vlgmr.msra.gmra.mrb[80].mxu0 %v3315_v3 }
  0xc3   :  { %2105 = vmatprep.mubr.bf16.mxu1 %v3318_v4  ;;  %2202 = vmatprep.mubr.bf16.mxu0 %v3320_v5 }
  0xca   :  { %2106 = vmatmul.mubr.bf16.gmra.mrb[84].mxu1 %v3322_v6  ;;  %2203 = vmatmul.mubr.bf16.gmra.mrb[84].mxu0 %v3323_v7 }
  0xcb   :  { %2113 = vmatprep.mubr.bf16.mxu1 %v3324_v8  ;;  %2210 = vmatprep.mubr.bf16.mxu0 %v3326_v9 }
  0xd2   :  { %2114 = vmatmul.mubr.bf16.gmra.mrb[88].mxu1 %v3328_v10  ;;  %2211 = vmatmul.mubr.bf16.gmra.mrb[88].mxu0 %v3329_v11 }
  0xd3   :  { %2121 = vmatprep.mubr.bf16.mxu1 %v3330_v12  ;;  %2218 = vmatprep.mubr.bf16.mxu0 %v3332_v13 }
  0xda   :  { %2122 = vmatmul.mubr.bf16.gmra.mrb[92].mxu1 %v3334_v14  ;;  %2219 = vmatmul.mubr.bf16.gmra.mrb[92].mxu0 %v3335_v15 }
  0xdb   :  { %2129 = vmatprep.mubr.bf16.mxu1 %v3336_v16  ;;  %2226 = vmatprep.mubr.bf16.mxu0 %v3338_v17 }
  0xe2   :  { %2130 = vmatmul.mubr.bf16.gmra.mrb[96].mxu1 %v3340_v18  ;;  %2227 = vmatmul.mubr.bf16.gmra.mrb[96].mxu0 %v3341_v19 }
  0xe3   :  { %2137 = vmatprep.mubr.bf16.mxu1 %v3342_v20  ;;  %2234 = vmatprep.mubr.bf16.mxu0 %v3344_v21 }
  0xea   :  { %2138 = vmatmul.mubr.bf16.gmra.mrb[100].mxu1 %v3346_v22  ;;  %2235 = vmatmul.mubr.bf16.gmra.mrb[100].mxu0 %v3347_v23 }
  0xeb   :  { %2145 = vmatprep.mubr.bf16.mxu1 %v3348_v24  ;;  %2242 = vmatprep.mubr.bf16.mxu0 %v3350_v25 }
  0xf2   :  { %2146 = vmatmul.mubr.bf16.gmra.mrb[104].mxu1 %v3352_v26  ;;  %2243 = vmatmul.mubr.bf16.gmra.mrb[104].mxu0 %v3353_v27 }
  0xf3   :  { %2153 = vmatprep.mubr.bf16.mxu1 %v3354_v28  ;;  %2250 = vmatprep.mubr.bf16.mxu0 %v3356_v29 }
  0xf5   :  { %v2632_v30 = vpop.f32.mrb[0].mxu0  ;;  %v2656_v31 = vpop.f32.mrb[0].mxu1 }
  0xf6   :  { %v2633_v32 = vpop.f32.mrb[1].mxu0  ;;  %v2657_v33 = vpop.f32.mrb[1].mxu1 }
  0xf7   :  { %v2634_v36 = vadd.f32 %v2633_v32, %v2632_v30  ;;  %v4047_v37 = vadd.f32 %v2657_v33, %v2656_v31  ;;  %v2635_v38 = vpop.f32.mrb[2].mxu0  ;;  %v2659_v39 = vpop.f32.mrb[2].mxu1 }
  0xf8   :  { %v2636_v40 = vpop.f32.mrb[3].mxu0  ;;  %v2660_v41 = vpop.f32.mrb[3].mxu1 }
  0xf9   :  { %v2637_v42 = vadd.f32 %v2636_v40, %v2635_v38  ;;  %v4049_v43 = vadd.f32 %v2660_v41, %v2659_v39 }
  0xfa   :  { %2154 = vmatmul.mubr.bf16.gmra.mrb[108].mxu1 %v3358_v34  ;;  %2251 = vmatmul.mubr.bf16.gmra.mrb[108].mxu0 %v3359_v35 }
  0xfd   :  { %v2638_v44 = vpop.f32.mrb[4].mxu0  ;;  %v2662_v45 = vpop.f32.mrb[4].mxu1 }
  0xfe   :  { %v2639_v46 = vpop.f32.mrb[5].mxu0  ;;  %v2663_v47 = vpop.f32.mrb[5].mxu1 }
  0xff   :  { %v2640_v48 = vadd.f32 %v2639_v46, %v2638_v44  ;;  %v4051_v49 = vadd.f32 %v2663_v47, %v2662_v45  ;;  %v2641_v50 = vpop.f32.mrb[6].mxu0  ;;  %v2665_v51 = vpop.f32.mrb[6].mxu1 }
 0x100   :  { %v2642_v52 = vpop.f32.mrb[7].mxu0  ;;  %v2666_v53 = vpop.f32.mrb[7].mxu1 }
 0x101   :  { %v2643_v54 = vadd.f32 %v2642_v52, %v2641_v50  ;;  %v4053_v55 = vadd.f32 %v2666_v53, %v2665_v51 }
 0x105   :  { %v2644_v56 = vpop.f32.mrb[8].mxu0  ;;  %v2668_v57 = vpop.f32.mrb[8].mxu1 }
 0x106   :  { %v2645_v58 = vpop.f32.mrb[9].mxu0  ;;  %v2669_v59 = vpop.f32.mrb[9].mxu1 }
 0x107   :  { %v2646_v60 = vadd.f32 %v2645_v58, %v2644_v56  ;;  %v4055_v61 = vadd.f32 %v2669_v59, %v2668_v57  ;;  %v2647_v62 = vpop.f32.mrb[10].mxu0  ;;  %v2671_v63 = vpop.f32.mrb[10].mxu1 }
 0x108   :  { %v2648_v0 = vpop.f32.mrb[11].mxu0  ;;  %v2672_v1 = vpop.f32.mrb[11].mxu1 }
 0x109   :  { %v2649_v2 = vadd.f32 %v2648_v0, %v2647_v62  ;;  %v4057_v3 = vadd.f32 %v2672_v1, %v2671_v63 }
 0x10d   :  { %v2650_v4 = vpop.f32.mrb[12].mxu0  ;;  %v2674_v5 = vpop.f32.mrb[12].mxu1 }
 0x10e   :  { %v2651_v6 = vpop.f32.mrb[13].mxu0  ;;  %v2675_v7 = vpop.f32.mrb[13].mxu1 }
 0x10f   :  { %v4059_v8 = vadd.f32 %v2651_v6, %v2650_v4  ;;  %v4061_v9 = vadd.f32 %v2675_v7, %v2674_v5  ;;  %v2653_v10 = vpop.f32.mrb[14].mxu0  ;;  %v2677_v11 = vpop.f32.mrb[14].mxu1 }
 0x110   :  { %v2654_v12 = vpop.f32.mrb[15].mxu0  ;;  %v2678_v13 = vpop.f32.mrb[15].mxu1 }
 0x111   :  { %v4063_v14 = vadd.f32 %v2654_v12, %v2653_v10  ;;  %v4065_v15 = vadd.f32 %v2678_v13, %v2677_v11 }
 0x115   :  { %v2696_v16 = vpop.f32.mrb[16].mxu1  ;;  %v2760_v17 = vpop.f32.mrb[16].mxu0 }
 0x116   :  { %v2697_v18 = vpop.f32.mrb[17].mxu1  ;;  %v2761_v19 = vpop.f32.mrb[17].mxu0 }
 0x117   :  { %v2698_v20 = vadd.f32 %v2697_v18, %v2696_v16  ;;  %v2762_v21 = vadd.f32 %v2761_v19, %v2760_v17  ;;  %v2699_v22 = vpop.f32.mrb[18].mxu1  ;;  %v2763_v23 = vpop.f32.mrb[18].mxu0 }
 0x118   :  { %v2700_v24 = vpop.f32.mrb[19].mxu1  ;;  %v2764_v25 = vpop.f32.mrb[19].mxu0 }
 0x119   :  { %v1712_v26 = vadd.f32 %v2698_v20, %v2634_v36  ;;  %v2701_v27 = vadd.f32 %v2700_v24, %v2699_v22  ;;  %v2765_v28 = vadd.f32 %v2764_v25, %v2763_v23 }
 0x11b   :  { %v4067_v29 = vadd.f32 %v2762_v21, %v1712_v26  ;;  %v1715_v30 = vadd.f32 %v2701_v27, %v2637_v42 }
 0x11d   :  { %v4069_v31 = vadd.f32 %v2765_v28, %v1715_v30  ;;  %v2702_v32 = vpop.f32.mrb[20].mxu1  ;;  %v2766_v33 = vpop.f32.mrb[20].mxu0 }
 0x11e   :  { %v2703_v34 = vpop.f32.mrb[21].mxu1  ;;  %v2767_v35 = vpop.f32.mrb[21].mxu0 }
 0x11f   :  { %v2704_v38 = vadd.f32 %v2703_v34, %v2702_v32  ;;  %v2768_v39 = vadd.f32 %v2767_v35, %v2766_v33  ;;  %v2705_v40 = vpop.f32.mrb[22].mxu1  ;;  %v2769_v41 = vpop.f32.mrb[22].mxu0 }
 0x120   :  { %v2706_v44 = vpop.f32.mrb[23].mxu1  ;;  %v2770_v45 = vpop.f32.mrb[23].mxu0 }
 0x121   :  { %v1720_v46 = vadd.f32 %v2704_v38, %v2640_v48  ;;  %v2707_v47 = vadd.f32 %v2706_v44, %v2705_v40  ;;  %v2771_v36 = vadd.f32 %v2770_v45, %v2769_v41 }
 0x123   :  { %v4071_v50 = vadd.f32 %v2768_v39, %v1720_v46  ;;  %v1723_v51 = vadd.f32 %v2707_v47, %v2643_v54 }
 0x125   :  { %v4073_v52 = vadd.f32 %v2771_v36, %v1723_v51  ;;  %v2708_v42 = vpop.f32.mrb[24].mxu1  ;;  %v2772_v53 = vpop.f32.mrb[24].mxu0 }
 0x126   :  { %v2709_v56 = vpop.f32.mrb[25].mxu1  ;;  %v2773_v57 = vpop.f32.mrb[25].mxu0 }
 0x127   :  { %v2710_v58 = vadd.f32 %v2709_v56, %v2708_v42  ;;  %v2774_v59 = vadd.f32 %v2773_v57, %v2772_v53  ;;  %v2711_v62 = vpop.f32.mrb[26].mxu1  ;;  %v2775_v63 = vpop.f32.mrb[26].mxu0 }
 0x128   :  { %v2712_v0 = vpop.f32.mrb[27].mxu1  ;;  %v2776_v1 = vpop.f32.mrb[27].mxu0 }
 0x129   :  { %v1728_v4 = vadd.f32 %v2710_v58, %v2646_v60  ;;  %v2713_v5 = vadd.f32 %v2712_v0, %v2711_v62  ;;  %v2777_v48 = vadd.f32 %v2776_v1, %v2775_v63 }
 0x12b   :  { %v4075_v6 = vadd.f32 %v2774_v59, %v1728_v4  ;;  %v1731_v7 = vadd.f32 %v2713_v5, %v2649_v2 }
 0x12d   :  { %v4077_v10 = vadd.f32 %v2777_v48, %v1731_v7  ;;  %v2714_v54 = vpop.f32.mrb[28].mxu1  ;;  %v2778_v11 = vpop.f32.mrb[28].mxu0 }
 0x12e   :  { %v2715_v12 = vpop.f32.mrb[29].mxu1  ;;  %v2779_v13 = vpop.f32.mrb[29].mxu0 }
 0x12f   :  { %v2716_v16 = vadd.f32 %v2715_v12, %v2714_v54  ;;  %v2780_v17 = vadd.f32 %v2779_v13, %v2778_v11  ;;  %v2717_v18 = vpop.f32.mrb[30].mxu1  ;;  %v2781_v19 = vpop.f32.mrb[30].mxu0 }
 0x130   :  { %v2718_v20 = vpop.f32.mrb[31].mxu1  ;;  %v2782_v21 = vpop.f32.mrb[31].mxu0 }
 0x131   :  { %v1736_v22 = vadd.f32 %v2716_v16, %v4059_v8  ;;  %v2719_v60 = vadd.f32 %v2718_v20, %v2717_v18  ;;  %v2783_v23 = vadd.f32 %v2782_v21, %v2781_v19 }
 0x133   :  { %v4080_v24 = vadd.f32 %v2780_v17, %v1736_v22  ;;  %v1739_v2 = vadd.f32 %v2719_v60, %v4063_v14 }
 0x135   :  { %v4083_v25 = vadd.f32 %v2783_v23, %v1739_v2  ;;  %v2720_v26 = vpop.f32.mrb[32].mxu1  ;;  %v2784_v27 = vpop.f32.mrb[32].mxu0 }
 0x136   :  { %v2721_v28 = vpop.f32.mrb[33].mxu1  ;;  %v2785_v30 = vpop.f32.mrb[33].mxu0 }
 0x137   :  { %v2722_v32 = vadd.f32 %v2721_v28, %v2720_v26  ;;  %v2786_v33 = vadd.f32 %v2785_v30, %v2784_v27  ;;  %v2723_v34 = vpop.f32.mrb[34].mxu1  ;;  %v2787_v35 = vpop.f32.mrb[34].mxu0 }
 0x138   :  { %v2724_v38 = vpop.f32.mrb[35].mxu1  ;;  %v2788_v39 = vpop.f32.mrb[35].mxu0 }
 0x139   :  { %v1744_v8 = vadd.f32 %v2722_v32, %v4047_v37  ;;  %v2725_v40 = vadd.f32 %v2724_v38, %v2723_v34  ;;  %v2789_v41 = vadd.f32 %v2788_v39, %v2787_v35 }
 0x13b   :  { %v4086_v44 = vadd.f32 %v2786_v33, %v1744_v8  ;;  %v1747_v14 = vadd.f32 %v2725_v40, %v4049_v43 }
 0x13d   :  { %v4089_v45 = vadd.f32 %v2789_v41, %v1747_v14  ;;  %v2726_v46 = vpop.f32.mrb[36].mxu1  ;;  %v2790_v47 = vpop.f32.mrb[36].mxu0 }
 0x13e   :  { %v2727_v36 = vpop.f32.mrb[37].mxu1  ;;  %v2791_v51 = vpop.f32.mrb[37].mxu0 }
 0x13f   :  { %v2728_v42 = vadd.f32 %v2727_v36, %v2726_v46  ;;  %v2792_v53 = vadd.f32 %v2791_v51, %v2790_v47  ;;  %v2729_v56 = vpop.f32.mrb[38].mxu1  ;;  %v2793_v57 = vpop.f32.mrb[38].mxu0 }
 0x140   :  { %v2730_v58 = vpop.f32.mrb[39].mxu1  ;;  %v2794_v59 = vpop.f32.mrb[39].mxu0 }
 0x141   :  { %v1752_v37 = vadd.f32 %v2728_v42, %v4051_v49  ;;  %v2731_v62 = vadd.f32 %v2730_v58, %v2729_v56  ;;  %v2795_v63 = vadd.f32 %v2794_v59, %v2793_v57 }
 0x143   :  { %v4092_v0 = vadd.f32 %v2792_v53, %v1752_v37  ;;  %v1755_v43 = vadd.f32 %v2731_v62, %v4053_v55 }
 0x145   :  { %v4095_v1 = vadd.f32 %v2795_v63, %v1755_v43  ;;  %v2732_v4 = vpop.f32.mrb[40].mxu1  ;;  %v2796_v5 = vpop.f32.mrb[40].mxu0 }
 0x146   :  { %v2733_v48 = vpop.f32.mrb[41].mxu1  ;;  %v2797_v7 = vpop.f32.mrb[41].mxu0 }
 0x147   :  { %v2734_v54 = vadd.f32 %v2733_v48, %v2732_v4  ;;  %v2798_v11 = vadd.f32 %v2797_v7, %v2796_v5  ;;  %v2735_v12 = vpop.f32.mrb[42].mxu1  ;;  %v2799_v13 = vpop.f32.mrb[42].mxu0 }
 0x148   :  { %v2736_v16 = vpop.f32.mrb[43].mxu1  ;;  %v2800_v17 = vpop.f32.mrb[43].mxu0 }
 0x149   :  { %v1760_v49 = vadd.f32 %v2734_v54, %v4055_v61  ;;  %v2737_v18 = vadd.f32 %v2736_v16, %v2735_v12  ;;  %v2801_v19 = vadd.f32 %v2800_v17, %v2799_v13 }
 0x14b   :  { %v4098_v20 = vadd.f32 %v2798_v11, %v1760_v49  ;;  %v1763_v55 = vadd.f32 %v2737_v18, %v4057_v3 }
 0x14d   :  { %v4101_v21 = vadd.f32 %v2801_v19, %v1763_v55  ;;  %v2738_v22 = vpop.f32.mrb[44].mxu1  ;;  %v2802_v60 = vpop.f32.mrb[44].mxu0 }
 0x14e   :  { %v2739_v23 = vpop.f32.mrb[45].mxu1  ;;  %v2803_v2 = vpop.f32.mrb[45].mxu0 }
 0x14f   :  { %v2740_v26 = vadd.f32 %v2739_v23, %v2738_v22  ;;  %v2804_v27 = vadd.f32 %v2803_v2, %v2802_v60  ;;  %v2741_v28 = vpop.f32.mrb[46].mxu1  ;;  %v2805_v30 = vpop.f32.mrb[46].mxu0 }
 0x150   :  { %v2742_v32 = vpop.f32.mrb[47].mxu1  ;;  %v2806_v33 = vpop.f32.mrb[47].mxu0 }
 0x151   :  { %v1768_v61 = vadd.f32 %v2740_v26, %v4061_v9  ;;  %v2743_v34 = vadd.f32 %v2742_v32, %v2741_v28  ;;  %v2807_v35 = vadd.f32 %v2806_v33, %v2805_v30 }
 0x153   :  { %v4104_v38 = vadd.f32 %v2804_v27, %v1768_v61  ;;  %v1771_v3 = vadd.f32 %v2743_v34, %v4065_v15 }
 0x155   :  { %v4107_v39 = vadd.f32 %v2807_v35, %v1771_v3  ;;  %v2824_v8 = vpop.f32.mrb[48].mxu1  ;;  %v2888_v40 = vpop.f32.mrb[48].mxu0 }
 0x156   :  { %v2825_v41 = vpop.f32.mrb[49].mxu1  ;;  %v2889_v14 = vpop.f32.mrb[49].mxu0 }
 0x157   :  { %v2826_v46 = vadd.f32 %v2825_v41, %v2824_v8  ;;  %v2890_v47 = vadd.f32 %v2889_v14, %v2888_v40  ;;  %v2827_v36 = vpop.f32.mrb[50].mxu1  ;;  %v2891_v51 = vpop.f32.mrb[50].mxu0 }
 0x158   :  { %v2828_v42 = vpop.f32.mrb[51].mxu1  ;;  %v2892_v53 = vpop.f32.mrb[51].mxu0 }
 0x159   :  { %v1906_v9 = vadd.f32 %v2826_v46, %v4067_v29  ;;  %v2829_v56 = vadd.f32 %v2828_v42, %v2827_v36  ;;  %v2893_v57 = vadd.f32 %v2892_v53, %v2891_v51 }
 0x15b   :  { %v4110_v58 = vadd.f32 %v2890_v47, %v1906_v9  ;;  %v1909_v15 = vadd.f32 %v2829_v56, %v4069_v31 }
 0x15d   :  { %v4113_v59 = vadd.f32 %v2893_v57, %v1909_v15  ;;  %v2830_v37 = vpop.f32.mrb[52].mxu1  ;;  %v2894_v62 = vpop.f32.mrb[52].mxu0 }
 0x15e   :  { %v2831_v63 = vpop.f32.mrb[53].mxu1  ;;  %v2895_v43 = vpop.f32.mrb[53].mxu0 }
 0x15f   :  { %v2832_v4 = vadd.f32 %v2831_v63, %v2830_v37  ;;  %v2896_v5 = vadd.f32 %v2895_v43, %v2894_v62  ;;  %v2833_v48 = vpop.f32.mrb[54].mxu1  ;;  %v2897_v7 = vpop.f32.mrb[54].mxu0 }
 0x160   :  { %v2834_v54 = vpop.f32.mrb[55].mxu1  ;;  %v2898_v11 = vpop.f32.mrb[55].mxu0 }
 0x161   :  { %v1914_v29 = vadd.f32 %v2832_v4, %v4071_v50  ;;  %v2835_v12 = vadd.f32 %v2834_v54, %v2833_v48  ;;  %v2899_v13 = vadd.f32 %v2898_v11, %v2897_v7 }
 0x163   :  { %v4116_v16 = vadd.f32 %v2896_v5, %v1914_v29  ;;  %v1917_v31 = vadd.f32 %v2835_v12, %v4073_v52 }
 0x165   :  { %v4119_v17 = vadd.f32 %v2899_v13, %v1917_v31  ;;  %v2836_v49 = vpop.f32.mrb[56].mxu1  ;;  %v2900_v18 = vpop.f32.mrb[56].mxu0 }
 0x166   :  { %v2837_v19 = vpop.f32.mrb[57].mxu1  ;;  %v2901_v55 = vpop.f32.mrb[57].mxu0 }
 0x167   :  { %v2838_v22 = vadd.f32 %v2837_v19, %v2836_v49  ;;  %v2902_v60 = vadd.f32 %v2901_v55, %v2900_v18  ;;  %v2839_v23 = vpop.f32.mrb[58].mxu1  ;;  %v2903_v2 = vpop.f32.mrb[58].mxu0 }
 0x168   :  { %v2840_v26 = vpop.f32.mrb[59].mxu1  ;;  %v2904_v27 = vpop.f32.mrb[59].mxu0 }
 0x169   :  { %v1922_v50 = vadd.f32 %v2838_v22, %v4075_v6  ;;  %v2841_v28 = vadd.f32 %v2840_v26, %v2839_v23  ;;  %v2905_v30 = vadd.f32 %v2904_v27, %v2903_v2 }
 0x16b   :  { %v4122_v32 = vadd.f32 %v2902_v60, %v1922_v50  ;;  %v1925_v52 = vadd.f32 %v2841_v28, %v4077_v10 }
 0x16d   :  { %v4125_v33 = vadd.f32 %v2905_v30, %v1925_v52  ;;  %v2842_v61 = vpop.f32.mrb[60].mxu1  ;;  %v2906_v34 = vpop.f32.mrb[60].mxu0 }
 0x16e   :  { %v2843_v35 = vpop.f32.mrb[61].mxu1  ;;  %v2907_v3 = vpop.f32.mrb[61].mxu0 }
 0x16f   :  { %v2844_v8 = vadd.f32 %v2843_v35, %v2842_v61  ;;  %v2908_v40 = vadd.f32 %v2907_v3, %v2906_v34  ;;  %v2845_v41 = vpop.f32.mrb[62].mxu1  ;;  %v2909_v14 = vpop.f32.mrb[62].mxu0 }
 0x170   :  { %v2846_v46 = vpop.f32.mrb[63].mxu1  ;;  %v2910_v47 = vpop.f32.mrb[63].mxu0 }
 0x171   :  { %v1930_v6 = vadd.f32 %v2844_v8, %v4080_v24  ;;  %v2847_v36 = vadd.f32 %v2846_v46, %v2845_v41  ;;  %v2911_v51 = vadd.f32 %v2910_v47, %v2909_v14 }
 0x173   :  { %v4128_v42 = vadd.f32 %v2908_v40, %v1930_v6  ;;  %v1933_v10 = vadd.f32 %v2847_v36, %v4083_v25 }
 0x175   :  { %v4131_v53 = vadd.f32 %v2911_v51, %v1933_v10  ;;  %v2848_v9 = vpop.f32.mrb[64].mxu1  ;;  %v2912_v56 = vpop.f32.mrb[64].mxu0 }
 0x176   :  { %v2849_v57 = vpop.f32.mrb[65].mxu1  ;;  %v2913_v15 = vpop.f32.mrb[65].mxu0 }
 0x177   :  { %v2850_v37 = vadd.f32 %v2849_v57, %v2848_v9  ;;  %v2914_v62 = vadd.f32 %v2913_v15, %v2912_v56  ;;  %v2851_v63 = vpop.f32.mrb[66].mxu1  ;;  %v2915_v43 = vpop.f32.mrb[66].mxu0 }
 0x178   :  { %v2852_v4 = vpop.f32.mrb[67].mxu1  ;;  %v2916_v5 = vpop.f32.mrb[67].mxu0 }
 0x179   :  { %v1938_v24 = vadd.f32 %v2850_v37, %v4086_v44  ;;  %v2853_v48 = vadd.f32 %v2852_v4, %v2851_v63  ;;  %v2917_v7 = vadd.f32 %v2916_v5, %v2915_v43 }
 0x17b   :  { %v4134_v54 = vadd.f32 %v2914_v62, %v1938_v24  ;;  %v1941_v25 = vadd.f32 %v2853_v48, %v4089_v45 }
 0x17d   :  { %v4137_v11 = vadd.f32 %v2917_v7, %v1941_v25  ;;  %v2854_v29 = vpop.f32.mrb[68].mxu1  ;;  %v2918_v12 = vpop.f32.mrb[68].mxu0 }
 0x17e   :  { %v2855_v13 = vpop.f32.mrb[69].mxu1  ;;  %v2919_v31 = vpop.f32.mrb[69].mxu0 }
 0x17f   :  { %v2856_v49 = vadd.f32 %v2855_v13, %v2854_v29  ;;  %v2920_v18 = vadd.f32 %v2919_v31, %v2918_v12  ;;  %v2857_v19 = vpop.f32.mrb[70].mxu1  ;;  %v2921_v55 = vpop.f32.mrb[70].mxu0 }
 0x180   :  { %v2858_v22 = vpop.f32.mrb[71].mxu1  ;;  %v2922_v60 = vpop.f32.mrb[71].mxu0 }
 0x181   :  { %v1946_v44 = vadd.f32 %v2856_v49, %v4092_v0  ;;  %v2859_v23 = vadd.f32 %v2858_v22, %v2857_v19  ;;  %v2923_v2 = vadd.f32 %v2922_v60, %v2921_v55 }
 0x183   :  { %v4140_v26 = vadd.f32 %v2920_v18, %v1946_v44  ;;  %v1949_v45 = vadd.f32 %v2859_v23, %v4095_v1 }
 0x185   :  { %v4143_v27 = vadd.f32 %v2923_v2, %v1949_v45  ;;  %v2860_v50 = vpop.f32.mrb[72].mxu1  ;;  %v2924_v28 = vpop.f32.mrb[72].mxu0 }
 0x186   :  { %v2861_v30 = vpop.f32.mrb[73].mxu1  ;;  %v2925_v52 = vpop.f32.mrb[73].mxu0 }
 0x187   :  { %v2862_v61 = vadd.f32 %v2861_v30, %v2860_v50  ;;  %v2926_v34 = vadd.f32 %v2925_v52, %v2924_v28  ;;  %v2863_v35 = vpop.f32.mrb[74].mxu1  ;;  %v2927_v3 = vpop.f32.mrb[74].mxu0 }
 0x188   :  { %v2864_v8 = vpop.f32.mrb[75].mxu1  ;;  %v2928_v40 = vpop.f32.mrb[75].mxu0 }
 0x189   :  { %v1954_v0 = vadd.f32 %v2862_v61, %v4098_v20  ;;  %v2865_v41 = vadd.f32 %v2864_v8, %v2863_v35  ;;  %v2929_v14 = vadd.f32 %v2928_v40, %v2927_v3 }
 0x18b   :  { %v4146_v46 = vadd.f32 %v2926_v34, %v1954_v0  ;;  %v1957_v1 = vadd.f32 %v2865_v41, %v4101_v21 }
 0x18d   :  { %v4149_v47 = vadd.f32 %v2929_v14, %v1957_v1  ;;  %v2866_v6 = vpop.f32.mrb[76].mxu1  ;;  %v2930_v36 = vpop.f32.mrb[76].mxu0 }
 0x18e   :  { %v2867_v51 = vpop.f32.mrb[77].mxu1  ;;  %v2931_v10 = vpop.f32.mrb[77].mxu0 }
 0x18f   :  { %v2868_v9 = vadd.f32 %v2867_v51, %v2866_v6  ;;  %v2932_v56 = vadd.f32 %v2931_v10, %v2930_v36  ;;  %v2869_v57 = vpop.f32.mrb[78].mxu1  ;;  %v2933_v15 = vpop.f32.mrb[78].mxu0 }
 0x190   :  { %v2870_v37 = vpop.f32.mrb[79].mxu1  ;;  %v2934_v62 = vpop.f32.mrb[79].mxu0 }
 0x191   :  { %v1962_v20 = vadd.f32 %v2868_v9, %v4104_v38  ;;  %v2871_v63 = vadd.f32 %v2870_v37, %v2869_v57  ;;  %v2935_v43 = vadd.f32 %v2934_v62, %v2933_v15 }
 0x193   :  { %v4152_v4 = vadd.f32 %v2932_v56, %v1962_v20  ;;  %v1965_v21 = vadd.f32 %v2871_v63, %v4107_v39 }
 0x195   :  { %v4155_v5 = vadd.f32 %v2935_v43, %v1965_v21  ;;  %v2952_v24 = vpop.f32.mrb[80].mxu1  ;;  %v3016_v48 = vpop.f32.mrb[80].mxu0 }
 0x196   :  { %v2953_v7 = vpop.f32.mrb[81].mxu1  ;;  %v3017_v25 = vpop.f32.mrb[81].mxu0 }
 0x197   :  { %v2954_v29 = vadd.f32 %v2953_v7, %v2952_v24  ;;  %v3018_v12 = vadd.f32 %v3017_v25, %v3016_v48  ;;  %v2955_v13 = vpop.f32.mrb[82].mxu1  ;;  %v3019_v31 = vpop.f32.mrb[82].mxu0 }
 0x198   :  { %v2956_v49 = vpop.f32.mrb[83].mxu1  ;;  %v3020_v18 = vpop.f32.mrb[83].mxu0 }
 0x199   :  { %v2100_v38 = vadd.f32 %v2954_v29, %v4110_v58  ;;  %v2957_v19 = vadd.f32 %v2956_v49, %v2955_v13  ;;  %v3021_v55 = vadd.f32 %v3020_v18, %v3019_v31 }
 0x19b   :  { %v2197_v22 = vadd.f32 %v3018_v12, %v2100_v38  ;;  %v2103_v60 = vadd.f32 %v2957_v19, %v4113_v59 }
 0x19d   :  { %v2259_v39 = vmax.f32 %v2197_v22, 0.0  ;;  %v2200_v44 = vadd.f32 %v3021_v55, %v2103_v60  ;;  %v2958_v23 = vpop.f32.mrb[84].mxu1  ;;  %v3022_v2 = vpop.f32.mrb[84].mxu0 }
 0x19e   :  { %v2959_v45 = vpop.f32.mrb[85].mxu1  ;;  %v3023_v50 = vpop.f32.mrb[85].mxu0 }
 0x19f   :  { %v2600_v28 = vpack.c.bf16 %v2259_v39, %v2259_v39  ;;  %v2260_v30 = vmax.f32 %v2200_v44, 0.0  ;;  %v2960_v52 = vadd.f32 %v2959_v45, %v2958_v23  ;;  %v3024_v61 = vadd.f32 %v3023_v50, %v3022_v2  ;;  %v2961_v34 = vpop.f32.mrb[86].mxu1  ;;  %v3025_v35 = vpop.f32.mrb[86].mxu0 }
 0x1a0   :  { %v2962_v3 = vpop.f32.mrb[87].mxu1  ;;  %v3026_v58 = vpop.f32.mrb[87].mxu0 }
 0x1a1   :  { %2340 = vst.msk [vmem:[%s4239_s2] sm:$0xf] %vm2339_vm0, %v2600_v28  ;;  %v2601_v59 = vpack.c.bf16 %v2260_v30, %v2260_v30  ;;  %v2108_v8 = vadd.f32 %v2960_v52, %v4116_v16  ;;  %v2963_v40 = vadd.f32 %v2962_v3, %v2961_v34  ;;  %v3027_v0 = vadd.f32 %v3026_v58, %v3025_v35 }
 0x1a3   :  { %2341 = vst.msk [vmem:[%s4239_s2 + $0x4] sm:$0xf] %vm2339_vm0, %v2601_v59  ;;  %v2205_v41 = vadd.f32 %v3024_v61, %v2108_v8  ;;  %v2111_v14 = vadd.f32 %v2963_v40, %v4119_v17 }
 0x1a5   :  { %v2261_v1 = vmax.f32 %v2205_v41, 0.0  ;;  %v2208_v6 = vadd.f32 %v3027_v0, %v2111_v14  ;;  %v2964_v36 = vpop.f32.mrb[88].mxu1  ;;  %v3028_v51 = vpop.f32.mrb[88].mxu0 }
 0x1a6   :  { %v2965_v10 = vpop.f32.mrb[89].mxu1  ;;  %v3029_v9 = vpop.f32.mrb[89].mxu0 }
 0x1a7   :  { %v2602_v56 = vpack.c.bf16 %v2261_v1, %v2261_v1  ;;  %v2262_v57 = vmax.f32 %v2208_v6, 0.0  ;;  %v2966_v15 = vadd.f32 %v2965_v10, %v2964_v36  ;;  %v3030_v16 = vadd.f32 %v3029_v9, %v3028_v51  ;;  %v2967_v37 = vpop.f32.mrb[90].mxu1  ;;  %v3031_v62 = vpop.f32.mrb[90].mxu0 }
 0x1a8   :  { %v2968_v20 = vpop.f32.mrb[91].mxu1  ;;  %v3032_v63 = vpop.f32.mrb[91].mxu0 }
 0x1a9   :  { %2342 = vst.msk [vmem:[%s4239_s2 + $0x8] sm:$0xf] %vm2339_vm0, %v2602_v56  ;;  %v2603_v17 = vpack.c.bf16 %v2262_v57, %v2262_v57  ;;  %v2116_v43 = vadd.f32 %v2966_v15, %v4122_v32  ;;  %v2969_v21 = vadd.f32 %v2968_v20, %v2967_v37  ;;  %v3033_v24 = vadd.f32 %v3032_v63, %v3031_v62 }
 0x1ab   :  { %2343 = vst.msk [vmem:[%s4239_s2 + $0xc] sm:$0xf] %vm2339_vm0, %v2603_v17  ;;  %v2213_v48 = vadd.f32 %v3030_v16, %v2116_v43  ;;  %v2119_v7 = vadd.f32 %v2969_v21, %v4125_v33 }
 0x1ad   :  { %v2263_v25 = vmax.f32 %v2213_v48, 0.0  ;;  %v2216_v29 = vadd.f32 %v3033_v24, %v2119_v7  ;;  %v2970_v12 = vpop.f32.mrb[92].mxu1  ;;  %v3034_v13 = vpop.f32.mrb[92].mxu0 }
 0x1ae   :  { %v2971_v31 = vpop.f32.mrb[93].mxu1  ;;  %v3035_v49 = vpop.f32.mrb[93].mxu0 }
 0x1af   :  { %v2604_v18 = vpack.c.bf16 %v2263_v25, %v2263_v25  ;;  %v2264_v38 = vmax.f32 %v2216_v29, 0.0  ;;  %v2972_v19 = vadd.f32 %v2971_v31, %v2970_v12  ;;  %v3036_v32 = vadd.f32 %v3035_v49, %v3034_v13  ;;  %v2973_v55 = vpop.f32.mrb[94].mxu1  ;;  %v3037_v22 = vpop.f32.mrb[94].mxu0 }
 0x1b0   :  { %v2974_v60 = vpop.f32.mrb[95].mxu1  ;;  %v3038_v39 = vpop.f32.mrb[95].mxu0 }
 0x1b1   :  { %2344 = vst.msk [vmem:[%s4239_s2 + $0x10] sm:$0xf] %vm2339_vm0, %v2604_v18  ;;  %v2605_v33 = vpack.c.bf16 %v2264_v38, %v2264_v38  ;;  %v2124_v44 = vadd.f32 %v2972_v19, %v4128_v42  ;;  %v2975_v23 = vadd.f32 %v2974_v60, %v2973_v55  ;;  %v3039_v2 = vadd.f32 %v3038_v39, %v3037_v22 }
 0x1b3   :  { %2345 = vst.msk [vmem:[%s4239_s2 + $0x14] sm:$0xf] %vm2339_vm0, %v2605_v33  ;;  %v2221_v45 = vadd.f32 %v3036_v32, %v2124_v44  ;;  %v2127_v50 = vadd.f32 %v2975_v23, %v4131_v53 }
 0x1b5   :  { %v2265_v28 = vmax.f32 %v2221_v45, 0.0  ;;  %v2224_v30 = vadd.f32 %v3039_v2, %v2127_v50  ;;  %v2976_v52 = vpop.f32.mrb[96].mxu1  ;;  %v3040_v61 = vpop.f32.mrb[96].mxu0 }
 0x1b6   :  { %v2977_v34 = vpop.f32.mrb[97].mxu1  ;;  %v3041_v35 = vpop.f32.mrb[97].mxu0 }
 0x1b7   :  { %v2606_v3 = vpack.c.bf16 %v2265_v28, %v2265_v28  ;;  %v2266_v58 = vmax.f32 %v2224_v30, 0.0  ;;  %v2978_v59 = vadd.f32 %v2977_v34, %v2976_v52  ;;  %v3042_v42 = vadd.f32 %v3041_v35, %v3040_v61  ;;  %v2979_v8 = vpop.f32.mrb[98].mxu1  ;;  %v3043_v40 = vpop.f32.mrb[98].mxu0 }
 0x1b8   :  { %v2980_v0 = vpop.f32.mrb[99].mxu1  ;;  %v3044_v41 = vpop.f32.mrb[99].mxu0 }
 0x1b9   :  { %2346 = vst.msk [vmem:[%s4239_s2 + $0x18] sm:$0xf] %vm2339_vm0, %v2606_v3  ;;  %v2607_v53 = vpack.c.bf16 %v2266_v58, %v2266_v58  ;;  %v2132_v14 = vadd.f32 %v2978_v59, %v4134_v54  ;;  %v2981_v1 = vadd.f32 %v2980_v0, %v2979_v8  ;;  %v3045_v6 = vadd.f32 %v3044_v41, %v3043_v40 }
 0x1bb   :  { %2347 = vst.msk [vmem:[%s4239_s2 + $0x1c] sm:$0xf] %vm2339_vm0, %v2607_v53  ;;  %v2229_v36 = vadd.f32 %v3042_v42, %v2132_v14  ;;  %v2135_v51 = vadd.f32 %v2981_v1, %v4137_v11 }
 0x1bd   :  { %v2267_v10 = vmax.f32 %v2229_v36, 0.0  ;;  %v2232_v9 = vadd.f32 %v3045_v6, %v2135_v51  ;;  %v2982_v56 = vpop.f32.mrb[100].mxu1  ;;  %v3046_v57 = vpop.f32.mrb[100].mxu0 }
 0x1be   :  { %v2983_v15 = vpop.f32.mrb[101].mxu1  ;;  %v3047_v16 = vpop.f32.mrb[101].mxu0 }
 0x1bf   :  { %v2608_v37 = vpack.c.bf16 %v2267_v10, %v2267_v10  ;;  %v2268_v62 = vmax.f32 %v2232_v9, 0.0  ;;  %v2984_v20 = vadd.f32 %v2983_v15, %v2982_v56  ;;  %v3048_v54 = vadd.f32 %v3047_v16, %v3046_v57  ;;  %v2985_v63 = vpop.f32.mrb[102].mxu1  ;;  %v3049_v17 = vpop.f32.mrb[102].mxu0 }
 0x1c0   :  { %v2986_v43 = vpop.f32.mrb[103].mxu1  ;;  %v3050_v21 = vpop.f32.mrb[103].mxu0 }
 0x1c1   :  { %2348 = vst.msk [vmem:[%s4239_s2 + $0x20] sm:$0xf] %vm2339_vm0, %v2608_v37  ;;  %v2609_v11 = vpack.c.bf16 %v2268_v62, %v2268_v62  ;;  %v2140_v24 = vadd.f32 %v2984_v20, %v4140_v26  ;;  %v2987_v48 = vadd.f32 %v2986_v43, %v2985_v63  ;;  %v3051_v7 = vadd.f32 %v3050_v21, %v3049_v17 }
 0x1c3   :  { %2349 = vst.msk [vmem:[%s4239_s2 + $0x24] sm:$0xf] %vm2339_vm0, %v2609_v11  ;;  %v2237_v25 = vadd.f32 %v3048_v54, %v2140_v24  ;;  %v2143_v29 = vadd.f32 %v2987_v48, %v4143_v27 }
 0x1c5   :  { %v2269_v12 = vmax.f32 %v2237_v25, 0.0  ;;  %v2240_v13 = vadd.f32 %v3051_v7, %v2143_v29  ;;  %v2988_v31 = vpop.f32.mrb[104].mxu1  ;;  %v3052_v49 = vpop.f32.mrb[104].mxu0 }
 0x1c6   :  { %v2989_v18 = vpop.f32.mrb[105].mxu1  ;;  %v3053_v38 = vpop.f32.mrb[105].mxu0 }
 0x1c7   :  { %v2610_v19 = vpack.c.bf16 %v2269_v12, %v2269_v12  ;;  %v2270_v32 = vmax.f32 %v2240_v13, 0.0  ;;  %v2990_v55 = vadd.f32 %v2989_v18, %v2988_v31  ;;  %v3054_v26 = vadd.f32 %v3053_v38, %v3052_v49  ;;  %v2991_v22 = vpop.f32.mrb[106].mxu1  ;;  %v3055_v60 = vpop.f32.mrb[106].mxu0 }
 0x1c8   :  { %v2992_v39 = vpop.f32.mrb[107].mxu1  ;;  %v3056_v33 = vpop.f32.mrb[107].mxu0 }
 0x1c9   :  { %2350 = vst.msk [vmem:[%s4239_s2 + $0x28] sm:$0xf] %vm2339_vm0, %v2610_v19  ;;  %v2611_v27 = vpack.c.bf16 %v2270_v32, %v2270_v32  ;;  %v2148_v44 = vadd.f32 %v2990_v55, %v4146_v46  ;;  %v2993_v23 = vadd.f32 %v2992_v39, %v2991_v22  ;;  %v3057_v2 = vadd.f32 %v3056_v33, %v3055_v60 }
 0x1cb   :  { %2351 = vst.msk [vmem:[%s4239_s2 + $0x2c] sm:$0xf] %vm2339_vm0, %v2611_v27  ;;  %v2245_v45 = vadd.f32 %v3054_v26, %v2148_v44  ;;  %v2151_v50 = vadd.f32 %v2993_v23, %v4149_v47 }
 0x1cd   :  { %v2271_v28 = vmax.f32 %v2245_v45, 0.0  ;;  %v2248_v30 = vadd.f32 %v3057_v2, %v2151_v50  ;;  %v2994_v52 = vpop.f32.mrb[108].mxu1  ;;  %v3058_v61 = vpop.f32.mrb[108].mxu0 }
 0x1ce   :  { %v2995_v34 = vpop.f32.mrb[109].mxu1  ;;  %v3059_v35 = vpop.f32.mrb[109].mxu0 }
 0x1cf   :  { %v2612_v3 = vpack.c.bf16 %v2271_v28, %v2271_v28  ;;  %v2272_v58 = vmax.f32 %v2248_v30, 0.0  ;;  %v2996_v59 = vadd.f32 %v2995_v34, %v2994_v52  ;;  %v3060_v46 = vadd.f32 %v3059_v35, %v3058_v61  ;;  %v2997_v42 = vpop.f32.mrb[110].mxu1  ;;  %v3061_v8 = vpop.f32.mrb[110].mxu0 }
 0x1d0   :  { %v2998_v40 = vpop.f32.mrb[111].mxu1  ;;  %v3062_v0 = vpop.f32.mrb[111].mxu0 }
 0x1d1   :  { %2352 = vst.msk [vmem:[%s4239_s2 + $0x30] sm:$0xf] %vm2339_vm0, %v2612_v3  ;;  %v2613_v47 = vpack.c.bf16 %v2272_v58, %v2272_v58  ;;  %v2156_v41 = vadd.f32 %v2996_v59, %v4152_v4  ;;  %v2999_v53 = vadd.f32 %v2998_v40, %v2997_v42  ;;  %v3063_v14 = vadd.f32 %v3062_v0, %v3061_v8 }
 0x1d3   :  { %2353 = vst.msk [vmem:[%s4239_s2 + $0x34] sm:$0xf] %vm2339_vm0, %v2613_v47  ;;  %v2253_v1 = vadd.f32 %v3060_v46, %v2156_v41  ;;  %v2159_v6 = vadd.f32 %v2999_v53, %v4155_v5 }
 0x1d5   :  { %v2273_v36 = vmax.f32 %v2253_v1, 0.0  ;;  %v2256_v51 = vadd.f32 %v3063_v14, %v2159_v6 }
 0x1d7   :  { %v2614_v10 = vpack.c.bf16 %v2273_v36, %v2273_v36  ;;  %v2274_v9 = vmax.f32 %v2256_v51, 0.0 }
 0x1d9   :  { %2354 = vst.msk [vmem:[%s4239_s2 + $0x38] sm:$0xf] %vm2339_vm0, %v2614_v10  ;;  %v2615_v4 = vpack.c.bf16 %v2274_v9, %v2274_v9 }
 0x1db   :  { %2355 = vst.msk [vmem:[%s4239_s2 + $0x3c] sm:$0xf] %vm2339_vm0, %v2615_v4 }

// kernel: cnn_forward.44
= control target key start
LH: loop header
LB: loop body
LE: loop exit
PB: predicated region body
PF: predicated region fallthrough
CT: control target
= control target key end

     0   :  { %v455_v1 = vmov 0   ;;  %vm116_vm0 = vcmask 523264   ;;  %s575_s1 = inlined_call_operand.vmem [shape: bf16[64,256], index: 1, kind: input, shape index: {}]   ;;  %s576_s0 = inlined_call_operand.vmem [shape: bf16[128,64], index: 0, kind: input, shape index: {}]   ;;  %s577_s2 = inlined_call_operand.vmem [shape: bf16[128,256], index: 2, kind: output, shape index: {}]  }
   0x1   :  { %v435_v0 = vld [vmem:[%s575_s1 + $0x4] ss:$8 sps:$4 sm:$0xff]   ;;  %173 = vmatprep.mubr.bf16.mxu0 %v455_v1  ;;  %213 = vmatprep.mubr.bf16.mxu1 %v455_v1  ;;  %v437_v2 = vld [vmem:[%s575_s1] ss:$8 sps:$4 sm:$0xff]   ;;  %v438_v3 = vld [vmem:[%s575_s1 + $0x14] ss:$8 sps:$4 sm:$0xff]  }
   0x2   :  { %141 = vmatprep.subr.bf16.mxu0 %v435_v0  ;;  %426 = vmatprep.subr.bf16.mxu1 %v435_v0  ;;  %v440_v4 = vld [vmem:[%s575_s1 + $0x10] ss:$8 sps:$4 sm:$0xff]   ;;  %v441_v5 = vld [vmem:[%s575_s1 + $0x24] ss:$8 sps:$4 sm:$0xff]   ;;  %v443_v6 = vld [vmem:[%s575_s1 + $0x20] ss:$8 sps:$4 sm:$0xff]  }
   0x3   :  { %142 = vmatpush1.bf16.msra.mxu0 %v437_v2  ;;  %430 = vmatpush1.bf16.msra.mxu1 %v437_v2  ;;  %v444_v7 = vld [vmem:[%s575_s1 + $0x34] ss:$8 sps:$4 sm:$0xff]   ;;  %v446_v8 = vld [vmem:[%s575_s1 + $0x30] ss:$8 sps:$4 sm:$0xff]   ;;  %v447_v9 = vld [vmem:[%s576_s0] sm:$0xff]  }
   0x4   :  { %143 = vmatprep.subr.bf16.mxu0 %v438_v3  ;;  %427 = vmatprep.subr.bf16.mxu1 %v438_v3  ;;  %v448_v10 = vld [vmem:[%s576_s0 + $0x20] sm:$0xff]   ;;  %v449_v11 = vld [vmem:[%s576_s0 + $0x8] sm:$0xff]   ;;  %v451_v13 = vld [vmem:[%s576_s0 + $0x10] sm:$0xff]  }
   0x5   :  { %v450_v12 = vld [vmem:[%s576_s0 + $0x28] sm:$0xff]   ;;  %v452_v14 = vld [vmem:[%s576_s0 + $0x30] sm:$0xff]   ;;  %v453_v15 = vld [vmem:[%s576_s0 + $0x18] sm:$0xff]  }
   0x6   :  { %v454_v16 = vld [vmem:[%s576_s0 + $0x38] sm:$0xff]  }
   0x7   :  { %144 = vmatpush1.bf16.msra.mxu0 %v440_v4  ;;  %431 = vmatpush1.bf16.msra.mxu1 %v440_v4 }
   0x8   :  { %145 = vmatprep.subr.bf16.mxu0 %v441_v5  ;;  %428 = vmatprep.subr.bf16.mxu1 %v441_v5 }
   0xb   :  { %146 = vmatpush1.bf16.msra.mxu0 %v443_v6  ;;  %432 = vmatpush1.bf16.msra.mxu1 %v443_v6 }
   0xc   :  { %147 = vmatprep.subr.bf16.mxu0 %v444_v7  ;;  %429 = vmatprep.subr.bf16.mxu1 %v444_v7 }
   0xf   :  { %148 = vmatpush1.bf16.msra.mxu0 %v446_v8  ;;  %433 = vmatpush1.bf16.msra.mxu1 %v446_v8 }
  0x12   :  { %386 = vmatmul.mubr.msk.bf16.vlgmr.msra.gmra.mrb[0].mxu0 %vm116_vm0, %v447_v9  ;;  %390 = vmatmul.mubr.msk.bf16.vlgmr.msra.gmra.mrb[0].mxu1 %vm116_vm0, %v448_v10 }
  0x13   :  { %183 = vmatprep.mubr.bf16.mxu0 %v455_v1  ;;  %223 = vmatprep.mubr.bf16.mxu1 %v455_v1 }
  0x1a   :  { %387 = vmatmul.mubr.msk.bf16.gmra.mrb[4].mxu0 %vm116_vm0, %v449_v11  ;;  %391 = vmatmul.mubr.msk.bf16.gmra.mrb[4].mxu1 %vm116_vm0, %v450_v12 }
  0x1b   :  { %193 = vmatprep.mubr.bf16.mxu0 %v455_v1  ;;  %233 = vmatprep.mubr.bf16.mxu1 %v455_v1 }
  0x22   :  { %388 = vmatmul.mubr.msk.bf16.gmra.mrb[8].mxu0 %vm116_vm0, %v451_v13  ;;  %392 = vmatmul.mubr.msk.bf16.gmra.mrb[8].mxu1 %vm116_vm0, %v452_v14 }
  0x23   :  { %203 = vmatprep.mubr.bf16.mxu0 %v455_v1  ;;  %243 = vmatprep.mubr.bf16.mxu1 %v455_v1 }
  0x2a   :  { %389 = vmatmul.mubr.msk.bf16.gmra.mrb[12].mxu0 %vm116_vm0, %v453_v15  ;;  %393 = vmatmul.mubr.msk.bf16.gmra.mrb[12].mxu1 %vm116_vm0, %v454_v16 }
  0xe5   :  { %v175_v17 = vpop.f32.mrb[0].mxu0  ;;  %v215_v18 = vpop.f32.mrb[0].mxu1 }
  0xe6   :  { %v177_v19 = vpop.f32.mrb[1].mxu0  ;;  %v217_v20 = vpop.f32.mrb[1].mxu1 }
  0xe7   :  { %v410_v21 = vpack.c.bf16 %v177_v19, %v175_v17  ;;  %v418_v22 = vpack.c.bf16 %v217_v20, %v215_v18  ;;  %v179_v23 = vpop.f32.mrb[2].mxu0  ;;  %v219_v24 = vpop.f32.mrb[2].mxu1 }
  0xe8   :  { %v181_v25 = vpop.f32.mrb[3].mxu0  ;;  %v221_v26 = vpop.f32.mrb[3].mxu1 }
  0xe9   :  { %350 = vst [vmem:[%s577_s2] sm:$0xff] %v410_v21  ;;  %358 = vst [vmem:[%s577_s2 + $0x40] sm:$0xff] %v418_v22  ;;  %v411_v27 = vpack.c.bf16 %v181_v25, %v179_v23  ;;  %v419_v28 = vpack.c.bf16 %v221_v26, %v219_v24 }
  0xeb   :  { %351 = vst [vmem:[%s577_s2 + $0x8] sm:$0xff] %v411_v27  ;;  %359 = vst [vmem:[%s577_s2 + $0x48] sm:$0xff] %v419_v28 }
  0xed   :  { %v185_v29 = vpop.f32.mrb[4].mxu0  ;;  %v225_v30 = vpop.f32.mrb[4].mxu1 }
  0xee   :  { %v187_v31 = vpop.f32.mrb[5].mxu0  ;;  %v227_v32 = vpop.f32.mrb[5].mxu1 }
  0xef   :  { %v412_v33 = vpack.c.bf16 %v187_v31, %v185_v29  ;;  %v420_v34 = vpack.c.bf16 %v227_v32, %v225_v30  ;;  %v189_v35 = vpop.f32.mrb[6].mxu0  ;;  %v229_v36 = vpop.f32.mrb[6].mxu1 }
  0xf0   :  { %v191_v37 = vpop.f32.mrb[7].mxu0  ;;  %v231_v38 = vpop.f32.mrb[7].mxu1 }
  0xf1   :  { %352 = vst [vmem:[%s577_s2 + $0x10] sm:$0xff] %v412_v33  ;;  %360 = vst [vmem:[%s577_s2 + $0x50] sm:$0xff] %v420_v34  ;;  %v413_v39 = vpack.c.bf16 %v191_v37, %v189_v35  ;;  %v421_v40 = vpack.c.bf16 %v231_v38, %v229_v36 }
  0xf3   :  { %353 = vst [vmem:[%s577_s2 + $0x18] sm:$0xff] %v413_v39  ;;  %361 = vst [vmem:[%s577_s2 + $0x58] sm:$0xff] %v421_v40 }
  0xf5   :  { %v195_v41 = vpop.f32.mrb[8].mxu0  ;;  %v235_v42 = vpop.f32.mrb[8].mxu1 }
  0xf6   :  { %v197_v43 = vpop.f32.mrb[9].mxu0  ;;  %v237_v44 = vpop.f32.mrb[9].mxu1 }
  0xf7   :  { %v414_v45 = vpack.c.bf16 %v197_v43, %v195_v41  ;;  %v422_v46 = vpack.c.bf16 %v237_v44, %v235_v42  ;;  %v199_v47 = vpop.f32.mrb[10].mxu0  ;;  %v239_v48 = vpop.f32.mrb[10].mxu1 }
  0xf8   :  { %v201_v49 = vpop.f32.mrb[11].mxu0  ;;  %v241_v50 = vpop.f32.mrb[11].mxu1 }
  0xf9   :  { %354 = vst [vmem:[%s577_s2 + $0x20] sm:$0xff] %v414_v45  ;;  %362 = vst [vmem:[%s577_s2 + $0x60] sm:$0xff] %v422_v46  ;;  %v415_v51 = vpack.c.bf16 %v201_v49, %v199_v47  ;;  %v423_v52 = vpack.c.bf16 %v241_v50, %v239_v48 }
  0xfb   :  { %355 = vst [vmem:[%s577_s2 + $0x28] sm:$0xff] %v415_v51  ;;  %363 = vst [vmem:[%s577_s2 + $0x68] sm:$0xff] %v423_v52 }
  0xfd   :  { %v205_v53 = vpop.f32.mrb[12].mxu0  ;;  %v245_v54 = vpop.f32.mrb[12].mxu1 }
  0xfe   :  { %v207_v55 = vpop.f32.mrb[13].mxu0  ;;  %v247_v56 = vpop.f32.mrb[13].mxu1 }
  0xff   :  { %v416_v57 = vpack.c.bf16 %v207_v55, %v205_v53  ;;  %v424_v58 = vpack.c.bf16 %v247_v56, %v245_v54  ;;  %v209_v59 = vpop.f32.mrb[14].mxu0  ;;  %v249_v60 = vpop.f32.mrb[14].mxu1 }
 0x100   :  { %v211_v61 = vpop.f32.mrb[15].mxu0  ;;  %v251_v62 = vpop.f32.mrb[15].mxu1 }
 0x101   :  { %356 = vst [vmem:[%s577_s2 + $0x30] sm:$0xff] %v416_v57  ;;  %364 = vst [vmem:[%s577_s2 + $0x70] sm:$0xff] %v424_v58  ;;  %v417_v63 = vpack.c.bf16 %v211_v61, %v209_v59  ;;  %v425_v0 = vpack.c.bf16 %v251_v62, %v249_v60 }
 0x103   :  { %357 = vst [vmem:[%s577_s2 + $0x38] sm:$0xff] %v417_v63  ;;  %365 = vst [vmem:[%s577_s2 + $0x78] sm:$0xff] %v425_v0 }

// kernel: cnn_forward.46
= control target key start
LH: loop header
LB: loop body
LE: loop exit
PB: predicated region body
PF: predicated region fallthrough
CT: control target
= control target key end

     0   :  { %vm413_vm0 = vcmask 519168   ;;  %s793_s1 = inlined_call_operand.vmem [shape: bf16[256,64], index: 1, kind: input, shape index: {}]   ;;  %s794_s0 = inlined_call_operand.vmem [shape: bf16[128,256], index: 0, kind: input, shape index: {}]   ;;  %s795_s2 = inlined_call_operand.vmem [shape: bf16[128,64], index: 2, kind: output, shape index: {}]  }
   0x1   :  { %v578_v0 = vld [vmem:[%s793_s1 + $0x40] sm:$0xff]   ;;  %v580_v2 = vld [vmem:[%s793_s1 + $0x48] sm:$0xff]   ;;  %v582_v4 = vld [vmem:[%s793_s1 + $0x50] sm:$0xff]  }
   0x2   :  { %v579_v1 = vld [vmem:[%s793_s1] sm:$0xff]   ;;  %498 = vmatprep.subr.bf16.mxu0 %v578_v0  ;;  %562 = vmatprep.subr.bf16.mxu1 %v578_v0  ;;  %v581_v3 = vld [vmem:[%s793_s1 + $0x8] sm:$0xff]   ;;  %v583_v5 = vld [vmem:[%s793_s1 + $0x10] sm:$0xff]  }
   0x3   :  { %499 = vmatpush3.bf16.msra.mxu0 %v579_v1  ;;  %570 = vmatpush3.bf16.msra.mxu1 %v579_v1  ;;  %v584_v6 = vld [vmem:[%s793_s1 + $0x58] sm:$0xff]   ;;  %v586_v8 = vld [vmem:[%s793_s1 + $0x60] sm:$0xff]   ;;  %v588_v10 = vld [vmem:[%s793_s1 + $0x68] sm:$0xff]  }
   0x4   :  { %500 = vmatprep.subr.bf16.mxu0 %v580_v2  ;;  %563 = vmatprep.subr.bf16.mxu1 %v580_v2  ;;  %v585_v7 = vld [vmem:[%s793_s1 + $0x18] sm:$0xff]   ;;  %v587_v9 = vld [vmem:[%s793_s1 + $0x20] sm:$0xff]   ;;  %v589_v13 = vld [vmem:[%s793_s1 + $0x28] sm:$0xff]  }
   0x5   :  { %v596_v11 = vld [vmem:[%s794_s0 + $0x4] ss:$8 sps:$4 sm:$0xff]   ;;  %v590_v14 = vld [vmem:[%s793_s1 + $0x70] sm:$0xff]   ;;  %v592_v16 = vld [vmem:[%s793_s1 + $0x78] sm:$0xff]  }
   0x6   :  { %v599_v12 = vld [vmem:[%s794_s0 + $0x44] ss:$8 sps:$4 sm:$0xff]   ;;  %268 = vmatprep.mubr.bf16.mxu0 %v596_v11  ;;  %v591_v15 = vld [vmem:[%s793_s1 + $0x30] sm:$0xff]   ;;  %v593_v17 = vld [vmem:[%s793_s1 + $0x38] sm:$0xff]  }
   0x7   :  { %501 = vmatpush3.bf16.msra.mxu0 %v581_v3  ;;  %571 = vmatpush3.bf16.msra.mxu1 %v581_v3  ;;  %v594_v18 = vld [vmem:[%s794_s0] ss:$8 sps:$4 sm:$0xff]   ;;  %v600_v20 = vld [vmem:[%s794_s0 + $0x14] ss:$8 sps:$4 sm:$0xff]   ;;  %v604_v22 = vld [vmem:[%s794_s0 + $0x10] ss:$8 sps:$4 sm:$0xff]  }
   0x8   :  { %502 = vmatprep.subr.bf16.mxu0 %v582_v4  ;;  %564 = vmatprep.subr.bf16.mxu1 %v582_v4  ;;  %v597_v19 = vld [vmem:[%s794_s0 + $0x40] ss:$8 sps:$4 sm:$0xff]   ;;  %v602_v21 = vld [vmem:[%s794_s0 + $0x54] ss:$8 sps:$4 sm:$0xff]   ;;  %v605_v23 = vld [vmem:[%s794_s0 + $0x50] ss:$8 sps:$4 sm:$0xff]  }
   0x9   :  { %300 = vmatprep.mubr.bf16.mxu1 %v599_v12  ;;  %v606_v24 = vld [vmem:[%s794_s0 + $0x24] ss:$8 sps:$4 sm:$0xff]   ;;  %v610_v26 = vld [vmem:[%s794_s0 + $0x20] ss:$8 sps:$4 sm:$0xff]   ;;  %v612_v28 = vld [vmem:[%s794_s0 + $0x34] ss:$8 sps:$4 sm:$0xff]  }
   0xa   :  { %v608_v25 = vld [vmem:[%s794_s0 + $0x64] ss:$8 sps:$4 sm:$0xff]   ;;  %v611_v27 = vld [vmem:[%s794_s0 + $0x60] ss:$8 sps:$4 sm:$0xff]   ;;  %v614_v29 = vld [vmem:[%s794_s0 + $0x74] ss:$8 sps:$4 sm:$0xff]  }
   0xb   :  { %503 = vmatpush3.bf16.msra.mxu0 %v583_v5  ;;  %572 = vmatpush3.bf16.msra.mxu1 %v583_v5  ;;  %v616_v30 = vld [vmem:[%s794_s0 + $0x30] ss:$8 sps:$4 sm:$0xff]  }
   0xc   :  { %504 = vmatprep.subr.bf16.mxu0 %v584_v6  ;;  %565 = vmatprep.subr.bf16.mxu1 %v584_v6  ;;  %v617_v31 = vld [vmem:[%s794_s0 + $0x70] ss:$8 sps:$4 sm:$0xff]  }
   0xf   :  { %505 = vmatpush3.bf16.msra.mxu0 %v585_v7  ;;  %573 = vmatpush3.bf16.msra.mxu1 %v585_v7 }
  0x10   :  { %506 = vmatprep.subr.bf16.mxu0 %v586_v8  ;;  %566 = vmatprep.subr.bf16.mxu1 %v586_v8 }
  0x13   :  { %507 = vmatpush3.bf16.msra.mxu0 %v587_v9  ;;  %574 = vmatpush3.bf16.msra.mxu1 %v587_v9 }
  0x14   :  { %508 = vmatprep.subr.bf16.mxu0 %v588_v10  ;;  %567 = vmatprep.subr.bf16.mxu1 %v588_v10 }
  0x17   :  { %509 = vmatpush3.bf16.msra.mxu0 %v589_v13  ;;  %575 = vmatpush3.bf16.msra.mxu1 %v589_v13 }
  0x18   :  { %510 = vmatprep.subr.bf16.mxu0 %v590_v14  ;;  %568 = vmatprep.subr.bf16.mxu1 %v590_v14 }
  0x1b   :  { %511 = vmatpush3.bf16.msra.mxu0 %v591_v15  ;;  %576 = vmatpush3.bf16.msra.mxu1 %v591_v15 }
  0x1c   :  { %512 = vmatprep.subr.bf16.mxu0 %v592_v16  ;;  %569 = vmatprep.subr.bf16.mxu1 %v592_v16 }
  0x1f   :  { %513 = vmatpush3.bf16.msra.mxu0 %v593_v17  ;;  %577 = vmatpush3.bf16.msra.mxu1 %v593_v17 }
  0x22   :  { %269 = vmatmul.mubr.bf16.vlgmr.msra.gmra.mrb[0].mxu0 %v594_v18  ;;  %301 = vmatmul.mubr.bf16.vlgmr.msra.gmra.mrb[0].mxu1 %v597_v19 }
  0x23   :  { %276 = vmatprep.mubr.bf16.mxu0 %v600_v20  ;;  %308 = vmatprep.mubr.bf16.mxu1 %v602_v21 }
  0x2a   :  { %277 = vmatmul.mubr.bf16.gmra.mrb[4].mxu0 %v604_v22  ;;  %309 = vmatmul.mubr.bf16.gmra.mrb[4].mxu1 %v605_v23 }
  0x2b   :  { %284 = vmatprep.mubr.bf16.mxu0 %v606_v24  ;;  %316 = vmatprep.mubr.bf16.mxu1 %v608_v25 }
  0x32   :  { %285 = vmatmul.mubr.bf16.gmra.mrb[8].mxu0 %v610_v26  ;;  %317 = vmatmul.mubr.bf16.gmra.mrb[8].mxu1 %v611_v27 }
  0x33   :  { %292 = vmatprep.mubr.bf16.mxu0 %v612_v28  ;;  %324 = vmatprep.mubr.bf16.mxu1 %v614_v29 }
  0x3a   :  { %293 = vmatmul.mubr.bf16.gmra.mrb[12].mxu0 %v616_v30  ;;  %325 = vmatmul.mubr.bf16.gmra.mrb[12].mxu1 %v617_v31 }
  0xf5   :  { %v514_v32 = vpop.f32.mrb[0].mxu0  ;;  %v538_v33 = vpop.f32.mrb[0].mxu1 }
  0xf6   :  { %v515_v34 = vpop.f32.mrb[1].mxu0  ;;  %v539_v35 = vpop.f32.mrb[1].mxu1 }
  0xf7   :  { %v516_v36 = vadd.f32 %v515_v34, %v514_v32  ;;  %v540_v37 = vadd.f32 %v539_v35, %v538_v33  ;;  %v517_v38 = vpop.f32.mrb[2].mxu0  ;;  %v541_v39 = vpop.f32.mrb[2].mxu1 }
  0xf8   :  { %v518_v40 = vpop.f32.mrb[3].mxu0  ;;  %v542_v41 = vpop.f32.mrb[3].mxu1 }
  0xf9   :  { %v333_v42 = vmax.f32 %v516_v36, 0.0  ;;  %v341_v43 = vmax.f32 %v540_v37, 0.0  ;;  %v519_v44 = vadd.f32 %v518_v40, %v517_v38  ;;  %v543_v45 = vadd.f32 %v542_v41, %v541_v39 }
  0xfb   :  { %v482_v46 = vpack.c.bf16 %v333_v42, %v333_v42  ;;  %v490_v47 = vpack.c.bf16 %v341_v43, %v341_v43  ;;  %v334_v48 = vmax.f32 %v519_v44, 0.0  ;;  %v342_v49 = vmax.f32 %v543_v45, 0.0 }
  0xfd   :  { %414 = vst.msk [vmem:[%s795_s2] sm:$0xf] %vm413_vm0, %v482_v46  ;;  %422 = vst.msk [vmem:[%s795_s2 + $0x20] sm:$0xf] %vm413_vm0, %v490_v47  ;;  %v483_v50 = vpack.c.bf16 %v334_v48, %v334_v48  ;;  %v491_v51 = vpack.c.bf16 %v342_v49, %v342_v49  ;;  %v520_v52 = vpop.f32.mrb[4].mxu0  ;;  %v544_v53 = vpop.f32.mrb[4].mxu1 }
  0xfe   :  { %v521_v54 = vpop.f32.mrb[5].mxu0  ;;  %v545_v55 = vpop.f32.mrb[5].mxu1 }
  0xff   :  { %415 = vst.msk [vmem:[%s795_s2 + $0x4] sm:$0xf] %vm413_vm0, %v483_v50  ;;  %423 = vst.msk [vmem:[%s795_s2 + $0x24] sm:$0xf] %vm413_vm0, %v491_v51  ;;  %v522_v56 = vadd.f32 %v521_v54, %v520_v52  ;;  %v546_v57 = vadd.f32 %v545_v55, %v544_v53  ;;  %v523_v58 = vpop.f32.mrb[6].mxu0  ;;  %v547_v59 = vpop.f32.mrb[6].mxu1 }
 0x100   :  { %v524_v60 = vpop.f32.mrb[7].mxu0  ;;  %v548_v61 = vpop.f32.mrb[7].mxu1 }
 0x101   :  { %v335_v62 = vmax.f32 %v522_v56, 0.0  ;;  %v343_v63 = vmax.f32 %v546_v57, 0.0  ;;  %v525_v0 = vadd.f32 %v524_v60, %v523_v58  ;;  %v549_v1 = vadd.f32 %v548_v61, %v547_v59 }
 0x103   :  { %v484_v2 = vpack.c.bf16 %v335_v62, %v335_v62  ;;  %v492_v3 = vpack.c.bf16 %v343_v63, %v343_v63  ;;  %v336_v4 = vmax.f32 %v525_v0, 0.0  ;;  %v344_v5 = vmax.f32 %v549_v1, 0.0 }
 0x105   :  { %416 = vst.msk [vmem:[%s795_s2 + $0x8] sm:$0xf] %vm413_vm0, %v484_v2  ;;  %424 = vst.msk [vmem:[%s795_s2 + $0x28] sm:$0xf] %vm413_vm0, %v492_v3  ;;  %v485_v6 = vpack.c.bf16 %v336_v4, %v336_v4  ;;  %v493_v7 = vpack.c.bf16 %v344_v5, %v344_v5  ;;  %v526_v8 = vpop.f32.mrb[8].mxu0  ;;  %v550_v9 = vpop.f32.mrb[8].mxu1 }
 0x106   :  { %v527_v10 = vpop.f32.mrb[9].mxu0  ;;  %v551_v11 = vpop.f32.mrb[9].mxu1 }
 0x107   :  { %417 = vst.msk [vmem:[%s795_s2 + $0xc] sm:$0xf] %vm413_vm0, %v485_v6  ;;  %425 = vst.msk [vmem:[%s795_s2 + $0x2c] sm:$0xf] %vm413_vm0, %v493_v7  ;;  %v528_v12 = vadd.f32 %v527_v10, %v526_v8  ;;  %v552_v13 = vadd.f32 %v551_v11, %v550_v9  ;;  %v529_v14 = vpop.f32.mrb[10].mxu0  ;;  %v553_v15 = vpop.f32.mrb[10].mxu1 }
 0x108   :  { %v530_v16 = vpop.f32.mrb[11].mxu0  ;;  %v554_v17 = vpop.f32.mrb[11].mxu1 }
 0x109   :  { %v337_v18 = vmax.f32 %v528_v12, 0.0  ;;  %v345_v19 = vmax.f32 %v552_v13, 0.0  ;;  %v531_v20 = vadd.f32 %v530_v16, %v529_v14  ;;  %v555_v21 = vadd.f32 %v554_v17, %v553_v15 }
 0x10b   :  { %v486_v22 = vpack.c.bf16 %v337_v18, %v337_v18  ;;  %v494_v23 = vpack.c.bf16 %v345_v19, %v345_v19  ;;  %v338_v24 = vmax.f32 %v531_v20, 0.0  ;;  %v346_v25 = vmax.f32 %v555_v21, 0.0 }
 0x10d   :  { %418 = vst.msk [vmem:[%s795_s2 + $0x10] sm:$0xf] %vm413_vm0, %v486_v22  ;;  %426 = vst.msk [vmem:[%s795_s2 + $0x30] sm:$0xf] %vm413_vm0, %v494_v23  ;;  %v487_v26 = vpack.c.bf16 %v338_v24, %v338_v24  ;;  %v495_v27 = vpack.c.bf16 %v346_v25, %v346_v25  ;;  %v532_v28 = vpop.f32.mrb[12].mxu0  ;;  %v556_v29 = vpop.f32.mrb[12].mxu1 }
 0x10e   :  { %v533_v30 = vpop.f32.mrb[13].mxu0  ;;  %v557_v31 = vpop.f32.mrb[13].mxu1 }
 0x10f   :  { %419 = vst.msk [vmem:[%s795_s2 + $0x14] sm:$0xf] %vm413_vm0, %v487_v26  ;;  %427 = vst.msk [vmem:[%s795_s2 + $0x34] sm:$0xf] %vm413_vm0, %v495_v27  ;;  %v534_v32 = vadd.f32 %v533_v30, %v532_v28  ;;  %v558_v33 = vadd.f32 %v557_v31, %v556_v29  ;;  %v535_v34 = vpop.f32.mrb[14].mxu0  ;;  %v559_v35 = vpop.f32.mrb[14].mxu1 }
 0x110   :  { %v536_v36 = vpop.f32.mrb[15].mxu0  ;;  %v560_v37 = vpop.f32.mrb[15].mxu1 }
 0x111   :  { %v339_v38 = vmax.f32 %v534_v32, 0.0  ;;  %v347_v39 = vmax.f32 %v558_v33, 0.0  ;;  %v537_v40 = vadd.f32 %v536_v36, %v535_v34  ;;  %v561_v41 = vadd.f32 %v560_v37, %v559_v35 }
 0x113   :  { %v488_v42 = vpack.c.bf16 %v339_v38, %v339_v38  ;;  %v496_v43 = vpack.c.bf16 %v347_v39, %v347_v39  ;;  %v340_v44 = vmax.f32 %v537_v40, 0.0  ;;  %v348_v45 = vmax.f32 %v561_v41, 0.0 }
 0x115   :  { %420 = vst.msk [vmem:[%s795_s2 + $0x18] sm:$0xf] %vm413_vm0, %v488_v42  ;;  %428 = vst.msk [vmem:[%s795_s2 + $0x38] sm:$0xf] %vm413_vm0, %v496_v43  ;;  %v489_v46 = vpack.c.bf16 %v340_v44, %v340_v44  ;;  %v497_v47 = vpack.c.bf16 %v348_v45, %v348_v45 }
 0x117   :  { %421 = vst.msk [vmem:[%s795_s2 + $0x1c] sm:$0xf] %vm413_vm0, %v489_v46  ;;  %429 = vst.msk [vmem:[%s795_s2 + $0x3c] sm:$0xf] %vm413_vm0, %v497_v47 }

// kernel: cnn_forward.45
= control target key start
LH: loop header
LB: loop body
LE: loop exit
PB: predicated region body
PF: predicated region fallthrough
CT: control target
= control target key end

     0   :  { %v538_v1 = vmov 0   ;;  %vm167_vm0 = vcmask 523264   ;;  %s711_s1 = inlined_call_operand.vmem [shape: bf16[64,256], index: 1, kind: input, shape index: {}]   ;;  %s712_s0 = inlined_call_operand.vmem [shape: bf16[128,64], index: 0, kind: input, shape index: {}]   ;;  %s713_s2 = inlined_call_operand.vmem [shape: bf16[128,256], index: 2, kind: input, shape index: {}]   ;;  %s714_s3 = inlined_call_operand.vmem [shape: bf16[128,256], index: 3, kind: output, shape index: {}]  }
   0x1   :  { %v518_v0 = vld [vmem:[%s711_s1 + $0x4] ss:$8 sps:$4 sm:$0xff]   ;;  %224 = vmatprep.mubr.bf16.mxu0 %v538_v1  ;;  %264 = vmatprep.mubr.bf16.mxu1 %v538_v1  ;;  %v520_v2 = vld [vmem:[%s711_s1] ss:$8 sps:$4 sm:$0xff]   ;;  %v521_v3 = vld [vmem:[%s711_s1 + $0x14] ss:$8 sps:$4 sm:$0xff]  }
   0x2   :  { %192 = vmatprep.subr.bf16.mxu0 %v518_v0  ;;  %509 = vmatprep.subr.bf16.mxu1 %v518_v0  ;;  %v523_v4 = vld [vmem:[%s711_s1 + $0x10] ss:$8 sps:$4 sm:$0xff]   ;;  %v524_v5 = vld [vmem:[%s711_s1 + $0x24] ss:$8 sps:$4 sm:$0xff]   ;;  %v526_v6 = vld [vmem:[%s711_s1 + $0x20] ss:$8 sps:$4 sm:$0xff]  }
   0x3   :  { %193 = vmatpush1.bf16.msra.mxu0 %v520_v2  ;;  %513 = vmatpush1.bf16.msra.mxu1 %v520_v2  ;;  %v527_v7 = vld [vmem:[%s711_s1 + $0x34] ss:$8 sps:$4 sm:$0xff]   ;;  %v529_v8 = vld [vmem:[%s711_s1 + $0x30] ss:$8 sps:$4 sm:$0xff]   ;;  %v530_v9 = vld [vmem:[%s712_s0] sm:$0xff]  }
   0x4   :  { %194 = vmatprep.subr.bf16.mxu0 %v521_v3  ;;  %510 = vmatprep.subr.bf16.mxu1 %v521_v3  ;;  %v531_v10 = vld [vmem:[%s712_s0 + $0x20] sm:$0xff]   ;;  %v532_v11 = vld [vmem:[%s712_s0 + $0x8] sm:$0xff]   ;;  %v534_v13 = vld [vmem:[%s712_s0 + $0x10] sm:$0xff]  }
   0x5   :  { %v533_v12 = vld [vmem:[%s712_s0 + $0x28] sm:$0xff]   ;;  %v535_v14 = vld [vmem:[%s712_s0 + $0x30] sm:$0xff]   ;;  %v536_v15 = vld [vmem:[%s712_s0 + $0x18] sm:$0xff]  }
   0x6   :  { %v537_v16 = vld [vmem:[%s712_s0 + $0x38] sm:$0xff]   ;;  %v39_v17 = vld [vmem:[%s713_s2] sm:$0xff]  ;;  %v40_v19 = vld [vmem:[%s713_s2 + $0x8] sm:$0xff] }
   0x7   :  { %195 = vmatpush1.bf16.msra.mxu0 %v523_v4  ;;  %514 = vmatpush1.bf16.msra.mxu1 %v523_v4  ;;  %v47_v18 = vld [vmem:[%s713_s2 + $0x40] sm:$0xff]  ;;  %v48_v20 = vld [vmem:[%s713_s2 + $0x48] sm:$0xff]  ;;  %v55_v21 = vunpack.c.l.bf16 %v39_v17  ;;  %v56_v23 = vunpack.c.h.bf16 %v39_v17  ;;  %v57_v25 = vunpack.c.l.bf16 %v40_v19  ;;  %v41_v27 = vld [vmem:[%s713_s2 + $0x10] sm:$0xff]  ;;  %v58_v31 = vunpack.c.h.bf16 %v40_v19 }
   0x8   :  { %196 = vmatprep.subr.bf16.mxu0 %v524_v5  ;;  %511 = vmatprep.subr.bf16.mxu1 %v524_v5  ;;  %v71_v22 = vunpack.c.l.bf16 %v47_v18  ;;  %v72_v24 = vunpack.c.h.bf16 %v47_v18  ;;  %v73_v26 = vunpack.c.l.bf16 %v48_v20  ;;  %v49_v28 = vld [vmem:[%s713_s2 + $0x50] sm:$0xff]  ;;  %v74_v32 = vunpack.c.h.bf16 %v48_v20  ;;  %v42_v53 = vld [vmem:[%s713_s2 + $0x18] sm:$0xff]  ;;  %v51_v2 = vld [vmem:[%s713_s2 + $0x60] sm:$0xff] }
   0x9   :  { %v59_v41 = vunpack.c.l.bf16 %v41_v27  ;;  %v75_v42 = vunpack.c.l.bf16 %v49_v28  ;;  %v50_v54 = vld [vmem:[%s713_s2 + $0x58] sm:$0xff]  ;;  %v60_v57 = vunpack.c.h.bf16 %v41_v27  ;;  %v76_v58 = vunpack.c.h.bf16 %v49_v28 }
   0xa   :  { %v61_v63 = vunpack.c.l.bf16 %v42_v53  ;;  %v77_v0 = vunpack.c.l.bf16 %v50_v54  ;;  %v79_v18 = vunpack.c.l.bf16 %v51_v2 }
   0xb   :  { %197 = vmatpush1.bf16.msra.mxu0 %v526_v6  ;;  %515 = vmatpush1.bf16.msra.mxu1 %v526_v6 }
   0xc   :  { %198 = vmatprep.subr.bf16.mxu0 %v527_v7  ;;  %512 = vmatprep.subr.bf16.mxu1 %v527_v7  ;;  %v62_v7 = vunpack.c.h.bf16 %v42_v53 }
   0xf   :  { %199 = vmatpush1.bf16.msra.mxu0 %v529_v8  ;;  %516 = vmatpush1.bf16.msra.mxu1 %v529_v8  ;;  %v78_v8 = vunpack.c.h.bf16 %v50_v54 }
  0x12   :  { %469 = vmatmul.mubr.msk.bf16.vlgmr.msra.gmra.mrb[0].mxu0 %vm167_vm0, %v530_v9  ;;  %473 = vmatmul.mubr.msk.bf16.vlgmr.msra.gmra.mrb[0].mxu1 %vm167_vm0, %v531_v10 }
  0x13   :  { %234 = vmatprep.mubr.bf16.mxu0 %v538_v1  ;;  %274 = vmatprep.mubr.bf16.mxu1 %v538_v1 }
  0x1a   :  { %470 = vmatmul.mubr.msk.bf16.gmra.mrb[4].mxu0 %vm167_vm0, %v532_v11  ;;  %474 = vmatmul.mubr.msk.bf16.gmra.mrb[4].mxu1 %vm167_vm0, %v533_v12 }
  0x1b   :  { %244 = vmatprep.mubr.bf16.mxu0 %v538_v1  ;;  %284 = vmatprep.mubr.bf16.mxu1 %v538_v1 }
  0x22   :  { %471 = vmatmul.mubr.msk.bf16.gmra.mrb[8].mxu0 %vm167_vm0, %v534_v13  ;;  %475 = vmatmul.mubr.msk.bf16.gmra.mrb[8].mxu1 %vm167_vm0, %v535_v14 }
  0x23   :  { %254 = vmatprep.mubr.bf16.mxu0 %v538_v1  ;;  %294 = vmatprep.mubr.bf16.mxu1 %v538_v1  ;;  %v43_v1 = vld [vmem:[%s713_s2 + $0x20] sm:$0xff] }
  0x24   :  { %v63_v17 = vunpack.c.l.bf16 %v43_v1 }
  0x2a   :  { %472 = vmatmul.mubr.msk.bf16.gmra.mrb[12].mxu0 %vm167_vm0, %v536_v15  ;;  %476 = vmatmul.mubr.msk.bf16.gmra.mrb[12].mxu1 %vm167_vm0, %v537_v16 }
  0xe5   :  { %v226_v29 = vpop.f32.mrb[0].mxu0  ;;  %v266_v30 = vpop.f32.mrb[0].mxu1 }
  0xe6   :  { %v227_v33 = vadd.f32 %v226_v29, %v55_v21  ;;  %v267_v34 = vadd.f32 %v266_v30, %v71_v22  ;;  %v228_v35 = vpop.f32.mrb[1].mxu0  ;;  %v268_v36 = vpop.f32.mrb[1].mxu1  ;;  %v44_v29 = vld [vmem:[%s713_s2 + $0x28] sm:$0xff] }
  0xe7   :  { %v229_v37 = vadd.f32 %v228_v35, %v56_v23  ;;  %v269_v38 = vadd.f32 %v268_v36, %v72_v24  ;;  %v230_v39 = vpop.f32.mrb[2].mxu0  ;;  %v270_v40 = vpop.f32.mrb[2].mxu1  ;;  %v52_v30 = vld [vmem:[%s713_s2 + $0x68] sm:$0xff] }
  0xe8   :  { %v305_v43 = vmax.f32 %v227_v33, 0.0  ;;  %v321_v44 = vmax.f32 %v267_v34, 0.0  ;;  %v231_v45 = vadd.f32 %v230_v39, %v57_v25  ;;  %v271_v46 = vadd.f32 %v270_v40, %v73_v26  ;;  %v232_v47 = vpop.f32.mrb[3].mxu0  ;;  %v272_v48 = vpop.f32.mrb[3].mxu1 }
  0xe9   :  { %v306_v49 = vmax.f32 %v229_v37, 0.0  ;;  %v322_v50 = vmax.f32 %v269_v38, 0.0  ;;  %v233_v51 = vadd.f32 %v232_v47, %v58_v31  ;;  %v273_v52 = vadd.f32 %v272_v48, %v74_v32 }
  0xea   :  { %v307_v55 = vmax.f32 %v231_v45, 0.0  ;;  %v323_v56 = vmax.f32 %v271_v46, 0.0  ;;  %v64_v33 = vunpack.c.h.bf16 %v43_v1  ;;  %v80_v34 = vunpack.c.h.bf16 %v51_v2 }
  0xeb   :  { %v493_v59 = vpack.c.bf16 %v306_v49, %v305_v43  ;;  %v501_v60 = vpack.c.bf16 %v322_v50, %v321_v44  ;;  %v308_v61 = vmax.f32 %v233_v51, 0.0  ;;  %v324_v62 = vmax.f32 %v273_v52, 0.0 }
  0xec   :  { %v65_v39 = vunpack.c.l.bf16 %v44_v29  ;;  %v81_v40 = vunpack.c.l.bf16 %v52_v30  ;;  %v66_v47 = vunpack.c.h.bf16 %v44_v29  ;;  %v82_v48 = vunpack.c.h.bf16 %v52_v30 }
  0xed   :  { %433 = vst [vmem:[%s714_s3] sm:$0xff] %v493_v59  ;;  %441 = vst [vmem:[%s714_s3 + $0x40] sm:$0xff] %v501_v60  ;;  %v494_v3 = vpack.c.bf16 %v308_v61, %v307_v55  ;;  %v502_v4 = vpack.c.bf16 %v324_v62, %v323_v56  ;;  %v236_v5 = vpop.f32.mrb[4].mxu0  ;;  %v276_v6 = vpop.f32.mrb[4].mxu1 }
  0xee   :  { %v237_v9 = vadd.f32 %v236_v5, %v59_v41  ;;  %v277_v10 = vadd.f32 %v276_v6, %v75_v42  ;;  %v238_v11 = vpop.f32.mrb[5].mxu0  ;;  %v278_v12 = vpop.f32.mrb[5].mxu1  ;;  %v45_v41 = vld [vmem:[%s713_s2 + $0x30] sm:$0xff]  ;;  %v46_v5 = vld [vmem:[%s713_s2 + $0x38] sm:$0xff] }
  0xef   :  { %434 = vst [vmem:[%s714_s3 + $0x8] sm:$0xff] %v494_v3  ;;  %442 = vst [vmem:[%s714_s3 + $0x48] sm:$0xff] %v502_v4  ;;  %v239_v13 = vadd.f32 %v238_v11, %v60_v57  ;;  %v279_v14 = vadd.f32 %v278_v12, %v76_v58  ;;  %v240_v15 = vpop.f32.mrb[6].mxu0  ;;  %v280_v16 = vpop.f32.mrb[6].mxu1  ;;  %v53_v42 = vld [vmem:[%s713_s2 + $0x70] sm:$0xff]  ;;  %v67_v57 = vunpack.c.l.bf16 %v45_v41  ;;  %v54_v6 = vld [vmem:[%s713_s2 + $0x78] sm:$0xff] }
  0xf0   :  { %v309_v19 = vmax.f32 %v237_v9, 0.0  ;;  %v325_v20 = vmax.f32 %v277_v10, 0.0  ;;  %v241_v21 = vadd.f32 %v240_v15, %v61_v63  ;;  %v281_v22 = vadd.f32 %v280_v16, %v77_v0  ;;  %v242_v23 = vpop.f32.mrb[7].mxu0  ;;  %v282_v24 = vpop.f32.mrb[7].mxu1 }
  0xf1   :  { %v310_v25 = vmax.f32 %v239_v13, 0.0  ;;  %v326_v26 = vmax.f32 %v279_v14, 0.0  ;;  %v243_v27 = vadd.f32 %v242_v23, %v62_v7  ;;  %v283_v28 = vadd.f32 %v282_v24, %v78_v8 }
  0xf2   :  { %v311_v31 = vmax.f32 %v241_v21, 0.0  ;;  %v327_v32 = vmax.f32 %v281_v22, 0.0  ;;  %v83_v58 = vunpack.c.l.bf16 %v53_v42  ;;  %v68_v9 = vunpack.c.h.bf16 %v45_v41 }
  0xf3   :  { %v495_v35 = vpack.c.bf16 %v310_v25, %v309_v19  ;;  %v503_v36 = vpack.c.bf16 %v326_v26, %v325_v20  ;;  %v312_v37 = vmax.f32 %v243_v27, 0.0  ;;  %v328_v38 = vmax.f32 %v283_v28, 0.0 }
  0xf4   :  { %v84_v10 = vunpack.c.h.bf16 %v53_v42  ;;  %v69_v15 = vunpack.c.l.bf16 %v46_v5  ;;  %v85_v16 = vunpack.c.l.bf16 %v54_v6  ;;  %v70_v21 = vunpack.c.h.bf16 %v46_v5 }
  0xf5   :  { %435 = vst [vmem:[%s714_s3 + $0x10] sm:$0xff] %v495_v35  ;;  %443 = vst [vmem:[%s714_s3 + $0x50] sm:$0xff] %v503_v36  ;;  %v496_v43 = vpack.c.bf16 %v312_v37, %v311_v31  ;;  %v504_v44 = vpack.c.bf16 %v328_v38, %v327_v32  ;;  %v246_v45 = vpop.f32.mrb[8].mxu0  ;;  %v286_v46 = vpop.f32.mrb[8].mxu1  ;;  %v86_v22 = vunpack.c.h.bf16 %v54_v6 }
  0xf6   :  { %v247_v49 = vadd.f32 %v246_v45, %v63_v17  ;;  %v287_v50 = vadd.f32 %v286_v46, %v79_v18  ;;  %v248_v51 = vpop.f32.mrb[9].mxu0  ;;  %v288_v52 = vpop.f32.mrb[9].mxu1 }
  0xf7   :  { %436 = vst [vmem:[%s714_s3 + $0x18] sm:$0xff] %v496_v43  ;;  %444 = vst [vmem:[%s714_s3 + $0x58] sm:$0xff] %v504_v44  ;;  %v249_v53 = vadd.f32 %v248_v51, %v64_v33  ;;  %v289_v54 = vadd.f32 %v288_v52, %v80_v34  ;;  %v250_v55 = vpop.f32.mrb[10].mxu0  ;;  %v290_v56 = vpop.f32.mrb[10].mxu1 }
  0xf8   :  { %v313_v59 = vmax.f32 %v247_v49, 0.0  ;;  %v329_v60 = vmax.f32 %v287_v50, 0.0  ;;  %v251_v61 = vadd.f32 %v250_v55, %v65_v39  ;;  %v291_v62 = vadd.f32 %v290_v56, %v81_v40  ;;  %v252_v63 = vpop.f32.mrb[11].mxu0  ;;  %v292_v0 = vpop.f32.mrb[11].mxu1 }
  0xf9   :  { %v314_v1 = vmax.f32 %v249_v53, 0.0  ;;  %v330_v2 = vmax.f32 %v289_v54, 0.0  ;;  %v253_v3 = vadd.f32 %v252_v63, %v66_v47  ;;  %v293_v4 = vadd.f32 %v292_v0, %v82_v48 }
  0xfa   :  { %v315_v7 = vmax.f32 %v251_v61, 0.0  ;;  %v331_v8 = vmax.f32 %v291_v62, 0.0 }
  0xfb   :  { %v497_v11 = vpack.c.bf16 %v314_v1, %v313_v59  ;;  %v505_v12 = vpack.c.bf16 %v330_v2, %v329_v60  ;;  %v316_v13 = vmax.f32 %v253_v3, 0.0  ;;  %v332_v14 = vmax.f32 %v293_v4, 0.0 }
  0xfd   :  { %437 = vst [vmem:[%s714_s3 + $0x20] sm:$0xff] %v497_v11  ;;  %445 = vst [vmem:[%s714_s3 + $0x60] sm:$0xff] %v505_v12  ;;  %v498_v17 = vpack.c.bf16 %v316_v13, %v315_v7  ;;  %v506_v18 = vpack.c.bf16 %v332_v14, %v331_v8  ;;  %v256_v19 = vpop.f32.mrb[12].mxu0  ;;  %v296_v20 = vpop.f32.mrb[12].mxu1 }
  0xfe   :  { %v257_v23 = vadd.f32 %v256_v19, %v67_v57  ;;  %v297_v24 = vadd.f32 %v296_v20, %v83_v58  ;;  %v258_v25 = vpop.f32.mrb[13].mxu0  ;;  %v298_v26 = vpop.f32.mrb[13].mxu1 }
  0xff   :  { %438 = vst [vmem:[%s714_s3 + $0x28] sm:$0xff] %v498_v17  ;;  %446 = vst [vmem:[%s714_s3 + $0x68] sm:$0xff] %v506_v18  ;;  %v259_v27 = vadd.f32 %v258_v25, %v68_v9  ;;  %v299_v28 = vadd.f32 %v298_v26, %v84_v10  ;;  %v260_v29 = vpop.f32.mrb[14].mxu0  ;;  %v300_v30 = vpop.f32.mrb[14].mxu1 }
 0x100   :  { %v317_v31 = vmax.f32 %v257_v23, 0.0  ;;  %v333_v32 = vmax.f32 %v297_v24, 0.0  ;;  %v261_v33 = vadd.f32 %v260_v29, %v69_v15  ;;  %v301_v34 = vadd.f32 %v300_v30, %v85_v16  ;;  %v262_v35 = vpop.f32.mrb[15].mxu0  ;;  %v302_v36 = vpop.f32.mrb[15].mxu1 }
 0x101   :  { %v318_v37 = vmax.f32 %v259_v27, 0.0  ;;  %v334_v38 = vmax.f32 %v299_v28, 0.0  ;;  %v263_v39 = vadd.f32 %v262_v35, %v70_v21  ;;  %v303_v40 = vadd.f32 %v302_v36, %v86_v22 }
 0x102   :  { %v319_v41 = vmax.f32 %v261_v33, 0.0  ;;  %v335_v42 = vmax.f32 %v301_v34, 0.0 }
 0x103   :  { %v499_v43 = vpack.c.bf16 %v318_v37, %v317_v31  ;;  %v507_v44 = vpack.c.bf16 %v334_v38, %v333_v32  ;;  %v320_v45 = vmax.f32 %v263_v39, 0.0  ;;  %v336_v46 = vmax.f32 %v303_v40, 0.0 }
 0x105   :  { %439 = vst [vmem:[%s714_s3 + $0x30] sm:$0xff] %v499_v43  ;;  %447 = vst [vmem:[%s714_s3 + $0x70] sm:$0xff] %v507_v44  ;;  %v500_v47 = vpack.c.bf16 %v320_v45, %v319_v41  ;;  %v508_v48 = vpack.c.bf16 %v336_v46, %v335_v42 }
 0x107   :  { %440 = vst [vmem:[%s714_s3 + $0x38] sm:$0xff] %v500_v47  ;;  %448 = vst [vmem:[%s714_s3 + $0x78] sm:$0xff] %v508_v48 }

// kernel: cnn_forward.52
= control target key start
LH: loop header
LB: loop body
LE: loop exit
PB: predicated region body
PF: predicated region fallthrough
CT: control target
= control target key end

     0   :  { %s799_s1 = inlined_call_operand.vmem [shape: bf16[256,128], index: 1, kind: input, shape index: {}]   ;;  %s800_s0 = inlined_call_operand.vmem [shape: bf16[128,256], index: 0, kind: input, shape index: {}]   ;;  %s801_s2 = inlined_call_operand.vmem [shape: bf16[128,128], index: 2, kind: output, shape index: {}]  }
   0x1   :  { %v624_v0 = vld [vmem:[%s799_s1 + $0x40] sm:$0xff]   ;;  %v626_v2 = vld [vmem:[%s799_s1 + $0x48] sm:$0xff]   ;;  %v628_v4 = vld [vmem:[%s799_s1 + $0x50] sm:$0xff]  }
   0x2   :  { %v625_v1 = vld [vmem:[%s799_s1] sm:$0xff]   ;;  %544 = vmatprep.subr.bf16.mxu0 %v624_v0  ;;  %608 = vmatprep.subr.bf16.mxu1 %v624_v0  ;;  %v627_v3 = vld [vmem:[%s799_s1 + $0x8] sm:$0xff]   ;;  %v629_v5 = vld [vmem:[%s799_s1 + $0x10] sm:$0xff]  }
   0x3   :  { %545 = vmatpush3.bf16.msra.mxu0 %v625_v1  ;;  %616 = vmatpush3.bf16.msra.mxu1 %v625_v1  ;;  %v630_v6 = vld [vmem:[%s799_s1 + $0x58] sm:$0xff]   ;;  %v632_v8 = vld [vmem:[%s799_s1 + $0x60] sm:$0xff]   ;;  %v634_v10 = vld [vmem:[%s799_s1 + $0x68] sm:$0xff]  }
   0x4   :  { %546 = vmatprep.subr.bf16.mxu0 %v626_v2  ;;  %609 = vmatprep.subr.bf16.mxu1 %v626_v2  ;;  %v631_v7 = vld [vmem:[%s799_s1 + $0x18] sm:$0xff]   ;;  %v633_v9 = vld [vmem:[%s799_s1 + $0x20] sm:$0xff]   ;;  %v635_v13 = vld [vmem:[%s799_s1 + $0x28] sm:$0xff]  }
   0x5   :  { %v642_v11 = vld [vmem:[%s800_s0 + $0x4] ss:$8 sps:$4 sm:$0xff]   ;;  %v636_v14 = vld [vmem:[%s799_s1 + $0x70] sm:$0xff]   ;;  %v638_v16 = vld [vmem:[%s799_s1 + $0x78] sm:$0xff]  }
   0x6   :  { %v645_v12 = vld [vmem:[%s800_s0 + $0x44] ss:$8 sps:$4 sm:$0xff]   ;;  %268 = vmatprep.mubr.bf16.mxu0 %v642_v11  ;;  %v637_v15 = vld [vmem:[%s799_s1 + $0x30] sm:$0xff]   ;;  %v639_v17 = vld [vmem:[%s799_s1 + $0x38] sm:$0xff]  }
   0x7   :  { %547 = vmatpush3.bf16.msra.mxu0 %v627_v3  ;;  %617 = vmatpush3.bf16.msra.mxu1 %v627_v3  ;;  %v640_v18 = vld [vmem:[%s800_s0] ss:$8 sps:$4 sm:$0xff]   ;;  %v646_v20 = vld [vmem:[%s800_s0 + $0x14] ss:$8 sps:$4 sm:$0xff]   ;;  %v650_v22 = vld [vmem:[%s800_s0 + $0x10] ss:$8 sps:$4 sm:$0xff]  }
   0x8   :  { %548 = vmatprep.subr.bf16.mxu0 %v628_v4  ;;  %610 = vmatprep.subr.bf16.mxu1 %v628_v4  ;;  %v643_v19 = vld [vmem:[%s800_s0 + $0x40] ss:$8 sps:$4 sm:$0xff]   ;;  %v648_v21 = vld [vmem:[%s800_s0 + $0x54] ss:$8 sps:$4 sm:$0xff]   ;;  %v651_v23 = vld [vmem:[%s800_s0 + $0x50] ss:$8 sps:$4 sm:$0xff]  }
   0x9   :  { %300 = vmatprep.mubr.bf16.mxu1 %v645_v12  ;;  %v652_v24 = vld [vmem:[%s800_s0 + $0x24] ss:$8 sps:$4 sm:$0xff]   ;;  %v656_v26 = vld [vmem:[%s800_s0 + $0x20] ss:$8 sps:$4 sm:$0xff]   ;;  %v658_v28 = vld [vmem:[%s800_s0 + $0x34] ss:$8 sps:$4 sm:$0xff]  }
   0xa   :  { %v654_v25 = vld [vmem:[%s800_s0 + $0x64] ss:$8 sps:$4 sm:$0xff]   ;;  %v657_v27 = vld [vmem:[%s800_s0 + $0x60] ss:$8 sps:$4 sm:$0xff]   ;;  %v660_v29 = vld [vmem:[%s800_s0 + $0x74] ss:$8 sps:$4 sm:$0xff]  }
   0xb   :  { %549 = vmatpush3.bf16.msra.mxu0 %v629_v5  ;;  %618 = vmatpush3.bf16.msra.mxu1 %v629_v5  ;;  %v662_v30 = vld [vmem:[%s800_s0 + $0x30] ss:$8 sps:$4 sm:$0xff]  }
   0xc   :  { %550 = vmatprep.subr.bf16.mxu0 %v630_v6  ;;  %611 = vmatprep.subr.bf16.mxu1 %v630_v6  ;;  %v663_v31 = vld [vmem:[%s800_s0 + $0x70] ss:$8 sps:$4 sm:$0xff]  }
   0xf   :  { %551 = vmatpush3.bf16.msra.mxu0 %v631_v7  ;;  %619 = vmatpush3.bf16.msra.mxu1 %v631_v7 }
  0x10   :  { %552 = vmatprep.subr.bf16.mxu0 %v632_v8  ;;  %612 = vmatprep.subr.bf16.mxu1 %v632_v8 }
  0x13   :  { %553 = vmatpush3.bf16.msra.mxu0 %v633_v9  ;;  %620 = vmatpush3.bf16.msra.mxu1 %v633_v9 }
  0x14   :  { %554 = vmatprep.subr.bf16.mxu0 %v634_v10  ;;  %613 = vmatprep.subr.bf16.mxu1 %v634_v10 }
  0x17   :  { %555 = vmatpush3.bf16.msra.mxu0 %v635_v13  ;;  %621 = vmatpush3.bf16.msra.mxu1 %v635_v13 }
  0x18   :  { %556 = vmatprep.subr.bf16.mxu0 %v636_v14  ;;  %614 = vmatprep.subr.bf16.mxu1 %v636_v14 }
  0x1b   :  { %557 = vmatpush3.bf16.msra.mxu0 %v637_v15  ;;  %622 = vmatpush3.bf16.msra.mxu1 %v637_v15 }
  0x1c   :  { %558 = vmatprep.subr.bf16.mxu0 %v638_v16  ;;  %615 = vmatprep.subr.bf16.mxu1 %v638_v16 }
  0x1f   :  { %559 = vmatpush3.bf16.msra.mxu0 %v639_v17  ;;  %623 = vmatpush3.bf16.msra.mxu1 %v639_v17 }
  0x22   :  { %269 = vmatmul.mubr.bf16.vlgmr.msra.gmra.mrb[0].mxu0 %v640_v18  ;;  %301 = vmatmul.mubr.bf16.vlgmr.msra.gmra.mrb[0].mxu1 %v643_v19 }
  0x23   :  { %276 = vmatprep.mubr.bf16.mxu0 %v646_v20  ;;  %308 = vmatprep.mubr.bf16.mxu1 %v648_v21 }
  0x2a   :  { %277 = vmatmul.mubr.bf16.gmra.mrb[4].mxu0 %v650_v22  ;;  %309 = vmatmul.mubr.bf16.gmra.mrb[4].mxu1 %v651_v23 }
  0x2b   :  { %284 = vmatprep.mubr.bf16.mxu0 %v652_v24  ;;  %316 = vmatprep.mubr.bf16.mxu1 %v654_v25 }
  0x32   :  { %285 = vmatmul.mubr.bf16.gmra.mrb[8].mxu0 %v656_v26  ;;  %317 = vmatmul.mubr.bf16.gmra.mrb[8].mxu1 %v657_v27 }
  0x33   :  { %292 = vmatprep.mubr.bf16.mxu0 %v658_v28  ;;  %324 = vmatprep.mubr.bf16.mxu1 %v660_v29 }
  0x3a   :  { %293 = vmatmul.mubr.bf16.gmra.mrb[12].mxu0 %v662_v30  ;;  %325 = vmatmul.mubr.bf16.gmra.mrb[12].mxu1 %v663_v31 }
  0xf5   :  { %v560_v32 = vpop.f32.mrb[0].mxu0  ;;  %v584_v33 = vpop.f32.mrb[0].mxu1 }
  0xf6   :  { %v561_v34 = vpop.f32.mrb[1].mxu0  ;;  %v585_v35 = vpop.f32.mrb[1].mxu1 }
  0xf7   :  { %v562_v36 = vadd.f32 %v561_v34, %v560_v32  ;;  %v586_v37 = vadd.f32 %v585_v35, %v584_v33  ;;  %v563_v38 = vpop.f32.mrb[2].mxu0  ;;  %v587_v39 = vpop.f32.mrb[2].mxu1 }
  0xf8   :  { %v564_v40 = vpop.f32.mrb[3].mxu0  ;;  %v588_v41 = vpop.f32.mrb[3].mxu1 }
  0xf9   :  { %v565_v42 = vadd.f32 %v564_v40, %v563_v38  ;;  %v589_v43 = vadd.f32 %v588_v41, %v587_v39  ;;  %v333_v44 = vmax.f32 %v562_v36, 0.0  ;;  %v341_v45 = vmax.f32 %v586_v37, 0.0 }
  0xfb   :  { %v334_v46 = vmax.f32 %v565_v42, 0.0  ;;  %v342_v47 = vmax.f32 %v589_v43, 0.0 }
  0xfd   :  { %v500_v48 = vpack.c.bf16 %v334_v46, %v333_v44  ;;  %v520_v49 = vpack.c.bf16 %v342_v47, %v341_v45  ;;  %v566_v50 = vpop.f32.mrb[4].mxu0  ;;  %v590_v51 = vpop.f32.mrb[4].mxu1 }
  0xfe   :  { %v567_v52 = vpop.f32.mrb[5].mxu0  ;;  %v591_v53 = vpop.f32.mrb[5].mxu1 }
  0xff   :  { %501 = vst [vmem:[%s801_s2] sm:$0xff] %v500_v48   ;;  %540 = vst [vmem:[%s801_s2 + $0x20] sm:$0xff] %v520_v49   ;;  %v568_v54 = vadd.f32 %v567_v52, %v566_v50  ;;  %v592_v55 = vadd.f32 %v591_v53, %v590_v51  ;;  %v569_v56 = vpop.f32.mrb[6].mxu0  ;;  %v593_v57 = vpop.f32.mrb[6].mxu1 }
 0x100   :  { %v570_v58 = vpop.f32.mrb[7].mxu0  ;;  %v594_v59 = vpop.f32.mrb[7].mxu1 }
 0x101   :  { %v571_v60 = vadd.f32 %v570_v58, %v569_v56  ;;  %v595_v61 = vadd.f32 %v594_v59, %v593_v57  ;;  %v335_v62 = vmax.f32 %v568_v54, 0.0  ;;  %v343_v63 = vmax.f32 %v592_v55, 0.0 }
 0x103   :  { %v336_v0 = vmax.f32 %v571_v60, 0.0  ;;  %v344_v1 = vmax.f32 %v595_v61, 0.0 }
 0x105   :  { %v505_v2 = vpack.c.bf16 %v336_v0, %v335_v62  ;;  %v525_v3 = vpack.c.bf16 %v344_v1, %v343_v63  ;;  %v572_v4 = vpop.f32.mrb[8].mxu0  ;;  %v596_v5 = vpop.f32.mrb[8].mxu1 }
 0x106   :  { %v573_v6 = vpop.f32.mrb[9].mxu0  ;;  %v597_v7 = vpop.f32.mrb[9].mxu1 }
 0x107   :  { %537 = vst [vmem:[%s801_s2 + $0x8] sm:$0xff] %v505_v2   ;;  %541 = vst [vmem:[%s801_s2 + $0x28] sm:$0xff] %v525_v3   ;;  %v574_v8 = vadd.f32 %v573_v6, %v572_v4  ;;  %v598_v9 = vadd.f32 %v597_v7, %v596_v5  ;;  %v575_v10 = vpop.f32.mrb[10].mxu0  ;;  %v599_v11 = vpop.f32.mrb[10].mxu1 }
 0x108   :  { %v576_v12 = vpop.f32.mrb[11].mxu0  ;;  %v600_v13 = vpop.f32.mrb[11].mxu1 }
 0x109   :  { %v577_v14 = vadd.f32 %v576_v12, %v575_v10  ;;  %v601_v15 = vadd.f32 %v600_v13, %v599_v11  ;;  %v337_v16 = vmax.f32 %v574_v8, 0.0  ;;  %v345_v17 = vmax.f32 %v598_v9, 0.0 }
 0x10b   :  { %v338_v18 = vmax.f32 %v577_v14, 0.0  ;;  %v346_v19 = vmax.f32 %v601_v15, 0.0 }
 0x10d   :  { %v510_v20 = vpack.c.bf16 %v338_v18, %v337_v16  ;;  %v530_v21 = vpack.c.bf16 %v346_v19, %v345_v17  ;;  %v578_v22 = vpop.f32.mrb[12].mxu0  ;;  %v602_v23 = vpop.f32.mrb[12].mxu1 }
 0x10e   :  { %v579_v24 = vpop.f32.mrb[13].mxu0  ;;  %v603_v25 = vpop.f32.mrb[13].mxu1 }
 0x10f   :  { %538 = vst [vmem:[%s801_s2 + $0x10] sm:$0xff] %v510_v20   ;;  %542 = vst [vmem:[%s801_s2 + $0x30] sm:$0xff] %v530_v21   ;;  %v580_v26 = vadd.f32 %v579_v24, %v578_v22  ;;  %v604_v27 = vadd.f32 %v603_v25, %v602_v23  ;;  %v581_v28 = vpop.f32.mrb[14].mxu0  ;;  %v605_v29 = vpop.f32.mrb[14].mxu1 }
 0x110   :  { %v582_v30 = vpop.f32.mrb[15].mxu0  ;;  %v606_v31 = vpop.f32.mrb[15].mxu1 }
 0x111   :  { %v583_v32 = vadd.f32 %v582_v30, %v581_v28  ;;  %v607_v33 = vadd.f32 %v606_v31, %v605_v29  ;;  %v339_v34 = vmax.f32 %v580_v26, 0.0  ;;  %v347_v35 = vmax.f32 %v604_v27, 0.0 }
 0x113   :  { %v340_v36 = vmax.f32 %v583_v32, 0.0  ;;  %v348_v37 = vmax.f32 %v607_v33, 0.0 }
 0x115   :  { %v515_v38 = vpack.c.bf16 %v340_v36, %v339_v34  ;;  %v535_v39 = vpack.c.bf16 %v348_v37, %v347_v35 }
 0x117   :  { %539 = vst [vmem:[%s801_s2 + $0x18] sm:$0xff] %v515_v38   ;;  %543 = vst [vmem:[%s801_s2 + $0x38] sm:$0xff] %v535_v39  }

// kernel: cnn_forward.55
= control target key start
LH: loop header
LB: loop body
LE: loop exit
PB: predicated region body
PF: predicated region fallthrough
CT: control target
= control target key end

     0   :  { %s861_s12 = smov 0   ;;  %s863_s13 = smov 0   ;;  %s971_s0 = inlined_call_operand.vmem [shape: bf16[16,128], index: 0, kind: input, shape index: {}]   ;;  %s972_s1 = inlined_call_operand.vmem [shape: bf16[128,512], index: 1, kind: input, shape index: {}]   ;;  %s973_s2 = inlined_call_operand.vmem [shape: bf16[16,512], index: 2, kind: input, shape index: {}]   ;;  %s974_s3 = inlined_call_operand.vmem [shape: bf16[16,512], index: 3, kind: output, shape index: {}]  }
   0x1   :  { %s865_s14 = smov 0   ;;  %s867_s15 = smov 0  }
   0x2   :  { %s869_s16 = smov 0  }
   0x3 LB: > { %s22_s17 = sadd.s32 1, %s834_s15  ;;  %s690_s18 = sadd.s32 4294967295, %s838_s16   ;;  %s838_s16 = sphi %s869_s16, %s13_s16   ;;  %s834_s15 = sphi %s867_s15, %s980_s15   ;;  %s830_s14 = sphi %s865_s14, %s979_s14   ;;  %s826_s13 = sphi %s863_s13, %s978_s13   ;;  %s822_s12 = sphi %s861_s12, %s977_s12  }
   0x4   : > { %p23_p0 = scmp.ge.s32.totalorder %s22_s17, 2  ;;  %p65_p1 = scmp.ne.s32.totalorder %s826_s13, %s822_s12 }
   0x5   : > { %p66_p2 = scmp.eq.s32.totalorder %s838_s16, 0  ;;  %p125_p4 = scmp.eq.s32.totalorder %s690_s18, 1 }
   0x6   : > { %s982_s17 = smov (%p23_p0, %s22_s17), 0  ;;  %s58_s21 = sadd.s32 1, %s826_s13 }
   0x7   : > { %p893_p3 = por %p66_p2, %p65_p1  ;;  %s55_s20 = ssub.s32 %s834_s15, %s982_s17 }
   0x8   : > { %p56_p5 = scmp.eq.s32.totalorder %s55_s20, 0  ;;  %p900_p6 = por %p125_p4, %p65_p1 }
   0x9   : > { %p694_p7 = scmp.ge.s32.totalorder %s838_s16, 2 }
   0xa   : > { %s905_s23 = scalar_select %p56_p5, %s826_s13, %s58_s21  }
   0xb   : > { %156 = sbr.rel (%p694_p7) target bundleno = 37 (0x25), region = 20 }
  0x12   : > { %159 = sbr.rel (!%p893_p3) target bundleno = 30 (0x1e), region = 24  ;;  %s161_s24 = sand.u32 (%p893_p3), 1, %s826_s13  }
  0x13   : > { %s729_s25 = sshll.u32 (%p893_p3), %s834_s15, 3  ;;  %s695_s26 = sshll.u32 (%p893_p3), %s161_s24, 7 }
  0x14   : > { %s915_s29 = scalar_lea.vmem (%p893_p3), %s972_s1, %s729_s25  ;;  %s163_s30 = scalar_lea.vmem (%p893_p3), [#allocation2], %s695_s26 }
  0x15   : > { %v224_v0 = vld [vmem:[%s915_s29] sm:$0xff] (%p893_p3)  ;;  %v226_v1 = vld [vmem:[%s915_s29 + $0x10] sm:$0xff] (%p893_p3) }
  0x16   : > { %v228_v2 = vld [vmem:[%s915_s29 + $0x20] sm:$0xff] (%p893_p3)  ;;  %225 = vst [vmem:[%s163_s30] sm:$0xff] (%p893_p3), %v224_v0  ;;  %227 = vst [vmem:[%s163_s30 + $0x8] sm:$0xff] (%p893_p3), %v226_v1  ;;  %v230_v3 = vld [vmem:[%s915_s29 + $0x30] sm:$0xff] (%p893_p3) }
  0x17   : > { %229 = vst [vmem:[%s163_s30 + $0x10] sm:$0xff] (%p893_p3), %v228_v2  ;;  %v232_v4 = vld [vmem:[%s915_s29 + $0x40] sm:$0xff] (%p893_p3)  ;;  %v234_v5 = vld [vmem:[%s915_s29 + $0x50] sm:$0xff] (%p893_p3)  ;;  %231 = vst [vmem:[%s163_s30 + $0x18] sm:$0xff] (%p893_p3), %v230_v3 }
  0x18   : > { %233 = vst [vmem:[%s163_s30 + $0x20] sm:$0xff] (%p893_p3), %v232_v4  ;;  %235 = vst [vmem:[%s163_s30 + $0x28] sm:$0xff] (%p893_p3), %v234_v5  ;;  %v236_v6 = vld [vmem:[%s915_s29 + $0x60] sm:$0xff] (%p893_p3)  ;;  %v238_v7 = vld [vmem:[%s915_s29 + $0x70] sm:$0xff] (%p893_p3) }
  0x19   : > { %v240_v8 = vld [vmem:[%s915_s29 + $0x80] sm:$0xff]  ;;  %237 = vst [vmem:[%s163_s30 + $0x30] sm:$0xff] %v236_v6  ;;  %239 = vst [vmem:[%s163_s30 + $0x38] sm:$0xff] %v238_v7  ;;  %v242_v9 = vld [vmem:[%s915_s29 + $0x90] sm:$0xff] }
  0x1a   : > { %241 = vst [vmem:[%s163_s30 + $0x40] sm:$0xff] %v240_v8  ;;  %v244_v10 = vld [vmem:[%s915_s29 + $0xa0] sm:$0xff]  ;;  %v246_v11 = vld [vmem:[%s915_s29 + $0xb0] sm:$0xff]  ;;  %243 = vst [vmem:[%s163_s30 + $0x48] sm:$0xff] %v242_v9 }
  0x1b   : > { %245 = vst [vmem:[%s163_s30 + $0x50] sm:$0xff] %v244_v10  ;;  %247 = vst [vmem:[%s163_s30 + $0x58] sm:$0xff] %v246_v11  ;;  %v248_v12 = vld [vmem:[%s915_s29 + $0xc0] sm:$0xff]  ;;  %v250_v13 = vld [vmem:[%s915_s29 + $0xd0] sm:$0xff] }
  0x1c   : > { %v252_v14 = vld [vmem:[%s915_s29 + $0xe0] sm:$0xff]  ;;  %249 = vst [vmem:[%s163_s30 + $0x60] sm:$0xff] %v248_v12  ;;  %251 = vst [vmem:[%s163_s30 + $0x68] sm:$0xff] %v250_v13  ;;  %v254_v15 = vld [vmem:[%s915_s29 + $0xf0] sm:$0xff] }
  0x1d   : > { %253 = vst [vmem:[%s163_s30 + $0x70] sm:$0xff] %v252_v14  ;;  %255 = vst [vmem:[%s163_s30 + $0x78] sm:$0xff] %v254_v15 }
  0x1e PF: > { %261 = sbr.rel (!%p893_p3) target bundleno = 37 (0x25), region = 62  ;;  %s263_s4 = sand.u32 (%p893_p3), 1, %s826_s13  }
  0x1f   : > { %s730_s5 = sshll.u32 (%p893_p3), %s834_s15, 3  ;;  %s698_s6 = sshll.u32 (%p893_p3), %s263_s4, 4 }
  0x20   : > { %s271_s9 = scalar_lea.vmem (%p893_p3), %s973_s2, %s730_s5  ;;  %s265_s10 = scalar_lea.vmem (%p893_p3), [#allocation3], %s698_s6 }
  0x21   : > { %v301_v16 = vld [vmem:[%s271_s9] sm:$0xff] (%p893_p3)  ;;  %v303_v17 = vld [vmem:[%s271_s9 + $0x10] sm:$0xff] (%p893_p3) }
  0x22   : > { %302 = vst [vmem:[%s265_s10] sm:$0xff] (%p893_p3), %v301_v16  ;;  %304 = vst [vmem:[%s265_s10 + $0x8] sm:$0xff] (%p893_p3), %v303_v17 }
  0x25 PF: > { %p701_p8 = scmp.ge.s32.totalorder %s838_s16, 1  ;;  %p309_p9 = scmp.lt.s32.totalorder %s838_s16, 3 }
  0x27   : > { %p310_p10 = pnand %p701_p8, %p309_p9 }
  0x28   : > { %s316_s11 = sand.u32 (!%p310_p10), 1, %s822_s12   ;;  %v840_v18 = vmov (!%p310_p10), 0   ;;  %v799_v35 = vld [vmem:[%s971_s0] sm:$0xff] (!%p310_p10)  }
  0x29   : > { %313 = sbr.rel (%p310_p10) target bundleno = 306 (0x132), region = 100  ;;  %s702_s18 = sshll.u32 (!%p310_p10), %s316_s11, 7  ;;  %508 = vmatprep.mubr.bf16.mxu0 (!%p310_p10), %v840_v18 }
  0x2a   : > { %s318_s19 = scalar_lea.vmem (!%p310_p10), [#allocation2], %s702_s18  ;;  %s703_s24 = sshll.u32 (!%p310_p10), %s316_s11, 4 }
  0x2b   : > { %v775_v19 = vld [vmem:[%s318_s19 + $0x4] ss:$8 sps:$4 sm:$0xff] (!%p310_p10)   ;;  %v777_v20 = vld [vmem:[%s318_s19] ss:$8 sps:$4 sm:$0xff] (!%p310_p10)   ;;  %v778_v21 = vld [vmem:[%s318_s19 + $0x14] ss:$8 sps:$4 sm:$0xff] (!%p310_p10)  }
  0x2c   : > { %476 = vmatprep.subr.bf16.mxu0 (!%p310_p10), %v775_v19  ;;  %v780_v22 = vld [vmem:[%s318_s19 + $0x10] ss:$8 sps:$4 sm:$0xff] (!%p310_p10)   ;;  %v781_v23 = vld [vmem:[%s318_s19 + $0x24] ss:$8 sps:$4 sm:$0xff] (!%p310_p10)   ;;  %v783_v24 = vld [vmem:[%s318_s19 + $0x20] ss:$8 sps:$4 sm:$0xff] (!%p310_p10)  }
  0x2d   : > { %477 = vmatpush1.bf16.msra.mxu0 (!%p310_p10), %v777_v20  ;;  %v784_v25 = vld [vmem:[%s318_s19 + $0x34] ss:$8 sps:$4 sm:$0xff] (!%p310_p10)   ;;  %v786_v26 = vld [vmem:[%s318_s19 + $0x30] ss:$8 sps:$4 sm:$0xff] (!%p310_p10)   ;;  %v787_v27 = vld [vmem:[%s318_s19 + $0x44] ss:$8 sps:$4 sm:$0xff] (!%p310_p10)  }
  0x2e   : > { %478 = vmatprep.subr.bf16.mxu0 (!%p310_p10), %v778_v21  ;;  %v789_v28 = vld [vmem:[%s318_s19 + $0x40] ss:$8 sps:$4 sm:$0xff] (!%p310_p10)   ;;  %v790_v29 = vld [vmem:[%s318_s19 + $0x54] ss:$8 sps:$4 sm:$0xff] (!%p310_p10)   ;;  %v792_v30 = vld [vmem:[%s318_s19 + $0x50] ss:$8 sps:$4 sm:$0xff] (!%p310_p10)  }
  0x2f   : > { %v793_v31 = vld [vmem:[%s318_s19 + $0x64] ss:$8 sps:$4 sm:$0xff] (!%p310_p10)   ;;  %v795_v32 = vld [vmem:[%s318_s19 + $0x60] ss:$8 sps:$4 sm:$0xff] (!%p310_p10)   ;;  %v796_v33 = vld [vmem:[%s318_s19 + $0x74] ss:$8 sps:$4 sm:$0xff] (!%p310_p10)  }
  0x30   : > { %v798_v34 = vld [vmem:[%s318_s19 + $0x70] ss:$8 sps:$4 sm:$0xff]   ;;  %s325_s25 = scalar_lea.vmem [#allocation3], %s703_s24  ;;  %s353_s12 = scalar_lea.vmem [#allocation4], %s703_s24 }
  0x31   : > { %479 = vmatpush1.bf16.msra.mxu0 %v780_v22  ;;  %v384_v36 = vld [vmem:[%s325_s25] sm:$0xff]  ;;  %v385_v37 = vld [vmem:[%s325_s25 + $0x8] sm:$0xff]  ;;  %s733_s26 = sshll.u32 (%p900_p6), %s830_s14, 3 }
  0x32   : > { %480 = vmatprep.subr.bf16.mxu0 %v781_v23  ;;  %v386_v38 = vunpack.c.l.bf16 %v384_v36  ;;  %v387_v39 = vunpack.c.h.bf16 %v384_v36  ;;  %v388_v40 = vunpack.c.l.bf16 %v385_v37  ;;  %v389_v42 = vunpack.c.h.bf16 %v385_v37  ;;  %s549_s29 = scalar_lea.vmem (%p900_p6), %s974_s3, %s733_s26 }
  0x35   : > { %481 = vmatpush1.bf16.msra.mxu0 %v783_v24 }
  0x36   : > { %482 = vmatprep.subr.bf16.mxu0 %v784_v25 }
  0x39   : > { %483 = vmatpush1.bf16.msra.mxu0 %v786_v26 }
  0x3a   : > { %484 = vmatprep.subr.bf16.mxu0 %v787_v27 }
  0x3d   : > { %485 = vmatpush1.bf16.msra.mxu0 %v789_v28 }
  0x3e   : > { %486 = vmatprep.subr.bf16.mxu0 %v790_v29 }
  0x41   : > { %487 = vmatpush1.bf16.msra.mxu0 %v792_v30 }
  0x42   : > { %488 = vmatprep.subr.bf16.mxu0 %v793_v31 }
  0x45   : > { %489 = vmatpush1.bf16.msra.mxu0 %v795_v32 }
  0x46   : > { %490 = vmatprep.subr.bf16.mxu0 %v796_v33 }
  0x49   : > { %491 = vmatpush1.bf16.msra.mxu0 %v798_v34 }
  0x4c   : > { %509 = vmatmul.mubr.bf16.vlgmr.msra.gmra.mrb[0].mxu0 %v799_v35 }
 0x11f   : > { %v510_v41 = vpop.f32.mrb[0].mxu0 }
 0x120   : > { %v511_v43 = vadd.f32 %v510_v41, %v386_v38  ;;  %v512_v44 = vpop.f32.mrb[1].mxu0 }
 0x121   : > { %v513_v45 = vadd.f32 %v512_v44, %v387_v39  ;;  %v514_v46 = vpop.f32.mrb[2].mxu0 }
 0x122   : > { %v519_v47 = vmax.f32 %v511_v43, 0.0  ;;  %v515_v48 = vadd.f32 %v514_v46, %v388_v40  ;;  %v516_v49 = vpop.f32.mrb[3].mxu0 }
 0x123   : > { %v520_v50 = vmax.f32 %v513_v45, 0.0  ;;  %v517_v51 = vadd.f32 %v516_v49, %v389_v42  ;;  %543 = sbr.rel (!%p900_p6) target bundleno = 306 (0x132), region = 112 }
 0x124   : > { %v521_v52 = vmax.f32 %v515_v48, 0.0 }
 0x125   : > { %v731_v53 = vpack.c.bf16 %v520_v50, %v519_v47  ;;  %v522_v54 = vmax.f32 %v517_v51, 0.0 }
 0x127   : > { %535 = vst [vmem:[%s353_s12] sm:$0xff] %v731_v53  ;;  %v732_v55 = vpack.c.bf16 %v522_v54, %v521_v52 }
 0x129   : > { %536 = vst [vmem:[%s353_s12 + $0x8] sm:$0xff] %v732_v55 }
 0x12e   : > { %v579_v56 = vld [vmem:[%s353_s12] sm:$0xff] }
 0x12f   : > { %580 = vst [vmem:[%s549_s29] sm:$0xff] %v579_v56 }
 0x130   : > { %v581_v57 = vld [vmem:[%s353_s12 + $0x8] sm:$0xff] }
 0x131   : > { %582 = vst [vmem:[%s549_s29 + $0x10] sm:$0xff] %v581_v57 }
 0x132 PF: > { %s13_s16 = sadd.s32 1, %s838_s16   ;;  %s977_s12 = smov %s826_s13 }
 0x133   : > { %p10_p11 = scmp.ge.s32.totalorder %s13_s16, 4   ;;  %s978_s13 = smov %s905_s23 }
 0x134   : > { %s979_s14 = smov %s834_s15  ;;  %s980_s15 = smov %s982_s17 }
 0x135   :  { %12 = sbr.rel (!%p10_p11) target bundleno = 3 (0x3), region = 192 }

// kernel: cnn_forward.54
= control target key start
LH: loop header
LB: loop body
LE: loop exit
PB: predicated region body
PF: predicated region fallthrough
CT: control target
= control target key end

     0   :  { %s934_s9 = smov 0   ;;  %s936_s10 = smov 0   ;;  %s1118_s0 = inlined_call_operand.vmem [shape: bf16[16,256], index: 0, kind: input, shape index: {}]   ;;  %s1119_s1 = inlined_call_operand.vmem [shape: bf16[256,512], index: 1, kind: input, shape index: {}]   ;;  %s1120_s2 = inlined_call_operand.vmem [shape: bf16[16,512], index: 2, kind: output, shape index: {}]  }
   0x1   :  { %s938_s11 = smov 0   ;;  %s940_s12 = smov 0  }
   0x2   :  { %s942_s13 = smov 0  }
   0x3 LB: > { %s21_s14 = sadd.s32 1, %s913_s12  ;;  %s732_s15 = sadd.s32 4294967295, %s917_s13   ;;  %s917_s13 = sphi %s942_s13, %s12_s13   ;;  %s913_s12 = sphi %s940_s12, %s1125_s12   ;;  %s909_s11 = sphi %s938_s11, %s1124_s11   ;;  %s905_s10 = sphi %s936_s10, %s1123_s10   ;;  %s901_s9 = sphi %s934_s9, %s1122_s9  }
   0x4   : > { %p22_p0 = scmp.ge.s32.totalorder %s21_s14, 2  ;;  %p64_p1 = scmp.ne.s32.totalorder %s905_s10, %s901_s9 }
   0x5   : > { %p65_p2 = scmp.eq.s32.totalorder %s917_s13, 0  ;;  %p96_p4 = scmp.eq.s32.totalorder %s732_s15, 1 }
   0x6   : > { %s1127_s14 = smov (%p22_p0, %s21_s14), 0  ;;  %s57_s17 = sadd.s32 1, %s905_s10 }
   0x7   : > { %p66_p3 = por %p65_p2, %p64_p1  ;;  %s54_s16 = ssub.s32 %s913_s12, %s1127_s14 }
   0x8   : > { %p55_p5 = scmp.eq.s32.totalorder %s54_s16, 0  ;;  %p969_p6 = por %p96_p4, %p64_p1 }
   0x9   : > { %p736_p7 = scmp.ge.s32.totalorder %s917_s13, 2 }
   0xa   : > { %s974_s19 = scalar_select %p55_p5, %s905_s10, %s57_s17  }
   0xb   : > { %128 = sbr.rel (%p736_p7) target bundleno = 38 (0x26), region = 20 }
  0x12   : > { %131 = sbr.rel (!%p66_p3) target bundleno = 38 (0x26), region = 24  ;;  %s133_s20 = sand.u32 (%p66_p3), 1, %s905_s10  }
  0x13   : > { %s784_s21 = sshll.u32 (%p66_p3), %s913_s12, 3  ;;  %s737_s22 = sshll.u32 (%p66_p3), %s133_s20, 8 }
  0x14   : > { %s982_s25 = scalar_lea.vmem (%p66_p3), %s1119_s1, %s784_s21  ;;  %s987_s26 = scalar_lea.vmem (%p66_p3), [#allocation2], %s737_s22 }
  0x15   : > { %v228_v0 = vld [vmem:[%s982_s25] sm:$0xff] (%p66_p3)  ;;  %v230_v1 = vld [vmem:[%s982_s25 + $0x10] sm:$0xff] (%p66_p3) }
  0x16   : > { %v232_v2 = vld [vmem:[%s982_s25 + $0x20] sm:$0xff] (%p66_p3)  ;;  %229 = vst [vmem:[%s987_s26] sm:$0xff] (%p66_p3), %v228_v0  ;;  %231 = vst [vmem:[%s987_s26 + $0x8] sm:$0xff] (%p66_p3), %v230_v1  ;;  %v234_v3 = vld [vmem:[%s982_s25 + $0x30] sm:$0xff] (%p66_p3) }
  0x17   : > { %233 = vst [vmem:[%s987_s26 + $0x10] sm:$0xff] (%p66_p3), %v232_v2  ;;  %v236_v4 = vld [vmem:[%s982_s25 + $0x40] sm:$0xff] (%p66_p3)  ;;  %v238_v5 = vld [vmem:[%s982_s25 + $0x50] sm:$0xff] (%p66_p3)  ;;  %235 = vst [vmem:[%s987_s26 + $0x18] sm:$0xff] (%p66_p3), %v234_v3 }
  0x18   : > { %237 = vst [vmem:[%s987_s26 + $0x20] sm:$0xff] (%p66_p3), %v236_v4  ;;  %239 = vst [vmem:[%s987_s26 + $0x28] sm:$0xff] (%p66_p3), %v238_v5  ;;  %v240_v6 = vld [vmem:[%s982_s25 + $0x60] sm:$0xff] (%p66_p3)  ;;  %v242_v7 = vld [vmem:[%s982_s25 + $0x70] sm:$0xff] (%p66_p3) }
  0x19   : > { %v244_v8 = vld [vmem:[%s982_s25 + $0x80] sm:$0xff]  ;;  %241 = vst [vmem:[%s987_s26 + $0x30] sm:$0xff] %v240_v6  ;;  %243 = vst [vmem:[%s987_s26 + $0x38] sm:$0xff] %v242_v7  ;;  %v246_v9 = vld [vmem:[%s982_s25 + $0x90] sm:$0xff] }
  0x1a   : > { %245 = vst [vmem:[%s987_s26 + $0x40] sm:$0xff] %v244_v8  ;;  %v248_v10 = vld [vmem:[%s982_s25 + $0xa0] sm:$0xff]  ;;  %v250_v11 = vld [vmem:[%s982_s25 + $0xb0] sm:$0xff]  ;;  %247 = vst [vmem:[%s987_s26 + $0x48] sm:$0xff] %v246_v9 }
  0x1b   : > { %249 = vst [vmem:[%s987_s26 + $0x50] sm:$0xff] %v248_v10  ;;  %251 = vst [vmem:[%s987_s26 + $0x58] sm:$0xff] %v250_v11  ;;  %v252_v12 = vld [vmem:[%s982_s25 + $0xc0] sm:$0xff]  ;;  %v254_v13 = vld [vmem:[%s982_s25 + $0xd0] sm:$0xff] }
  0x1c   : > { %v256_v14 = vld [vmem:[%s982_s25 + $0xe0] sm:$0xff]  ;;  %253 = vst [vmem:[%s987_s26 + $0x60] sm:$0xff] %v252_v12  ;;  %255 = vst [vmem:[%s987_s26 + $0x68] sm:$0xff] %v254_v13  ;;  %v258_v15 = vld [vmem:[%s982_s25 + $0xf0] sm:$0xff] }
  0x1d   : > { %257 = vst [vmem:[%s987_s26 + $0x70] sm:$0xff] %v256_v14  ;;  %v260_v16 = vld [vmem:[%s982_s25 + $0x100] sm:$0xff]  ;;  %v262_v17 = vld [vmem:[%s982_s25 + $0x110] sm:$0xff]  ;;  %259 = vst [vmem:[%s987_s26 + $0x78] sm:$0xff] %v258_v15 }
  0x1e   : > { %261 = vst [vmem:[%s987_s26 + $0x80] sm:$0xff] %v260_v16  ;;  %263 = vst [vmem:[%s987_s26 + $0x88] sm:$0xff] %v262_v17  ;;  %v264_v18 = vld [vmem:[%s982_s25 + $0x120] sm:$0xff]  ;;  %v266_v19 = vld [vmem:[%s982_s25 + $0x130] sm:$0xff] }
  0x1f   : > { %v268_v20 = vld [vmem:[%s982_s25 + $0x140] sm:$0xff]  ;;  %265 = vst [vmem:[%s987_s26 + $0x90] sm:$0xff] %v264_v18  ;;  %267 = vst [vmem:[%s987_s26 + $0x98] sm:$0xff] %v266_v19  ;;  %v270_v21 = vld [vmem:[%s982_s25 + $0x150] sm:$0xff] }
  0x20   : > { %269 = vst [vmem:[%s987_s26 + $0xa0] sm:$0xff] %v268_v20  ;;  %v272_v22 = vld [vmem:[%s982_s25 + $0x160] sm:$0xff]  ;;  %v274_v23 = vld [vmem:[%s982_s25 + $0x170] sm:$0xff]  ;;  %271 = vst [vmem:[%s987_s26 + $0xa8] sm:$0xff] %v270_v21 }
  0x21   : > { %273 = vst [vmem:[%s987_s26 + $0xb0] sm:$0xff] %v272_v22  ;;  %275 = vst [vmem:[%s987_s26 + $0xb8] sm:$0xff] %v274_v23  ;;  %v276_v24 = vld [vmem:[%s982_s25 + $0x180] sm:$0xff]  ;;  %v278_v25 = vld [vmem:[%s982_s25 + $0x190] sm:$0xff] }
  0x22   : > { %v280_v26 = vld [vmem:[%s982_s25 + $0x1a0] sm:$0xff]  ;;  %277 = vst [vmem:[%s987_s26 + $0xc0] sm:$0xff] %v276_v24  ;;  %279 = vst [vmem:[%s987_s26 + $0xc8] sm:$0xff] %v278_v25  ;;  %v282_v27 = vld [vmem:[%s982_s25 + $0x1b0] sm:$0xff] }
  0x23   : > { %281 = vst [vmem:[%s987_s26 + $0xd0] sm:$0xff] %v280_v26  ;;  %v284_v28 = vld [vmem:[%s982_s25 + $0x1c0] sm:$0xff]  ;;  %v286_v29 = vld [vmem:[%s982_s25 + $0x1d0] sm:$0xff]  ;;  %283 = vst [vmem:[%s987_s26 + $0xd8] sm:$0xff] %v282_v27 }
  0x24   : > { %285 = vst [vmem:[%s987_s26 + $0xe0] sm:$0xff] %v284_v28  ;;  %287 = vst [vmem:[%s987_s26 + $0xe8] sm:$0xff] %v286_v29  ;;  %v288_v30 = vld [vmem:[%s982_s25 + $0x1e0] sm:$0xff]  ;;  %v290_v31 = vld [vmem:[%s982_s25 + $0x1f0] sm:$0xff] }
  0x25   : > { %289 = vst [vmem:[%s987_s26 + $0xf0] sm:$0xff] %v288_v30  ;;  %291 = vst [vmem:[%s987_s26 + $0xf8] sm:$0xff] %v290_v31 }
  0x26 PF: > { %p740_p8 = scmp.ge.s32.totalorder %s917_s13, 1  ;;  %p296_p9 = scmp.lt.s32.totalorder %s917_s13, 3 }
  0x28   : > { %p297_p10 = pnand %p740_p8, %p296_p9 }
  0x29   : > { %s303_s27 = sand.u32 (!%p297_p10), 1, %s901_s9   ;;  %v878_v32 = vld [vmem:[%s1118_s0 + $0x4] ss:$8 sps:$4 sm:$0xff] (!%p297_p10)   ;;  %v876_v1 = vld [vmem:[%s1118_s0] ss:$8 sps:$4 sm:$0xff] (!%p297_p10)  }
  0x2a   : > { %300 = sbr.rel (%p297_p10) target bundleno = 335 (0x14f), region = 62  ;;  %s741_s28 = sshll.u32 (!%p297_p10), %s303_s27, 8  ;;  %575 = vmatprep.mubr.bf16.mxu0 (!%p297_p10), %v878_v32 }
  0x2b   : > { %s1058_s3 = scalar_lea.vmem (!%p297_p10), [#allocation2], %s741_s28  ;;  %s742_s6 = sshll.u32 (!%p297_p10), %s303_s27, 4 }
  0x2c   : > { %v828_v33 = vld [vmem:[%s1058_s3 + $0x4] ss:$8 sps:$4 sm:$0xff] (!%p297_p10)   ;;  %v830_v34 = vld [vmem:[%s1058_s3] ss:$8 sps:$4 sm:$0xff] (!%p297_p10)   ;;  %v831_v35 = vld [vmem:[%s1058_s3 + $0x14] ss:$8 sps:$4 sm:$0xff] (!%p297_p10)  }
  0x2d   : > { %543 = vmatprep.subr.bf16.mxu0 (!%p297_p10), %v828_v33  ;;  %v833_v36 = vld [vmem:[%s1058_s3 + $0x10] ss:$8 sps:$4 sm:$0xff] (!%p297_p10)   ;;  %v834_v37 = vld [vmem:[%s1058_s3 + $0x24] ss:$8 sps:$4 sm:$0xff] (!%p297_p10)   ;;  %v836_v38 = vld [vmem:[%s1058_s3 + $0x20] ss:$8 sps:$4 sm:$0xff] (!%p297_p10)  }
  0x2e   : > { %544 = vmatpush1.bf16.msra.mxu0 (!%p297_p10), %v830_v34  ;;  %v837_v39 = vld [vmem:[%s1058_s3 + $0x34] ss:$8 sps:$4 sm:$0xff] (!%p297_p10)   ;;  %v839_v40 = vld [vmem:[%s1058_s3 + $0x30] ss:$8 sps:$4 sm:$0xff] (!%p297_p10)   ;;  %v840_v41 = vld [vmem:[%s1058_s3 + $0x44] ss:$8 sps:$4 sm:$0xff] (!%p297_p10)  }
  0x2f   : > { %545 = vmatprep.subr.bf16.mxu0 (!%p297_p10), %v831_v35  ;;  %v842_v42 = vld [vmem:[%s1058_s3 + $0x40] ss:$8 sps:$4 sm:$0xff] (!%p297_p10)   ;;  %v843_v43 = vld [vmem:[%s1058_s3 + $0x54] ss:$8 sps:$4 sm:$0xff] (!%p297_p10)   ;;  %v845_v44 = vld [vmem:[%s1058_s3 + $0x50] ss:$8 sps:$4 sm:$0xff] (!%p297_p10)  }
  0x30   : > { %v846_v45 = vld [vmem:[%s1058_s3 + $0x64] ss:$8 sps:$4 sm:$0xff] (!%p297_p10)   ;;  %v848_v46 = vld [vmem:[%s1058_s3 + $0x60] ss:$8 sps:$4 sm:$0xff] (!%p297_p10)   ;;  %v849_v47 = vld [vmem:[%s1058_s3 + $0x74] ss:$8 sps:$4 sm:$0xff] (!%p297_p10)  }
  0x31   : > { %v851_v48 = vld [vmem:[%s1058_s3 + $0x70] ss:$8 sps:$4 sm:$0xff]   ;;  %v852_v49 = vld [vmem:[%s1058_s3 + $0x84] ss:$8 sps:$4 sm:$0xff]   ;;  %v854_v50 = vld [vmem:[%s1058_s3 + $0x80] ss:$8 sps:$4 sm:$0xff]  }
  0x32   : > { %546 = vmatpush1.bf16.msra.mxu0 %v833_v36  ;;  %v855_v51 = vld [vmem:[%s1058_s3 + $0x94] ss:$8 sps:$4 sm:$0xff]   ;;  %v857_v52 = vld [vmem:[%s1058_s3 + $0x90] ss:$8 sps:$4 sm:$0xff]   ;;  %v858_v53 = vld [vmem:[%s1058_s3 + $0xa4] ss:$8 sps:$4 sm:$0xff]  }
  0x33   : > { %547 = vmatprep.subr.bf16.mxu0 %v834_v37  ;;  %v860_v54 = vld [vmem:[%s1058_s3 + $0xa0] ss:$8 sps:$4 sm:$0xff]   ;;  %v861_v55 = vld [vmem:[%s1058_s3 + $0xb4] ss:$8 sps:$4 sm:$0xff]   ;;  %v863_v56 = vld [vmem:[%s1058_s3 + $0xb0] ss:$8 sps:$4 sm:$0xff]  }
  0x34   : > { %v864_v57 = vld [vmem:[%s1058_s3 + $0xc4] ss:$8 sps:$4 sm:$0xff]   ;;  %v866_v58 = vld [vmem:[%s1058_s3 + $0xc0] ss:$8 sps:$4 sm:$0xff]   ;;  %v867_v59 = vld [vmem:[%s1058_s3 + $0xd4] ss:$8 sps:$4 sm:$0xff]  }
  0x35   : > { %v869_v60 = vld [vmem:[%s1058_s3 + $0xd0] ss:$8 sps:$4 sm:$0xff]   ;;  %v870_v61 = vld [vmem:[%s1058_s3 + $0xe4] ss:$8 sps:$4 sm:$0xff]   ;;  %v872_v62 = vld [vmem:[%s1058_s3 + $0xe0] ss:$8 sps:$4 sm:$0xff]  }
  0x36   : > { %548 = vmatpush1.bf16.msra.mxu0 %v836_v38  ;;  %v873_v63 = vld [vmem:[%s1058_s3 + $0xf4] ss:$8 sps:$4 sm:$0xff]   ;;  %v875_v0 = vld [vmem:[%s1058_s3 + $0xf0] ss:$8 sps:$4 sm:$0xff]   ;;  %s328_s7 = scalar_lea.vmem [#allocation3], %s742_s6  ;;  %s787_s8 = sshll.u32 (%p969_p6), %s909_s11, 3 }
  0x37   : > { %549 = vmatprep.subr.bf16.mxu0 %v837_v39  ;;  %s612_s9 = scalar_lea.vmem (%p969_p6), %s1120_s2, %s787_s8 }
  0x3a   : > { %550 = vmatpush1.bf16.msra.mxu0 %v839_v40 }
  0x3b   : > { %551 = vmatprep.subr.bf16.mxu0 %v840_v41 }
  0x3e   : > { %552 = vmatpush1.bf16.msra.mxu0 %v842_v42 }
  0x3f   : > { %553 = vmatprep.subr.bf16.mxu0 %v843_v43 }
  0x42   : > { %554 = vmatpush1.bf16.msra.mxu0 %v845_v44 }
  0x43   : > { %555 = vmatprep.subr.bf16.mxu0 %v846_v45 }
  0x46   : > { %556 = vmatpush1.bf16.msra.mxu0 %v848_v46 }
  0x47   : > { %557 = vmatprep.subr.bf16.mxu0 %v849_v47 }
  0x4a   : > { %558 = vmatpush1.bf16.msra.mxu0 %v851_v48 }
  0x4b   : > { %559 = vmatprep.subr.bf16.mxu0 %v852_v49 }
  0x4e   : > { %560 = vmatpush1.bf16.msra.mxu0 %v854_v50 }
  0x4f   : > { %561 = vmatprep.subr.bf16.mxu0 %v855_v51 }
  0x52   : > { %562 = vmatpush1.bf16.msra.mxu0 %v857_v52 }
  0x53   : > { %563 = vmatprep.subr.bf16.mxu0 %v858_v53 }
  0x56   : > { %564 = vmatpush1.bf16.msra.mxu0 %v860_v54 }
  0x57   : > { %565 = vmatprep.subr.bf16.mxu0 %v861_v55 }
  0x5a   : > { %566 = vmatpush1.bf16.msra.mxu0 %v863_v56 }
  0x5b   : > { %567 = vmatprep.subr.bf16.mxu0 %v864_v57 }
  0x5e   : > { %568 = vmatpush1.bf16.msra.mxu0 %v866_v58 }
  0x5f   : > { %569 = vmatprep.subr.bf16.mxu0 %v867_v59 }
  0x62   : > { %570 = vmatpush1.bf16.msra.mxu0 %v869_v60 }
  0x63   : > { %571 = vmatprep.subr.bf16.mxu0 %v870_v61 }
  0x66   : > { %572 = vmatpush1.bf16.msra.mxu0 %v872_v62 }
  0x67   : > { %573 = vmatprep.subr.bf16.mxu0 %v873_v63 }
  0x6a   : > { %574 = vmatpush1.bf16.msra.mxu0 %v875_v0 }
  0x6d   : > { %576 = vmatmul.mubr.bf16.vlgmr.msra.gmra.mrb[0].mxu0 %v876_v1 }
 0x140   : > { %v577_v2 = vpop.f32.mrb[0].mxu0  ;;  %606 = sbr.rel (!%p969_p6) target bundleno = 335 (0x14f), region = 70 }
 0x141   : > { %v579_v3 = vpop.f32.mrb[1].mxu0 }
 0x142   : > { %v785_v4 = vpack.c.bf16 %v579_v3, %v577_v2  ;;  %v581_v5 = vpop.f32.mrb[2].mxu0 }
 0x143   : > { %v583_v6 = vpop.f32.mrb[3].mxu0 }
 0x144   : > { %598 = vst [vmem:[%s328_s7] sm:$0xff] %v785_v4  ;;  %v786_v7 = vpack.c.bf16 %v583_v6, %v581_v5 }
 0x146   : > { %599 = vst [vmem:[%s328_s7 + $0x8] sm:$0xff] %v786_v7 }
 0x14b   : > { %v642_v8 = vld [vmem:[%s328_s7] sm:$0xff] }
 0x14c   : > { %643 = vst [vmem:[%s612_s9] sm:$0xff] %v642_v8 }
 0x14d   : > { %v644_v9 = vld [vmem:[%s328_s7 + $0x8] sm:$0xff] }
 0x14e   : > { %645 = vst [vmem:[%s612_s9 + $0x10] sm:$0xff] %v644_v9 }
 0x14f PF: > { %s12_s13 = sadd.s32 1, %s917_s13   ;;  %s1122_s9 = smov %s905_s10 }
 0x150   : > { %p9_p11 = scmp.ge.s32.totalorder %s12_s13, 4   ;;  %s1123_s10 = smov %s974_s19 }
 0x151   : > { %s1124_s11 = smov %s913_s12  ;;  %s1125_s12 = smov %s1127_s14 }
 0x152   :  { %11 = sbr.rel (!%p9_p11) target bundleno = 3 (0x3), region = 142 }

// kernel: cnn_forward.56
= control target key start
LH: loop header
LB: loop body
LE: loop exit
PB: predicated region body
PF: predicated region fallthrough
CT: control target
= control target key end

     0   :  { %s643_s1 = inlined_call_operand.vmem [shape: bf16[512,128], index: 1, kind: input, shape index: {}]   ;;  %s644_s0 = inlined_call_operand.vmem [shape: bf16[16,512], index: 0, kind: input, shape index: {}]   ;;  %s645_s2 = inlined_call_operand.vmem [shape: bf16[16,128], index: 2, kind: output, shape index: {}]  }
   0x1   :  { %v479_v0 = vld [vmem:[%s643_s1 + $0x40] sm:$0xff]   ;;  %v483_v4 = vld [vmem:[%s643_s1 + $0x48] sm:$0xff]   ;;  %v487_v8 = vld [vmem:[%s643_s1 + $0x50] sm:$0xff]  }
   0x2   :  { %v480_v1 = vld [vmem:[%s643_s1 + $0xc0] sm:$0xff]   ;;  %435 = vmatprep.subr.bf16.mxu0 %v479_v0  ;;  %v484_v5 = vld [vmem:[%s643_s1 + $0xc8] sm:$0xff]   ;;  %v488_v9 = vld [vmem:[%s643_s1 + $0xd0] sm:$0xff]  }
   0x3   :  { %v481_v2 = vld [vmem:[%s643_s1] sm:$0xff]   ;;  %457 = vmatprep.subr.bf16.mxu1 %v480_v1  ;;  %v485_v6 = vld [vmem:[%s643_s1 + $0x8] sm:$0xff]   ;;  %v489_v10 = vld [vmem:[%s643_s1 + $0x10] sm:$0xff]  }
   0x4   :  { %v482_v3 = vld [vmem:[%s643_s1 + $0x80] sm:$0xff]   ;;  %436 = vmatpush3.bf16.msra.mxu0 %v481_v2  ;;  %v486_v7 = vld [vmem:[%s643_s1 + $0x88] sm:$0xff]   ;;  %v490_v11 = vld [vmem:[%s643_s1 + $0x90] sm:$0xff]  }
   0x5   :  { %458 = vmatpush3.bf16.msra.mxu1 %v482_v3  ;;  %437 = vmatprep.subr.bf16.mxu0 %v483_v4  ;;  %v491_v12 = vld [vmem:[%s643_s1 + $0x58] sm:$0xff]   ;;  %v495_v16 = vld [vmem:[%s643_s1 + $0x60] sm:$0xff]   ;;  %v499_v20 = vld [vmem:[%s643_s1 + $0x68] sm:$0xff]  }
   0x6   :  { %459 = vmatprep.subr.bf16.mxu1 %v484_v5  ;;  %v492_v13 = vld [vmem:[%s643_s1 + $0xd8] sm:$0xff]   ;;  %v496_v17 = vld [vmem:[%s643_s1 + $0xe0] sm:$0xff]   ;;  %v500_v21 = vld [vmem:[%s643_s1 + $0xe8] sm:$0xff]  }
   0x7   :  { %v493_v14 = vld [vmem:[%s643_s1 + $0x18] sm:$0xff]   ;;  %v497_v18 = vld [vmem:[%s643_s1 + $0x20] sm:$0xff]   ;;  %v501_v22 = vld [vmem:[%s643_s1 + $0x28] sm:$0xff]  }
   0x8   :  { %438 = vmatpush3.bf16.msra.mxu0 %v485_v6  ;;  %v494_v15 = vld [vmem:[%s643_s1 + $0x98] sm:$0xff]   ;;  %v498_v19 = vld [vmem:[%s643_s1 + $0xa0] sm:$0xff]   ;;  %v502_v23 = vld [vmem:[%s643_s1 + $0xa8] sm:$0xff]  }
   0x9   :  { %460 = vmatpush3.bf16.msra.mxu1 %v486_v7  ;;  %439 = vmatprep.subr.bf16.mxu0 %v487_v8  ;;  %v503_v24 = vld [vmem:[%s643_s1 + $0x70] sm:$0xff]   ;;  %v507_v28 = vld [vmem:[%s643_s1 + $0x78] sm:$0xff]  }
   0xa   :  { %461 = vmatprep.subr.bf16.mxu1 %v488_v9  ;;  %v504_v25 = vld [vmem:[%s643_s1 + $0xf0] sm:$0xff]   ;;  %v508_v29 = vld [vmem:[%s643_s1 + $0xf8] sm:$0xff]  }
   0xb   :  { %v505_v26 = vld [vmem:[%s643_s1 + $0x30] sm:$0xff]   ;;  %v509_v30 = vld [vmem:[%s643_s1 + $0x38] sm:$0xff]  }
   0xc   :  { %440 = vmatpush3.bf16.msra.mxu0 %v489_v10  ;;  %v506_v27 = vld [vmem:[%s643_s1 + $0xb0] sm:$0xff]   ;;  %v510_v31 = vld [vmem:[%s643_s1 + $0xb8] sm:$0xff]  }
   0xd   :  { %462 = vmatpush3.bf16.msra.mxu1 %v490_v11  ;;  %441 = vmatprep.subr.bf16.mxu0 %v491_v12  ;;  %v511_v32 = vld [vmem:[%s644_s0] ss:$16 sps:$4 sm:$0xff]   ;;  %v513_v33 = vld [vmem:[%s644_s0 + $0x4] ss:$16 sps:$4 sm:$0xff]   ;;  %v514_v34 = vld [vmem:[%s644_s0 + $0x8] ss:$16 sps:$4 sm:$0xff]  }
   0xe   :  { %463 = vmatprep.subr.bf16.mxu1 %v492_v13  ;;  %v516_v35 = vld [vmem:[%s644_s0 + $0xc] ss:$16 sps:$4 sm:$0xff]   ;;  %324 = vmatprep.mubr.bf16.mxu0 %v513_v33 }
   0xf   :  { %365 = vmatprep.mubr.bf16.mxu1 %v516_v35 }
  0x10   :  { %442 = vmatpush3.bf16.msra.mxu0 %v493_v14 }
  0x11   :  { %464 = vmatpush3.bf16.msra.mxu1 %v494_v15  ;;  %443 = vmatprep.subr.bf16.mxu0 %v495_v16 }
  0x12   :  { %465 = vmatprep.subr.bf16.mxu1 %v496_v17 }
  0x14   :  { %444 = vmatpush3.bf16.msra.mxu0 %v497_v18 }
  0x15   :  { %466 = vmatpush3.bf16.msra.mxu1 %v498_v19  ;;  %445 = vmatprep.subr.bf16.mxu0 %v499_v20 }
  0x16   :  { %467 = vmatprep.subr.bf16.mxu1 %v500_v21 }
  0x18   :  { %446 = vmatpush3.bf16.msra.mxu0 %v501_v22 }
  0x19   :  { %468 = vmatpush3.bf16.msra.mxu1 %v502_v23  ;;  %447 = vmatprep.subr.bf16.mxu0 %v503_v24 }
  0x1a   :  { %469 = vmatprep.subr.bf16.mxu1 %v504_v25 }
  0x1c   :  { %448 = vmatpush3.bf16.msra.mxu0 %v505_v26 }
  0x1d   :  { %470 = vmatpush3.bf16.msra.mxu1 %v506_v27  ;;  %449 = vmatprep.subr.bf16.mxu0 %v507_v28 }
  0x1e   :  { %471 = vmatprep.subr.bf16.mxu1 %v508_v29 }
  0x20   :  { %450 = vmatpush3.bf16.msra.mxu0 %v509_v30 }
  0x21   :  { %472 = vmatpush3.bf16.msra.mxu1 %v510_v31 }
  0x23   :  { %325 = vmatmul.mubr.bf16.vlgmr.msra.gmra.mrb[0].mxu0 %v511_v32 }
  0x24   :  { %366 = vmatmul.mubr.bf16.vlgmr.msra.gmra.mrb[0].mxu1 %v514_v34 }
  0xf6   :  { %v451_v36 = vpop.f32.mrb[0].mxu0 }
  0xf7   :  { %v473_v37 = vpop.f32.mrb[0].mxu1  ;;  %v452_v38 = vpop.f32.mrb[1].mxu0 }
  0xf8   :  { %v453_v39 = vadd.f32 %v452_v38, %v451_v36  ;;  %v474_v40 = vpop.f32.mrb[1].mxu1  ;;  %v454_v41 = vpop.f32.mrb[2].mxu0 }
  0xf9   :  { %v475_v42 = vadd.f32 %v474_v40, %v473_v37  ;;  %v476_v43 = vpop.f32.mrb[2].mxu1  ;;  %v455_v44 = vpop.f32.mrb[3].mxu0 }
  0xfa   :  { %v456_v45 = vadd.f32 %v455_v44, %v454_v41  ;;  %v477_v46 = vpop.f32.mrb[3].mxu1 }
  0xfb   :  { %v368_v47 = vadd.f32 %v475_v42, %v453_v39  ;;  %v478_v48 = vadd.f32 %v477_v46, %v476_v43 }
  0xfd   :  { %v371_v49 = vadd.f32 %v478_v48, %v456_v45  ;;  %v374_v50 = vmax.f32 %v368_v47, 0.0 }
  0xff   :  { %v375_v51 = vmax.f32 %v371_v49, 0.0 }
 0x101   :  { %v433_v52 = vpack.c.bf16 %v375_v51, %v374_v50 }
 0x103   :  { %434 = vst [vmem:[%s645_s2] sm:$0xff] %v433_v52  }

// kernel: cnn_forward.53
= control target key start
LH: loop header
LB: loop body
LE: loop exit
PB: predicated region body
PF: predicated region fallthrough
CT: control target
= control target key end

     0   :  { %vm3320_vm0 = vmmov 0   ;;  %s4068_s1 = inlined_call_operand.vmem [shape: bf16[3456,128], index: 1, kind: input, shape index: {}]   ;;  %s4069_s0 = inlined_call_operand.vmem [shape: bf16[16,3456], index: 0, kind: input, shape index: {}]   ;;  %s4070_s2 = inlined_call_operand.vmem [shape: bf16[16,128], index: 2, kind: output, shape index: {}]  }
   0x1   :  { %v3063_v0 = vld [vmem:[%s4068_s1 + $0x40] sm:$0xff]   ;;  %v3067_v4 = vld [vmem:[%s4068_s1 + $0x48] sm:$0xff]   ;;  %v3071_v8 = vld [vmem:[%s4068_s1 + $0x50] sm:$0xff]  }
   0x2   :  { %v3064_v1 = vld [vmem:[%s4068_s1 + $0xc0] sm:$0xff]   ;;  %2746 = vmatprep.subr.bf16.mxu0 %v3063_v0  ;;  %v3068_v5 = vld [vmem:[%s4068_s1 + $0xc8] sm:$0xff]   ;;  %v3072_v9 = vld [vmem:[%s4068_s1 + $0xd0] sm:$0xff]  }
   0x3   :  { %v3065_v2 = vld [vmem:[%s4068_s1] sm:$0xff]   ;;  %2768 = vmatprep.subr.bf16.mxu1 %v3064_v1  ;;  %v3069_v6 = vld [vmem:[%s4068_s1 + $0x8] sm:$0xff]   ;;  %v3073_v10 = vld [vmem:[%s4068_s1 + $0x10] sm:$0xff]  }
   0x4   :  { %v3066_v3 = vld [vmem:[%s4068_s1 + $0x80] sm:$0xff]   ;;  %2747 = vmatpush3.bf16.msra.mxu0 %v3065_v2  ;;  %v3070_v7 = vld [vmem:[%s4068_s1 + $0x88] sm:$0xff]   ;;  %v3074_v11 = vld [vmem:[%s4068_s1 + $0x90] sm:$0xff]  }
   0x5   :  { %2769 = vmatpush3.bf16.msra.mxu1 %v3066_v3  ;;  %2748 = vmatprep.subr.bf16.mxu0 %v3067_v4  ;;  %v3075_v12 = vld [vmem:[%s4068_s1 + $0x58] sm:$0xff]   ;;  %v3079_v16 = vld [vmem:[%s4068_s1 + $0x60] sm:$0xff]   ;;  %v3083_v20 = vld [vmem:[%s4068_s1 + $0x68] sm:$0xff]  }
   0x6   :  { %2770 = vmatprep.subr.bf16.mxu1 %v3068_v5  ;;  %v3076_v13 = vld [vmem:[%s4068_s1 + $0xd8] sm:$0xff]   ;;  %v3080_v17 = vld [vmem:[%s4068_s1 + $0xe0] sm:$0xff]   ;;  %v3084_v21 = vld [vmem:[%s4068_s1 + $0xe8] sm:$0xff]  }
   0x7   :  { %v3077_v14 = vld [vmem:[%s4068_s1 + $0x18] sm:$0xff]   ;;  %v3081_v18 = vld [vmem:[%s4068_s1 + $0x20] sm:$0xff]   ;;  %v3085_v22 = vld [vmem:[%s4068_s1 + $0x28] sm:$0xff]  }
   0x8   :  { %2749 = vmatpush3.bf16.msra.mxu0 %v3069_v6  ;;  %v3078_v15 = vld [vmem:[%s4068_s1 + $0x98] sm:$0xff]   ;;  %v3082_v19 = vld [vmem:[%s4068_s1 + $0xa0] sm:$0xff]   ;;  %v3086_v23 = vld [vmem:[%s4068_s1 + $0xa8] sm:$0xff]  }
   0x9   :  { %2771 = vmatpush3.bf16.msra.mxu1 %v3070_v7  ;;  %2750 = vmatprep.subr.bf16.mxu0 %v3071_v8  ;;  %v3087_v24 = vld [vmem:[%s4068_s1 + $0x70] sm:$0xff]   ;;  %v3091_v28 = vld [vmem:[%s4068_s1 + $0x78] sm:$0xff]   ;;  %v3095_v32 = vld [vmem:[%s4069_s0] ss:$108 sps:$4 sm:$0xff]  }
   0xa   :  { %2772 = vmatprep.subr.bf16.mxu1 %v3072_v9  ;;  %v3088_v25 = vld [vmem:[%s4068_s1 + $0xf0] sm:$0xff]   ;;  %v3092_v29 = vld [vmem:[%s4068_s1 + $0xf8] sm:$0xff]   ;;  %v3101_v36 = vld [vmem:[%s4068_s1 + $0x140] sm:$0xff]  }
   0xb   :  { %v3089_v26 = vld [vmem:[%s4068_s1 + $0x30] sm:$0xff]   ;;  %v3093_v30 = vld [vmem:[%s4068_s1 + $0x38] sm:$0xff]   ;;  %v3102_v37 = vld [vmem:[%s4068_s1 + $0x100] sm:$0xff]  }
   0xc   :  { %2751 = vmatpush3.bf16.msra.mxu0 %v3073_v10  ;;  %v3090_v27 = vld [vmem:[%s4068_s1 + $0xb0] sm:$0xff]   ;;  %v3094_v31 = vld [vmem:[%s4068_s1 + $0xb8] sm:$0xff]   ;;  %v3103_v38 = vld [vmem:[%s4068_s1 + $0x1c0] sm:$0xff]  }
   0xd   :  { %2773 = vmatpush3.bf16.msra.mxu1 %v3074_v11  ;;  %2752 = vmatprep.subr.bf16.mxu0 %v3075_v12  ;;  %v3097_v33 = vld [vmem:[%s4069_s0 + $0x4] ss:$108 sps:$4 sm:$0xff]   ;;  %v3098_v34 = vld [vmem:[%s4069_s0 + $0x8] ss:$108 sps:$4 sm:$0xff]   ;;  %v3100_v35 = vld [vmem:[%s4069_s0 + $0xc] ss:$108 sps:$4 sm:$0xff]  }
   0xe   :  { %2774 = vmatprep.subr.bf16.mxu1 %v3076_v13  ;;  %1936 = vmatprep.mubr.bf16.mxu0 %v3097_v33  ;;  %v3104_v39 = vld [vmem:[%s4068_s1 + $0x180] sm:$0xff]   ;;  %v3105_v40 = vld [vmem:[%s4068_s1 + $0x148] sm:$0xff]   ;;  %v3109_v44 = vld [vmem:[%s4068_s1 + $0x150] sm:$0xff]  }
   0xf   :  { %1977 = vmatprep.mubr.bf16.mxu1 %v3100_v35  ;;  %v3106_v41 = vld [vmem:[%s4068_s1 + $0x108] sm:$0xff]   ;;  %v3110_v45 = vld [vmem:[%s4068_s1 + $0x110] sm:$0xff]   ;;  %v3113_v48 = vld [vmem:[%s4068_s1 + $0x158] sm:$0xff]  }
  0x10   :  { %2753 = vmatpush3.bf16.msra.mxu0 %v3077_v14  ;;  %v3107_v42 = vld [vmem:[%s4068_s1 + $0x1c8] sm:$0xff]   ;;  %v3111_v46 = vld [vmem:[%s4068_s1 + $0x1d0] sm:$0xff]   ;;  %v3114_v49 = vld [vmem:[%s4068_s1 + $0x118] sm:$0xff]  }
  0x11   :  { %2775 = vmatpush3.bf16.msra.mxu1 %v3078_v15  ;;  %2754 = vmatprep.subr.bf16.mxu0 %v3079_v16  ;;  %v3108_v43 = vld [vmem:[%s4068_s1 + $0x188] sm:$0xff]   ;;  %v3112_v47 = vld [vmem:[%s4068_s1 + $0x190] sm:$0xff]   ;;  %v3115_v50 = vld [vmem:[%s4068_s1 + $0x1d8] sm:$0xff]  }
  0x12   :  { %2776 = vmatprep.subr.bf16.mxu1 %v3080_v17  ;;  %v3116_v51 = vld [vmem:[%s4068_s1 + $0x198] sm:$0xff]   ;;  %v3117_v52 = vld [vmem:[%s4068_s1 + $0x160] sm:$0xff]   ;;  %v3121_v56 = vld [vmem:[%s4068_s1 + $0x168] sm:$0xff]  }
  0x13   :  { %v3118_v53 = vld [vmem:[%s4068_s1 + $0x120] sm:$0xff]   ;;  %v3122_v57 = vld [vmem:[%s4068_s1 + $0x128] sm:$0xff]   ;;  %v3125_v60 = vld [vmem:[%s4068_s1 + $0x170] sm:$0xff]  }
  0x14   :  { %2755 = vmatpush3.bf16.msra.mxu0 %v3081_v18  ;;  %v3119_v54 = vld [vmem:[%s4068_s1 + $0x1e0] sm:$0xff]   ;;  %v3123_v58 = vld [vmem:[%s4068_s1 + $0x1e8] sm:$0xff]   ;;  %v3126_v61 = vld [vmem:[%s4068_s1 + $0x130] sm:$0xff]  }
  0x15   :  { %2777 = vmatpush3.bf16.msra.mxu1 %v3082_v19  ;;  %2756 = vmatprep.subr.bf16.mxu0 %v3083_v20  ;;  %v3120_v55 = vld [vmem:[%s4068_s1 + $0x1a0] sm:$0xff]   ;;  %v3124_v59 = vld [vmem:[%s4068_s1 + $0x1a8] sm:$0xff]   ;;  %v3127_v62 = vld [vmem:[%s4068_s1 + $0x1f0] sm:$0xff]  }
  0x16   :  { %2778 = vmatprep.subr.bf16.mxu1 %v3084_v21  ;;  %v3128_v63 = vld [vmem:[%s4068_s1 + $0x1b0] sm:$0xff]   ;;  %v3129_v0 = vld [vmem:[%s4068_s1 + $0x178] sm:$0xff]   ;;  %v3136_v6 = vld [vmem:[%s4068_s1 + $0x240] sm:$0xff]  }
  0x17   :  { %v3130_v1 = vld [vmem:[%s4068_s1 + $0x138] sm:$0xff]   ;;  %v3134_v4 = vld [vmem:[%s4069_s0 + $0x14] ss:$108 sps:$4 sm:$0xff]   ;;  %v3143_v12 = vld [vmem:[%s4068_s1 + $0x248] sm:$0xff]  }
  0x18   :  { %2757 = vmatpush3.bf16.msra.mxu0 %v3085_v22  ;;  %v3131_v2 = vld [vmem:[%s4068_s1 + $0x1f8] sm:$0xff]   ;;  %v3140_v9 = vld [vmem:[%s4068_s1 + $0x200] sm:$0xff]   ;;  %v3144_v13 = vld [vmem:[%s4068_s1 + $0x208] sm:$0xff]  }
  0x19   :  { %2779 = vmatpush3.bf16.msra.mxu1 %v3086_v23  ;;  %2758 = vmatprep.subr.bf16.mxu0 %v3087_v24  ;;  %v3132_v3 = vld [vmem:[%s4069_s0 + $0x10] ss:$108 sps:$4 sm:$0xff]   ;;  %v3137_v7 = vld [vmem:[%s4069_s0 + $0x18] ss:$108 sps:$4 sm:$0xff]   ;;  %v3145_v14 = vld [vmem:[%s4068_s1 + $0x2c8] sm:$0xff]  }
  0x1a   :  { %2780 = vmatprep.subr.bf16.mxu1 %v3088_v25  ;;  %v3135_v5 = vld [vmem:[%s4068_s1 + $0x1b8] sm:$0xff]   ;;  %v3141_v10 = vld [vmem:[%s4068_s1 + $0x2c0] sm:$0xff]   ;;  %v3146_v15 = vld [vmem:[%s4068_s1 + $0x288] sm:$0xff]  }
  0x1b   :  { %v3139_v8 = vld [vmem:[%s4069_s0 + $0x1c] ss:$108 sps:$4 sm:$0xff]   ;;  %v3142_v11 = vld [vmem:[%s4068_s1 + $0x280] sm:$0xff]   ;;  %v3147_v16 = vld [vmem:[%s4068_s1 + $0x250] sm:$0xff]  }
  0x1c   :  { %2759 = vmatpush3.bf16.msra.mxu0 %v3089_v26  ;;  %v3148_v17 = vld [vmem:[%s4068_s1 + $0x210] sm:$0xff]   ;;  %v3151_v20 = vld [vmem:[%s4068_s1 + $0x258] sm:$0xff]   ;;  %v3155_v24 = vld [vmem:[%s4068_s1 + $0x260] sm:$0xff]  }
  0x1d   :  { %2781 = vmatpush3.bf16.msra.mxu1 %v3090_v27  ;;  %2760 = vmatprep.subr.bf16.mxu0 %v3091_v28  ;;  %v3149_v18 = vld [vmem:[%s4068_s1 + $0x2d0] sm:$0xff]   ;;  %v3152_v21 = vld [vmem:[%s4068_s1 + $0x218] sm:$0xff]   ;;  %v3156_v25 = vld [vmem:[%s4068_s1 + $0x220] sm:$0xff]  }
  0x1e   :  { %2782 = vmatprep.subr.bf16.mxu1 %v3092_v29  ;;  %v3150_v19 = vld [vmem:[%s4068_s1 + $0x290] sm:$0xff]   ;;  %v3153_v22 = vld [vmem:[%s4068_s1 + $0x2d8] sm:$0xff]   ;;  %v3157_v26 = vld [vmem:[%s4068_s1 + $0x2e0] sm:$0xff]  }
  0x1f   :  { %v3154_v23 = vld [vmem:[%s4068_s1 + $0x298] sm:$0xff]   ;;  %v3158_v27 = vld [vmem:[%s4068_s1 + $0x2a0] sm:$0xff]   ;;  %v3159_v28 = vld [vmem:[%s4068_s1 + $0x268] sm:$0xff]  }
  0x20   :  { %2761 = vmatpush3.bf16.msra.mxu0 %v3093_v30  ;;  %v3160_v29 = vld [vmem:[%s4068_s1 + $0x228] sm:$0xff]   ;;  %v3164_v33 = vld [vmem:[%s4068_s1 + $0x230] sm:$0xff]  }
  0x21   :  { %2783 = vmatpush3.bf16.msra.mxu1 %v3094_v31  ;;  %2790 = vmatprep.subr.bf16.mxu0 %v3101_v36  ;;  %v3161_v30 = vld [vmem:[%s4068_s1 + $0x2e8] sm:$0xff]   ;;  %v3166_v35 = vld [vmem:[%s4068_s1 + $0x2b0] sm:$0xff]   ;;  %v3167_v36 = vld [vmem:[%s4068_s1 + $0x278] sm:$0xff]  }
  0x22   :  { %2812 = vmatprep.subr.bf16.mxu1 %v3103_v38  ;;  %v3162_v31 = vld [vmem:[%s4068_s1 + $0x2a8] sm:$0xff]   ;;  %v3169_v38 = vld [vmem:[%s4068_s1 + $0x2f8] sm:$0xff]  }
  0x23   :  { %1937 = vmatmul.mubr.bf16.vlgmr.msra.gmra.mrb[0].mxu0 %v3095_v32  ;;  %v3163_v32 = vld [vmem:[%s4068_s1 + $0x270] sm:$0xff]  }
  0x24   :  { %1978 = vmatmul.mubr.bf16.vlgmr.msra.gmra.mrb[0].mxu1 %v3098_v34  ;;  %2791 = vmatpush3.bf16.msra.mxu0 %v3102_v37  ;;  %v3165_v34 = vld [vmem:[%s4068_s1 + $0x2f0] sm:$0xff]   ;;  %v3168_v37 = vld [vmem:[%s4068_s1 + $0x238] sm:$0xff]  }
  0x25   :  { %2813 = vmatpush3.bf16.msra.mxu1 %v3104_v39  ;;  %2792 = vmatprep.subr.bf16.mxu0 %v3105_v40  ;;  %v3170_v39 = vld [vmem:[%s4069_s0 + $0x20] ss:$108 sps:$4 sm:$0xff]   ;;  %v3172_v40 = vld [vmem:[%s4069_s0 + $0x24] ss:$108 sps:$4 sm:$0xff]  }
  0x26   :  { %2814 = vmatprep.subr.bf16.mxu1 %v3107_v42  ;;  %2018 = vmatprep.mubr.bf16.mxu0 %v3134_v4  ;;  %v3174_v42 = vld [vmem:[%s4068_s1 + $0x340] sm:$0xff]   ;;  %v3201_v4 = vld [vmem:[%s4068_s1 + $0x370] sm:$0xff]  }
  0x27   :  { %2059 = vmatprep.mubr.bf16.mxu1 %v3139_v8  ;;  %v3205_v8 = vld [vmem:[%s4068_s1 + $0x378] sm:$0xff]  }
  0x28   :  { %2793 = vmatpush3.bf16.msra.mxu0 %v3106_v41  ;;  %v3173_v41 = vld [vmem:[%s4068_s1 + $0x2b8] sm:$0xff]  }
  0x29   :  { %2815 = vmatpush3.bf16.msra.mxu1 %v3108_v43  ;;  %2794 = vmatprep.subr.bf16.mxu0 %v3109_v44  ;;  %v3175_v43 = vld [vmem:[%s4069_s0 + $0x28] ss:$108 sps:$4 sm:$0xff]   ;;  %v3177_v44 = vld [vmem:[%s4069_s0 + $0x2c] ss:$108 sps:$4 sm:$0xff]  }
  0x2a   :  { %2816 = vmatprep.subr.bf16.mxu1 %v3111_v46  ;;  %v3179_v46 = vld [vmem:[%s4068_s1 + $0x3c0] sm:$0xff]  }
  0x2c   :  { %2795 = vmatpush3.bf16.msra.mxu0 %v3110_v45  ;;  %v3178_v45 = vld [vmem:[%s4068_s1 + $0x300] sm:$0xff]  }
  0x2d   :  { %2817 = vmatpush3.bf16.msra.mxu1 %v3112_v47  ;;  %2796 = vmatprep.subr.bf16.mxu0 %v3113_v48  ;;  %v3180_v47 = vld [vmem:[%s4068_s1 + $0x380] sm:$0xff]   ;;  %v3181_v48 = vld [vmem:[%s4068_s1 + $0x348] sm:$0xff]  }
  0x2e   :  { %2818 = vmatprep.subr.bf16.mxu1 %v3115_v50  ;;  %v3183_v50 = vld [vmem:[%s4068_s1 + $0x3c8] sm:$0xff]  }
  0x30   :  { %2797 = vmatpush3.bf16.msra.mxu0 %v3114_v49  ;;  %v3182_v49 = vld [vmem:[%s4068_s1 + $0x308] sm:$0xff]  }
  0x31   :  { %2819 = vmatpush3.bf16.msra.mxu1 %v3116_v51  ;;  %2798 = vmatprep.subr.bf16.mxu0 %v3117_v52  ;;  %v3184_v51 = vld [vmem:[%s4068_s1 + $0x388] sm:$0xff]   ;;  %v3185_v52 = vld [vmem:[%s4068_s1 + $0x350] sm:$0xff]  }
  0x32   :  { %2820 = vmatprep.subr.bf16.mxu1 %v3119_v54  ;;  %v3187_v54 = vld [vmem:[%s4068_s1 + $0x3d0] sm:$0xff]  }
  0x34   :  { %2799 = vmatpush3.bf16.msra.mxu0 %v3118_v53  ;;  %v3186_v53 = vld [vmem:[%s4068_s1 + $0x310] sm:$0xff]  }
  0x35   :  { %2821 = vmatpush3.bf16.msra.mxu1 %v3120_v55  ;;  %2800 = vmatprep.subr.bf16.mxu0 %v3121_v56  ;;  %v3188_v55 = vld [vmem:[%s4068_s1 + $0x390] sm:$0xff]   ;;  %v3189_v56 = vld [vmem:[%s4068_s1 + $0x358] sm:$0xff]  }
  0x36   :  { %2822 = vmatprep.subr.bf16.mxu1 %v3123_v58  ;;  %v3191_v58 = vld [vmem:[%s4068_s1 + $0x3d8] sm:$0xff]  }
  0x38   :  { %2801 = vmatpush3.bf16.msra.mxu0 %v3122_v57  ;;  %v3190_v57 = vld [vmem:[%s4068_s1 + $0x318] sm:$0xff]  }
  0x39   :  { %2823 = vmatpush3.bf16.msra.mxu1 %v3124_v59  ;;  %2802 = vmatprep.subr.bf16.mxu0 %v3125_v60  ;;  %v3192_v59 = vld [vmem:[%s4068_s1 + $0x398] sm:$0xff]   ;;  %v3193_v60 = vld [vmem:[%s4068_s1 + $0x360] sm:$0xff]  }
  0x3a   :  { %2824 = vmatprep.subr.bf16.mxu1 %v3127_v62  ;;  %v3195_v62 = vld [vmem:[%s4068_s1 + $0x3e0] sm:$0xff]  }
  0x3c   :  { %2803 = vmatpush3.bf16.msra.mxu0 %v3126_v61  ;;  %v3194_v61 = vld [vmem:[%s4068_s1 + $0x320] sm:$0xff]  }
  0x3d   :  { %2825 = vmatpush3.bf16.msra.mxu1 %v3128_v63  ;;  %2804 = vmatprep.subr.bf16.mxu0 %v3129_v0  ;;  %v3196_v63 = vld [vmem:[%s4068_s1 + $0x3a0] sm:$0xff]   ;;  %v3197_v0 = vld [vmem:[%s4068_s1 + $0x368] sm:$0xff]  }
  0x3e   :  { %2826 = vmatprep.subr.bf16.mxu1 %v3131_v2  ;;  %v3199_v2 = vld [vmem:[%s4068_s1 + $0x3e8] sm:$0xff]  }
  0x40   :  { %2805 = vmatpush3.bf16.msra.mxu0 %v3130_v1  ;;  %v3198_v1 = vld [vmem:[%s4068_s1 + $0x328] sm:$0xff]  }
  0x41   :  { %2827 = vmatpush3.bf16.msra.mxu1 %v3135_v5  ;;  %2834 = vmatprep.subr.bf16.mxu0 %v3136_v6  ;;  %v3202_v5 = vld [vmem:[%s4068_s1 + $0x330] sm:$0xff]  }
  0x42   :  { %2856 = vmatprep.subr.bf16.mxu1 %v3141_v10  ;;  %v3203_v6 = vld [vmem:[%s4068_s1 + $0x3f0] sm:$0xff]   ;;  %v3207_v10 = vld [vmem:[%s4068_s1 + $0x3f8] sm:$0xff]  }
  0x43   :  { %2019 = vmatmul.mubr.bf16.vlgmr.msra.gmra.mrb[4].mxu0 %v3132_v3  ;;  %v3200_v3 = vld [vmem:[%s4068_s1 + $0x3a8] sm:$0xff]  }
  0x44   :  { %2835 = vmatpush3.bf16.msra.mxu0 %v3140_v9  ;;  %2060 = vmatmul.mubr.bf16.vlgmr.msra.gmra.mrb[4].mxu1 %v3137_v7  ;;  %v3204_v7 = vld [vmem:[%s4068_s1 + $0x3b0] sm:$0xff]   ;;  %v3206_v9 = vld [vmem:[%s4068_s1 + $0x338] sm:$0xff]  }
  0x45   :  { %2857 = vmatpush3.bf16.msra.mxu1 %v3142_v11  ;;  %2836 = vmatprep.subr.bf16.mxu0 %v3143_v12  ;;  %v3208_v11 = vld [vmem:[%s4069_s0 + $0x30] ss:$108 sps:$4 sm:$0xff]   ;;  %v3210_v12 = vld [vmem:[%s4069_s0 + $0x34] ss:$108 sps:$4 sm:$0xff]  }
  0x46   :  { %2858 = vmatprep.subr.bf16.mxu1 %v3145_v14  ;;  %2100 = vmatprep.mubr.bf16.mxu0 %v3172_v40  ;;  %v3212_v14 = vld [vmem:[%s4068_s1 + $0x440] sm:$0xff]   ;;  %v3239_v40 = vld [vmem:[%s4068_s1 + $0x470] sm:$0xff]  }
  0x47   :  { %2141 = vmatprep.mubr.bf16.mxu1 %v3177_v44  ;;  %v3243_v44 = vld [vmem:[%s4068_s1 + $0x478] sm:$0xff]  }
  0x48   :  { %2837 = vmatpush3.bf16.msra.mxu0 %v3144_v13  ;;  %v3211_v13 = vld [vmem:[%s4068_s1 + $0x3b8] sm:$0xff]  }
  0x49   :  { %2859 = vmatpush3.bf16.msra.mxu1 %v3146_v15  ;;  %2838 = vmatprep.subr.bf16.mxu0 %v3147_v16  ;;  %v3213_v15 = vld [vmem:[%s4069_s0 + $0x38] ss:$108 sps:$4 sm:$0xff]   ;;  %v3215_v16 = vld [vmem:[%s4069_s0 + $0x3c] ss:$108 sps:$4 sm:$0xff]  }
  0x4a   :  { %2860 = vmatprep.subr.bf16.mxu1 %v3149_v18  ;;  %v3217_v18 = vld [vmem:[%s4068_s1 + $0x4c0] sm:$0xff]  }
  0x4c   :  { %2839 = vmatpush3.bf16.msra.mxu0 %v3148_v17  ;;  %v3216_v17 = vld [vmem:[%s4068_s1 + $0x400] sm:$0xff]  }
  0x4d   :  { %2861 = vmatpush3.bf16.msra.mxu1 %v3150_v19  ;;  %2840 = vmatprep.subr.bf16.mxu0 %v3151_v20  ;;  %v3218_v19 = vld [vmem:[%s4068_s1 + $0x480] sm:$0xff]   ;;  %v3219_v20 = vld [vmem:[%s4068_s1 + $0x448] sm:$0xff]  }
  0x4e   :  { %2862 = vmatprep.subr.bf16.mxu1 %v3153_v22  ;;  %v3221_v22 = vld [vmem:[%s4068_s1 + $0x4c8] sm:$0xff]  }
  0x50   :  { %2841 = vmatpush3.bf16.msra.mxu0 %v3152_v21  ;;  %v3220_v21 = vld [vmem:[%s4068_s1 + $0x408] sm:$0xff]  }
  0x51   :  { %2863 = vmatpush3.bf16.msra.mxu1 %v3154_v23  ;;  %2842 = vmatprep.subr.bf16.mxu0 %v3155_v24  ;;  %v3222_v23 = vld [vmem:[%s4068_s1 + $0x488] sm:$0xff]   ;;  %v3223_v24 = vld [vmem:[%s4068_s1 + $0x450] sm:$0xff]  }
  0x52   :  { %2864 = vmatprep.subr.bf16.mxu1 %v3157_v26  ;;  %v3225_v26 = vld [vmem:[%s4068_s1 + $0x4d0] sm:$0xff]  }
  0x54   :  { %2843 = vmatpush3.bf16.msra.mxu0 %v3156_v25  ;;  %v3224_v25 = vld [vmem:[%s4068_s1 + $0x410] sm:$0xff]  }
  0x55   :  { %2865 = vmatpush3.bf16.msra.mxu1 %v3158_v27  ;;  %2844 = vmatprep.subr.bf16.mxu0 %v3159_v28  ;;  %v3226_v27 = vld [vmem:[%s4068_s1 + $0x490] sm:$0xff]   ;;  %v3227_v28 = vld [vmem:[%s4068_s1 + $0x458] sm:$0xff]  }
  0x56   :  { %2866 = vmatprep.subr.bf16.mxu1 %v3161_v30  ;;  %v3229_v30 = vld [vmem:[%s4068_s1 + $0x4d8] sm:$0xff]  }
  0x58   :  { %2845 = vmatpush3.bf16.msra.mxu0 %v3160_v29  ;;  %v3228_v29 = vld [vmem:[%s4068_s1 + $0x418] sm:$0xff]  }
  0x59   :  { %2867 = vmatpush3.bf16.msra.mxu1 %v3162_v31  ;;  %2846 = vmatprep.subr.bf16.mxu0 %v3163_v32  ;;  %v3230_v31 = vld [vmem:[%s4068_s1 + $0x498] sm:$0xff]   ;;  %v3231_v32 = vld [vmem:[%s4068_s1 + $0x460] sm:$0xff]  }
  0x5a   :  { %2868 = vmatprep.subr.bf16.mxu1 %v3165_v34  ;;  %v3233_v34 = vld [vmem:[%s4068_s1 + $0x4e0] sm:$0xff]  }
  0x5c   :  { %2847 = vmatpush3.bf16.msra.mxu0 %v3164_v33  ;;  %v3232_v33 = vld [vmem:[%s4068_s1 + $0x420] sm:$0xff]  }
  0x5d   :  { %2869 = vmatpush3.bf16.msra.mxu1 %v3166_v35  ;;  %2848 = vmatprep.subr.bf16.mxu0 %v3167_v36  ;;  %v3234_v35 = vld [vmem:[%s4068_s1 + $0x4a0] sm:$0xff]   ;;  %v3235_v36 = vld [vmem:[%s4068_s1 + $0x468] sm:$0xff]  }
  0x5e   :  { %2870 = vmatprep.subr.bf16.mxu1 %v3169_v38  ;;  %v3237_v38 = vld [vmem:[%s4068_s1 + $0x4e8] sm:$0xff]  }
  0x60   :  { %2849 = vmatpush3.bf16.msra.mxu0 %v3168_v37  ;;  %v3236_v37 = vld [vmem:[%s4068_s1 + $0x428] sm:$0xff]  }
  0x61   :  { %2871 = vmatpush3.bf16.msra.mxu1 %v3173_v41  ;;  %2878 = vmatprep.subr.bf16.mxu0 %v3174_v42  ;;  %v3240_v41 = vld [vmem:[%s4068_s1 + $0x430] sm:$0xff]  }
  0x62   :  { %2900 = vmatprep.subr.bf16.mxu1 %v3179_v46  ;;  %v3241_v42 = vld [vmem:[%s4068_s1 + $0x4f0] sm:$0xff]   ;;  %v3245_v46 = vld [vmem:[%s4068_s1 + $0x4f8] sm:$0xff]  }
  0x63   :  { %2101 = vmatmul.mubr.bf16.vlgmr.msra.gmra.mrb[8].mxu0 %v3170_v39  ;;  %v3238_v39 = vld [vmem:[%s4068_s1 + $0x4a8] sm:$0xff]  }
  0x64   :  { %2879 = vmatpush3.bf16.msra.mxu0 %v3178_v45  ;;  %2142 = vmatmul.mubr.bf16.vlgmr.msra.gmra.mrb[8].mxu1 %v3175_v43  ;;  %v3242_v43 = vld [vmem:[%s4068_s1 + $0x4b0] sm:$0xff]   ;;  %v3244_v45 = vld [vmem:[%s4068_s1 + $0x438] sm:$0xff]  }
  0x65   :  { %2901 = vmatpush3.bf16.msra.mxu1 %v3180_v47  ;;  %2880 = vmatprep.subr.bf16.mxu0 %v3181_v48  ;;  %v3246_v47 = vld [vmem:[%s4069_s0 + $0x40] ss:$108 sps:$4 sm:$0xff]   ;;  %v3248_v48 = vld [vmem:[%s4069_s0 + $0x44] ss:$108 sps:$4 sm:$0xff]  }
  0x66   :  { %2902 = vmatprep.subr.bf16.mxu1 %v3183_v50  ;;  %2182 = vmatprep.mubr.bf16.mxu0 %v3210_v12  ;;  %v3250_v50 = vld [vmem:[%s4068_s1 + $0x540] sm:$0xff]   ;;  %v3277_v12 = vld [vmem:[%s4068_s1 + $0x570] sm:$0xff]  }
  0x67   :  { %2223 = vmatprep.mubr.bf16.mxu1 %v3215_v16  ;;  %v3281_v16 = vld [vmem:[%s4068_s1 + $0x578] sm:$0xff]  }
  0x68   :  { %2881 = vmatpush3.bf16.msra.mxu0 %v3182_v49  ;;  %v3249_v49 = vld [vmem:[%s4068_s1 + $0x4b8] sm:$0xff]  }
  0x69   :  { %2903 = vmatpush3.bf16.msra.mxu1 %v3184_v51  ;;  %2882 = vmatprep.subr.bf16.mxu0 %v3185_v52  ;;  %v3251_v51 = vld [vmem:[%s4069_s0 + $0x48] ss:$108 sps:$4 sm:$0xff]   ;;  %v3253_v52 = vld [vmem:[%s4069_s0 + $0x4c] ss:$108 sps:$4 sm:$0xff]  }
  0x6a   :  { %2904 = vmatprep.subr.bf16.mxu1 %v3187_v54  ;;  %v3255_v54 = vld [vmem:[%s4068_s1 + $0x5c0] sm:$0xff]  }
  0x6c   :  { %2883 = vmatpush3.bf16.msra.mxu0 %v3186_v53  ;;  %v3254_v53 = vld [vmem:[%s4068_s1 + $0x500] sm:$0xff]  }
  0x6d   :  { %2905 = vmatpush3.bf16.msra.mxu1 %v3188_v55  ;;  %2884 = vmatprep.subr.bf16.mxu0 %v3189_v56  ;;  %v3256_v55 = vld [vmem:[%s4068_s1 + $0x580] sm:$0xff]   ;;  %v3257_v56 = vld [vmem:[%s4068_s1 + $0x548] sm:$0xff]  }
  0x6e   :  { %2906 = vmatprep.subr.bf16.mxu1 %v3191_v58  ;;  %v3259_v58 = vld [vmem:[%s4068_s1 + $0x5c8] sm:$0xff]  }
  0x70   :  { %2885 = vmatpush3.bf16.msra.mxu0 %v3190_v57  ;;  %v3258_v57 = vld [vmem:[%s4068_s1 + $0x508] sm:$0xff]  }
  0x71   :  { %2907 = vmatpush3.bf16.msra.mxu1 %v3192_v59  ;;  %2886 = vmatprep.subr.bf16.mxu0 %v3193_v60  ;;  %v3260_v59 = vld [vmem:[%s4068_s1 + $0x588] sm:$0xff]   ;;  %v3261_v60 = vld [vmem:[%s4068_s1 + $0x550] sm:$0xff]  }
  0x72   :  { %2908 = vmatprep.subr.bf16.mxu1 %v3195_v62  ;;  %v3263_v62 = vld [vmem:[%s4068_s1 + $0x5d0] sm:$0xff]  }
  0x74   :  { %2887 = vmatpush3.bf16.msra.mxu0 %v3194_v61  ;;  %v3262_v61 = vld [vmem:[%s4068_s1 + $0x510] sm:$0xff]  }
  0x75   :  { %2909 = vmatpush3.bf16.msra.mxu1 %v3196_v63  ;;  %2888 = vmatprep.subr.bf16.mxu0 %v3197_v0  ;;  %v3264_v63 = vld [vmem:[%s4068_s1 + $0x590] sm:$0xff]   ;;  %v3265_v0 = vld [vmem:[%s4068_s1 + $0x558] sm:$0xff]  }
  0x76   :  { %2910 = vmatprep.subr.bf16.mxu1 %v3199_v2  ;;  %v3267_v2 = vld [vmem:[%s4068_s1 + $0x5d8] sm:$0xff]  }
  0x78   :  { %2889 = vmatpush3.bf16.msra.mxu0 %v3198_v1  ;;  %v3266_v1 = vld [vmem:[%s4068_s1 + $0x518] sm:$0xff]  }
  0x79   :  { %2911 = vmatpush3.bf16.msra.mxu1 %v3200_v3  ;;  %2890 = vmatprep.subr.bf16.mxu0 %v3201_v4  ;;  %v3268_v3 = vld [vmem:[%s4068_s1 + $0x598] sm:$0xff]   ;;  %v3269_v4 = vld [vmem:[%s4068_s1 + $0x560] sm:$0xff]  }
  0x7a   :  { %2912 = vmatprep.subr.bf16.mxu1 %v3203_v6  ;;  %v3271_v6 = vld [vmem:[%s4068_s1 + $0x5e0] sm:$0xff]  }
  0x7c   :  { %2891 = vmatpush3.bf16.msra.mxu0 %v3202_v5  ;;  %v3270_v5 = vld [vmem:[%s4068_s1 + $0x520] sm:$0xff]  }
  0x7d   :  { %2913 = vmatpush3.bf16.msra.mxu1 %v3204_v7  ;;  %2892 = vmatprep.subr.bf16.mxu0 %v3205_v8  ;;  %v3272_v7 = vld [vmem:[%s4068_s1 + $0x5a0] sm:$0xff]   ;;  %v3273_v8 = vld [vmem:[%s4068_s1 + $0x568] sm:$0xff]  }
  0x7e   :  { %2914 = vmatprep.subr.bf16.mxu1 %v3207_v10  ;;  %v3275_v10 = vld [vmem:[%s4068_s1 + $0x5e8] sm:$0xff]  }
  0x80   :  { %2893 = vmatpush3.bf16.msra.mxu0 %v3206_v9  ;;  %v3274_v9 = vld [vmem:[%s4068_s1 + $0x528] sm:$0xff]  }
  0x81   :  { %2915 = vmatpush3.bf16.msra.mxu1 %v3211_v13  ;;  %2922 = vmatprep.subr.bf16.mxu0 %v3212_v14  ;;  %v3278_v13 = vld [vmem:[%s4068_s1 + $0x530] sm:$0xff]  }
  0x82   :  { %2944 = vmatprep.subr.bf16.mxu1 %v3217_v18  ;;  %v3279_v14 = vld [vmem:[%s4068_s1 + $0x5f0] sm:$0xff]   ;;  %v3283_v18 = vld [vmem:[%s4068_s1 + $0x5f8] sm:$0xff]  }
  0x83   :  { %2183 = vmatmul.mubr.bf16.vlgmr.msra.gmra.mrb[12].mxu0 %v3208_v11  ;;  %v3276_v11 = vld [vmem:[%s4068_s1 + $0x5a8] sm:$0xff]  }
  0x84   :  { %2923 = vmatpush3.bf16.msra.mxu0 %v3216_v17  ;;  %2224 = vmatmul.mubr.bf16.vlgmr.msra.gmra.mrb[12].mxu1 %v3213_v15  ;;  %v3280_v15 = vld [vmem:[%s4068_s1 + $0x5b0] sm:$0xff]   ;;  %v3282_v17 = vld [vmem:[%s4068_s1 + $0x538] sm:$0xff]  }
  0x85   :  { %2945 = vmatpush3.bf16.msra.mxu1 %v3218_v19  ;;  %2924 = vmatprep.subr.bf16.mxu0 %v3219_v20  ;;  %v3284_v19 = vld [vmem:[%s4069_s0 + $0x50] ss:$108 sps:$4 sm:$0xff]   ;;  %v3286_v20 = vld [vmem:[%s4069_s0 + $0x54] ss:$108 sps:$4 sm:$0xff]  }
  0x86   :  { %2946 = vmatprep.subr.bf16.mxu1 %v3221_v22  ;;  %2264 = vmatprep.mubr.bf16.mxu0 %v3248_v48  ;;  %v3288_v22 = vld [vmem:[%s4068_s1 + $0x640] sm:$0xff]   ;;  %v3313_v48 = vld [vmem:[%s4068_s1 + $0x638] sm:$0xff]  }
  0x87   :  { %2305 = vmatprep.mubr.bf16.mxu1 %v3253_v52 }
  0x88   :  { %2925 = vmatpush3.bf16.msra.mxu0 %v3220_v21  ;;  %v3287_v21 = vld [vmem:[%s4068_s1 + $0x5b8] sm:$0xff]  }
  0x89   :  { %2947 = vmatpush3.bf16.msra.mxu1 %v3222_v23  ;;  %2926 = vmatprep.subr.bf16.mxu0 %v3223_v24  ;;  %v3289_v23 = vld [vmem:[%s4069_s0 + $0x58] ss:$108 sps:$4 sm:$0xff]   ;;  %v3291_v24 = vld [vmem:[%s4069_s0 + $0x5c] ss:$108 sps:$4 sm:$0xff]  }
  0x8a   :  { %2948 = vmatprep.subr.bf16.mxu1 %v3225_v26  ;;  %v3319_v26 = vmov 0.0  }
  0x8c   :  { %2927 = vmatpush3.bf16.msra.mxu0 %v3224_v25  ;;  %v3292_v25 = vld [vmem:[%s4068_s1 + $0x600] sm:$0xff]  }
  0x8d   :  { %2949 = vmatpush3.bf16.msra.mxu1 %v3226_v27  ;;  %2928 = vmatprep.subr.bf16.mxu0 %v3227_v28  ;;  %v3293_v27 = vld [vmem:[%s4068_s1 + $0x680] sm:$0xff]   ;;  %v3294_v28 = vld [vmem:[%s4068_s1 + $0x648] sm:$0xff]  }
  0x8e   :  { %2950 = vmatprep.subr.bf16.mxu1 %v3229_v30  ;;  %v3296_v30 = vld [vmem:[%s4068_s1 + $0x688] sm:$0xff]  }
  0x90   :  { %2929 = vmatpush3.bf16.msra.mxu0 %v3228_v29  ;;  %v3295_v29 = vld [vmem:[%s4068_s1 + $0x608] sm:$0xff]  }
  0x91   :  { %2951 = vmatpush3.bf16.msra.mxu1 %v3230_v31  ;;  %2930 = vmatprep.subr.bf16.mxu0 %v3231_v32  ;;  %v3297_v31 = vld [vmem:[%s4068_s1 + $0x650] sm:$0xff]  }
  0x92   :  { %2952 = vmatprep.subr.bf16.mxu1 %v3233_v34  ;;  %v3298_v32 = vld [vmem:[%s4068_s1 + $0x610] sm:$0xff]   ;;  %v3300_v34 = vld [vmem:[%s4068_s1 + $0x658] sm:$0xff]  }
  0x94   :  { %2931 = vmatpush3.bf16.msra.mxu0 %v3232_v33  ;;  %v3299_v33 = vld [vmem:[%s4068_s1 + $0x690] sm:$0xff]  }
  0x95   :  { %2953 = vmatpush3.bf16.msra.mxu1 %v3234_v35  ;;  %2932 = vmatprep.subr.bf16.mxu0 %v3235_v36  ;;  %v3301_v35 = vld [vmem:[%s4068_s1 + $0x618] sm:$0xff]  }
  0x96   :  { %2954 = vmatprep.subr.bf16.mxu1 %v3237_v38  ;;  %v3302_v36 = vld [vmem:[%s4068_s1 + $0x698] sm:$0xff]   ;;  %v3304_v38 = vld [vmem:[%s4068_s1 + $0x620] sm:$0xff]  }
  0x98   :  { %2933 = vmatpush3.bf16.msra.mxu0 %v3236_v37  ;;  %v3303_v37 = vld [vmem:[%s4068_s1 + $0x660] sm:$0xff]  }
  0x99   :  { %2955 = vmatpush3.bf16.msra.mxu1 %v3238_v39  ;;  %2934 = vmatprep.subr.bf16.mxu0 %v3239_v40  ;;  %v3305_v39 = vld [vmem:[%s4068_s1 + $0x6a0] sm:$0xff]   ;;  %v3306_v40 = vld [vmem:[%s4068_s1 + $0x668] sm:$0xff]  }
  0x9a   :  { %2956 = vmatprep.subr.bf16.mxu1 %v3241_v42  ;;  %v3308_v42 = vld [vmem:[%s4068_s1 + $0x6a8] sm:$0xff]  }
  0x9c   :  { %2935 = vmatpush3.bf16.msra.mxu0 %v3240_v41  ;;  %v3307_v41 = vld [vmem:[%s4068_s1 + $0x628] sm:$0xff]  }
  0x9d   :  { %2957 = vmatpush3.bf16.msra.mxu1 %v3242_v43  ;;  %2936 = vmatprep.subr.bf16.mxu0 %v3243_v44  ;;  %v3309_v43 = vld [vmem:[%s4068_s1 + $0x670] sm:$0xff]  }
  0x9e   :  { %2958 = vmatprep.subr.bf16.mxu1 %v3245_v46  ;;  %v3310_v44 = vld [vmem:[%s4068_s1 + $0x630] sm:$0xff]   ;;  %v3312_v46 = vld [vmem:[%s4068_s1 + $0x678] sm:$0xff]  }
  0xa0   :  { %2937 = vmatpush3.bf16.msra.mxu0 %v3244_v45  ;;  %v3311_v45 = vld [vmem:[%s4068_s1 + $0x6b0] sm:$0xff]  }
  0xa1   :  { %2959 = vmatpush3.bf16.msra.mxu1 %v3249_v49  ;;  %2966 = vmatprep.subr.bf16.mxu0 %v3250_v50  ;;  %v3317_v49 = vld [vmem:[%s4068_s1 + $0x6b8] sm:$0xff]   ;;  %v3314_v50 = vld [vmem:[%s4069_s0 + $0x60] ss:$108 sps:$4 sm:$0xff]  }
  0xa2   :  { %2988 = vmatprep.subr.bf16.mxu1 %v3255_v54 }
  0xa3   :  { %2265 = vmatmul.mubr.bf16.vlgmr.msra.gmra.mrb[16].mxu0 %v3246_v47  ;;  %v3316_v47 = vld [vmem:[%s4069_s0 + $0x64] ss:$108 sps:$4 sm:$0xff]  }
  0xa4   :  { %2967 = vmatpush3.bf16.msra.mxu0 %v3254_v53  ;;  %2306 = vmatmul.mubr.bf16.vlgmr.msra.gmra.mrb[16].mxu1 %v3251_v51  ;;  %v3318_v51 = vld [vmem:[%s4069_s0 + $0x68] ss:$108 sps:$4 sm:$0xff]  }
  0xa5   :  { %2989 = vmatpush3.bf16.msra.mxu1 %v3256_v55  ;;  %2968 = vmatprep.subr.bf16.mxu0 %v3257_v56 }
  0xa6   :  { %2990 = vmatprep.subr.bf16.mxu1 %v3259_v58  ;;  %2346 = vmatprep.mubr.bf16.mxu0 %v3286_v20 }
  0xa7   :  { %2387 = vmatprep.mubr.bf16.mxu1 %v3291_v24 }
  0xa8   :  { %2969 = vmatpush3.bf16.msra.mxu0 %v3258_v57 }
  0xa9   :  { %2991 = vmatpush3.bf16.msra.mxu1 %v3260_v59  ;;  %2970 = vmatprep.subr.bf16.mxu0 %v3261_v60 }
  0xaa   :  { %2992 = vmatprep.subr.bf16.mxu1 %v3263_v62 }
  0xac   :  { %2971 = vmatpush3.bf16.msra.mxu0 %v3262_v61 }
  0xad   :  { %2993 = vmatpush3.bf16.msra.mxu1 %v3264_v63  ;;  %2972 = vmatprep.subr.bf16.mxu0 %v3265_v0 }
  0xae   :  { %2994 = vmatprep.subr.bf16.mxu1 %v3267_v2 }
  0xb0   :  { %2973 = vmatpush3.bf16.msra.mxu0 %v3266_v1 }
  0xb1   :  { %2995 = vmatpush3.bf16.msra.mxu1 %v3268_v3  ;;  %2974 = vmatprep.subr.bf16.mxu0 %v3269_v4 }
  0xb2   :  { %2996 = vmatprep.subr.bf16.mxu1 %v3271_v6 }
  0xb4   :  { %2975 = vmatpush3.bf16.msra.mxu0 %v3270_v5 }
  0xb5   :  { %2997 = vmatpush3.bf16.msra.mxu1 %v3272_v7  ;;  %2976 = vmatprep.subr.bf16.mxu0 %v3273_v8 }
  0xb6   :  { %2998 = vmatprep.subr.bf16.mxu1 %v3275_v10 }
  0xb8   :  { %2977 = vmatpush3.bf16.msra.mxu0 %v3274_v9 }
  0xb9   :  { %2999 = vmatpush3.bf16.msra.mxu1 %v3276_v11  ;;  %2978 = vmatprep.subr.bf16.mxu0 %v3277_v12 }
  0xba   :  { %3000 = vmatprep.subr.bf16.mxu1 %v3279_v14 }
  0xbc   :  { %2979 = vmatpush3.bf16.msra.mxu0 %v3278_v13 }
  0xbd   :  { %3001 = vmatpush3.bf16.msra.mxu1 %v3280_v15  ;;  %2980 = vmatprep.subr.bf16.mxu0 %v3281_v16 }
  0xbe   :  { %3002 = vmatprep.subr.bf16.mxu1 %v3283_v18 }
  0xc0   :  { %2981 = vmatpush3.bf16.msra.mxu0 %v3282_v17 }
  0xc1   :  { %3003 = vmatpush3.bf16.msra.mxu1 %v3287_v21  ;;  %3010 = vmatprep.subr.bf16.mxu0 %v3288_v22 }
  0xc2   :  { %3041 = vmatprep.subr.bf16.mxu1 %v3319_v26 }
  0xc3   :  { %2347 = vmatmul.mubr.bf16.vlgmr.msra.gmra.mrb[20].mxu0 %v3284_v19 }
  0xc4   :  { %3011 = vmatpush3.bf16.msra.mxu0 %v3292_v25  ;;  %2388 = vmatmul.mubr.bf16.vlgmr.msra.gmra.mrb[20].mxu1 %v3289_v23 }
  0xc5   :  { %3042 = vmatpush3.bf16.msra.mxu1 %v3293_v27  ;;  %3057 = vmatprep.mubr.msk.bf16.mxu1 %vm3320_vm0, %v3319_v26 }
  0xc6   :  { %3012 = vmatprep.subr.bf16.mxu0 %v3294_v28  ;;  %3043 = vmatprep.subr.bf16.mxu1 %v3319_v26 }
  0xc7   :  { %2428 = vmatprep.mubr.bf16.mxu0 %v3316_v47 }
  0xc8   :  { %3013 = vmatpush3.bf16.msra.mxu0 %v3295_v29 }
  0xc9   :  { %3044 = vmatpush3.bf16.msra.mxu1 %v3296_v30  ;;  %3014 = vmatprep.subr.bf16.mxu0 %v3297_v31 }
  0xca   :  { %3045 = vmatprep.subr.bf16.mxu1 %v3319_v26 }
  0xcc   :  { %3015 = vmatpush3.bf16.msra.mxu0 %v3298_v32 }
  0xcd   :  { %3046 = vmatpush3.bf16.msra.mxu1 %v3299_v33  ;;  %3016 = vmatprep.subr.bf16.mxu0 %v3300_v34 }
  0xce   :  { %3047 = vmatprep.subr.bf16.mxu1 %v3319_v26 }
  0xd0   :  { %3017 = vmatpush3.bf16.msra.mxu0 %v3301_v35 }
  0xd1   :  { %3048 = vmatpush3.bf16.msra.mxu1 %v3302_v36  ;;  %3018 = vmatprep.subr.bf16.mxu0 %v3303_v37 }
  0xd2   :  { %3049 = vmatprep.subr.bf16.mxu1 %v3319_v26 }
  0xd4   :  { %3019 = vmatpush3.bf16.msra.mxu0 %v3304_v38 }
  0xd5   :  { %3050 = vmatpush3.bf16.msra.mxu1 %v3305_v39  ;;  %3020 = vmatprep.subr.bf16.mxu0 %v3306_v40 }
  0xd6   :  { %3051 = vmatprep.subr.bf16.mxu1 %v3319_v26 }
  0xd8   :  { %3021 = vmatpush3.bf16.msra.mxu0 %v3307_v41 }
  0xd9   :  { %3052 = vmatpush3.bf16.msra.mxu1 %v3308_v42  ;;  %3022 = vmatprep.subr.bf16.mxu0 %v3309_v43 }
  0xda   :  { %3053 = vmatprep.subr.bf16.mxu1 %v3319_v26 }
  0xdc   :  { %3023 = vmatpush3.bf16.msra.mxu0 %v3310_v44 }
  0xdd   :  { %3054 = vmatpush3.bf16.msra.mxu1 %v3311_v45  ;;  %3024 = vmatprep.subr.bf16.mxu0 %v3312_v46 }
  0xde   :  { %3055 = vmatprep.subr.bf16.mxu1 %v3319_v26 }
  0xe0   :  { %3025 = vmatpush3.bf16.msra.mxu0 %v3313_v48 }
  0xe1   :  { %3056 = vmatpush3.bf16.msra.mxu1 %v3317_v49 }
  0xe3   :  { %2429 = vmatmul.mubr.bf16.vlgmr.msra.gmra.mrb[24].mxu0 %v3314_v50 }
  0xe4   :  { %3058 = vmatmul.mubr.bf16.vlgmr.msra.gmra.mrb[24].mxu1 %v3318_v51 }
  0xf6   :  { %v2762_v52 = vpop.f32.mrb[0].mxu0 }
  0xf7   :  { %v2784_v53 = vpop.f32.mrb[0].mxu1  ;;  %v2763_v54 = vpop.f32.mrb[1].mxu0 }
  0xf8   :  { %v2764_v55 = vadd.f32 %v2763_v54, %v2762_v52  ;;  %v2785_v56 = vpop.f32.mrb[1].mxu1  ;;  %v2765_v57 = vpop.f32.mrb[2].mxu0 }
  0xf9   :  { %v2786_v58 = vadd.f32 %v2785_v56, %v2784_v53  ;;  %v2787_v59 = vpop.f32.mrb[2].mxu1  ;;  %v2766_v60 = vpop.f32.mrb[3].mxu0 }
  0xfa   :  { %v2767_v61 = vadd.f32 %v2766_v60, %v2765_v57  ;;  %v2788_v62 = vpop.f32.mrb[3].mxu1 }
  0xfb   :  { %v1980_v63 = vadd.f32 %v2786_v58, %v2764_v55  ;;  %v2789_v0 = vadd.f32 %v2788_v62, %v2787_v59 }
  0xfd   :  { %v1983_v1 = vadd.f32 %v2789_v0, %v2767_v61 }
 0x116   :  { %v2806_v2 = vpop.f32.mrb[4].mxu0 }
 0x117   :  { %v2807_v3 = vpop.f32.mrb[5].mxu0  ;;  %v2828_v8 = vpop.f32.mrb[4].mxu1 }
 0x118   :  { %v2808_v4 = vadd.f32 %v2807_v3, %v2806_v2  ;;  %v2809_v5 = vpop.f32.mrb[6].mxu0  ;;  %v2829_v10 = vpop.f32.mrb[5].mxu1 }
 0x119   :  { %v2810_v6 = vpop.f32.mrb[7].mxu0  ;;  %v2830_v12 = vadd.f32 %v2829_v10, %v2828_v8  ;;  %v2831_v13 = vpop.f32.mrb[6].mxu1 }
 0x11a   :  { %v2021_v7 = vadd.f32 %v2808_v4, %v1980_v63  ;;  %v2811_v9 = vadd.f32 %v2810_v6, %v2809_v5  ;;  %v2832_v14 = vpop.f32.mrb[7].mxu1 }
 0x11b   :  { %v2833_v16 = vadd.f32 %v2832_v14, %v2831_v13 }
 0x11c   :  { %v2024_v11 = vadd.f32 %v2811_v9, %v1983_v1  ;;  %v2062_v15 = vadd.f32 %v2830_v12, %v2021_v7 }
 0x11e   :  { %v2065_v17 = vadd.f32 %v2833_v16, %v2024_v11 }
 0x136   :  { %v2850_v18 = vpop.f32.mrb[8].mxu0 }
 0x137   :  { %v2851_v19 = vpop.f32.mrb[9].mxu0  ;;  %v2872_v22 = vpop.f32.mrb[8].mxu1 }
 0x138   :  { %v2852_v20 = vadd.f32 %v2851_v19, %v2850_v18  ;;  %v2853_v21 = vpop.f32.mrb[10].mxu0  ;;  %v2873_v26 = vpop.f32.mrb[9].mxu1 }
 0x139   :  { %v2854_v23 = vpop.f32.mrb[11].mxu0  ;;  %v2874_v27 = vadd.f32 %v2873_v26, %v2872_v22  ;;  %v2875_v28 = vpop.f32.mrb[10].mxu1 }
 0x13a   :  { %v2103_v24 = vadd.f32 %v2852_v20, %v2062_v15  ;;  %v2855_v25 = vadd.f32 %v2854_v23, %v2853_v21  ;;  %v2876_v30 = vpop.f32.mrb[11].mxu1 }
 0x13b   :  { %v2877_v32 = vadd.f32 %v2876_v30, %v2875_v28 }
 0x13c   :  { %v2106_v29 = vadd.f32 %v2855_v25, %v2065_v17  ;;  %v2144_v31 = vadd.f32 %v2874_v27, %v2103_v24 }
 0x13e   :  { %v2147_v33 = vadd.f32 %v2877_v32, %v2106_v29 }
 0x156   :  { %v2894_v34 = vpop.f32.mrb[12].mxu0 }
 0x157   :  { %v2895_v35 = vpop.f32.mrb[13].mxu0  ;;  %v2916_v38 = vpop.f32.mrb[12].mxu1 }
 0x158   :  { %v2896_v36 = vadd.f32 %v2895_v35, %v2894_v34  ;;  %v2897_v37 = vpop.f32.mrb[14].mxu0  ;;  %v2917_v42 = vpop.f32.mrb[13].mxu1 }
 0x159   :  { %v2898_v39 = vpop.f32.mrb[15].mxu0  ;;  %v2918_v43 = vadd.f32 %v2917_v42, %v2916_v38  ;;  %v2919_v44 = vpop.f32.mrb[14].mxu1 }
 0x15a   :  { %v2185_v40 = vadd.f32 %v2896_v36, %v2144_v31  ;;  %v2899_v41 = vadd.f32 %v2898_v39, %v2897_v37  ;;  %v2920_v46 = vpop.f32.mrb[15].mxu1 }
 0x15b   :  { %v2921_v48 = vadd.f32 %v2920_v46, %v2919_v44 }
 0x15c   :  { %v2188_v45 = vadd.f32 %v2899_v41, %v2147_v33  ;;  %v2226_v47 = vadd.f32 %v2918_v43, %v2185_v40 }
 0x15e   :  { %v2229_v49 = vadd.f32 %v2921_v48, %v2188_v45 }
 0x176   :  { %v2938_v50 = vpop.f32.mrb[16].mxu0 }
 0x177   :  { %v2939_v51 = vpop.f32.mrb[17].mxu0  ;;  %v2960_v56 = vpop.f32.mrb[16].mxu1 }
 0x178   :  { %v2940_v52 = vadd.f32 %v2939_v51, %v2938_v50  ;;  %v2941_v53 = vpop.f32.mrb[18].mxu0  ;;  %v2961_v58 = vpop.f32.mrb[17].mxu1 }
 0x179   :  { %v2942_v54 = vpop.f32.mrb[19].mxu0  ;;  %v2962_v60 = vadd.f32 %v2961_v58, %v2960_v56  ;;  %v2963_v61 = vpop.f32.mrb[18].mxu1 }
 0x17a   :  { %v2267_v55 = vadd.f32 %v2940_v52, %v2226_v47  ;;  %v2943_v57 = vadd.f32 %v2942_v54, %v2941_v53  ;;  %v2964_v62 = vpop.f32.mrb[19].mxu1 }
 0x17b   :  { %v2965_v0 = vadd.f32 %v2964_v62, %v2963_v61 }
 0x17c   :  { %v2270_v59 = vadd.f32 %v2943_v57, %v2229_v49  ;;  %v2308_v63 = vadd.f32 %v2962_v60, %v2267_v55 }
 0x17e   :  { %v2311_v1 = vadd.f32 %v2965_v0, %v2270_v59 }
 0x196   :  { %v2982_v2 = vpop.f32.mrb[20].mxu0 }
 0x197   :  { %v2983_v3 = vpop.f32.mrb[21].mxu0  ;;  %v3004_v6 = vpop.f32.mrb[20].mxu1 }
 0x198   :  { %v2984_v4 = vadd.f32 %v2983_v3, %v2982_v2  ;;  %v2985_v5 = vpop.f32.mrb[22].mxu0  ;;  %v3005_v10 = vpop.f32.mrb[21].mxu1 }
 0x199   :  { %v2986_v7 = vpop.f32.mrb[23].mxu0  ;;  %v3006_v11 = vadd.f32 %v3005_v10, %v3004_v6  ;;  %v3007_v12 = vpop.f32.mrb[22].mxu1 }
 0x19a   :  { %v2349_v8 = vadd.f32 %v2984_v4, %v2308_v63  ;;  %v2987_v9 = vadd.f32 %v2986_v7, %v2985_v5  ;;  %v3008_v14 = vpop.f32.mrb[23].mxu1 }
 0x19b   :  { %v3009_v16 = vadd.f32 %v3008_v14, %v3007_v12 }
 0x19c   :  { %v2352_v13 = vadd.f32 %v2987_v9, %v2311_v1  ;;  %v2390_v15 = vadd.f32 %v3006_v11, %v2349_v8 }
 0x19e   :  { %v2393_v17 = vadd.f32 %v3009_v16, %v2352_v13 }
 0x1b6   :  { %v3026_v18 = vpop.f32.mrb[24].mxu0 }
 0x1b7   :  { %v3027_v19 = vpop.f32.mrb[25].mxu0  ;;  %v2471_v20 = vpop.f32.mrb[24].mxu1 }
 0x1b8   :  { %v3028_v21 = vadd.f32 %v3027_v19, %v3026_v18  ;;  %v3029_v22 = vpop.f32.mrb[26].mxu0  ;;  %v3059_v23 = vpop.f32.mrb[25].mxu1 }
 0x1b9   :  { %v3030_v24 = vpop.f32.mrb[27].mxu0  ;;  %v2474_v25 = vpop.f32.mrb[26].mxu1 }
 0x1ba   :  { %v2431_v26 = vadd.f32 %v3028_v21, %v2390_v15  ;;  %v3031_v27 = vadd.f32 %v3030_v24, %v3029_v22  ;;  %v3060_v28 = vpop.f32.mrb[27].mxu1 }
 0x1bc   :  { %v2472_v29 = vadd.f32 %v2471_v20, %v2431_v26  ;;  %v2434_v30 = vadd.f32 %v3031_v27, %v2393_v17 }
 0x1be   :  { %v2475_v31 = vadd.f32 %v2474_v25, %v2434_v30  ;;  %v2478_v32 = vmax.f32 %v2472_v29, 0.0 }
 0x1c0   :  { %v2479_v33 = vmax.f32 %v2475_v31, 0.0 }
 0x1c2   :  { %v2744_v34 = vpack.c.bf16 %v2479_v33, %v2478_v32 }
 0x1c4   :  { %2745 = vst [vmem:[%s4070_s2] sm:$0xff] %v2744_v34  }

// kernel: cnn_forward.78
= control target key start
LH: loop header
LB: loop body
LE: loop exit
PB: predicated region body
PF: predicated region fallthrough
CT: control target
= control target key end

     0   :  { %v199_v0 = vmov 0.0   ;;  %vm200_vm0 = vmmov 0   ;;  %s246_s1 = inlined_call_operand.vmem [shape: bf16[128,128], index: 1, kind: input, shape index: {}]   ;;  %s247_s0 = inlined_call_operand.vmem [shape: bf16[16,128], index: 0, kind: input, shape index: {}]   ;;  %s248_s2 = inlined_call_operand.vmem [shape: bf16[16,128], index: 2, kind: output, shape index: {}]  }
   0x1   :  { %168 = vmatprep.subr.bf16.mxu0 %v199_v0  ;;  %v190_v1 = vld [vmem:[%s246_s1] sm:$0xff]   ;;  %184 = vmatprep.mubr.msk.bf16.mxu0 %vm200_vm0, %v199_v0  ;;  %v191_v2 = vld [vmem:[%s246_s1 + $0x8] sm:$0xff]   ;;  %v192_v3 = vld [vmem:[%s246_s1 + $0x10] sm:$0xff]  }
   0x2   :  { %169 = vmatpush3.bf16.msra.mxu0 %v190_v1  ;;  %v193_v4 = vld [vmem:[%s246_s1 + $0x18] sm:$0xff]   ;;  %v194_v5 = vld [vmem:[%s246_s1 + $0x20] sm:$0xff]   ;;  %v195_v6 = vld [vmem:[%s246_s1 + $0x28] sm:$0xff]  }
   0x3   :  { %170 = vmatprep.subr.bf16.mxu0 %v199_v0  ;;  %v196_v7 = vld [vmem:[%s246_s1 + $0x30] sm:$0xff]   ;;  %v197_v8 = vld [vmem:[%s246_s1 + $0x38] sm:$0xff]   ;;  %v198_v9 = vld [vmem:[%s247_s0] sm:$0xff]  }
   0x6   :  { %171 = vmatpush3.bf16.msra.mxu0 %v191_v2 }
   0x7   :  { %172 = vmatprep.subr.bf16.mxu0 %v199_v0 }
   0xa   :  { %173 = vmatpush3.bf16.msra.mxu0 %v192_v3 }
   0xb   :  { %174 = vmatprep.subr.bf16.mxu0 %v199_v0 }
   0xe   :  { %175 = vmatpush3.bf16.msra.mxu0 %v193_v4 }
   0xf   :  { %176 = vmatprep.subr.bf16.mxu0 %v199_v0 }
  0x12   :  { %177 = vmatpush3.bf16.msra.mxu0 %v194_v5 }
  0x13   :  { %178 = vmatprep.subr.bf16.mxu0 %v199_v0 }
  0x16   :  { %179 = vmatpush3.bf16.msra.mxu0 %v195_v6 }
  0x17   :  { %180 = vmatprep.subr.bf16.mxu0 %v199_v0 }
  0x1a   :  { %181 = vmatpush3.bf16.msra.mxu0 %v196_v7 }
  0x1b   :  { %182 = vmatprep.subr.bf16.mxu0 %v199_v0 }
  0x1e   :  { %183 = vmatpush3.bf16.msra.mxu0 %v197_v8 }
  0x21   :  { %185 = vmatmul.mubr.bf16.vlgmr.msra.gmra.mrb[0].mxu0 %v198_v9 }
  0xf4   :  { %v118_v10 = vpop.f32.mrb[0].mxu0 }
  0xf5   :  { %v186_v11 = vpop.f32.mrb[1].mxu0  ;;  %v125_v13 = vmax.f32 %v118_v10, 0.0 }
  0xf6   :  { %v121_v12 = vpop.f32.mrb[2].mxu0 }
  0xf7   :  { %v126_v14 = vmax.f32 %v121_v12, 0.0  ;;  %v187_v15 = vpop.f32.mrb[3].mxu0 }
  0xf9   :  { %v157_v16 = vpack.c.bf16 %v126_v14, %v125_v13 }
  0xfb   :  { %158 = vst [vmem:[%s248_s2] sm:$0xff] %v157_v16  }

// kernel: cnn_forward.79
= control target key start
LH: loop header
LB: loop body
LE: loop exit
PB: predicated region body
PF: predicated region fallthrough
CT: control target
= control target key end

     0   :  { %v245_v3 = vmov 0.0|0.0   ;;  %vm246_vm0 = vmmov 0   ;;  %v247_v6 = vmov 0.0   ;;  %s327_s0 = inlined_call_operand.vmem [shape: bf16[2,8,128], index: 0, kind: input, shape index: {}]   ;;  %s328_s1 = inlined_call_operand.vmem [shape: f32[128,128], index: 1, kind: input, shape index: {}]   ;;  %s329_s2 = inlined_call_operand.hbm [shape: f32[2,128], index: 2, kind: output, shape index: {}]  }
   0x1   :  { %v31_v0 = vld [vmem:[%s328_s1] sm:$0xff]  ;;  %v32_v1 = vld [vmem:[%s328_s1 + $0x8] sm:$0xff]  ;;  %v33_v2 = vld [vmem:[%s328_s1 + $0x10] sm:$0xff]  ;;  %193 = vmatprep.subr.bf16.mxu0 %v245_v3  ;;  %190 = vmatprep.mubr.msk.f32.mxu0 %vm246_vm0, %v247_v6 }
   0x2   :  { %v194_v4 = vpack.c.bf16 %v32_v1, %v31_v0  ;;  %v34_v5 = vld [vmem:[%s328_s1 + $0x18] sm:$0xff]  ;;  %v35_v8 = vld [vmem:[%s328_s1 + $0x20] sm:$0xff]  ;;  %v36_v9 = vld [vmem:[%s328_s1 + $0x28] sm:$0xff] }
   0x3   :  { %v197_v7 = vpack.c.bf16 %v34_v5, %v33_v2  ;;  %v138_v10 = vld [vmem:[%s327_s0] sm:$0xff]  }
   0x4   :  { %195 = vmatpush3.bf16.msra.mxu0 %v194_v4 }
   0x5   :  { %196 = vmatprep.subr.bf16.mxu0 %v245_v3 }
   0x6   :  { %7 = vsyncpa [#allocation3], 0  ;;  %v139_v11 = vunpack.c.l.bf16 %v138_v10  ;;  %v140_v12 = vunpack.c.h.bf16 %v138_v10  ;;  %v200_v13 = vpack.c.bf16 %v36_v9, %v35_v8  ;;  %v37_v14 = vld [vmem:[%s328_s1 + $0x30] sm:$0xff]  ;;  %v38_v15 = vld [vmem:[%s328_s1 + $0x38] sm:$0xff]  ;;  %vm49_vm1 = vcmask 1041409   ;;  %s248_s14 = smov [#allocation2]  }
   0x7   :  { %v203_v20 = vpack.c.bf16 %v38_v15, %v37_v14  ;;  %v39_v21 = vld [vmem:[%s328_s1 + $0x40] sm:$0xff]  ;;  %v40_v22 = vld [vmem:[%s328_s1 + $0x48] sm:$0xff]  ;;  %v41_v28 = vld [vmem:[%s328_s1 + $0x50] sm:$0xff]  ;;  %s129_s15 = sshll.u32 %s248_s14, 4  ;;  %s130_s15 = int_to_ptr.vmem [resolvable:$true] %s129_s15 }
   0x8   :  { %198 = vmatpush3.bf16.msra.mxu0 %v197_v7  ;;  %v16_v16 = vrot.slane %v139_v11, 4  ;;  %v22_v17 = vrot.slane %v140_v12, 4  ;;  %v206_v25 = vpack.c.bf16 %v40_v22, %v39_v21  ;;  %v42_v29 = vld [vmem:[%s328_s1 + $0x58] sm:$0xff]  ;;  %v43_v33 = vld [vmem:[%s328_s1 + $0x60] sm:$0xff]  ;;  %v44_v34 = vld [vmem:[%s328_s1 + $0x68] sm:$0xff]  ;;  %s221_s16 = scalar_lea.vmem %s130_s15, 32  ;;  %p226_p1 = scmp.lt.s32.totalorder %s130_s15, %s130_s15 }
   0x9   :  { %199 = vmatprep.subr.bf16.mxu0 %v245_v3  ;;  %v209_v30 = vpack.c.bf16 %v42_v29, %v41_v28  ;;  %v212_v35 = vpack.c.bf16 %v44_v34, %v43_v33  ;;  %v45_v38 = vld [vmem:[%s328_s1 + $0x70] sm:$0xff]  ;;  %v46_v39 = vld [vmem:[%s328_s1 + $0x78] sm:$0xff]  ;;  %p222_p0 = scmp.ne.s32.totalorder %s130_s15, %s221_s16  ;;  %p227_p2 = scmp.lt.s32.totalorder %s221_s16, %s221_s16 }
   0xa   :  { %v17_v18 = vadd.f32 %v139_v11, %v16_v16  ;;  %v23_v19 = vadd.f32 %v140_v12, %v22_v17  ;;  %v215_v40 = vpack.c.bf16 %v46_v39, %v45_v38 }
   0xb   :  { %p228_p3 = por %p227_p2, %p226_p1 }
   0xc   :  { %201 = vmatpush3.bf16.msra.mxu0 %v200_v13  ;;  %v18_v23 = vrot.slane %v17_v18, 2  ;;  %v24_v24 = vrot.slane %v23_v19, 2 }
   0xd   :  { %202 = vmatprep.subr.bf16.mxu0 %v245_v3  ;;  %p229_p4 = pnand %p228_p3, %p222_p0 }
   0xe   :  { %v19_v26 = vadd.f32 %v18_v23, %v17_v18  ;;  %v25_v27 = vadd.f32 %v24_v24, %v23_v19 }
  0x10   :  { %204 = vmatpush3.bf16.msra.mxu0 %v203_v20  ;;  %v20_v31 = vrot.slane %v19_v26, 1  ;;  %v26_v32 = vrot.slane %v25_v27, 1 }
  0x11   :  { %205 = vmatprep.subr.bf16.mxu0 %v245_v3 }
  0x12   :  { %v21_v36 = vadd.f32 %v20_v31, %v19_v26  ;;  %v27_v37 = vadd.f32 %v26_v32, %v25_v27 }
  0x14   :  { %207 = vmatpush3.bf16.msra.mxu0 %v206_v25  ;;  %v29_v41 = vmul.f32 0.125, %v21_v36  ;;  %v30_v42 = vmul.f32 0.125, %v27_v37 }
  0x15   :  { %208 = vmatprep.subr.bf16.mxu0 %v245_v3 }
  0x16   :  { %v50_v43 = vsel %vm49_vm1, %v30_v42, %v29_v41 }
  0x18   :  { %210 = vmatpush3.bf16.msra.mxu0 %v209_v30 }
  0x19   :  { %211 = vmatprep.subr.bf16.mxu0 %v245_v3 }
  0x1c   :  { %213 = vmatpush3.bf16.msra.mxu0 %v212_v35 }
  0x1d   :  { %214 = vmatprep.subr.bf16.mxu0 %v245_v3 }
  0x20   :  { %216 = vmatpush3.bf16.msra.mxu0 %v215_v40 }
  0x23   :  { %191 = vmatmul.mubr.f32.vlgmr.msra.gmra.mrb[0].mxu0 %v50_v43 }
  0xf6   :  { %v118_v44 = vpop.f32.mrb[0].mxu0 }
  0xf7   :  { %122 = vst [vmem:[#allocation2] sm:$0x3] %v118_v44  ;;  %v192_v45 = vpop.f32.mrb[1].mxu0 }
  0xf8   :  { %232 = shalt.err (!%p229_p4)
}
  0xf9   :  { %s233_s18 = scalar_lea.hbm %s329_s2, 32 }
  0xfa   :  { %p234_p5 = scmp.ne.s32.totalorder %s329_s2, %s233_s18  ;;  %p237_p6 = scmp.lt.u32.totalorder %s233_s18, %s329_s2 }
  0xfc   :  { %p239_p7 = pnand %p237_p6, %p234_p5 }
  0xfe   :  { %242 = shalt.err (!%p239_p7)
}
  0xff   :  { %132 = dma.vmem_to_hbm [thread:$0]  %s130_s15, 32, %s329_s2, [#allocation3]  }
 0x100   :  { %243 = dma.done.wait [#allocation3], 32  }
 0x101   :  { %244 = vsyncadd [#allocation3], 4294967264 }
 0x102   :  { %136 = vsyncpa [#allocation3], 1 }

// kernel: cnn_forward.57
= control target key start
LH: loop header
LB: loop body
LE: loop exit
PB: predicated region body
PF: predicated region fallthrough
CT: control target
= control target key end

     0   :  { %7 = vsyncpa [#allocation3], 0  ;;  %s3361_s9 = smov [#allocation2]   ;;  %s4044_s0 = inlined_call_operand.hbm [shape: bf16[16,3456], index: 0, kind: input, shape index: {}]   ;;  %s4045_s1 = inlined_call_operand.vmem [shape: bf16[3456,128], index: 1, kind: input, shape index: {}]   ;;  %s4046_s2 = inlined_call_operand.vmem [shape: bf16[16,128], index: 2, kind: output, shape index: {}]  }
   0x1   :  { %s13_s10 = sshll.u32 %s3361_s9, 4  ;;  %s3337_s13 = scalar_lea.hbm %s4044_s0, 3456  ;;  %s14_s10 = int_to_ptr.vmem [resolvable:$true] %s13_s10 }
   0x2   :  { %p3338_p0 = scmp.ne.s32.totalorder %s4044_s0, %s3337_s13  ;;  %p3341_p1 = scmp.lt.u32.totalorder %s3337_s13, %s4044_s0 }
   0x4   :  { %p3343_p2 = pnand %p3341_p1, %p3338_p0 }
   0x6   :  { %3346 = shalt.err (!%p3343_p2)
}
   0x7   :  { %s3347_s18 = scalar_lea.vmem %s14_s10, 3456  ;;  %p3352_p4 = scmp.lt.s32.totalorder %s14_s10, %s14_s10 }
   0x8   :  { %p3348_p3 = scmp.ne.s32.totalorder %s14_s10, %s3347_s18  ;;  %p3353_p5 = scmp.lt.s32.totalorder %s3347_s18, %s3347_s18 }
   0xa   :  { %p3354_p6 = por %p3353_p5, %p3352_p4 }
   0xc   :  { %p3355_p7 = pnand %p3354_p6, %p3348_p3 }
   0xe   :  { %3358 = shalt.err (!%p3355_p7)
}
   0xf   :  { %s3362_s19 = smov 1728   ;;  %s3363_s20 = smov 108  }
  0x10   :  { %19 = dma.hbm_to_vmem [thread:$0]  %s4044_s0, 3456, %s14_s10, [#allocation3], %s3362_s19, %s3362_s19, %s3363_s20  }
  0x11   :  { %3359 = dma.done.wait [#allocation3], 3456  }
  0x12   :  { %3360 = vsyncadd [#allocation3], 4294963840  ;;  %v3081_v0 = vld [vmem:[%s4045_s1 + $0x40] sm:$0xff]   ;;  %v3085_v4 = vld [vmem:[%s4045_s1 + $0x48] sm:$0xff]   ;;  %vm3365_vm0 = vmmov 0  }
  0x13   :  { %v3082_v1 = vld [vmem:[%s4045_s1 + $0xc0] sm:$0xff]   ;;  %2761 = vmatprep.subr.bf16.mxu0 %v3081_v0  ;;  %v3086_v5 = vld [vmem:[%s4045_s1 + $0xc8] sm:$0xff]   ;;  %v3089_v8 = vld [vmem:[%s4045_s1 + $0x50] sm:$0xff]  }
  0x14   :  { %v3083_v2 = vld [vmem:[%s4045_s1] sm:$0xff]   ;;  %2783 = vmatprep.subr.bf16.mxu1 %v3082_v1  ;;  %v3087_v6 = vld [vmem:[%s4045_s1 + $0x8] sm:$0xff]   ;;  %v3090_v9 = vld [vmem:[%s4045_s1 + $0xd0] sm:$0xff]  }
  0x15   :  { %v3084_v3 = vld [vmem:[%s4045_s1 + $0x80] sm:$0xff]   ;;  %2762 = vmatpush3.bf16.msra.mxu0 %v3083_v2  ;;  %v3088_v7 = vld [vmem:[%s4045_s1 + $0x88] sm:$0xff]   ;;  %v3091_v10 = vld [vmem:[%s4045_s1 + $0x10] sm:$0xff]  }
  0x16   :  { %2784 = vmatpush3.bf16.msra.mxu1 %v3084_v3  ;;  %2763 = vmatprep.subr.bf16.mxu0 %v3085_v4  ;;  %v3092_v11 = vld [vmem:[%s4045_s1 + $0x90] sm:$0xff]   ;;  %v3093_v12 = vld [vmem:[%s4045_s1 + $0x58] sm:$0xff]   ;;  %v3097_v16 = vld [vmem:[%s4045_s1 + $0x60] sm:$0xff]  }
  0x17   :  { %2785 = vmatprep.subr.bf16.mxu1 %v3086_v5  ;;  %v3094_v13 = vld [vmem:[%s4045_s1 + $0xd8] sm:$0xff]   ;;  %v3098_v17 = vld [vmem:[%s4045_s1 + $0xe0] sm:$0xff]   ;;  %v3101_v20 = vld [vmem:[%s4045_s1 + $0x68] sm:$0xff]  }
  0x18   :  { %v3095_v14 = vld [vmem:[%s4045_s1 + $0x18] sm:$0xff]   ;;  %v3099_v18 = vld [vmem:[%s4045_s1 + $0x20] sm:$0xff]   ;;  %v3102_v21 = vld [vmem:[%s4045_s1 + $0xe8] sm:$0xff]  }
  0x19   :  { %2764 = vmatpush3.bf16.msra.mxu0 %v3087_v6  ;;  %v3096_v15 = vld [vmem:[%s4045_s1 + $0x98] sm:$0xff]   ;;  %v3100_v19 = vld [vmem:[%s4045_s1 + $0xa0] sm:$0xff]   ;;  %v3103_v22 = vld [vmem:[%s4045_s1 + $0x28] sm:$0xff]  }
  0x1a   :  { %2786 = vmatpush3.bf16.msra.mxu1 %v3088_v7  ;;  %2765 = vmatprep.subr.bf16.mxu0 %v3089_v8  ;;  %v3104_v23 = vld [vmem:[%s4045_s1 + $0xa8] sm:$0xff]   ;;  %v3105_v24 = vld [vmem:[%s4045_s1 + $0x70] sm:$0xff]   ;;  %v3109_v28 = vld [vmem:[%s4045_s1 + $0x78] sm:$0xff]  }
  0x1b   :  { %2787 = vmatprep.subr.bf16.mxu1 %v3090_v9  ;;  %v3106_v25 = vld [vmem:[%s4045_s1 + $0xf0] sm:$0xff]   ;;  %v3110_v29 = vld [vmem:[%s4045_s1 + $0xf8] sm:$0xff]   ;;  %v3113_v32 = vld [vmem:[#allocation2] ss:$108 sps:$4 sm:$0xff]  }
  0x1c   :  { %v3107_v26 = vld [vmem:[%s4045_s1 + $0x30] sm:$0xff]   ;;  %v3111_v30 = vld [vmem:[%s4045_s1 + $0x38] sm:$0xff]   ;;  %v3119_v36 = vld [vmem:[%s4045_s1 + $0x140] sm:$0xff]  }
  0x1d   :  { %2766 = vmatpush3.bf16.msra.mxu0 %v3091_v10  ;;  %v3108_v27 = vld [vmem:[%s4045_s1 + $0xb0] sm:$0xff]   ;;  %v3112_v31 = vld [vmem:[%s4045_s1 + $0xb8] sm:$0xff]   ;;  %v3120_v37 = vld [vmem:[%s4045_s1 + $0x100] sm:$0xff]  }
  0x1e   :  { %2788 = vmatpush3.bf16.msra.mxu1 %v3092_v11  ;;  %2767 = vmatprep.subr.bf16.mxu0 %v3093_v12  ;;  %v3115_v33 = vld [vmem:[#allocation2 + $0x4] ss:$108 sps:$4 sm:$0xff]   ;;  %v3116_v34 = vld [vmem:[#allocation2 + $0x8] ss:$108 sps:$4 sm:$0xff]   ;;  %v3118_v35 = vld [vmem:[#allocation2 + $0xc] ss:$108 sps:$4 sm:$0xff]  }
  0x1f   :  { %2789 = vmatprep.subr.bf16.mxu1 %v3094_v13  ;;  %1950 = vmatprep.mubr.bf16.mxu0 %v3115_v33  ;;  %v3121_v38 = vld [vmem:[%s4045_s1 + $0x1c0] sm:$0xff]   ;;  %v3123_v40 = vld [vmem:[%s4045_s1 + $0x148] sm:$0xff]   ;;  %v3127_v44 = vld [vmem:[%s4045_s1 + $0x150] sm:$0xff]  }
  0x20   :  { %1991 = vmatprep.mubr.bf16.mxu1 %v3118_v35  ;;  %v3122_v39 = vld [vmem:[%s4045_s1 + $0x180] sm:$0xff]   ;;  %v3124_v41 = vld [vmem:[%s4045_s1 + $0x108] sm:$0xff]   ;;  %v3128_v45 = vld [vmem:[%s4045_s1 + $0x110] sm:$0xff]  }
  0x21   :  { %2768 = vmatpush3.bf16.msra.mxu0 %v3095_v14  ;;  %v3125_v42 = vld [vmem:[%s4045_s1 + $0x1c8] sm:$0xff]   ;;  %v3129_v46 = vld [vmem:[%s4045_s1 + $0x1d0] sm:$0xff]   ;;  %v3131_v48 = vld [vmem:[%s4045_s1 + $0x158] sm:$0xff]  }
  0x22   :  { %2790 = vmatpush3.bf16.msra.mxu1 %v3096_v15  ;;  %2769 = vmatprep.subr.bf16.mxu0 %v3097_v16  ;;  %v3126_v43 = vld [vmem:[%s4045_s1 + $0x188] sm:$0xff]   ;;  %v3130_v47 = vld [vmem:[%s4045_s1 + $0x190] sm:$0xff]   ;;  %v3132_v49 = vld [vmem:[%s4045_s1 + $0x118] sm:$0xff]  }
  0x23   :  { %2791 = vmatprep.subr.bf16.mxu1 %v3098_v17  ;;  %v3133_v50 = vld [vmem:[%s4045_s1 + $0x1d8] sm:$0xff]   ;;  %v3135_v52 = vld [vmem:[%s4045_s1 + $0x160] sm:$0xff]   ;;  %v3139_v56 = vld [vmem:[%s4045_s1 + $0x168] sm:$0xff]  }
  0x24   :  { %v3134_v51 = vld [vmem:[%s4045_s1 + $0x198] sm:$0xff]   ;;  %v3136_v53 = vld [vmem:[%s4045_s1 + $0x120] sm:$0xff]   ;;  %v3140_v57 = vld [vmem:[%s4045_s1 + $0x128] sm:$0xff]  }
  0x25   :  { %2770 = vmatpush3.bf16.msra.mxu0 %v3099_v18  ;;  %v3137_v54 = vld [vmem:[%s4045_s1 + $0x1e0] sm:$0xff]   ;;  %v3141_v58 = vld [vmem:[%s4045_s1 + $0x1e8] sm:$0xff]   ;;  %v3143_v60 = vld [vmem:[%s4045_s1 + $0x170] sm:$0xff]  }
  0x26   :  { %2792 = vmatpush3.bf16.msra.mxu1 %v3100_v19  ;;  %2771 = vmatprep.subr.bf16.mxu0 %v3101_v20  ;;  %v3138_v55 = vld [vmem:[%s4045_s1 + $0x1a0] sm:$0xff]   ;;  %v3142_v59 = vld [vmem:[%s4045_s1 + $0x1a8] sm:$0xff]   ;;  %v3144_v61 = vld [vmem:[%s4045_s1 + $0x130] sm:$0xff]  }
  0x27   :  { %2793 = vmatprep.subr.bf16.mxu1 %v3102_v21  ;;  %v3145_v62 = vld [vmem:[%s4045_s1 + $0x1f0] sm:$0xff]   ;;  %v3147_v0 = vld [vmem:[%s4045_s1 + $0x178] sm:$0xff]   ;;  %v3154_v6 = vld [vmem:[%s4045_s1 + $0x240] sm:$0xff]  }
  0x28   :  { %v3146_v63 = vld [vmem:[%s4045_s1 + $0x1b0] sm:$0xff]   ;;  %v3148_v1 = vld [vmem:[%s4045_s1 + $0x138] sm:$0xff]   ;;  %v3158_v9 = vld [vmem:[%s4045_s1 + $0x200] sm:$0xff]  }
  0x29   :  { %2772 = vmatpush3.bf16.msra.mxu0 %v3103_v22  ;;  %v3149_v2 = vld [vmem:[%s4045_s1 + $0x1f8] sm:$0xff]   ;;  %v3152_v4 = vld [vmem:[#allocation2 + $0x14] ss:$108 sps:$4 sm:$0xff]   ;;  %v3161_v12 = vld [vmem:[%s4045_s1 + $0x248] sm:$0xff]  }
  0x2a   :  { %2794 = vmatpush3.bf16.msra.mxu1 %v3104_v23  ;;  %2773 = vmatprep.subr.bf16.mxu0 %v3105_v24  ;;  %v3150_v3 = vld [vmem:[#allocation2 + $0x10] ss:$108 sps:$4 sm:$0xff]   ;;  %v3155_v7 = vld [vmem:[#allocation2 + $0x18] ss:$108 sps:$4 sm:$0xff]   ;;  %v3162_v13 = vld [vmem:[%s4045_s1 + $0x208] sm:$0xff]  }
  0x2b   :  { %2795 = vmatprep.subr.bf16.mxu1 %v3106_v25  ;;  %v3153_v5 = vld [vmem:[%s4045_s1 + $0x1b8] sm:$0xff]   ;;  %v3159_v10 = vld [vmem:[%s4045_s1 + $0x2c0] sm:$0xff]   ;;  %v3163_v14 = vld [vmem:[%s4045_s1 + $0x2c8] sm:$0xff]  }
  0x2c   :  { %v3157_v8 = vld [vmem:[#allocation2 + $0x1c] ss:$108 sps:$4 sm:$0xff]   ;;  %v3160_v11 = vld [vmem:[%s4045_s1 + $0x280] sm:$0xff]   ;;  %v3165_v16 = vld [vmem:[%s4045_s1 + $0x250] sm:$0xff]  }
  0x2d   :  { %2774 = vmatpush3.bf16.msra.mxu0 %v3107_v26  ;;  %v3164_v15 = vld [vmem:[%s4045_s1 + $0x288] sm:$0xff]   ;;  %v3166_v17 = vld [vmem:[%s4045_s1 + $0x210] sm:$0xff]   ;;  %v3169_v20 = vld [vmem:[%s4045_s1 + $0x258] sm:$0xff]  }
  0x2e   :  { %2796 = vmatpush3.bf16.msra.mxu1 %v3108_v27  ;;  %2775 = vmatprep.subr.bf16.mxu0 %v3109_v28  ;;  %v3167_v18 = vld [vmem:[%s4045_s1 + $0x2d0] sm:$0xff]   ;;  %v3170_v21 = vld [vmem:[%s4045_s1 + $0x218] sm:$0xff]   ;;  %v3173_v24 = vld [vmem:[%s4045_s1 + $0x260] sm:$0xff]  }
  0x2f   :  { %2797 = vmatprep.subr.bf16.mxu1 %v3110_v29  ;;  %v3168_v19 = vld [vmem:[%s4045_s1 + $0x290] sm:$0xff]   ;;  %v3171_v22 = vld [vmem:[%s4045_s1 + $0x2d8] sm:$0xff]   ;;  %v3174_v25 = vld [vmem:[%s4045_s1 + $0x220] sm:$0xff]  }
  0x30   :  { %v3172_v23 = vld [vmem:[%s4045_s1 + $0x298] sm:$0xff]   ;;  %v3175_v26 = vld [vmem:[%s4045_s1 + $0x2e0] sm:$0xff]   ;;  %v3177_v28 = vld [vmem:[%s4045_s1 + $0x268] sm:$0xff]  }
  0x31   :  { %2776 = vmatpush3.bf16.msra.mxu0 %v3111_v30  ;;  %v3176_v27 = vld [vmem:[%s4045_s1 + $0x2a0] sm:$0xff]   ;;  %v3178_v29 = vld [vmem:[%s4045_s1 + $0x228] sm:$0xff]   ;;  %v3182_v33 = vld [vmem:[%s4045_s1 + $0x230] sm:$0xff]  }
  0x32   :  { %2798 = vmatpush3.bf16.msra.mxu1 %v3112_v31  ;;  %2805 = vmatprep.subr.bf16.mxu0 %v3119_v36  ;;  %v3179_v30 = vld [vmem:[%s4045_s1 + $0x2e8] sm:$0xff]   ;;  %v3184_v35 = vld [vmem:[%s4045_s1 + $0x2b0] sm:$0xff]   ;;  %v3185_v36 = vld [vmem:[%s4045_s1 + $0x278] sm:$0xff]  }
  0x33   :  { %2827 = vmatprep.subr.bf16.mxu1 %v3121_v38  ;;  %v3180_v31 = vld [vmem:[%s4045_s1 + $0x2a8] sm:$0xff]   ;;  %v3187_v38 = vld [vmem:[%s4045_s1 + $0x2f8] sm:$0xff]  }
  0x34   :  { %1951 = vmatmul.mubr.bf16.vlgmr.msra.gmra.mrb[0].mxu0 %v3113_v32  ;;  %v3181_v32 = vld [vmem:[%s4045_s1 + $0x270] sm:$0xff]  }
  0x35   :  { %1992 = vmatmul.mubr.bf16.vlgmr.msra.gmra.mrb[0].mxu1 %v3116_v34  ;;  %2806 = vmatpush3.bf16.msra.mxu0 %v3120_v37  ;;  %v3183_v34 = vld [vmem:[%s4045_s1 + $0x2f0] sm:$0xff]   ;;  %v3186_v37 = vld [vmem:[%s4045_s1 + $0x238] sm:$0xff]  }
  0x36   :  { %2828 = vmatpush3.bf16.msra.mxu1 %v3122_v39  ;;  %2807 = vmatprep.subr.bf16.mxu0 %v3123_v40  ;;  %v3188_v39 = vld [vmem:[#allocation2 + $0x20] ss:$108 sps:$4 sm:$0xff]   ;;  %v3190_v40 = vld [vmem:[#allocation2 + $0x24] ss:$108 sps:$4 sm:$0xff]  }
  0x37   :  { %2829 = vmatprep.subr.bf16.mxu1 %v3125_v42  ;;  %2032 = vmatprep.mubr.bf16.mxu0 %v3152_v4  ;;  %v3192_v42 = vld [vmem:[%s4045_s1 + $0x340] sm:$0xff]   ;;  %v3219_v4 = vld [vmem:[%s4045_s1 + $0x370] sm:$0xff]  }
  0x38   :  { %2073 = vmatprep.mubr.bf16.mxu1 %v3157_v8  ;;  %v3223_v8 = vld [vmem:[%s4045_s1 + $0x378] sm:$0xff]  }
  0x39   :  { %2808 = vmatpush3.bf16.msra.mxu0 %v3124_v41  ;;  %v3191_v41 = vld [vmem:[%s4045_s1 + $0x2b8] sm:$0xff]  }
  0x3a   :  { %2830 = vmatpush3.bf16.msra.mxu1 %v3126_v43  ;;  %2809 = vmatprep.subr.bf16.mxu0 %v3127_v44  ;;  %v3193_v43 = vld [vmem:[#allocation2 + $0x28] ss:$108 sps:$4 sm:$0xff]   ;;  %v3195_v44 = vld [vmem:[#allocation2 + $0x2c] ss:$108 sps:$4 sm:$0xff]  }
  0x3b   :  { %2831 = vmatprep.subr.bf16.mxu1 %v3129_v46  ;;  %v3197_v46 = vld [vmem:[%s4045_s1 + $0x3c0] sm:$0xff]  }
  0x3d   :  { %2810 = vmatpush3.bf16.msra.mxu0 %v3128_v45  ;;  %v3196_v45 = vld [vmem:[%s4045_s1 + $0x300] sm:$0xff]  }
  0x3e   :  { %2832 = vmatpush3.bf16.msra.mxu1 %v3130_v47  ;;  %2811 = vmatprep.subr.bf16.mxu0 %v3131_v48  ;;  %v3198_v47 = vld [vmem:[%s4045_s1 + $0x380] sm:$0xff]   ;;  %v3199_v48 = vld [vmem:[%s4045_s1 + $0x348] sm:$0xff]  }
  0x3f   :  { %2833 = vmatprep.subr.bf16.mxu1 %v3133_v50  ;;  %v3201_v50 = vld [vmem:[%s4045_s1 + $0x3c8] sm:$0xff]  }
  0x41   :  { %2812 = vmatpush3.bf16.msra.mxu0 %v3132_v49  ;;  %v3200_v49 = vld [vmem:[%s4045_s1 + $0x308] sm:$0xff]  }
  0x42   :  { %2834 = vmatpush3.bf16.msra.mxu1 %v3134_v51  ;;  %2813 = vmatprep.subr.bf16.mxu0 %v3135_v52  ;;  %v3202_v51 = vld [vmem:[%s4045_s1 + $0x388] sm:$0xff]   ;;  %v3203_v52 = vld [vmem:[%s4045_s1 + $0x350] sm:$0xff]  }
  0x43   :  { %2835 = vmatprep.subr.bf16.mxu1 %v3137_v54  ;;  %v3205_v54 = vld [vmem:[%s4045_s1 + $0x3d0] sm:$0xff]  }
  0x45   :  { %2814 = vmatpush3.bf16.msra.mxu0 %v3136_v53  ;;  %v3204_v53 = vld [vmem:[%s4045_s1 + $0x310] sm:$0xff]  }
  0x46   :  { %2836 = vmatpush3.bf16.msra.mxu1 %v3138_v55  ;;  %2815 = vmatprep.subr.bf16.mxu0 %v3139_v56  ;;  %v3206_v55 = vld [vmem:[%s4045_s1 + $0x390] sm:$0xff]   ;;  %v3207_v56 = vld [vmem:[%s4045_s1 + $0x358] sm:$0xff]  }
  0x47   :  { %2837 = vmatprep.subr.bf16.mxu1 %v3141_v58  ;;  %v3209_v58 = vld [vmem:[%s4045_s1 + $0x3d8] sm:$0xff]  }
  0x49   :  { %2816 = vmatpush3.bf16.msra.mxu0 %v3140_v57  ;;  %v3208_v57 = vld [vmem:[%s4045_s1 + $0x318] sm:$0xff]  }
  0x4a   :  { %2838 = vmatpush3.bf16.msra.mxu1 %v3142_v59  ;;  %2817 = vmatprep.subr.bf16.mxu0 %v3143_v60  ;;  %v3210_v59 = vld [vmem:[%s4045_s1 + $0x398] sm:$0xff]   ;;  %v3211_v60 = vld [vmem:[%s4045_s1 + $0x360] sm:$0xff]  }
  0x4b   :  { %2839 = vmatprep.subr.bf16.mxu1 %v3145_v62  ;;  %v3213_v62 = vld [vmem:[%s4045_s1 + $0x3e0] sm:$0xff]  }
  0x4d   :  { %2818 = vmatpush3.bf16.msra.mxu0 %v3144_v61  ;;  %v3212_v61 = vld [vmem:[%s4045_s1 + $0x320] sm:$0xff]  }
  0x4e   :  { %2840 = vmatpush3.bf16.msra.mxu1 %v3146_v63  ;;  %2819 = vmatprep.subr.bf16.mxu0 %v3147_v0  ;;  %v3214_v63 = vld [vmem:[%s4045_s1 + $0x3a0] sm:$0xff]   ;;  %v3215_v0 = vld [vmem:[%s4045_s1 + $0x368] sm:$0xff]  }
  0x4f   :  { %2841 = vmatprep.subr.bf16.mxu1 %v3149_v2  ;;  %v3217_v2 = vld [vmem:[%s4045_s1 + $0x3e8] sm:$0xff]  }
  0x51   :  { %2820 = vmatpush3.bf16.msra.mxu0 %v3148_v1  ;;  %v3216_v1 = vld [vmem:[%s4045_s1 + $0x328] sm:$0xff]  }
  0x52   :  { %2842 = vmatpush3.bf16.msra.mxu1 %v3153_v5  ;;  %2849 = vmatprep.subr.bf16.mxu0 %v3154_v6  ;;  %v3220_v5 = vld [vmem:[%s4045_s1 + $0x330] sm:$0xff]  }
  0x53   :  { %2871 = vmatprep.subr.bf16.mxu1 %v3159_v10  ;;  %v3221_v6 = vld [vmem:[%s4045_s1 + $0x3f0] sm:$0xff]   ;;  %v3225_v10 = vld [vmem:[%s4045_s1 + $0x3f8] sm:$0xff]  }
  0x54   :  { %2033 = vmatmul.mubr.bf16.vlgmr.msra.gmra.mrb[4].mxu0 %v3150_v3  ;;  %v3218_v3 = vld [vmem:[%s4045_s1 + $0x3a8] sm:$0xff]  }
  0x55   :  { %2850 = vmatpush3.bf16.msra.mxu0 %v3158_v9  ;;  %2074 = vmatmul.mubr.bf16.vlgmr.msra.gmra.mrb[4].mxu1 %v3155_v7  ;;  %v3222_v7 = vld [vmem:[%s4045_s1 + $0x3b0] sm:$0xff]   ;;  %v3224_v9 = vld [vmem:[%s4045_s1 + $0x338] sm:$0xff]  }
  0x56   :  { %2872 = vmatpush3.bf16.msra.mxu1 %v3160_v11  ;;  %2851 = vmatprep.subr.bf16.mxu0 %v3161_v12  ;;  %v3226_v11 = vld [vmem:[#allocation2 + $0x30] ss:$108 sps:$4 sm:$0xff]   ;;  %v3228_v12 = vld [vmem:[#allocation2 + $0x34] ss:$108 sps:$4 sm:$0xff]  }
  0x57   :  { %2873 = vmatprep.subr.bf16.mxu1 %v3163_v14  ;;  %2114 = vmatprep.mubr.bf16.mxu0 %v3190_v40  ;;  %v3230_v14 = vld [vmem:[%s4045_s1 + $0x440] sm:$0xff]   ;;  %v3257_v40 = vld [vmem:[%s4045_s1 + $0x470] sm:$0xff]  }
  0x58   :  { %2155 = vmatprep.mubr.bf16.mxu1 %v3195_v44  ;;  %v3261_v44 = vld [vmem:[%s4045_s1 + $0x478] sm:$0xff]  }
  0x59   :  { %2852 = vmatpush3.bf16.msra.mxu0 %v3162_v13  ;;  %v3229_v13 = vld [vmem:[%s4045_s1 + $0x3b8] sm:$0xff]  }
  0x5a   :  { %2874 = vmatpush3.bf16.msra.mxu1 %v3164_v15  ;;  %2853 = vmatprep.subr.bf16.mxu0 %v3165_v16  ;;  %v3231_v15 = vld [vmem:[#allocation2 + $0x38] ss:$108 sps:$4 sm:$0xff]   ;;  %v3233_v16 = vld [vmem:[#allocation2 + $0x3c] ss:$108 sps:$4 sm:$0xff]  }
  0x5b   :  { %2875 = vmatprep.subr.bf16.mxu1 %v3167_v18  ;;  %v3235_v18 = vld [vmem:[%s4045_s1 + $0x4c0] sm:$0xff]  }
  0x5d   :  { %2854 = vmatpush3.bf16.msra.mxu0 %v3166_v17  ;;  %v3234_v17 = vld [vmem:[%s4045_s1 + $0x400] sm:$0xff]  }
  0x5e   :  { %2876 = vmatpush3.bf16.msra.mxu1 %v3168_v19  ;;  %2855 = vmatprep.subr.bf16.mxu0 %v3169_v20  ;;  %v3236_v19 = vld [vmem:[%s4045_s1 + $0x480] sm:$0xff]   ;;  %v3237_v20 = vld [vmem:[%s4045_s1 + $0x448] sm:$0xff]  }
  0x5f   :  { %2877 = vmatprep.subr.bf16.mxu1 %v3171_v22  ;;  %v3239_v22 = vld [vmem:[%s4045_s1 + $0x4c8] sm:$0xff]  }
  0x61   :  { %2856 = vmatpush3.bf16.msra.mxu0 %v3170_v21  ;;  %v3238_v21 = vld [vmem:[%s4045_s1 + $0x408] sm:$0xff]  }
  0x62   :  { %2878 = vmatpush3.bf16.msra.mxu1 %v3172_v23  ;;  %2857 = vmatprep.subr.bf16.mxu0 %v3173_v24  ;;  %v3240_v23 = vld [vmem:[%s4045_s1 + $0x488] sm:$0xff]   ;;  %v3241_v24 = vld [vmem:[%s4045_s1 + $0x450] sm:$0xff]  }
  0x63   :  { %2879 = vmatprep.subr.bf16.mxu1 %v3175_v26  ;;  %v3243_v26 = vld [vmem:[%s4045_s1 + $0x4d0] sm:$0xff]  }
  0x65   :  { %2858 = vmatpush3.bf16.msra.mxu0 %v3174_v25  ;;  %v3242_v25 = vld [vmem:[%s4045_s1 + $0x410] sm:$0xff]  }
  0x66   :  { %2880 = vmatpush3.bf16.msra.mxu1 %v3176_v27  ;;  %2859 = vmatprep.subr.bf16.mxu0 %v3177_v28  ;;  %v3244_v27 = vld [vmem:[%s4045_s1 + $0x490] sm:$0xff]   ;;  %v3245_v28 = vld [vmem:[%s4045_s1 + $0x458] sm:$0xff]  }
  0x67   :  { %2881 = vmatprep.subr.bf16.mxu1 %v3179_v30  ;;  %v3247_v30 = vld [vmem:[%s4045_s1 + $0x4d8] sm:$0xff]  }
  0x69   :  { %2860 = vmatpush3.bf16.msra.mxu0 %v3178_v29  ;;  %v3246_v29 = vld [vmem:[%s4045_s1 + $0x418] sm:$0xff]  }
  0x6a   :  { %2882 = vmatpush3.bf16.msra.mxu1 %v3180_v31  ;;  %2861 = vmatprep.subr.bf16.mxu0 %v3181_v32  ;;  %v3248_v31 = vld [vmem:[%s4045_s1 + $0x498] sm:$0xff]   ;;  %v3249_v32 = vld [vmem:[%s4045_s1 + $0x460] sm:$0xff]  }
  0x6b   :  { %2883 = vmatprep.subr.bf16.mxu1 %v3183_v34  ;;  %v3251_v34 = vld [vmem:[%s4045_s1 + $0x4e0] sm:$0xff]  }
  0x6d   :  { %2862 = vmatpush3.bf16.msra.mxu0 %v3182_v33  ;;  %v3250_v33 = vld [vmem:[%s4045_s1 + $0x420] sm:$0xff]  }
  0x6e   :  { %2884 = vmatpush3.bf16.msra.mxu1 %v3184_v35  ;;  %2863 = vmatprep.subr.bf16.mxu0 %v3185_v36  ;;  %v3252_v35 = vld [vmem:[%s4045_s1 + $0x4a0] sm:$0xff]   ;;  %v3253_v36 = vld [vmem:[%s4045_s1 + $0x468] sm:$0xff]  }
  0x6f   :  { %2885 = vmatprep.subr.bf16.mxu1 %v3187_v38  ;;  %v3255_v38 = vld [vmem:[%s4045_s1 + $0x4e8] sm:$0xff]  }
  0x71   :  { %2864 = vmatpush3.bf16.msra.mxu0 %v3186_v37  ;;  %v3254_v37 = vld [vmem:[%s4045_s1 + $0x428] sm:$0xff]  }
  0x72   :  { %2886 = vmatpush3.bf16.msra.mxu1 %v3191_v41  ;;  %2893 = vmatprep.subr.bf16.mxu0 %v3192_v42  ;;  %v3258_v41 = vld [vmem:[%s4045_s1 + $0x430] sm:$0xff]  }
  0x73   :  { %2915 = vmatprep.subr.bf16.mxu1 %v3197_v46  ;;  %v3259_v42 = vld [vmem:[%s4045_s1 + $0x4f0] sm:$0xff]   ;;  %v3263_v46 = vld [vmem:[%s4045_s1 + $0x4f8] sm:$0xff]  }
  0x74   :  { %2115 = vmatmul.mubr.bf16.vlgmr.msra.gmra.mrb[8].mxu0 %v3188_v39  ;;  %v3256_v39 = vld [vmem:[%s4045_s1 + $0x4a8] sm:$0xff]  }
  0x75   :  { %2894 = vmatpush3.bf16.msra.mxu0 %v3196_v45  ;;  %2156 = vmatmul.mubr.bf16.vlgmr.msra.gmra.mrb[8].mxu1 %v3193_v43  ;;  %v3260_v43 = vld [vmem:[%s4045_s1 + $0x4b0] sm:$0xff]   ;;  %v3262_v45 = vld [vmem:[%s4045_s1 + $0x438] sm:$0xff]  }
  0x76   :  { %2916 = vmatpush3.bf16.msra.mxu1 %v3198_v47  ;;  %2895 = vmatprep.subr.bf16.mxu0 %v3199_v48  ;;  %v3264_v47 = vld [vmem:[#allocation2 + $0x40] ss:$108 sps:$4 sm:$0xff]   ;;  %v3266_v48 = vld [vmem:[#allocation2 + $0x44] ss:$108 sps:$4 sm:$0xff]  }
  0x77   :  { %2917 = vmatprep.subr.bf16.mxu1 %v3201_v50  ;;  %2196 = vmatprep.mubr.bf16.mxu0 %v3228_v12  ;;  %v3268_v50 = vld [vmem:[%s4045_s1 + $0x540] sm:$0xff]   ;;  %v3295_v12 = vld [vmem:[%s4045_s1 + $0x570] sm:$0xff]  }
  0x78   :  { %2237 = vmatprep.mubr.bf16.mxu1 %v3233_v16  ;;  %v3299_v16 = vld [vmem:[%s4045_s1 + $0x578] sm:$0xff]  }
  0x79   :  { %2896 = vmatpush3.bf16.msra.mxu0 %v3200_v49  ;;  %v3267_v49 = vld [vmem:[%s4045_s1 + $0x4b8] sm:$0xff]  }
  0x7a   :  { %2918 = vmatpush3.bf16.msra.mxu1 %v3202_v51  ;;  %2897 = vmatprep.subr.bf16.mxu0 %v3203_v52  ;;  %v3269_v51 = vld [vmem:[#allocation2 + $0x48] ss:$108 sps:$4 sm:$0xff]   ;;  %v3271_v52 = vld [vmem:[#allocation2 + $0x4c] ss:$108 sps:$4 sm:$0xff]  }
  0x7b   :  { %2919 = vmatprep.subr.bf16.mxu1 %v3205_v54  ;;  %v3273_v54 = vld [vmem:[%s4045_s1 + $0x5c0] sm:$0xff]  }
  0x7d   :  { %2898 = vmatpush3.bf16.msra.mxu0 %v3204_v53  ;;  %v3272_v53 = vld [vmem:[%s4045_s1 + $0x500] sm:$0xff]  }
  0x7e   :  { %2920 = vmatpush3.bf16.msra.mxu1 %v3206_v55  ;;  %2899 = vmatprep.subr.bf16.mxu0 %v3207_v56  ;;  %v3274_v55 = vld [vmem:[%s4045_s1 + $0x580] sm:$0xff]   ;;  %v3275_v56 = vld [vmem:[%s4045_s1 + $0x548] sm:$0xff]  }
  0x7f   :  { %2921 = vmatprep.subr.bf16.mxu1 %v3209_v58  ;;  %v3277_v58 = vld [vmem:[%s4045_s1 + $0x5c8] sm:$0xff]  }
  0x81   :  { %2900 = vmatpush3.bf16.msra.mxu0 %v3208_v57  ;;  %v3276_v57 = vld [vmem:[%s4045_s1 + $0x508] sm:$0xff]  }
  0x82   :  { %2922 = vmatpush3.bf16.msra.mxu1 %v3210_v59  ;;  %2901 = vmatprep.subr.bf16.mxu0 %v3211_v60  ;;  %v3278_v59 = vld [vmem:[%s4045_s1 + $0x588] sm:$0xff]   ;;  %v3279_v60 = vld [vmem:[%s4045_s1 + $0x550] sm:$0xff]  }
  0x83   :  { %2923 = vmatprep.subr.bf16.mxu1 %v3213_v62  ;;  %v3281_v62 = vld [vmem:[%s4045_s1 + $0x5d0] sm:$0xff]  }
  0x85   :  { %2902 = vmatpush3.bf16.msra.mxu0 %v3212_v61  ;;  %v3280_v61 = vld [vmem:[%s4045_s1 + $0x510] sm:$0xff]  }
  0x86   :  { %2924 = vmatpush3.bf16.msra.mxu1 %v3214_v63  ;;  %2903 = vmatprep.subr.bf16.mxu0 %v3215_v0  ;;  %v3282_v63 = vld [vmem:[%s4045_s1 + $0x590] sm:$0xff]   ;;  %v3283_v0 = vld [vmem:[%s4045_s1 + $0x558] sm:$0xff]  }
  0x87   :  { %2925 = vmatprep.subr.bf16.mxu1 %v3217_v2  ;;  %v3285_v2 = vld [vmem:[%s4045_s1 + $0x5d8] sm:$0xff]  }
  0x89   :  { %2904 = vmatpush3.bf16.msra.mxu0 %v3216_v1  ;;  %v3284_v1 = vld [vmem:[%s4045_s1 + $0x518] sm:$0xff]  }
  0x8a   :  { %2926 = vmatpush3.bf16.msra.mxu1 %v3218_v3  ;;  %2905 = vmatprep.subr.bf16.mxu0 %v3219_v4  ;;  %v3286_v3 = vld [vmem:[%s4045_s1 + $0x598] sm:$0xff]   ;;  %v3287_v4 = vld [vmem:[%s4045_s1 + $0x560] sm:$0xff]  }
  0x8b   :  { %2927 = vmatprep.subr.bf16.mxu1 %v3221_v6  ;;  %v3289_v6 = vld [vmem:[%s4045_s1 + $0x5e0] sm:$0xff]  }
  0x8d   :  { %2906 = vmatpush3.bf16.msra.mxu0 %v3220_v5  ;;  %v3288_v5 = vld [vmem:[%s4045_s1 + $0x520] sm:$0xff]  }
  0x8e   :  { %2928 = vmatpush3.bf16.msra.mxu1 %v3222_v7  ;;  %2907 = vmatprep.subr.bf16.mxu0 %v3223_v8  ;;  %v3290_v7 = vld [vmem:[%s4045_s1 + $0x5a0] sm:$0xff]   ;;  %v3291_v8 = vld [vmem:[%s4045_s1 + $0x568] sm:$0xff]  }
  0x8f   :  { %2929 = vmatprep.subr.bf16.mxu1 %v3225_v10  ;;  %v3293_v10 = vld [vmem:[%s4045_s1 + $0x5e8] sm:$0xff]  }
  0x91   :  { %2908 = vmatpush3.bf16.msra.mxu0 %v3224_v9  ;;  %v3292_v9 = vld [vmem:[%s4045_s1 + $0x528] sm:$0xff]  }
  0x92   :  { %2930 = vmatpush3.bf16.msra.mxu1 %v3229_v13  ;;  %2937 = vmatprep.subr.bf16.mxu0 %v3230_v14  ;;  %v3296_v13 = vld [vmem:[%s4045_s1 + $0x530] sm:$0xff]  }
  0x93   :  { %2959 = vmatprep.subr.bf16.mxu1 %v3235_v18  ;;  %v3297_v14 = vld [vmem:[%s4045_s1 + $0x5f0] sm:$0xff]   ;;  %v3301_v18 = vld [vmem:[%s4045_s1 + $0x5f8] sm:$0xff]  }
  0x94   :  { %2197 = vmatmul.mubr.bf16.vlgmr.msra.gmra.mrb[12].mxu0 %v3226_v11  ;;  %v3294_v11 = vld [vmem:[%s4045_s1 + $0x5a8] sm:$0xff]  }
  0x95   :  { %2938 = vmatpush3.bf16.msra.mxu0 %v3234_v17  ;;  %2238 = vmatmul.mubr.bf16.vlgmr.msra.gmra.mrb[12].mxu1 %v3231_v15  ;;  %v3298_v15 = vld [vmem:[%s4045_s1 + $0x5b0] sm:$0xff]   ;;  %v3300_v17 = vld [vmem:[%s4045_s1 + $0x538] sm:$0xff]  }
  0x96   :  { %2960 = vmatpush3.bf16.msra.mxu1 %v3236_v19  ;;  %2939 = vmatprep.subr.bf16.mxu0 %v3237_v20  ;;  %v3302_v19 = vld [vmem:[#allocation2 + $0x50] ss:$108 sps:$4 sm:$0xff]   ;;  %v3304_v20 = vld [vmem:[#allocation2 + $0x54] ss:$108 sps:$4 sm:$0xff]  }
  0x97   :  { %2961 = vmatprep.subr.bf16.mxu1 %v3239_v22  ;;  %2278 = vmatprep.mubr.bf16.mxu0 %v3266_v48  ;;  %v3306_v22 = vld [vmem:[%s4045_s1 + $0x640] sm:$0xff]   ;;  %v3331_v48 = vld [vmem:[%s4045_s1 + $0x638] sm:$0xff]  }
  0x98   :  { %2319 = vmatprep.mubr.bf16.mxu1 %v3271_v52 }
  0x99   :  { %2940 = vmatpush3.bf16.msra.mxu0 %v3238_v21  ;;  %v3305_v21 = vld [vmem:[%s4045_s1 + $0x5b8] sm:$0xff]  }
  0x9a   :  { %2962 = vmatpush3.bf16.msra.mxu1 %v3240_v23  ;;  %2941 = vmatprep.subr.bf16.mxu0 %v3241_v24  ;;  %v3307_v23 = vld [vmem:[#allocation2 + $0x58] ss:$108 sps:$4 sm:$0xff]   ;;  %v3309_v24 = vld [vmem:[#allocation2 + $0x5c] ss:$108 sps:$4 sm:$0xff]  }
  0x9b   :  { %2963 = vmatprep.subr.bf16.mxu1 %v3243_v26  ;;  %v3364_v26 = vmov 0.0  }
  0x9d   :  { %2942 = vmatpush3.bf16.msra.mxu0 %v3242_v25  ;;  %v3310_v25 = vld [vmem:[%s4045_s1 + $0x600] sm:$0xff]  }
  0x9e   :  { %2964 = vmatpush3.bf16.msra.mxu1 %v3244_v27  ;;  %2943 = vmatprep.subr.bf16.mxu0 %v3245_v28  ;;  %v3311_v27 = vld [vmem:[%s4045_s1 + $0x680] sm:$0xff]   ;;  %v3312_v28 = vld [vmem:[%s4045_s1 + $0x648] sm:$0xff]  }
  0x9f   :  { %2965 = vmatprep.subr.bf16.mxu1 %v3247_v30  ;;  %v3314_v30 = vld [vmem:[%s4045_s1 + $0x688] sm:$0xff]  }
  0xa1   :  { %2944 = vmatpush3.bf16.msra.mxu0 %v3246_v29  ;;  %v3313_v29 = vld [vmem:[%s4045_s1 + $0x608] sm:$0xff]  }
  0xa2   :  { %2966 = vmatpush3.bf16.msra.mxu1 %v3248_v31  ;;  %2945 = vmatprep.subr.bf16.mxu0 %v3249_v32  ;;  %v3315_v31 = vld [vmem:[%s4045_s1 + $0x650] sm:$0xff]  }
  0xa3   :  { %2967 = vmatprep.subr.bf16.mxu1 %v3251_v34  ;;  %v3316_v32 = vld [vmem:[%s4045_s1 + $0x610] sm:$0xff]   ;;  %v3318_v34 = vld [vmem:[%s4045_s1 + $0x658] sm:$0xff]  }
  0xa5   :  { %2946 = vmatpush3.bf16.msra.mxu0 %v3250_v33  ;;  %v3317_v33 = vld [vmem:[%s4045_s1 + $0x690] sm:$0xff]  }
  0xa6   :  { %2968 = vmatpush3.bf16.msra.mxu1 %v3252_v35  ;;  %2947 = vmatprep.subr.bf16.mxu0 %v3253_v36  ;;  %v3319_v35 = vld [vmem:[%s4045_s1 + $0x618] sm:$0xff]  }
  0xa7   :  { %2969 = vmatprep.subr.bf16.mxu1 %v3255_v38  ;;  %v3320_v36 = vld [vmem:[%s4045_s1 + $0x698] sm:$0xff]   ;;  %v3322_v38 = vld [vmem:[%s4045_s1 + $0x620] sm:$0xff]  }
  0xa9   :  { %2948 = vmatpush3.bf16.msra.mxu0 %v3254_v37  ;;  %v3321_v37 = vld [vmem:[%s4045_s1 + $0x660] sm:$0xff]  }
  0xaa   :  { %2970 = vmatpush3.bf16.msra.mxu1 %v3256_v39  ;;  %2949 = vmatprep.subr.bf16.mxu0 %v3257_v40  ;;  %v3323_v39 = vld [vmem:[%s4045_s1 + $0x6a0] sm:$0xff]   ;;  %v3324_v40 = vld [vmem:[%s4045_s1 + $0x668] sm:$0xff]  }
  0xab   :  { %2971 = vmatprep.subr.bf16.mxu1 %v3259_v42  ;;  %v3326_v42 = vld [vmem:[%s4045_s1 + $0x6a8] sm:$0xff]  }
  0xad   :  { %2950 = vmatpush3.bf16.msra.mxu0 %v3258_v41  ;;  %v3325_v41 = vld [vmem:[%s4045_s1 + $0x628] sm:$0xff]  }
  0xae   :  { %2972 = vmatpush3.bf16.msra.mxu1 %v3260_v43  ;;  %2951 = vmatprep.subr.bf16.mxu0 %v3261_v44  ;;  %v3327_v43 = vld [vmem:[%s4045_s1 + $0x670] sm:$0xff]  }
  0xaf   :  { %2973 = vmatprep.subr.bf16.mxu1 %v3263_v46  ;;  %v3328_v44 = vld [vmem:[%s4045_s1 + $0x630] sm:$0xff]   ;;  %v3330_v46 = vld [vmem:[%s4045_s1 + $0x678] sm:$0xff]  }
  0xb1   :  { %2952 = vmatpush3.bf16.msra.mxu0 %v3262_v45  ;;  %v3329_v45 = vld [vmem:[%s4045_s1 + $0x6b0] sm:$0xff]  }
  0xb2   :  { %2974 = vmatpush3.bf16.msra.mxu1 %v3267_v49  ;;  %2981 = vmatprep.subr.bf16.mxu0 %v3268_v50  ;;  %v3335_v49 = vld [vmem:[%s4045_s1 + $0x6b8] sm:$0xff]   ;;  %v3332_v50 = vld [vmem:[#allocation2 + $0x60] ss:$108 sps:$4 sm:$0xff]  }
  0xb3   :  { %3003 = vmatprep.subr.bf16.mxu1 %v3273_v54 }
  0xb4   :  { %2279 = vmatmul.mubr.bf16.vlgmr.msra.gmra.mrb[16].mxu0 %v3264_v47  ;;  %v3334_v47 = vld [vmem:[#allocation2 + $0x64] ss:$108 sps:$4 sm:$0xff]  }
  0xb5   :  { %2982 = vmatpush3.bf16.msra.mxu0 %v3272_v53  ;;  %2320 = vmatmul.mubr.bf16.vlgmr.msra.gmra.mrb[16].mxu1 %v3269_v51  ;;  %v3336_v51 = vld [vmem:[#allocation2 + $0x68] ss:$108 sps:$4 sm:$0xff]  }
  0xb6   :  { %3004 = vmatpush3.bf16.msra.mxu1 %v3274_v55  ;;  %2983 = vmatprep.subr.bf16.mxu0 %v3275_v56 }
  0xb7   :  { %3005 = vmatprep.subr.bf16.mxu1 %v3277_v58  ;;  %2360 = vmatprep.mubr.bf16.mxu0 %v3304_v20 }
  0xb8   :  { %2401 = vmatprep.mubr.bf16.mxu1 %v3309_v24 }
  0xb9   :  { %2984 = vmatpush3.bf16.msra.mxu0 %v3276_v57 }
  0xba   :  { %3006 = vmatpush3.bf16.msra.mxu1 %v3278_v59  ;;  %2985 = vmatprep.subr.bf16.mxu0 %v3279_v60 }
  0xbb   :  { %3007 = vmatprep.subr.bf16.mxu1 %v3281_v62 }
  0xbd   :  { %2986 = vmatpush3.bf16.msra.mxu0 %v3280_v61 }
  0xbe   :  { %3008 = vmatpush3.bf16.msra.mxu1 %v3282_v63  ;;  %2987 = vmatprep.subr.bf16.mxu0 %v3283_v0 }
  0xbf   :  { %3009 = vmatprep.subr.bf16.mxu1 %v3285_v2 }
  0xc1   :  { %2988 = vmatpush3.bf16.msra.mxu0 %v3284_v1 }
  0xc2   :  { %3010 = vmatpush3.bf16.msra.mxu1 %v3286_v3  ;;  %2989 = vmatprep.subr.bf16.mxu0 %v3287_v4 }
  0xc3   :  { %3011 = vmatprep.subr.bf16.mxu1 %v3289_v6 }
  0xc5   :  { %2990 = vmatpush3.bf16.msra.mxu0 %v3288_v5 }
  0xc6   :  { %3012 = vmatpush3.bf16.msra.mxu1 %v3290_v7  ;;  %2991 = vmatprep.subr.bf16.mxu0 %v3291_v8 }
  0xc7   :  { %3013 = vmatprep.subr.bf16.mxu1 %v3293_v10 }
  0xc9   :  { %2992 = vmatpush3.bf16.msra.mxu0 %v3292_v9 }
  0xca   :  { %3014 = vmatpush3.bf16.msra.mxu1 %v3294_v11  ;;  %2993 = vmatprep.subr.bf16.mxu0 %v3295_v12 }
  0xcb   :  { %3015 = vmatprep.subr.bf16.mxu1 %v3297_v14 }
  0xcd   :  { %2994 = vmatpush3.bf16.msra.mxu0 %v3296_v13 }
  0xce   :  { %3016 = vmatpush3.bf16.msra.mxu1 %v3298_v15  ;;  %2995 = vmatprep.subr.bf16.mxu0 %v3299_v16 }
  0xcf   :  { %3017 = vmatprep.subr.bf16.mxu1 %v3301_v18 }
  0xd1   :  { %2996 = vmatpush3.bf16.msra.mxu0 %v3300_v17 }
  0xd2   :  { %3018 = vmatpush3.bf16.msra.mxu1 %v3305_v21  ;;  %3025 = vmatprep.subr.bf16.mxu0 %v3306_v22 }
  0xd3   :  { %3056 = vmatprep.subr.bf16.mxu1 %v3364_v26 }
  0xd4   :  { %2361 = vmatmul.mubr.bf16.vlgmr.msra.gmra.mrb[20].mxu0 %v3302_v19 }
  0xd5   :  { %3026 = vmatpush3.bf16.msra.mxu0 %v3310_v25  ;;  %2402 = vmatmul.mubr.bf16.vlgmr.msra.gmra.mrb[20].mxu1 %v3307_v23 }
  0xd6   :  { %3057 = vmatpush3.bf16.msra.mxu1 %v3311_v27  ;;  %3072 = vmatprep.mubr.msk.bf16.mxu1 %vm3365_vm0, %v3364_v26 }
  0xd7   :  { %3027 = vmatprep.subr.bf16.mxu0 %v3312_v28  ;;  %3058 = vmatprep.subr.bf16.mxu1 %v3364_v26 }
  0xd8   :  { %2442 = vmatprep.mubr.bf16.mxu0 %v3334_v47 }
  0xd9   :  { %3028 = vmatpush3.bf16.msra.mxu0 %v3313_v29 }
  0xda   :  { %3059 = vmatpush3.bf16.msra.mxu1 %v3314_v30  ;;  %3029 = vmatprep.subr.bf16.mxu0 %v3315_v31 }
  0xdb   :  { %3060 = vmatprep.subr.bf16.mxu1 %v3364_v26 }
  0xdd   :  { %3030 = vmatpush3.bf16.msra.mxu0 %v3316_v32 }
  0xde   :  { %3061 = vmatpush3.bf16.msra.mxu1 %v3317_v33  ;;  %3031 = vmatprep.subr.bf16.mxu0 %v3318_v34 }
  0xdf   :  { %3062 = vmatprep.subr.bf16.mxu1 %v3364_v26 }
  0xe1   :  { %3032 = vmatpush3.bf16.msra.mxu0 %v3319_v35 }
  0xe2   :  { %3063 = vmatpush3.bf16.msra.mxu1 %v3320_v36  ;;  %3033 = vmatprep.subr.bf16.mxu0 %v3321_v37 }
  0xe3   :  { %3064 = vmatprep.subr.bf16.mxu1 %v3364_v26 }
  0xe5   :  { %3034 = vmatpush3.bf16.msra.mxu0 %v3322_v38 }
  0xe6   :  { %3065 = vmatpush3.bf16.msra.mxu1 %v3323_v39  ;;  %3035 = vmatprep.subr.bf16.mxu0 %v3324_v40 }
  0xe7   :  { %3066 = vmatprep.subr.bf16.mxu1 %v3364_v26 }
  0xe9   :  { %3036 = vmatpush3.bf16.msra.mxu0 %v3325_v41 }
  0xea   :  { %3067 = vmatpush3.bf16.msra.mxu1 %v3326_v42  ;;  %3037 = vmatprep.subr.bf16.mxu0 %v3327_v43 }
  0xeb   :  { %3068 = vmatprep.subr.bf16.mxu1 %v3364_v26 }
  0xed   :  { %3038 = vmatpush3.bf16.msra.mxu0 %v3328_v44 }
  0xee   :  { %3069 = vmatpush3.bf16.msra.mxu1 %v3329_v45  ;;  %3039 = vmatprep.subr.bf16.mxu0 %v3330_v46 }
  0xef   :  { %3070 = vmatprep.subr.bf16.mxu1 %v3364_v26 }
  0xf1   :  { %3040 = vmatpush3.bf16.msra.mxu0 %v3331_v48 }
  0xf2   :  { %3071 = vmatpush3.bf16.msra.mxu1 %v3335_v49 }
  0xf4   :  { %2443 = vmatmul.mubr.bf16.vlgmr.msra.gmra.mrb[24].mxu0 %v3332_v50 }
  0xf5   :  { %3073 = vmatmul.mubr.bf16.vlgmr.msra.gmra.mrb[24].mxu1 %v3336_v51 }
 0x107   :  { %v2777_v52 = vpop.f32.mrb[0].mxu0 }
 0x108   :  { %v2799_v53 = vpop.f32.mrb[0].mxu1  ;;  %v2778_v54 = vpop.f32.mrb[1].mxu0 }
 0x109   :  { %v2779_v55 = vadd.f32 %v2778_v54, %v2777_v52  ;;  %v2800_v56 = vpop.f32.mrb[1].mxu1  ;;  %v2780_v57 = vpop.f32.mrb[2].mxu0 }
 0x10a   :  { %v2801_v58 = vadd.f32 %v2800_v56, %v2799_v53  ;;  %v2802_v59 = vpop.f32.mrb[2].mxu1  ;;  %v2781_v60 = vpop.f32.mrb[3].mxu0 }
 0x10b   :  { %v2782_v61 = vadd.f32 %v2781_v60, %v2780_v57  ;;  %v2803_v62 = vpop.f32.mrb[3].mxu1 }
 0x10c   :  { %v1994_v63 = vadd.f32 %v2801_v58, %v2779_v55  ;;  %v2804_v0 = vadd.f32 %v2803_v62, %v2802_v59 }
 0x10e   :  { %v1997_v1 = vadd.f32 %v2804_v0, %v2782_v61 }
 0x127   :  { %v2821_v2 = vpop.f32.mrb[4].mxu0 }
 0x128   :  { %v2822_v3 = vpop.f32.mrb[5].mxu0  ;;  %v2843_v8 = vpop.f32.mrb[4].mxu1 }
 0x129   :  { %v2823_v4 = vadd.f32 %v2822_v3, %v2821_v2  ;;  %v2824_v5 = vpop.f32.mrb[6].mxu0  ;;  %v2844_v10 = vpop.f32.mrb[5].mxu1 }
 0x12a   :  { %v2825_v6 = vpop.f32.mrb[7].mxu0  ;;  %v2845_v12 = vadd.f32 %v2844_v10, %v2843_v8  ;;  %v2846_v13 = vpop.f32.mrb[6].mxu1 }
 0x12b   :  { %v2035_v7 = vadd.f32 %v2823_v4, %v1994_v63  ;;  %v2826_v9 = vadd.f32 %v2825_v6, %v2824_v5  ;;  %v2847_v14 = vpop.f32.mrb[7].mxu1 }
 0x12c   :  { %v2848_v16 = vadd.f32 %v2847_v14, %v2846_v13 }
 0x12d   :  { %v2038_v11 = vadd.f32 %v2826_v9, %v1997_v1  ;;  %v2076_v15 = vadd.f32 %v2845_v12, %v2035_v7 }
 0x12f   :  { %v2079_v17 = vadd.f32 %v2848_v16, %v2038_v11 }
 0x147   :  { %v2865_v18 = vpop.f32.mrb[8].mxu0 }
 0x148   :  { %v2866_v19 = vpop.f32.mrb[9].mxu0  ;;  %v2887_v22 = vpop.f32.mrb[8].mxu1 }
 0x149   :  { %v2867_v20 = vadd.f32 %v2866_v19, %v2865_v18  ;;  %v2868_v21 = vpop.f32.mrb[10].mxu0  ;;  %v2888_v26 = vpop.f32.mrb[9].mxu1 }
 0x14a   :  { %v2869_v23 = vpop.f32.mrb[11].mxu0  ;;  %v2889_v27 = vadd.f32 %v2888_v26, %v2887_v22  ;;  %v2890_v28 = vpop.f32.mrb[10].mxu1 }
 0x14b   :  { %v2117_v24 = vadd.f32 %v2867_v20, %v2076_v15  ;;  %v2870_v25 = vadd.f32 %v2869_v23, %v2868_v21  ;;  %v2891_v30 = vpop.f32.mrb[11].mxu1 }
 0x14c   :  { %v2892_v32 = vadd.f32 %v2891_v30, %v2890_v28 }
 0x14d   :  { %v2120_v29 = vadd.f32 %v2870_v25, %v2079_v17  ;;  %v2158_v31 = vadd.f32 %v2889_v27, %v2117_v24 }
 0x14f   :  { %v2161_v33 = vadd.f32 %v2892_v32, %v2120_v29 }
 0x167   :  { %v2909_v34 = vpop.f32.mrb[12].mxu0 }
 0x168   :  { %v2910_v35 = vpop.f32.mrb[13].mxu0  ;;  %v2931_v38 = vpop.f32.mrb[12].mxu1 }
 0x169   :  { %v2911_v36 = vadd.f32 %v2910_v35, %v2909_v34  ;;  %v2912_v37 = vpop.f32.mrb[14].mxu0  ;;  %v2932_v42 = vpop.f32.mrb[13].mxu1 }
 0x16a   :  { %v2913_v39 = vpop.f32.mrb[15].mxu0  ;;  %v2933_v43 = vadd.f32 %v2932_v42, %v2931_v38  ;;  %v2934_v44 = vpop.f32.mrb[14].mxu1 }
 0x16b   :  { %v2199_v40 = vadd.f32 %v2911_v36, %v2158_v31  ;;  %v2914_v41 = vadd.f32 %v2913_v39, %v2912_v37  ;;  %v2935_v46 = vpop.f32.mrb[15].mxu1 }
 0x16c   :  { %v2936_v48 = vadd.f32 %v2935_v46, %v2934_v44 }
 0x16d   :  { %v2202_v45 = vadd.f32 %v2914_v41, %v2161_v33  ;;  %v2240_v47 = vadd.f32 %v2933_v43, %v2199_v40 }
 0x16f   :  { %v2243_v49 = vadd.f32 %v2936_v48, %v2202_v45 }
 0x187   :  { %v2953_v50 = vpop.f32.mrb[16].mxu0 }
 0x188   :  { %v2954_v51 = vpop.f32.mrb[17].mxu0  ;;  %v2975_v56 = vpop.f32.mrb[16].mxu1 }
 0x189   :  { %v2955_v52 = vadd.f32 %v2954_v51, %v2953_v50  ;;  %v2956_v53 = vpop.f32.mrb[18].mxu0  ;;  %v2976_v58 = vpop.f32.mrb[17].mxu1 }
 0x18a   :  { %v2957_v54 = vpop.f32.mrb[19].mxu0  ;;  %v2977_v60 = vadd.f32 %v2976_v58, %v2975_v56  ;;  %v2978_v61 = vpop.f32.mrb[18].mxu1 }
 0x18b   :  { %v2281_v55 = vadd.f32 %v2955_v52, %v2240_v47  ;;  %v2958_v57 = vadd.f32 %v2957_v54, %v2956_v53  ;;  %v2979_v62 = vpop.f32.mrb[19].mxu1 }
 0x18c   :  { %v2980_v0 = vadd.f32 %v2979_v62, %v2978_v61 }
 0x18d   :  { %v2284_v59 = vadd.f32 %v2958_v57, %v2243_v49  ;;  %v2322_v63 = vadd.f32 %v2977_v60, %v2281_v55 }
 0x18f   :  { %v2325_v1 = vadd.f32 %v2980_v0, %v2284_v59 }
 0x1a7   :  { %v2997_v2 = vpop.f32.mrb[20].mxu0 }
 0x1a8   :  { %v2998_v3 = vpop.f32.mrb[21].mxu0  ;;  %v3019_v6 = vpop.f32.mrb[20].mxu1 }
 0x1a9   :  { %v2999_v4 = vadd.f32 %v2998_v3, %v2997_v2  ;;  %v3000_v5 = vpop.f32.mrb[22].mxu0  ;;  %v3020_v10 = vpop.f32.mrb[21].mxu1 }
 0x1aa   :  { %v3001_v7 = vpop.f32.mrb[23].mxu0  ;;  %v3021_v11 = vadd.f32 %v3020_v10, %v3019_v6  ;;  %v3022_v12 = vpop.f32.mrb[22].mxu1 }
 0x1ab   :  { %v2363_v8 = vadd.f32 %v2999_v4, %v2322_v63  ;;  %v3002_v9 = vadd.f32 %v3001_v7, %v3000_v5  ;;  %v3023_v14 = vpop.f32.mrb[23].mxu1 }
 0x1ac   :  { %v3024_v16 = vadd.f32 %v3023_v14, %v3022_v12 }
 0x1ad   :  { %v2366_v13 = vadd.f32 %v3002_v9, %v2325_v1  ;;  %v2404_v15 = vadd.f32 %v3021_v11, %v2363_v8 }
 0x1af   :  { %v2407_v17 = vadd.f32 %v3024_v16, %v2366_v13 }
 0x1c7   :  { %v3041_v18 = vpop.f32.mrb[24].mxu0 }
 0x1c8   :  { %v3042_v19 = vpop.f32.mrb[25].mxu0  ;;  %v2485_v20 = vpop.f32.mrb[24].mxu1 }
 0x1c9   :  { %v3043_v21 = vadd.f32 %v3042_v19, %v3041_v18  ;;  %v3044_v22 = vpop.f32.mrb[26].mxu0  ;;  %v3074_v23 = vpop.f32.mrb[25].mxu1 }
 0x1ca   :  { %v3045_v24 = vpop.f32.mrb[27].mxu0  ;;  %v2488_v25 = vpop.f32.mrb[26].mxu1 }
 0x1cb   :  { %v2445_v26 = vadd.f32 %v3043_v21, %v2404_v15  ;;  %v3046_v27 = vadd.f32 %v3045_v24, %v3044_v22  ;;  %v3075_v28 = vpop.f32.mrb[27].mxu1 }
 0x1cd   :  { %v2486_v29 = vadd.f32 %v2485_v20, %v2445_v26  ;;  %v2448_v30 = vadd.f32 %v3046_v27, %v2407_v17 }
 0x1cf   :  { %v2489_v31 = vadd.f32 %v2488_v25, %v2448_v30  ;;  %v2492_v32 = vmax.f32 %v2486_v29, 0.0 }
 0x1d1   :  { %v2493_v33 = vmax.f32 %v2489_v31, 0.0 }
 0x1d3   :  { %v2759_v34 = vpack.c.bf16 %v2493_v33, %v2492_v32 }
 0x1d5   :  { %2760 = vst [vmem:[%s4046_s2] sm:$0xff] %v2759_v34  }
 0x1d6   :  { %2508 = vsyncpa [#allocation3], 1 }

</bundles_post_ra>
